<compile_context>
chip_gen: v5e
topology: v5e:2x2
jax: 0.10.0
libtpu: 0.0.40
codegen_flags: <defaults>
</compile_context>

<pallas_src>
import functools

import jax
import jax.numpy as jnp
from jax.experimental import pallas as pl
from jax.experimental.pallas import tpu as pltpu


_NEG_SLOPE = 0.2
_BN_EPS = 1e-5


def _round_up(x, m):
    return ((x + m - 1) // m) * m


@functools.lru_cache(maxsize=1)
def _vmem_capacity_bytes():
    """Physical per-core VMEM (conservative fallback = v7x's 64 MiB)."""
    try:
        cap = getattr(pltpu.get_tpu_info(), "vmem_capacity_bytes", None)
        if cap:
            return int(cap)
    except Exception:
        pass
    return 64 * 1024 * 1024


def _vmem_limit_bytes(footprint):
    """Per-call scoped-VMEM limit: 2x analytic tile footprint + headroom,
    clamped to half the physical VMEM (32 MiB on v7x, 64 MiB on v5e/v6e)."""
    cap = _vmem_capacity_bytes()
    return int(min(max(2 * footprint + (4 << 20), 16 << 20), cap // 2))


def _choose_tm(M, K, C):
    """Pick an M-tile size.  Prefer (a) a single full tile, (b) a divisor of M
    (no pad / slice copies) that is a multiple of 16 (bf16 native sublanes),
    (c) padding as a last resort.  Cap is derived from a VMEM budget that
    includes the f32 matmul / squared intermediates of the stats kernel."""
    budget = min(20 << 20, _vmem_capacity_bytes() // 4)
    cap = 512
    while cap > 16:
        need = (3 * cap * K * 2      # patch tiles, up to triple-buffered bf16
                + 2 * cap * C * 2    # double-buffered bf16 outputs
                + K * C * 2          # resident bf16 weights
                + 2 * cap * C * 4)   # f32 matmul result + squared intermediate
        if need <= budget:
            break
        cap //= 2
    if M <= cap:
        return M, M                  # single tile (full-dim block), no padding
    for step in (16, 8):             # divisor of M -> no pad / slice copies
        tm = cap - cap % step
        while tm >= step:
            if M % tm == 0:
                return tm, M
            tm -= step
    tm = max(16, cap - cap % 16)     # fall back to padding
    return tm, _round_up(M, tm)


# ----------------------------------------------------------------------------
# Pallas kernels
# ----------------------------------------------------------------------------
def _conv_bias_lrelu_kernel(p_ref, w_ref, b_ref, o_ref, *, negative_slope):
    """Layer-1 fused tile: (TM,K)@(K,C) + bias + LeakyReLU -> bf16."""
    y = jnp.dot(p_ref[...], w_ref[...], preferred_element_type=jnp.float32)
    y = y + b_ref[...]
    o_ref[...] = jnp.where(y >= 0.0, y, negative_slope * y).astype(o_ref.dtype)


def _conv_stats_kernel(p_ref, w_ref, y_ref, sum_ref, sumsq_ref):
    """BN pass-1 tile: matmul (conv bias dropped: cancelled by BN mean
    subtraction), write pre-activation (bf16) and accumulate per-channel
    sum / sumsq (f32) across the M grid axis (marked 'arbitrary')."""
    i = pl.program_id(0)

    @pl.when(i == 0)
    def _():
        sum_ref[...] = jnp.zeros_like(sum_ref)
        sumsq_ref[...] = jnp.zeros_like(sumsq_ref)

    yf = jnp.dot(p_ref[...], w_ref[...], preferred_element_type=jnp.float32)
    y_ref[...] = yf.astype(y_ref.dtype)
    sum_ref[...] += jnp.sum(yf, axis=0, keepdims=True)
    sumsq_ref[...] += jnp.sum(yf * yf, axis=0, keepdims=True)


def _tail_kernel(p_ref, w_ref, gamma_ref, beta_ref, fcw_ref, fcb_ref, out_ref,
                 *, n_imgs, spatial, eps, negative_slope):
    """Fused tail: conv4 matmul + BatchNorm (batch stats, two-pass variance)
    + LeakyReLU + global average pool + Linear(512->1) + Sigmoid."""
    z = jnp.dot(p_ref[...], w_ref[...],
                preferred_element_type=jnp.float32)          # (M, C) f32
    mean = jnp.mean(z, axis=0, keepdims=True)                # (1, C)
    zc = z - mean
    var = jnp.mean(zc * zc, axis=0, keepdims=True)           # biased (training)
    inv_std = jax.lax.rsqrt(var + eps)
    a = zc * (gamma_ref[...] * inv_std) + beta_ref[...]
    a = jnp.where(a >= 0.0, a, negative_slope * a)            # (M, C)
    if spatial == 1:
        pooled = a                                            # (N, C)
    else:
        pooled = jnp.mean(a.reshape(n_imgs, spatial, a.shape[-1]), axis=1)
    logits = jnp.sum(pooled * fcw_ref[...], axis=-1, keepdims=True) + fcb_ref[...]
    out_ref[...] = 1.0 / (1.0 + jnp.exp(-logits))


def _head_kernel(feat_ref, w_ref, b_ref, out_ref):
    """Fallback head (large-M tail): GAP + Linear(512->1) + Sigmoid on an
    already-normalized activation, via a VPU lane reduction."""
    f = feat_ref[...].astype(jnp.float32)                     # (N, S, C)
    pooled = jnp.mean(f, axis=1)                              # (N, C)
    logits = jnp.sum(pooled * w_ref[...], axis=-1, keepdims=True) + b_ref[...]
    out_ref[...] = 1.0 / (1.0 + jnp.exp(-logits))


# ----------------------------------------------------------------------------
# pallas_call wrappers
# ----------------------------------------------------------------------------
def _patch_spec(tm, K, grid_m):
    # Extra pipeline depth only when the grid is long enough for it to matter
    # (hides DMA latency on mem-bound v5e; pure VMEM cost otherwise).
    if grid_m >= 3:
        return pl.BlockSpec((tm, K), lambda i: (i, 0),
                            pipeline_mode=pl.Buffered(3))
    return pl.BlockSpec((tm, K), lambda i: (i, 0))


def _conv1_call(patches, w, b, *, tm):
    M, K = patches.shape
    C = w.shape[1]
    grid_m = M // tm
    fp = 3 * tm * K * 2 + 2 * tm * C * 2 + K * C * 2 + tm * C * 4 + C * 8
    kernel = functools.partial(_conv_bias_lrelu_kernel,
                               negative_slope=_NEG_SLOPE)
    return pl.pallas_call(
        kernel,
        out_shape=jax.ShapeDtypeStruct((M, C), jnp.bfloat16),
        grid=(grid_m,),
        in_specs=[
            _patch_spec(tm, K, grid_m),
            pl.BlockSpec((K, C), lambda i: (0, 0)),     # weights resident
            pl.BlockSpec((1, C), lambda i: (0, 0)),     # bias resident
        ],
        out_specs=pl.BlockSpec((tm, C), lambda i: (i, 0)),
        compiler_params=pltpu.CompilerParams(
            dimension_semantics=("parallel",),
            vmem_limit_bytes=_vmem_limit_bytes(fp)),
    )(patches, w, b)


def _conv_stats_call(patches, w, *, tm):
    M, K = patches.shape
    C = w.shape[1]
    grid_m = M // tm
    fp = 3 * tm * K * 2 + 2 * tm * C * 2 + K * C * 2 + 2 * tm * C * 4 + 2 * C * 4
    return pl.pallas_call(
        _conv_stats_kernel,
        out_shape=(
            jax.ShapeDtypeStruct((M, C), jnp.bfloat16),   # pre-activations
            jax.ShapeDtypeStruct((1, C), jnp.float32),    # per-channel sum
            jax.ShapeDtypeStruct((1, C), jnp.float32),    # per-channel sumsq
        ),
        grid=(grid_m,),
        in_specs=[
            _patch_spec(tm, K, grid_m),
            pl.BlockSpec((K, C), lambda i: (0, 0)),       # weights resident
        ],
        out_specs=(
            pl.BlockSpec((tm, C), lambda i: (i, 0)),
            pl.BlockSpec((1, C), lambda i: (0, 0)),       # accumulator (resident)
            pl.BlockSpec((1, C), lambda i: (0, 0)),       # accumulator (resident)
        ),
        compiler_params=pltpu.CompilerParams(
            dimension_semantics=("arbitrary",),           # stats reduction axis
            vmem_limit_bytes=_vmem_limit_bytes(fp)),
    )(patches, w)


def _tail_call(patches, w, gamma, beta, fcw, fcb, *, n_imgs, spatial):
    M, K = patches.shape
    C = w.shape[1]
    fp = M * K * 2 + K * C * 2 + 3 * M * C * 4 + 6 * C * 4
    kernel = functools.partial(_tail_kernel, n_imgs=n_imgs, spatial=spatial,
                               eps=_BN_EPS, negative_slope=_NEG_SLOPE)
    return pl.pallas_call(
        kernel,
        out_shape=jax.ShapeDtypeStruct((n_imgs, 1), jnp.float32),
        grid=(1,),
        in_specs=[
            pl.BlockSpec((M, K), lambda i: (0, 0)),
            pl.BlockSpec((K, C), lambda i: (0, 0)),
            pl.BlockSpec((1, C), lambda i: (0, 0)),
            pl.BlockSpec((1, C), lambda i: (0, 0)),
            pl.BlockSpec((1, C), lambda i: (0, 0)),
            pl.BlockSpec((1, 1), lambda i: (0, 0)),
        ],
        out_specs=pl.BlockSpec((n_imgs, 1), lambda i: (0, 0)),
        compiler_params=pltpu.CompilerParams(
            dimension_semantics=("arbitrary",),
            vmem_limit_bytes=_vmem_limit_bytes(fp)),
    )(patches, w, gamma, beta, fcw, fcb)


def _head_call(feat, w_row, b):
    N, S, C = feat.shape
    fp = N * S * C * 2 + N * S * C * 4 + 4 * C * 4
    return pl.pallas_call(
        _head_kernel,
        out_shape=jax.ShapeDtypeStruct((N, 1), jnp.float32),
        grid=(1,),
        in_specs=[
            pl.BlockSpec((N, S, C), lambda i: (0, 0, 0)),
            pl.BlockSpec((1, C), lambda i: (0, 0)),
            pl.BlockSpec((1, 1), lambda i: (0, 0)),
        ],
        out_specs=pl.BlockSpec((N, 1), lambda i: (0, 0)),
        compiler_params=pltpu.CompilerParams(
            dimension_semantics=("arbitrary",),
            vmem_limit_bytes=_vmem_limit_bytes(fp)),
    )(feat, w_row, b)


# ----------------------------------------------------------------------------
# Glue: im2col for 3x3 / stride-2 / pad-1 convolutions (bf16, XLA-fused).
# The previous layer's BN affine + LeakyReLU is applied to the input right
# before this, so XLA fuses it into the same pad/slice/concat producer.
# ----------------------------------------------------------------------------
def _im2col_3x3_s2_p1(x_nhwc, pad_cols_to=None):
    """x: (N, H, W, C) -> patches (N*Ho*Wo, max(9*C, pad_cols_to)), (N,Ho,Wo)."""
    N, H, W, C = x_nhwc.shape
    k, stride, pad = 3, 2, 1
    xp = jnp.pad(x_nhwc, ((0, 0), (pad, pad), (pad, pad), (0, 0)))
    Ho = (H + 2 * pad - k) // stride + 1
    Wo = (W + 2 * pad - k) // stride + 1
    cols = []
    for kh in range(k):
        for kw in range(k):
            patch = jax.lax.slice(
                xp,
                (0, kh, kw, 0),
                (N, kh + (Ho - 1) * stride + 1, kw + (Wo - 1) * stride + 1, C),
                (1, stride, stride, 1),
            )  # (N, Ho, Wo, C)
            cols.append(patch)
    Kc = k * k * C
    if pad_cols_to is not None and pad_cols_to > Kc:
        # fold the K padding (e.g. 27 -> 32 for layer 1) into the same concat
        cols.append(jnp.zeros((N, Ho, Wo, pad_cols_to - Kc), x_nhwc.dtype))
        Kc = pad_cols_to
    patches = jnp.concatenate(cols, axis=-1)          # (N, Ho, Wo, Kc)
    return patches.reshape(N * Ho * Wo, Kc), (N, Ho, Wo)


def _leaky_relu(x, negative_slope=_NEG_SLOPE):
    return jnp.where(x >= 0.0, x, negative_slope * x)


def _bn_scale_shift(chan_sum, chan_sumsq, gamma, beta, m_real, eps=_BN_EPS):
    """Per-channel (1,C) finalize: training-mode BN with biased variance.
    NOTE: one-pass E[x^2]-E[x]^2 in f32 (clamped at 0); the fused tail kernel
    uses the numerically safer two-pass form since all rows are resident."""
    mean = chan_sum / m_real
    var = jnp.maximum(chan_sumsq / m_real - mean * mean, 0.0)
    inv_std = jax.lax.rsqrt(var + eps)
    scale = gamma * inv_std
    shift = beta - mean * scale
    return scale, shift


# ----------------------------------------------------------------------------
# Parameters (weights stored in im2col layout; matmul weights in bf16)
# ----------------------------------------------------------------------------
def init_params(key, in_channels=3):
    chans = [in_channels, 64, 128, 256, 512]
    params = {"convs": []}
    keys = jax.random.split(key, 2 * 4 + 2)
    for li in range(4):
        cin, cout = chans[li], chans[li + 1]
        K = 9 * cin
        K_pad = _round_up(K, 8)                        # layer 1: 27 -> 32
        w = jax.random.normal(keys[2 * li], (K, cout),
                              dtype=jnp.float32) * (1.0 / jnp.sqrt(K))
        if K_pad != K:
            w = jnp.pad(w, ((0, K_pad - K), (0, 0)))   # zero rows: no-op taps
        b = jax.random.normal(keys[2 * li + 1], (1, cout),
                              dtype=jnp.float32) * 0.01
        params["convs"].append({
            "w": w.astype(jnp.bfloat16),               # MXU operand dtype
            "b": b,                                    # f32 (only used w/o BN)
            "gamma": jnp.ones((1, cout), jnp.float32),
            "beta": jnp.zeros((1, cout), jnp.float32),
        })
    params["fc_w_row"] = jax.random.normal(
        keys[8], (1, 512), dtype=jnp.float32) * (1.0 / jnp.sqrt(512.0))
    params["fc_b"] = jax.random.normal(keys[9], (1, 1), dtype=jnp.float32) * 0.01
    return params


# ----------------------------------------------------------------------------
# Layer wrappers (handle the rare M-padding fallback)
# ----------------------------------------------------------------------------
def _conv1(patches, w, b):
    M, K = patches.shape
    C = w.shape[1]
    tm, M_pad = _choose_tm(M, K, C)
    if M_pad != M:
        patches = jnp.pad(patches, ((0, M_pad - M), (0, 0)))
    y = _conv1_call(patches, w, b, tm=tm)
    return y[:M] if M_pad != M else y


def _conv_bn_stats(patches, w):
    M, K = patches.shape
    C = w.shape[1]
    tm, M_pad = _choose_tm(M, K, C)
    if M_pad != M:
        # zero rows contribute nothing to the matmul or the BN statistics
        patches = jnp.pad(patches, ((0, M_pad - M), (0, 0)))
    z, s, ss = _conv_stats_call(patches, w, tm=tm)
    if M_pad != M:
        z = z[:M]
    return z, s, ss, M


# ----------------------------------------------------------------------------
# Forward pass
# ----------------------------------------------------------------------------
def image_discriminator_forward(params, x_nchw):
    # Accept NCHW like PyTorch; run internally in NHWC / im2col slabs (bf16).
    x = jnp.transpose(x_nchw, (0, 2, 3, 1)).astype(jnp.bfloat16)  # -> NHWC
    convs = params["convs"]

    # ---- layer 1: Conv + bias + LeakyReLU (no BatchNorm) -------------------
    patches, (N, Ho, Wo) = _im2col_3x3_s2_p1(x, pad_cols_to=convs[0]["w"].shape[0])
    a = _conv1(patches, convs[0]["w"], convs[0]["b"]).reshape(N, Ho, Wo, -1)

    # ---- layers 2-3: Conv + BN-stats kernel; the BN affine + LeakyReLU is
    # ---- applied lazily and fused by XLA into the NEXT layer's im2col ------
    for li in (1, 2):
        layer = convs[li]
        patches, (N, Ho, Wo) = _im2col_3x3_s2_p1(a, pad_cols_to=layer["w"].shape[0])
        z, s, ss, M = _conv_bn_stats(patches, layer["w"])
        scale, shift = _bn_scale_shift(s, ss, layer["gamma"], layer["beta"],
                                       float(M))
        z3d = z.reshape(N, Ho, Wo, -1).astype(jnp.float32)
        a = _leaky_relu(z3d * scale + shift).astype(jnp.bfloat16)

    # ---- layer 4 + head: fused conv + BN + LeakyReLU + GAP + FC + Sigmoid --
    layer = convs[3]
    patches4, (N, Ho4, Wo4) = _im2col_3x3_s2_p1(a, pad_cols_to=layer["w"].shape[0])
    M4, K4 = patches4.shape
    C4 = layer["w"].shape[1]
    tail_fp = M4 * K4 * 2 + K4 * C4 * 2 + 3 * M4 * C4 * 4
    if tail_fp <= min(24 << 20, _vmem_capacity_bytes() // 4):
        out = _tail_call(patches4, layer["w"], layer["gamma"], layer["beta"],
                         params["fc_w_row"], params["fc_b"],
                         n_imgs=N, spatial=Ho4 * Wo4)
    else:
        # Large-M fallback: tiled stats pass, normalize in XLA glue, GAP head.
        z, s, ss, M = _conv_bn_stats(patches4, layer["w"])
        scale, shift = _bn_scale_shift(s, ss, layer["gamma"], layer["beta"],
                                       float(M))
        a4 = _leaky_relu(z.astype(jnp.float32) * scale + shift).astype(jnp.bfloat16)
        feat = a4.reshape(N, Ho4 * Wo4, C4)
        out = _head_call(feat, params["fc_w_row"], params["fc_b"])
    return out                                                     # (N, 1) f32


# ----------------------------------------------------------------------------
if __name__ == "__main__":
    key = jax.random.PRNGKey(0)
    pkey, xkey = jax.random.split(key)
    params = init_params(pkey, in_channels=3)

    # small input consistent with the module: batch=2, channels=3, 16x16 image
    x = jax.random.normal(xkey, (2, 3, 16, 16), dtype=jnp.float32)

    fwd = jax.jit(image_discriminator_forward)
    out = fwd(params, x)
    out = jax.block_until_ready(out)

    assert out.shape == (2, 1), out.shape
    assert bool(jnp.all(jnp.isfinite(out)))
    assert bool(jnp.all((out >= 0.0) & (out <= 1.0)))
    print("KERNEL_OK")
</pallas_src>

<mosaic_0001>
module attributes {stable_mosaic.version = 11 : i64} {
  func.func @_conv_bias_lrelu_kernel(%arg0: i32, %arg1: memref<128x32xbf16, #tpu.memory_space<vmem>>, %arg2: memref<32x64xbf16, #tpu.memory_space<vmem>>, %arg3: memref<1x64xf32, #tpu.memory_space<vmem>>, %arg4: memref<128x64xbf16, #tpu.memory_space<vmem>>) attributes {dimension_semantics = [#tpu.dimension_semantics<parallel>], iteration_bounds = array<i64: 1>, scalar_prefetch = 0 : i64, scratch_operands = 0 : i64, tpu.core_type = #tpu.core_type<tc>, window_params = [{transform_indices = @transform_0, window_bounds = array<i64: 128, 32>}, {pipeline_mode = #tpu.pipeline_mode<synchronous>, transform_indices = @transform_1, window_bounds = array<i64: 32, 64>}, {pipeline_mode = #tpu.pipeline_mode<synchronous>, transform_indices = @transform_2, window_bounds = array<i64: 1, 64>}, {transform_indices = @transform_3, window_bounds = array<i64: 128, 64>}]} {
    %c0 = arith.constant 0 : index
    %c0_0 = arith.constant 0 : index
    %0 = vector.load %arg1[%c0, %c0_0] : memref<128x32xbf16, #tpu.memory_space<vmem>>, vector<128x32xbf16>
    %c0_1 = arith.constant 0 : index
    %c0_2 = arith.constant 0 : index
    %1 = vector.load %arg2[%c0_1, %c0_2] : memref<32x64xbf16, #tpu.memory_space<vmem>>, vector<32x64xbf16>
    %cst = arith.constant dense<0.000000e+00> : vector<128x64xf32>
    %2 = tpu.matmul %0, %1, %cst {dimension_numbers = #tpu.dot_dimension_numbers<[1], [0], [0], [1], [0, 0, 1, 1], [], []>} : vector<128x32xbf16>, vector<32x64xbf16>, vector<128x64xf32> -> vector<128x64xf32>
    %c0_3 = arith.constant 0 : index
    %c0_4 = arith.constant 0 : index
    %3 = vector.load %arg3[%c0_3, %c0_4] : memref<1x64xf32, #tpu.memory_space<vmem>>, vector<1x64xf32>
    %4 = vector.broadcast %3 : vector<1x64xf32> to vector<128x64xf32>
    %5 = arith.addf %2, %4 : vector<128x64xf32>
    %cst_5 = arith.constant 0.000000e+00 : f32
    %6 = vector.broadcast %cst_5 : f32 to vector<128x64xf32>
    %7 = arith.cmpf oge, %5, %6 : vector<128x64xf32>
    %cst_6 = arith.constant 2.000000e-01 : f32
    %8 = vector.broadcast %cst_6 : f32 to vector<128x64xf32>
    %9 = arith.mulf %8, %5 : vector<128x64xf32>
    %10 = arith.select %7, %5, %9 : vector<128x64xi1>, vector<128x64xf32>
    %11 = arith.truncf %10 : vector<128x64xf32> to vector<128x64xbf16>
    %c0_7 = arith.constant 0 : index
    %c0_8 = arith.constant 0 : index
    %12 = vector.load %arg4[%c0_7, %c0_8] : memref<128x64xbf16, #tpu.memory_space<vmem>>, vector<128x64xbf16>
    tpu.vector_store %arg4[%c0_7, %c0_8], %11 {strides = array<i32>} : memref<128x64xbf16, #tpu.memory_space<vmem>>, vector<128x64xbf16>,
    return
  }
  func.func @transform_0(%arg0: i32) -> (i32, i32) {
    %c0_i32 = arith.constant 0 : i32
    %c0_i32_0 = arith.constant 0 : i32
    return %arg0, %c0_i32 : i32, i32
  }
  func.func @transform_1(%arg0: i32) -> (i32, i32) {
    %c0_i32 = arith.constant 0 : i32
    %c0_i32_0 = arith.constant 0 : i32
    %c0_i32_1 = arith.constant 0 : i32
    return %c0_i32, %c0_i32_0 : i32, i32
  }
  func.func @transform_2(%arg0: i32) -> (i32, i32) {
    %c0_i32 = arith.constant 0 : i32
    %c0_i32_0 = arith.constant 0 : i32
    %c0_i32_1 = arith.constant 0 : i32
    return %c0_i32, %c0_i32_0 : i32, i32
  }
  func.func @transform_3(%arg0: i32) -> (i32, i32) {
    %c0_i32 = arith.constant 0 : i32
    %c0_i32_0 = arith.constant 0 : i32
    return %arg0, %c0_i32 : i32, i32
  }
}

module attributes {stable_mosaic.version = 11 : i64} {
  func.func @_conv_stats_kernel(%arg0: i32, %arg1: memref<32x576xbf16, #tpu.memory_space<vmem>>, %arg2: memref<576x128xbf16, #tpu.memory_space<vmem>>, %arg3: memref<32x128xbf16, #tpu.memory_space<vmem>>, %arg4: memref<1x128xf32, #tpu.memory_space<vmem>>, %arg5: memref<1x128xf32, #tpu.memory_space<vmem>>) attributes {dimension_semantics = [#tpu.dimension_semantics<arbitrary>], iteration_bounds = array<i64: 1>, scalar_prefetch = 0 : i64, scratch_operands = 0 : i64, tpu.core_type = #tpu.core_type<tc>, window_params = [{transform_indices = @transform_0, window_bounds = array<i64: 32, 576>}, {pipeline_mode = #tpu.pipeline_mode<synchronous>, transform_indices = @transform_1, window_bounds = array<i64: 576, 128>}, {transform_indices = @transform_2, window_bounds = array<i64: 32, 128>}, {pipeline_mode = #tpu.pipeline_mode<synchronous>, transform_indices = @transform_3, window_bounds = array<i64: 1, 128>}, {pipeline_mode = #tpu.pipeline_mode<synchronous>, transform_indices = @transform_4, window_bounds = array<i64: 1, 128>}]} {
    %c0_i32 = arith.constant 0 : i32
    %0 = arith.cmpi eq, %arg0, %c0_i32 : i32
    %1 = arith.extui %0 : i1 to i32
    %c0_i32_0 = arith.constant 0 : i32
    %2 = arith.cmpi ne, %1, %c0_i32_0 : i32
    scf.if %2 {
      %cst_16 = arith.constant 0.000000e+00 : f32
      %19 = vector.broadcast %cst_16 : f32 to vector<1x128xf32>
      %c0_17 = arith.constant 0 : index
      %c0_18 = arith.constant 0 : index
      %20 = vector.load %arg4[%c0_17, %c0_18] : memref<1x128xf32, #tpu.memory_space<vmem>>, vector<1x128xf32>
      tpu.vector_store %arg4[%c0_17, %c0_18], %19 {strides = array<i32>} : memref<1x128xf32, #tpu.memory_space<vmem>>, vector<1x128xf32>,
      %cst_19 = arith.constant 0.000000e+00 : f32
      %21 = vector.broadcast %cst_19 : f32 to vector<1x128xf32>
      %c0_20 = arith.constant 0 : index
      %c0_21 = arith.constant 0 : index
      %22 = vector.load %arg5[%c0_20, %c0_21] : memref<1x128xf32, #tpu.memory_space<vmem>>, vector<1x128xf32>
      tpu.vector_store %arg5[%c0_20, %c0_21], %21 {strides = array<i32>} : memref<1x128xf32, #tpu.memory_space<vmem>>, vector<1x128xf32>,
    } else {
    }
    %c0 = arith.constant 0 : index
    %c0_1 = arith.constant 0 : index
    %3 = vector.load %arg1[%c0, %c0_1] : memref<32x576xbf16, #tpu.memory_space<vmem>>, vector<32x576xbf16>
    %c0_2 = arith.constant 0 : index
    %c0_3 = arith.constant 0 : index
    %4 = vector.load %arg2[%c0_2, %c0_3] : memref<576x128xbf16, #tpu.memory_space<vmem>>, vector<576x128xbf16>
    %cst = arith.constant dense<0.000000e+00> : vector<32x128xf32>
    %5 = tpu.matmul %3, %4, %cst {dimension_numbers = #tpu.dot_dimension_numbers<[1], [0], [0], [1], [0, 0, 1, 1], [], []>} : vector<32x576xbf16>, vector<576x128xbf16>, vector<32x128xf32> -> vector<32x128xf32>
    %6 = arith.truncf %5 : vector<32x128xf32> to vector<32x128xbf16>
    %c0_4 = arith.constant 0 : index
    %c0_5 = arith.constant 0 : index
    %7 = vector.load %arg3[%c0_4, %c0_5] : memref<32x128xbf16, #tpu.memory_space<vmem>>, vector<32x128xbf16>
    tpu.vector_store %arg3[%c0_4, %c0_5], %6 {strides = array<i32>} : memref<32x128xbf16, #tpu.memory_space<vmem>>, vector<32x128xbf16>,
    %c0_6 = arith.constant 0 : index
    %c0_7 = arith.constant 0 : index
    %8 = vector.load %arg4[%c0_6, %c0_7] : memref<1x128xf32, #tpu.memory_space<vmem>>, vector<1x128xf32>
    %cst_8 = arith.constant dense<0.000000e+00> : vector<128xf32>
    %9 = vector.multi_reduction <add>, %5, %cst_8 [0] : vector<32x128xf32> to vector<128xf32>
    %10 = vector.shape_cast %9 : vector<128xf32> to vector<1x128xf32>
    %11 = arith.addf %8, %10 : vector<1x128xf32>
    %c0_9 = arith.constant 0 : index
    %c0_10 = arith.constant 0 : index
    %12 = vector.load %arg4[%c0_9, %c0_10] : memref<1x128xf32, #tpu.memory_space<vmem>>, vector<1x128xf32>
    tpu.vector_store %arg4[%c0_9, %c0_10], %11 {strides = array<i32>} : memref<1x128xf32, #tpu.memory_space<vmem>>, vector<1x128xf32>,
    %c0_11 = arith.constant 0 : index
    %c0_12 = arith.constant 0 : index
    %13 = vector.load %arg5[%c0_11, %c0_12] : memref<1x128xf32, #tpu.memory_space<vmem>>, vector<1x128xf32>
    %14 = arith.mulf %5, %5 : vector<32x128xf32>
    %cst_13 = arith.constant dense<0.000000e+00> : vector<128xf32>
    %15 = vector.multi_reduction <add>, %14, %cst_13 [0] : vector<32x128xf32> to vector<128xf32>
    %16 = vector.shape_cast %15 : vector<128xf32> to vector<1x128xf32>
    %17 = arith.addf %13, %16 : vector<1x128xf32>
    %c0_14 = arith.constant 0 : index
    %c0_15 = arith.constant 0 : index
    %18 = vector.load %arg5[%c0_14, %c0_15] : memref<1x128xf32, #tpu.memory_space<vmem>>, vector<1x128xf32>
    tpu.vector_store %arg5[%c0_14, %c0_15], %17 {strides = array<i32>} : memref<1x128xf32, #tpu.memory_space<vmem>>, vector<1x128xf32>,
    return
  }
  func.func @transform_0(%arg0: i32) -> (i32, i32) {
    %c0_i32 = arith.constant 0 : i32
    %c0_i32_0 = arith.constant 0 : i32
    return %arg0, %c0_i32 : i32, i32
  }
  func.func @transform_1(%arg0: i32) -> (i32, i32) {
    %c0_i32 = arith.constant 0 : i32
    %c0_i32_0 = arith.constant 0 : i32
    %c0_i32_1 = arith.constant 0 : i32
    return %c0_i32, %c0_i32_0 : i32, i32
  }
  func.func @transform_2(%arg0: i32) -> (i32, i32) {
    %c0_i32 = arith.constant 0 : i32
    %c0_i32_0 = arith.constant 0 : i32
    return %arg0, %c0_i32 : i32, i32
  }
  func.func @transform_3(%arg0: i32) -> (i32, i32) {
    %c0_i32 = arith.constant 0 : i32
    %c0_i32_0 = arith.constant 0 : i32
    %c0_i32_1 = arith.constant 0 : i32
    return %c0_i32, %c0_i32_0 : i32, i32
  }
  func.func @transform_4(%arg0: i32) -> (i32, i32) {
    %c0_i32 = arith.constant 0 : i32
    %c0_i32_0 = arith.constant 0 : i32
    %c0_i32_1 = arith.constant 0 : i32
    return %c0_i32, %c0_i32_0 : i32, i32
  }
}

module attributes {stable_mosaic.version = 11 : i64} {
  func.func @_conv_stats_kernel(%arg0: i32, %arg1: memref<8x1152xbf16, #tpu.memory_space<vmem>>, %arg2: memref<1152x256xbf16, #tpu.memory_space<vmem>>, %arg3: memref<8x256xbf16, #tpu.memory_space<vmem>>, %arg4: memref<1x256xf32, #tpu.memory_space<vmem>>, %arg5: memref<1x256xf32, #tpu.memory_space<vmem>>) attributes {dimension_semantics = [#tpu.dimension_semantics<arbitrary>], iteration_bounds = array<i64: 1>, scalar_prefetch = 0 : i64, scratch_operands = 0 : i64, tpu.core_type = #tpu.core_type<tc>, window_params = [{transform_indices = @transform_0, window_bounds = array<i64: 8, 1152>}, {pipeline_mode = #tpu.pipeline_mode<synchronous>, transform_indices = @transform_1, window_bounds = array<i64: 1152, 256>}, {transform_indices = @transform_2, window_bounds = array<i64: 8, 256>}, {pipeline_mode = #tpu.pipeline_mode<synchronous>, transform_indices = @transform_3, window_bounds = array<i64: 1, 256>}, {pipeline_mode = #tpu.pipeline_mode<synchronous>, transform_indices = @transform_4, window_bounds = array<i64: 1, 256>}]} {
    %c0_i32 = arith.constant 0 : i32
    %0 = arith.cmpi eq, %arg0, %c0_i32 : i32
    %1 = arith.extui %0 : i1 to i32
    %c0_i32_0 = arith.constant 0 : i32
    %2 = arith.cmpi ne, %1, %c0_i32_0 : i32
    scf.if %2 {
      %cst_16 = arith.constant 0.000000e+00 : f32
      %19 = vector.broadcast %cst_16 : f32 to vector<1x256xf32>
      %c0_17 = arith.constant 0 : index
      %c0_18 = arith.constant 0 : index
      %20 = vector.load %arg4[%c0_17, %c0_18] : memref<1x256xf32, #tpu.memory_space<vmem>>, vector<1x256xf32>
      tpu.vector_store %arg4[%c0_17, %c0_18], %19 {strides = array<i32>} : memref<1x256xf32, #tpu.memory_space<vmem>>, vector<1x256xf32>,
      %cst_19 = arith.constant 0.000000e+00 : f32
      %21 = vector.broadcast %cst_19 : f32 to vector<1x256xf32>
      %c0_20 = arith.constant 0 : index
      %c0_21 = arith.constant 0 : index
      %22 = vector.load %arg5[%c0_20, %c0_21] : memref<1x256xf32, #tpu.memory_space<vmem>>, vector<1x256xf32>
      tpu.vector_store %arg5[%c0_20, %c0_21], %21 {strides = array<i32>} : memref<1x256xf32, #tpu.memory_space<vmem>>, vector<1x256xf32>,
    } else {
    }
    %c0 = arith.constant 0 : index
    %c0_1 = arith.constant 0 : index
    %3 = vector.load %arg1[%c0, %c0_1] : memref<8x1152xbf16, #tpu.memory_space<vmem>>, vector<8x1152xbf16>
    %c0_2 = arith.constant 0 : index
    %c0_3 = arith.constant 0 : index
    %4 = vector.load %arg2[%c0_2, %c0_3] : memref<1152x256xbf16, #tpu.memory_space<vmem>>, vector<1152x256xbf16>
    %cst = arith.constant dense<0.000000e+00> : vector<8x256xf32>
    %5 = tpu.matmul %3, %4, %cst {dimension_numbers = #tpu.dot_dimension_numbers<[1], [0], [0], [1], [0, 0, 1, 1], [], []>} : vector<8x1152xbf16>, vector<1152x256xbf16>, vector<8x256xf32> -> vector<8x256xf32>
    %6 = arith.truncf %5 : vector<8x256xf32> to vector<8x256xbf16>
    %c0_4 = arith.constant 0 : index
    %c0_5 = arith.constant 0 : index
    %7 = vector.load %arg3[%c0_4, %c0_5] : memref<8x256xbf16, #tpu.memory_space<vmem>>, vector<8x256xbf16>
    tpu.vector_store %arg3[%c0_4, %c0_5], %6 {strides = array<i32>} : memref<8x256xbf16, #tpu.memory_space<vmem>>, vector<8x256xbf16>,
    %c0_6 = arith.constant 0 : index
    %c0_7 = arith.constant 0 : index
    %8 = vector.load %arg4[%c0_6, %c0_7] : memref<1x256xf32, #tpu.memory_space<vmem>>, vector<1x256xf32>
    %cst_8 = arith.constant dense<0.000000e+00> : vector<256xf32>
    %9 = vector.multi_reduction <add>, %5, %cst_8 [0] : vector<8x256xf32> to vector<256xf32>
    %10 = vector.shape_cast %9 : vector<256xf32> to vector<1x256xf32>
    %11 = arith.addf %8, %10 : vector<1x256xf32>
    %c0_9 = arith.constant 0 : index
    %c0_10 = arith.constant 0 : index
    %12 = vector.load %arg4[%c0_9, %c0_10] : memref<1x256xf32, #tpu.memory_space<vmem>>, vector<1x256xf32>
    tpu.vector_store %arg4[%c0_9, %c0_10], %11 {strides = array<i32>} : memref<1x256xf32, #tpu.memory_space<vmem>>, vector<1x256xf32>,
    %c0_11 = arith.constant 0 : index
    %c0_12 = arith.constant 0 : index
    %13 = vector.load %arg5[%c0_11, %c0_12] : memref<1x256xf32, #tpu.memory_space<vmem>>, vector<1x256xf32>
    %14 = arith.mulf %5, %5 : vector<8x256xf32>
    %cst_13 = arith.constant dense<0.000000e+00> : vector<256xf32>
    %15 = vector.multi_reduction <add>, %14, %cst_13 [0] : vector<8x256xf32> to vector<256xf32>
    %16 = vector.shape_cast %15 : vector<256xf32> to vector<1x256xf32>
    %17 = arith.addf %13, %16 : vector<1x256xf32>
    %c0_14 = arith.constant 0 : index
    %c0_15 = arith.constant 0 : index
    %18 = vector.load %arg5[%c0_14, %c0_15] : memref<1x256xf32, #tpu.memory_space<vmem>>, vector<1x256xf32>
    tpu.vector_store %arg5[%c0_14, %c0_15], %17 {strides = array<i32>} : memref<1x256xf32, #tpu.memory_space<vmem>>, vector<1x256xf32>,
    return
  }
  func.func @transform_0(%arg0: i32) -> (i32, i32) {
    %c0_i32 = arith.constant 0 : i32
    %c0_i32_0 = arith.constant 0 : i32
    return %arg0, %c0_i32 : i32, i32
  }
  func.func @transform_1(%arg0: i32) -> (i32, i32) {
    %c0_i32 = arith.constant 0 : i32
    %c0_i32_0 = arith.constant 0 : i32
    %c0_i32_1 = arith.constant 0 : i32
    return %c0_i32, %c0_i32_0 : i32, i32
  }
  func.func @transform_2(%arg0: i32) -> (i32, i32) {
    %c0_i32 = arith.constant 0 : i32
    %c0_i32_0 = arith.constant 0 : i32
    return %arg0, %c0_i32 : i32, i32
  }
  func.func @transform_3(%arg0: i32) -> (i32, i32) {
    %c0_i32 = arith.constant 0 : i32
    %c0_i32_0 = arith.constant 0 : i32
    %c0_i32_1 = arith.constant 0 : i32
    return %c0_i32, %c0_i32_0 : i32, i32
  }
  func.func @transform_4(%arg0: i32) -> (i32, i32) {
    %c0_i32 = arith.constant 0 : i32
    %c0_i32_0 = arith.constant 0 : i32
    %c0_i32_1 = arith.constant 0 : i32
    return %c0_i32, %c0_i32_0 : i32, i32
  }
}

module attributes {stable_mosaic.version = 11 : i64} {
  func.func @_tail_kernel(%arg0: i32, %arg1: memref<2x2304xbf16, #tpu.memory_space<vmem>>, %arg2: memref<2304x512xbf16, #tpu.memory_space<vmem>>, %arg3: memref<1x512xf32, #tpu.memory_space<vmem>>, %arg4: memref<1x512xf32, #tpu.memory_space<vmem>>, %arg5: memref<1x512xf32, #tpu.memory_space<vmem>>, %arg6: memref<1x1xf32, #tpu.memory_space<vmem>>, %arg7: memref<2x1xf32, #tpu.memory_space<vmem>>) attributes {dimension_semantics = [#tpu.dimension_semantics<arbitrary>], iteration_bounds = array<i64: 1>, scalar_prefetch = 0 : i64, scratch_operands = 0 : i64, tpu.core_type = #tpu.core_type<tc>, window_params = [{pipeline_mode = #tpu.pipeline_mode<synchronous>, transform_indices = @transform_0, window_bounds = array<i64: 2, 2304>}, {pipeline_mode = #tpu.pipeline_mode<synchronous>, transform_indices = @transform_1, window_bounds = array<i64: 2304, 512>}, {pipeline_mode = #tpu.pipeline_mode<synchronous>, transform_indices = @transform_2, window_bounds = array<i64: 1, 512>}, {pipeline_mode = #tpu.pipeline_mode<synchronous>, transform_indices = @transform_3, window_bounds = array<i64: 1, 512>}, {pipeline_mode = #tpu.pipeline_mode<synchronous>, transform_indices = @transform_4, window_bounds = array<i64: 1, 512>}, {pipeline_mode = #tpu.pipeline_mode<synchronous>, transform_indices = @transform_5, window_bounds = array<i64: 1, 1>}, {pipeline_mode = #tpu.pipeline_mode<synchronous>, transform_indices = @transform_6, window_bounds = array<i64: 2, 1>}]} {
    %c0 = arith.constant 0 : index
    %c0_0 = arith.constant 0 : index
    %0 = vector.load %arg1[%c0, %c0_0] : memref<2x2304xbf16, #tpu.memory_space<vmem>>, vector<2x2304xbf16>
    %c0_1 = arith.constant 0 : index
    %c0_2 = arith.constant 0 : index
    %1 = vector.load %arg2[%c0_1, %c0_2] : memref<2304x512xbf16, #tpu.memory_space<vmem>>, vector<2304x512xbf16>
    %cst = arith.constant dense<0.000000e+00> : vector<2x512xf32>
    %2 = tpu.matmul %0, %1, %cst {dimension_numbers = #tpu.dot_dimension_numbers<[1], [0], [0], [1], [0, 0, 1, 1], [], []>} : vector<2x2304xbf16>, vector<2304x512xbf16>, vector<2x512xf32> -> vector<2x512xf32>
    %cst_3 = arith.constant dense<0.000000e+00> : vector<512xf32>
    %3 = vector.multi_reduction <add>, %2, %cst_3 [0] : vector<2x512xf32> to vector<512xf32>
    %4 = vector.shape_cast %3 : vector<512xf32> to vector<1x512xf32>
    %cst_4 = arith.constant 2.000000e+00 : f32
    %5 = vector.broadcast %cst_4 : f32 to vector<1x512xf32>
    %6 = arith.divf %4, %5 : vector<1x512xf32>
    %7 = vector.broadcast %6 : vector<1x512xf32> to vector<2x512xf32>
    %8 = arith.subf %2, %7 : vector<2x512xf32>
    %9 = arith.mulf %8, %8 : vector<2x512xf32>
    %cst_5 = arith.constant dense<0.000000e+00> : vector<512xf32>
    %10 = vector.multi_reduction <add>, %9, %cst_5 [0] : vector<2x512xf32> to vector<512xf32>
    %11 = vector.shape_cast %10 : vector<512xf32> to vector<1x512xf32>
    %cst_6 = arith.constant 2.000000e+00 : f32
    %12 = vector.broadcast %cst_6 : f32 to vector<1x512xf32>
    %13 = arith.divf %11, %12 : vector<1x512xf32>
    %cst_7 = arith.constant 9.99999974E-6 : f32
    %14 = vector.broadcast %cst_7 : f32 to vector<1x512xf32>
    %15 = arith.addf %13, %14 : vector<1x512xf32>
    %16 = math.rsqrt %15 : vector<1x512xf32>
    %c0_8 = arith.constant 0 : index
    %c0_9 = arith.constant 0 : index
    %17 = vector.load %arg3[%c0_8, %c0_9] : memref<1x512xf32, #tpu.memory_space<vmem>>, vector<1x512xf32>
    %18 = arith.mulf %17, %16 : vector<1x512xf32>
    %19 = vector.broadcast %18 : vector<1x512xf32> to vector<2x512xf32>
    %20 = arith.mulf %8, %19 : vector<2x512xf32>
    %c0_10 = arith.constant 0 : index
    %c0_11 = arith.constant 0 : index
    %21 = vector.load %arg4[%c0_10, %c0_11] : memref<1x512xf32, #tpu.memory_space<vmem>>, vector<1x512xf32>
    %22 = vector.broadcast %21 : vector<1x512xf32> to vector<2x512xf32>
    %23 = arith.addf %20, %22 : vector<2x512xf32>
    %cst_12 = arith.constant 0.000000e+00 : f32
    %24 = vector.broadcast %cst_12 : f32 to vector<2x512xf32>
    %25 = arith.cmpf oge, %23, %24 : vector<2x512xf32>
    %cst_13 = arith.constant 2.000000e-01 : f32
    %26 = vector.broadcast %cst_13 : f32 to vector<2x512xf32>
    %27 = arith.mulf %26, %23 : vector<2x512xf32>
    %28 = arith.select %25, %23, %27 : vector<2x512xi1>, vector<2x512xf32>
    %c0_14 = arith.constant 0 : index
    %c0_15 = arith.constant 0 : index
    %29 = vector.load %arg5[%c0_14, %c0_15] : memref<1x512xf32, #tpu.memory_space<vmem>>, vector<1x512xf32>
    %30 = vector.broadcast %29 : vector<1x512xf32> to vector<2x512xf32>
    %31 = arith.mulf %28, %30 : vector<2x512xf32>
    %cst_16 = arith.constant dense<0.000000e+00> : vector<2xf32>
    %32 = vector.multi_reduction <add>, %31, %cst_16 [1] : vector<2x512xf32> to vector<2xf32>
    %33 = vector.shape_cast %32 : vector<2xf32> to vector<2x1xf32>
    %c0_17 = arith.constant 0 : index
    %c0_18 = arith.constant 0 : index
    %34 = vector.load %arg6[%c0_17, %c0_18] : memref<1x1xf32, #tpu.memory_space<vmem>>, vector<1x1xf32>
    %35 = vector.broadcast %34 : vector<1x1xf32> to vector<2x1xf32>
    %36 = arith.addf %33, %35 : vector<2x1xf32>
    %cst_19 = arith.constant 0.000000e+00 : f32
    %37 = vector.broadcast %cst_19 : f32 to vector<2x1xf32>
    %38 = arith.subf %37, %36 : vector<2x1xf32>
    %39 = math.exp %38 : vector<2x1xf32>
    %cst_20 = arith.constant 1.000000e+00 : f32
    %40 = vector.broadcast %cst_20 : f32 to vector<2x1xf32>
    %41 = arith.addf %40, %39 : vector<2x1xf32>
    %cst_21 = arith.constant 1.000000e+00 : f32
    %42 = vector.broadcast %cst_21 : f32 to vector<2x1xf32>
    %43 = arith.divf %42, %41 : vector<2x1xf32>
    %c0_22 = arith.constant 0 : index
    %c0_23 = arith.constant 0 : index
    %44 = vector.load %arg7[%c0_22, %c0_23] : memref<2x1xf32, #tpu.memory_space<vmem>>, vector<2x1xf32>
    tpu.vector_store %arg7[%c0_22, %c0_23], %43 {strides = array<i32>} : memref<2x1xf32, #tpu.memory_space<vmem>>, vector<2x1xf32>,
    return
  }
  func.func @transform_0(%arg0: i32) -> (i32, i32) {
    %c0_i32 = arith.constant 0 : i32
    %c0_i32_0 = arith.constant 0 : i32
    %c0_i32_1 = arith.constant 0 : i32
    return %c0_i32, %c0_i32_0 : i32, i32
  }
  func.func @transform_1(%arg0: i32) -> (i32, i32) {
    %c0_i32 = arith.constant 0 : i32
    %c0_i32_0 = arith.constant 0 : i32
    %c0_i32_1 = arith.constant 0 : i32
    return %c0_i32, %c0_i32_0 : i32, i32
  }
  func.func @transform_2(%arg0: i32) -> (i32, i32) {
    %c0_i32 = arith.constant 0 : i32
    %c0_i32_0 = arith.constant 0 : i32
    %c0_i32_1 = arith.constant 0 : i32
    return %c0_i32, %c0_i32_0 : i32, i32
  }
  func.func @transform_3(%arg0: i32) -> (i32, i32) {
    %c0_i32 = arith.constant 0 : i32
    %c0_i32_0 = arith.constant 0 : i32
    %c0_i32_1 = arith.constant 0 : i32
    return %c0_i32, %c0_i32_0 : i32, i32
  }
  func.func @transform_4(%arg0: i32) -> (i32, i32) {
    %c0_i32 = arith.constant 0 : i32
    %c0_i32_0 = arith.constant 0 : i32
    %c0_i32_1 = arith.constant 0 : i32
    return %c0_i32, %c0_i32_0 : i32, i32
  }
  func.func @transform_5(%arg0: i32) -> (i32, i32) {
    %c0_i32 = arith.constant 0 : i32
    %c0_i32_0 = arith.constant 0 : i32
    %c0_i32_1 = arith.constant 0 : i32
    return %c0_i32, %c0_i32_0 : i32, i32
  }
  func.func @transform_6(%arg0: i32) -> (i32, i32) {
    %c0_i32 = arith.constant 0 : i32
    %c0_i32_0 = arith.constant 0 : i32
    %c0_i32_1 = arith.constant 0 : i32
    return %c0_i32, %c0_i32_0 : i32, i32
  }
}

</mosaic_0001>

<bundles_post_ra>
// kernel: image_discriminator_forward.4
= control target key start
LH: loop header
LB: loop body
LE: loop exit
PB: predicated region body
PF: predicated region fallthrough
CT: control target
= control target key end

     0   :  { %8 = vsyncpa [#allocation3], 0  ;;  %s547_s0 = inlined_call_operand.vmem [shape: bf16[128,32], index: 0, kind: input, shape index: {}]   ;;  %s548_s1 = inlined_call_operand.hbm [shape: bf16[32,64], index: 1, kind: input, shape index: {}]   ;;  %s549_s2 = inlined_call_operand.hbm [shape: f32[1,64], index: 2, kind: input, shape index: {}]   ;;  %s550_s3 = inlined_call_operand.vmem [shape: bf16[128,64], index: 3, kind: output, shape index: {}]  }
   0x1   :  { %s16_s14 = sshll.u32 %s548_s1, 4  ;;  %s17_s14 = int_to_ptr.hbm [resolvable:$true] %s16_s14 }
   0x2   :  { %9 = vsyncpa [#allocation5], 0  ;;  %s403_s15 = smov [#allocation2]   ;;  %s30_s19 = sshll.u32 %s549_s2, 4  ;;  %s31_s19 = int_to_ptr.hbm [resolvable:$true] %s30_s19 }
   0x3   :  { %s18_s16 = sshll.u32 %s403_s15, 4  ;;  %s404_s20 = smov 64   ;;  %s19_s16 = int_to_ptr.vmem [resolvable:$true] %s18_s16 }
   0x4   :  { %s405_s21 = smov 4   ;;  %s406_s22 = smov [#allocation4]  }
   0x5   :  { %24 = dma.hbm_to_vmem [thread:$0]  %s17_s14, 256, %s19_s16, [#allocation3], %s404_s20, %s404_s20, %s405_s21  }
   0x6   :  { %s32_s23 = sshll.u32 %s406_s22, 4  ;;  %s33_s23 = int_to_ptr.vmem [resolvable:$true] %s32_s23 }
   0x7   :  { %35 = dma.hbm_to_vmem [thread:$0]  %s31_s19, 16, %s33_s23, [#allocation5]  }
   0x8   :  { %399 = dma.done.wait [#allocation3], 256  }
   0x9   :  { %400 = vsyncadd [#allocation3], 4294967040 }
   0xa   :  { %401 = dma.done.wait [#allocation5], 16  }
   0xb   :  { %402 = vsyncadd [#allocation5], 4294967280  ;;  %v339_v0 = vld [vmem:[#allocation2 + $0x8] sm:$0xff]  ;;  %v338_v1 = vld [vmem:[#allocation2] sm:$0xff]  ;;  %vm121_vm0 = vcmask 261120   ;;  %vm259_vm3 = vcmask 519168  }
   0xc   :  { %152 = vmatpush.bf16.msra.mxu0 %v339_v0  ;;  %340 = vmatpush.bf16.msra.mxu1 %v339_v0  ;;  %v330_v2 = vld [vmem:[%s547_s0] sm:$0xff]  ;;  %v332_v3 = vld [vmem:[%s547_s0 + $0x10] sm:$0xff]  ;;  %v331_v6 = vld [vmem:[%s547_s0 + $0x8] sm:$0xff] }
   0xd   :  { %341 = vmatpush.bf16.msra.mxu2 %v339_v0  ;;  %342 = vmatpush.bf16.msra.mxu3 %v339_v0  ;;  %v334_v4 = vld [vmem:[%s547_s0 + $0x20] sm:$0xff]  ;;  %v336_v5 = vld [vmem:[%s547_s0 + $0x30] sm:$0xff]  ;;  %v333_v7 = vld [vmem:[%s547_s0 + $0x18] sm:$0xff] }
   0xe   :  { %v335_v8 = vld [vmem:[%s547_s0 + $0x28] sm:$0xff]  ;;  %v337_v9 = vld [vmem:[%s547_s0 + $0x38] sm:$0xff]  ;;  %v465_v10 = vld [vmem:[#allocation4] ss:$0 sm:$0xff] }
  0x10   :  { %153 = vmatpush.bf16.msra.mxu0 %v338_v1  ;;  %343 = vmatpush.bf16.msra.mxu1 %v338_v1 }
  0x11   :  { %344 = vmatpush.bf16.msra.mxu2 %v338_v1  ;;  %345 = vmatpush.bf16.msra.mxu3 %v338_v1 }
  0x13   :  { %322 = vmatmul.msk.bf16.vlgmr.msra.gmra.mxu0 %vm121_vm0, %v330_v2  ;;  %324 = vmatmul.msk.bf16.vlgmr.msra.gmra.mxu1 %vm121_vm0, %v332_v3 }
  0x14   :  { %326 = vmatmul.msk.bf16.vlgmr.msra.gmra.mxu2 %vm121_vm0, %v334_v4  ;;  %328 = vmatmul.msk.bf16.vlgmr.msra.gmra.mxu3 %vm121_vm0, %v336_v5 }
  0x23   :  { %323 = vmatmul.msk.bf16.gmra.mxu0 %vm121_vm0, %v331_v6  ;;  %325 = vmatmul.msk.bf16.gmra.mxu1 %vm121_vm0, %v333_v7 }
  0x24   :  { %327 = vmatmul.msk.bf16.gmra.mxu2 %vm121_vm0, %v335_v8  ;;  %329 = vmatmul.msk.bf16.gmra.mxu3 %vm121_vm0, %v337_v9 }
  0x90   :  { %v155_v11 = vpop.f32.mrf.mxu0  ;;  %v165_v12 = vpop.f32.mrf.mxu1 }
  0x91   :  { %v156_v13 = vadd.f32 %v465_v10, %v155_v11  ;;  %v166_v14 = vadd.f32 %v465_v10, %v165_v12 }
  0x93   :  { %vm195_vm1 = vcmp.ge.f32.partialorder %v156_v13, 0.0  ;;  %v211_v15 = vmul.f32 0.2, %v156_v13  ;;  %vm199_vm2 = vcmp.ge.f32.partialorder %v166_v14, 0.0  ;;  %v215_v16 = vmul.f32 0.2, %v166_v14 }
  0x95   :  { %v227_v17 = vsel %vm195_vm1, %v156_v13, %v211_v15  ;;  %v231_v18 = vsel %vm199_vm2, %v166_v14, %v215_v16 }
  0x96   :  { %v243_v19 = vpack.c.bf16 %v227_v17, %v227_v17  ;;  %v247_v20 = vpack.c.bf16 %v231_v18, %v231_v18 }
  0x97   :  { %v175_v21 = vpop.f32.mrf.mxu2  ;;  %v185_v22 = vpop.f32.mrf.mxu3 }
  0x98   :  { %260 = vst.msk [vmem:[%s550_s3] sm:$0xf] %vm259_vm3, %v243_v19  ;;  %v176_v23 = vadd.f32 %v465_v10, %v175_v21  ;;  %v186_v24 = vadd.f32 %v465_v10, %v185_v22  ;;  %v157_v25 = vpop.f32.mrf.mxu0  ;;  %v167_v26 = vpop.f32.mrf.mxu1 }
  0x99   :  { %264 = vst.msk [vmem:[%s550_s3 + $0x10] sm:$0xf] %vm259_vm3, %v247_v20  ;;  %v158_v27 = vadd.f32 %v465_v10, %v157_v25  ;;  %v168_v28 = vadd.f32 %v465_v10, %v167_v26 }
  0x9a   :  { %vm203_vm4 = vcmp.ge.f32.partialorder %v176_v23, 0.0  ;;  %v219_v29 = vmul.f32 0.2, %v176_v23  ;;  %vm207_vm5 = vcmp.ge.f32.partialorder %v186_v24, 0.0  ;;  %v223_v30 = vmul.f32 0.2, %v186_v24 }
  0x9b   :  { %vm196_vm6 = vcmp.ge.f32.partialorder %v158_v27, 0.0  ;;  %v212_v31 = vmul.f32 0.2, %v158_v27  ;;  %vm200_vm7 = vcmp.ge.f32.partialorder %v168_v28, 0.0  ;;  %v216_v32 = vmul.f32 0.2, %v168_v28 }
  0x9c   :  { %v235_v33 = vsel %vm203_vm4, %v176_v23, %v219_v29  ;;  %v239_v34 = vsel %vm207_vm5, %v186_v24, %v223_v30 }
  0x9d   :  { %v251_v35 = vpack.c.bf16 %v235_v33, %v235_v33  ;;  %v255_v36 = vpack.c.bf16 %v239_v34, %v239_v34  ;;  %v228_v37 = vsel %vm196_vm6, %v158_v27, %v212_v31  ;;  %v232_v38 = vsel %vm200_vm7, %v168_v28, %v216_v32 }
  0x9e   :  { %v244_v39 = vpack.c.bf16 %v228_v37, %v228_v37  ;;  %v248_v40 = vpack.c.bf16 %v232_v38, %v232_v38 }
  0x9f   :  { %268 = vst.msk [vmem:[%s550_s3 + $0x20] sm:$0xf] %vm259_vm3, %v251_v35  ;;  %v177_v41 = vpop.f32.mrf.mxu2  ;;  %v187_v42 = vpop.f32.mrf.mxu3 }
  0xa0   :  { %272 = vst.msk [vmem:[%s550_s3 + $0x30] sm:$0xf] %vm259_vm3, %v255_v36  ;;  %v178_v43 = vadd.f32 %v465_v10, %v177_v41  ;;  %v188_v44 = vadd.f32 %v465_v10, %v187_v42  ;;  %v160_v45 = vpop.f32.mrf.mxu0  ;;  %v170_v46 = vpop.f32.mrf.mxu1 }
  0xa1   :  { %261 = vst.msk [vmem:[%s550_s3 + $0x4] sm:$0xf] %vm259_vm3, %v244_v39  ;;  %v161_v47 = vadd.f32 %v465_v10, %v160_v45  ;;  %v171_v48 = vadd.f32 %v465_v10, %v170_v46 }
  0xa2   :  { %265 = vst.msk [vmem:[%s550_s3 + $0x14] sm:$0xf] %vm259_vm3, %v248_v40  ;;  %vm204_vm8 = vcmp.ge.f32.partialorder %v178_v43, 0.0  ;;  %v220_v49 = vmul.f32 0.2, %v178_v43  ;;  %vm208_vm9 = vcmp.ge.f32.partialorder %v188_v44, 0.0 }
  0xa3   :  { %v224_v50 = vmul.f32 0.2, %v188_v44  ;;  %vm197_vm10 = vcmp.ge.f32.partialorder %v161_v47, 0.0  ;;  %v213_v51 = vmul.f32 0.2, %v161_v47  ;;  %vm201_vm11 = vcmp.ge.f32.partialorder %v171_v48, 0.0 }
  0xa4   :  { %v236_v52 = vsel %vm204_vm8, %v178_v43, %v220_v49  ;;  %v217_v53 = vmul.f32 0.2, %v171_v48 }
  0xa5   :  { %v252_v54 = vpack.c.bf16 %v236_v52, %v236_v52  ;;  %v240_v55 = vsel %vm208_vm9, %v188_v44, %v224_v50  ;;  %v229_v56 = vsel %vm197_vm10, %v161_v47, %v213_v51 }
  0xa6   :  { %v256_v57 = vpack.c.bf16 %v240_v55, %v240_v55  ;;  %v245_v58 = vpack.c.bf16 %v229_v56, %v229_v56  ;;  %v233_v59 = vsel %vm201_vm11, %v171_v48, %v217_v53 }
  0xa7   :  { %269 = vst.msk [vmem:[%s550_s3 + $0x24] sm:$0xf] %vm259_vm3, %v252_v54  ;;  %v249_v60 = vpack.c.bf16 %v233_v59, %v233_v59  ;;  %v180_v61 = vpop.f32.mrf.mxu2  ;;  %v190_v62 = vpop.f32.mrf.mxu3 }
  0xa8   :  { %273 = vst.msk [vmem:[%s550_s3 + $0x34] sm:$0xf] %vm259_vm3, %v256_v57  ;;  %v181_v63 = vadd.f32 %v465_v10, %v180_v61  ;;  %v191_v0 = vadd.f32 %v465_v10, %v190_v62  ;;  %v162_v1 = vpop.f32.mrf.mxu0  ;;  %v172_v2 = vpop.f32.mrf.mxu1 }
  0xa9   :  { %262 = vst.msk [vmem:[%s550_s3 + $0x8] sm:$0xf] %vm259_vm3, %v245_v58  ;;  %v163_v3 = vadd.f32 %v465_v10, %v162_v1  ;;  %v173_v4 = vadd.f32 %v465_v10, %v172_v2 }
  0xaa   :  { %266 = vst.msk [vmem:[%s550_s3 + $0x18] sm:$0xf] %vm259_vm3, %v249_v60  ;;  %vm205_vm12 = vcmp.ge.f32.partialorder %v181_v63, 0.0  ;;  %v221_v5 = vmul.f32 0.2, %v181_v63  ;;  %vm209_vm13 = vcmp.ge.f32.partialorder %v191_v0, 0.0 }
  0xab   :  { %v225_v6 = vmul.f32 0.2, %v191_v0  ;;  %vm198_vm14 = vcmp.ge.f32.partialorder %v163_v3, 0.0  ;;  %v214_v7 = vmul.f32 0.2, %v163_v3  ;;  %vm202_vm15 = vcmp.ge.f32.partialorder %v173_v4, 0.0 }
  0xac   :  { %v237_v8 = vsel %vm205_vm12, %v181_v63, %v221_v5  ;;  %v218_v9 = vmul.f32 0.2, %v173_v4 }
  0xad   :  { %v253_v11 = vpack.c.bf16 %v237_v8, %v237_v8  ;;  %v241_v12 = vsel %vm209_vm13, %v191_v0, %v225_v6  ;;  %v230_v13 = vsel %vm198_vm14, %v163_v3, %v214_v7 }
  0xae   :  { %v257_v14 = vpack.c.bf16 %v241_v12, %v241_v12  ;;  %v246_v15 = vpack.c.bf16 %v230_v13, %v230_v13  ;;  %v234_v16 = vsel %vm202_vm15, %v173_v4, %v218_v9 }
  0xaf   :  { %270 = vst.msk [vmem:[%s550_s3 + $0x28] sm:$0xf] %vm259_vm3, %v253_v11  ;;  %v250_v17 = vpack.c.bf16 %v234_v16, %v234_v16  ;;  %v182_v18 = vpop.f32.mrf.mxu2  ;;  %v192_v19 = vpop.f32.mrf.mxu3 }
  0xb0   :  { %274 = vst.msk [vmem:[%s550_s3 + $0x38] sm:$0xf] %vm259_vm3, %v257_v14  ;;  %v183_v20 = vadd.f32 %v465_v10, %v182_v18  ;;  %v193_v21 = vadd.f32 %v465_v10, %v192_v19 }
  0xb1   :  { %263 = vst.msk [vmem:[%s550_s3 + $0xc] sm:$0xf] %vm259_vm3, %v246_v15 }
  0xb2   :  { %267 = vst.msk [vmem:[%s550_s3 + $0x1c] sm:$0xf] %vm259_vm3, %v250_v17  ;;  %vm206_vm0 = vcmp.ge.f32.partialorder %v183_v20, 0.0  ;;  %v222_v22 = vmul.f32 0.2, %v183_v20  ;;  %vm210_vm1 = vcmp.ge.f32.partialorder %v193_v21, 0.0 }
  0xb3   :  { %v226_v23 = vmul.f32 0.2, %v193_v21 }
  0xb4   :  { %v238_v24 = vsel %vm206_vm0, %v183_v20, %v222_v22 }
  0xb5   :  { %v254_v25 = vpack.c.bf16 %v238_v24, %v238_v24  ;;  %v242_v26 = vsel %vm210_vm1, %v193_v21, %v226_v23 }
  0xb6   :  { %v258_v27 = vpack.c.bf16 %v242_v26, %v242_v26 }
  0xb7   :  { %271 = vst.msk [vmem:[%s550_s3 + $0x2c] sm:$0xf] %vm259_vm3, %v254_v25 }
  0xb8   :  { %275 = vst.msk [vmem:[%s550_s3 + $0x3c] sm:$0xf] %vm259_vm3, %v258_v27 }
  0xb9   :  { %280 = vsyncpa [#allocation3], 1 }
  0xba   :  { %281 = vsyncpa [#allocation5], 1 }

// kernel: image_discriminator_forward.5
= control target key start
LH: loop header
LB: loop body
LE: loop exit
PB: predicated region body
PF: predicated region fallthrough
CT: control target
= control target key end

     0   :  { %10 = vsyncpa [#allocation3], 0  ;;  %s815_s18 = smov [#allocation2]   ;;  %s816_s20 = smov 64   ;;  %s931_s0 = inlined_call_operand.vmem [shape: bf16[32,576], index: 0, kind: input, shape index: {}]   ;;  %s932_s1 = inlined_call_operand.hbm [shape: bf16[576,128], index: 1, kind: input, shape index: {}]   ;;  %s933_s2 = inlined_call_operand.vmem [shape: bf16[32,128], index: 2, kind: output, shape index: {0}]   ;;  %s934_s3 = inlined_call_operand.vmem [shape: f32[1,128], index: 3, kind: output, shape index: {1}]   ;;  %s935_s4 = inlined_call_operand.vmem [shape: f32[1,128], index: 4, kind: output, shape index: {2}]  }
   0x1   :  { %s17_s17 = sshll.u32 %s932_s1, 4  ;;  %s19_s19 = sshll.u32 %s815_s18, 4  ;;  %s18_s17 = int_to_ptr.hbm [resolvable:$true] %s17_s17  ;;  %s20_s19 = int_to_ptr.vmem [resolvable:$true] %s19_s19 }
   0x2   :  { %s817_s21 = smov 4  }
   0x3   :  { %25 = dma.hbm_to_vmem [thread:$0]  %s18_s17, 4608, %s20_s19, [#allocation3], %s816_s20, %s816_s20, %s817_s21  }
   0x4   :  { %813 = dma.done.wait [#allocation3], 4608  }
   0x5   :  { %814 = vsyncadd [#allocation3], 4294962688  ;;  %v741_v0 = vld [vmem:[#allocation2 + $0x38] sm:$0xff]  ;;  %v740_v4 = vld [vmem:[#allocation2 + $0x30] sm:$0xff]  ;;  %vm387_vm0 = vcmask 523264  }
   0x6   :  { %v749_v1 = vld [vmem:[#allocation2 + $0x78] sm:$0xff]  ;;  %394 = vmatpush.bf16.msra.mxu0 %v741_v0  ;;  %v748_v5 = vld [vmem:[#allocation2 + $0x70] sm:$0xff]  ;;  %v739_v8 = vld [vmem:[#allocation2 + $0x28] sm:$0xff] }
   0x7   :  { %v757_v2 = vld [vmem:[#allocation2 + $0xb8] sm:$0xff]  ;;  %413 = vmatpush.bf16.msra.mxu1 %v749_v1  ;;  %v756_v6 = vld [vmem:[#allocation2 + $0xb0] sm:$0xff]  ;;  %v747_v9 = vld [vmem:[#allocation2 + $0x68] sm:$0xff] }
   0x8   :  { %v765_v3 = vld [vmem:[#allocation2 + $0xf8] sm:$0xff]  ;;  %432 = vmatpush.bf16.msra.mxu2 %v757_v2  ;;  %v764_v7 = vld [vmem:[#allocation2 + $0xf0] sm:$0xff]  ;;  %v755_v10 = vld [vmem:[#allocation2 + $0xa8] sm:$0xff] }
   0x9   :  { %451 = vmatpush.bf16.msra.mxu3 %v765_v3  ;;  %v763_v11 = vld [vmem:[#allocation2 + $0xe8] sm:$0xff]  ;;  %v738_v12 = vld [vmem:[#allocation2 + $0x20] sm:$0xff]  ;;  %v737_v16 = vld [vmem:[#allocation2 + $0x18] sm:$0xff] }
   0xa   :  { %395 = vmatpush.bf16.msra.mxu0 %v740_v4  ;;  %v746_v13 = vld [vmem:[#allocation2 + $0x60] sm:$0xff]  ;;  %v745_v17 = vld [vmem:[#allocation2 + $0x58] sm:$0xff]  ;;  %v736_v20 = vld [vmem:[#allocation2 + $0x10] sm:$0xff] }
   0xb   :  { %414 = vmatpush.bf16.msra.mxu1 %v748_v5  ;;  %v754_v14 = vld [vmem:[#allocation2 + $0xa0] sm:$0xff]  ;;  %v753_v18 = vld [vmem:[#allocation2 + $0x98] sm:$0xff]  ;;  %v744_v21 = vld [vmem:[#allocation2 + $0x50] sm:$0xff] }
   0xc   :  { %433 = vmatpush.bf16.msra.mxu2 %v756_v6  ;;  %v762_v15 = vld [vmem:[#allocation2 + $0xe0] sm:$0xff]  ;;  %v761_v19 = vld [vmem:[#allocation2 + $0xd8] sm:$0xff]  ;;  %v752_v22 = vld [vmem:[#allocation2 + $0x90] sm:$0xff] }
   0xd   :  { %452 = vmatpush.bf16.msra.mxu3 %v764_v7  ;;  %v760_v23 = vld [vmem:[#allocation2 + $0xd0] sm:$0xff]  ;;  %v735_v24 = vld [vmem:[#allocation2 + $0x8] sm:$0xff]  ;;  %v734_v28 = vld [vmem:[#allocation2] sm:$0xff] }
   0xe   :  { %396 = vmatpush.bf16.msra.mxu0 %v739_v8  ;;  %v743_v25 = vld [vmem:[#allocation2 + $0x48] sm:$0xff]  ;;  %v742_v29 = vld [vmem:[#allocation2 + $0x40] sm:$0xff]  ;;  %v726_v33 = vld [vmem:[%s931_s0 + $0x10] sm:$0xf0]  ;;  %v818_v8 = vmov 0.0  }
   0xf   :  { %415 = vmatpush.bf16.msra.mxu1 %v747_v9  ;;  %v751_v26 = vld [vmem:[#allocation2 + $0x88] sm:$0xff]  ;;  %v750_v30 = vld [vmem:[#allocation2 + $0x80] sm:$0xff]  ;;  %v542_v35 = vld [vmem:[%s931_s0 + $0x14] sm:$0xf0]  ;;  %35 = vst [vmem:[%s934_s3] sm:$0x1] %v818_v8 }
  0x10   :  { %434 = vmatpush.bf16.msra.mxu2 %v755_v10  ;;  %v759_v27 = vld [vmem:[#allocation2 + $0xc8] sm:$0xff]  ;;  %v758_v31 = vld [vmem:[#allocation2 + $0xc0] sm:$0xff]  ;;  %v727_v37 = vld [vmem:[%s931_s0 + $0x18] sm:$0xf0]  ;;  %36 = vst [vmem:[%s935_s4] sm:$0x1] %v818_v8 }
  0x11   :  { %453 = vmatpush.bf16.msra.mxu3 %v763_v11  ;;  %v540_v32 = vld [vmem:[%s931_s0] sm:$0xf]  ;;  %v724_v34 = vld [vmem:[%s931_s0 + $0x4] sm:$0xf]  ;;  %v548_v36 = vld [vmem:[%s931_s0 + $0x8] sm:$0xf] }
  0x12   :  { %397 = vmatpush.bf16.msra.mxu0 %v738_v12  ;;  %v725_v38 = vld [vmem:[%s931_s0 + $0xc] sm:$0xf]  ;;  %v550_v39 = vld [vmem:[%s931_s0 + $0x1c] sm:$0xf0]  ;;  %v769_v40 = vld [vmem:[#allocation2 + $0x118] sm:$0xff]  ;;  %v541_v41 = vor.u32 %v726_v33, %v540_v32  ;;  %v545_v42 = vor.u32 %v724_v34, %v542_v35  ;;  %v549_v43 = vor.u32 %v727_v37, %v548_v36 }
  0x13   :  { %416 = vmatpush.bf16.msra.mxu1 %v746_v13  ;;  %v553_v44 = vor.u32 %v725_v38, %v550_v39  ;;  %v768_v45 = vld [vmem:[#allocation2 + $0x110] sm:$0xff]  ;;  %v767_v46 = vld [vmem:[#allocation2 + $0x108] sm:$0xff]  ;;  %v766_v47 = vld [vmem:[#allocation2 + $0x100] sm:$0xff] }
  0x14   :  { %435 = vmatpush.bf16.msra.mxu2 %v754_v14  ;;  %v560_v48 = vld [vmem:[%s931_s0 + $0x28] sm:$0xf]  ;;  %v731_v49 = vld [vmem:[%s931_s0 + $0x38] sm:$0xf0]  ;;  %v729_v50 = vld [vmem:[%s931_s0 + $0x2c] sm:$0xf] }
  0x15   :  { %454 = vmatpush.bf16.msra.mxu3 %v762_v15  ;;  %v562_v51 = vld [vmem:[%s931_s0 + $0x3c] sm:$0xf0]  ;;  %v568_v52 = vld [vmem:[%s931_s0 + $0x30] sm:$0xf]  ;;  %v732_v53 = vld [vmem:[%s931_s0 + $0x40] sm:$0xf0]  ;;  %v561_v56 = vor.u32 %v731_v49, %v560_v48 }
  0x16   :  { %398 = vmatpush.bf16.msra.mxu0 %v737_v16  ;;  %v730_v54 = vld [vmem:[%s931_s0 + $0x34] sm:$0xf]  ;;  %v570_v55 = vld [vmem:[%s931_s0 + $0x44] sm:$0xf0]  ;;  %v565_v57 = vor.u32 %v729_v50, %v562_v51  ;;  %v569_v58 = vor.u32 %v732_v53, %v568_v52  ;;  %v556_v60 = vld [vmem:[%s931_s0 + $0x10] sm:$0xf] }
  0x17   :  { %417 = vmatpush.bf16.msra.mxu1 %v745_v17  ;;  %v573_v59 = vor.u32 %v730_v54, %v570_v55  ;;  %v728_v61 = vld [vmem:[%s931_s0 + $0x20] sm:$0xf0]  ;;  %v576_v62 = vld [vmem:[%s931_s0 + $0x38] sm:$0xf]  ;;  %v733_v63 = vld [vmem:[%s931_s0 + $0x48] sm:$0xf0] }
  0x18   :  { %436 = vmatpush.bf16.msra.mxu2 %v753_v18  ;;  %v557_v0 = vor.u32 %v728_v61, %v556_v60  ;;  %v577_v1 = vor.u32 %v733_v63, %v576_v62  ;;  %v497_v60 = vld [vmem:[%s934_s3] sm:$0x1] }
  0x19   :  { %455 = vmatpush.bf16.msra.mxu3 %v761_v19  ;;  %v509_v63 = vld [vmem:[%s935_s4] sm:$0x1] }
  0x1a   :  { %399 = vmatpush.bf16.msra.mxu0 %v736_v20 }
  0x1b   :  { %418 = vmatpush.bf16.msra.mxu1 %v744_v21 }
  0x1c   :  { %437 = vmatpush.bf16.msra.mxu2 %v752_v22 }
  0x1d   :  { %456 = vmatpush.bf16.msra.mxu3 %v760_v23 }
  0x1e   :  { %400 = vmatpush.bf16.msra.mxu0 %v735_v24 }
  0x1f   :  { %419 = vmatpush.bf16.msra.mxu1 %v743_v25 }
  0x20   :  { %438 = vmatpush.bf16.msra.mxu2 %v751_v26 }
  0x21   :  { %457 = vmatpush.bf16.msra.mxu3 %v759_v27 }
  0x22   :  { %401 = vmatpush.bf16.msra.mxu0 %v734_v28 }
  0x23   :  { %420 = vmatpush.bf16.msra.mxu1 %v742_v29 }
  0x24   :  { %439 = vmatpush.bf16.msra.mxu2 %v750_v30 }
  0x25   :  { %458 = vmatpush.bf16.msra.mxu3 %v758_v31  ;;  %402 = vmatmul.bf16.vlgmr.msra.gmra.mxu0 %v541_v41 }
  0x26   :  { %474 = vmatpush.bf16.msrb.mxu0 %v769_v40  ;;  %421 = vmatmul.bf16.vlgmr.msra.gmra.mxu1 %v545_v42 }
  0x27   :  { %781 = vmatpush.bf16.msrb.mxu1 %v769_v40  ;;  %440 = vmatmul.bf16.vlgmr.msra.gmra.mxu2 %v549_v43 }
  0x28   :  { %459 = vmatmul.bf16.vlgmr.msra.gmra.mxu3 %v553_v44 }
  0x2a   :  { %475 = vmatpush.bf16.msrb.mxu0 %v768_v45 }
  0x2b   :  { %782 = vmatpush.bf16.msrb.mxu1 %v768_v45 }
  0x2e   :  { %476 = vmatpush.bf16.msrb.mxu0 %v767_v46 }
  0x2f   :  { %783 = vmatpush.bf16.msrb.mxu1 %v767_v46 }
  0x32   :  { %477 = vmatpush.bf16.msrb.mxu0 %v766_v47 }
  0x33   :  { %784 = vmatpush.bf16.msrb.mxu1 %v766_v47 }
  0x35   :  { %407 = vmatmul.bf16.gmra.mxu0 %v561_v56 }
  0x36   :  { %426 = vmatmul.bf16.gmra.mxu1 %v565_v57 }
  0x37   :  { %445 = vmatmul.bf16.gmra.mxu2 %v569_v58 }
  0x38   :  { %464 = vmatmul.bf16.gmra.mxu3 %v573_v59 }
  0x45   :  { %722 = vmatmul.msk.bf16.vlgmr.msrb.gmra.mxu0 %vm387_vm0, %v557_v0 }
  0x46   :  { %723 = vmatmul.msk.bf16.vlgmr.msrb.gmra.mxu1 %vm387_vm0, %v577_v1 }
  0xa2   :  { %v403_v2 = vpop.f32.mrf.mxu0 }
  0xa3   :  { %v422_v3 = vpop.f32.mrf.mxu1 }
  0xa4   :  { %v423_v17 = vadd.f32 %v422_v3, %v403_v2 }
  0xaa   :  { %v441_v4 = vpop.f32.mrf.mxu2  ;;  %v405_v6 = vpop.f32.mrf.mxu0 }
  0xab   :  { %v460_v5 = vpop.f32.mrf.mxu3  ;;  %v424_v7 = vpop.f32.mrf.mxu1  ;;  %v442_v19 = vadd.f32 %v441_v4, %v423_v17 }
  0xac   :  { %v425_v22 = vadd.f32 %v424_v7, %v405_v6 }
  0xad   :  { %v461_v28 = vadd.f32 %v460_v5, %v442_v19 }
  0xb2   :  { %v443_v9 = vpop.f32.mrf.mxu2  ;;  %v408_v11 = vpop.f32.mrf.mxu0 }
  0xb3   :  { %v462_v10 = vpop.f32.mrf.mxu3  ;;  %v427_v12 = vpop.f32.mrf.mxu1  ;;  %v444_v25 = vadd.f32 %v443_v9, %v425_v22 }
  0xb4   :  { %v428_v23 = vadd.f32 %v427_v12, %v408_v11 }
  0xb5   :  { %v463_v31 = vadd.f32 %v462_v10, %v444_v25 }
  0xba   :  { %v446_v13 = vpop.f32.mrf.mxu2  ;;  %v410_v14 = vpop.f32.mrf.mxu0 }
  0xbb   :  { %v429_v15 = vpop.f32.mrf.mxu1  ;;  %v465_v16 = vpop.f32.mrf.mxu3  ;;  %v447_v26 = vadd.f32 %v446_v13, %v428_v23 }
  0xbc   :  { %v430_v24 = vadd.f32 %v429_v15, %v410_v14 }
  0xbd   :  { %v466_v32 = vadd.f32 %v465_v16, %v447_v26 }
  0xc2   :  { %v448_v18 = vpop.f32.mrf.mxu2  ;;  %v479_v20 = vpop.f32.mrf.mxu0 }
  0xc3   :  { %v484_v21 = vpop.f32.mrf.mxu1  ;;  %v449_v27 = vadd.f32 %v448_v18, %v430_v24  ;;  %v467_v29 = vpop.f32.mrf.mxu3  ;;  %v480_v30 = vadd.f32 %v479_v20, %v461_v28 }
  0xc4   :  { %v485_v36 = vadd.f32 %v484_v21, %v466_v32 }
  0xc5   :  { %v468_v33 = vadd.f32 %v467_v29, %v449_v27  ;;  %v510_v39 = vmul.f32 %v480_v30, %v480_v30 }
  0xc6   :  { %v512_v44 = vmul.f32 %v485_v36, %v485_v36 }
  0xca   :  { %v481_v34 = vpop.f32.mrf.mxu0 }
  0xcb   :  { %v486_v35 = vpop.f32.mrf.mxu1  ;;  %v482_v37 = vadd.f32 %v481_v34, %v463_v31 }
  0xcc   :  { %v487_v38 = vadd.f32 %v486_v35, %v468_v33 }
  0xcd   :  { %v773_v40 = vpack.c.bf16 %v482_v37, %v480_v30  ;;  %v498_v41 = vadd.f32 %v482_v37, %v480_v30  ;;  %v511_v42 = vmul.f32 %v482_v37, %v482_v37 }
  0xce   :  { %v778_v43 = vpack.c.bf16 %v487_v38, %v485_v36  ;;  %v513_v48 = vmul.f32 %v487_v38, %v487_v38 }
  0xcf   :  { %774 = vst [vmem:[%s933_s2] sm:$0xff] %v773_v40   ;;  %v514_v45 = vadd.f32 %v511_v42, %v510_v39  ;;  %v499_v46 = vadd.f32 %v498_v41, %v485_v36 }
  0xd0   :  { %780 = vst [vmem:[%s933_s2 + $0x8] sm:$0xff] %v778_v43  }
  0xd1   :  { %v500_v47 = vadd.f32 %v499_v46, %v487_v38  ;;  %v515_v49 = vadd.f32 %v514_v45, %v512_v44 }
  0xd3   :  { %v501_v50 = vrot.slane %v500_v47, 4  ;;  %v516_v51 = vadd.f32 %v515_v49, %v513_v48 }
  0xd5   :  { %v502_v52 = vadd.f32 %v501_v50, %v500_v47  ;;  %v517_v53 = vrot.slane %v516_v51, 4 }
  0xd7   :  { %v503_v54 = vrot.slane %v502_v52, 2  ;;  %v518_v55 = vadd.f32 %v517_v53, %v516_v51 }
  0xd9   :  { %v504_v56 = vadd.f32 %v503_v54, %v502_v52  ;;  %v519_v57 = vrot.slane %v518_v55, 2 }
  0xdb   :  { %v505_v58 = vrot.slane %v504_v56, 1  ;;  %v520_v59 = vadd.f32 %v519_v57, %v518_v55 }
  0xdd   :  { %v506_v61 = vadd.f32 %v505_v58, %v504_v56  ;;  %v521_v62 = vrot.slane %v520_v59, 1 }
  0xdf   :  { %v507_v0 = vadd.f32 %v506_v61, %v497_v60  ;;  %v522_v1 = vadd.f32 %v521_v62, %v520_v59 }
  0xe1   :  { %508 = vst [vmem:[%s934_s3] sm:$0x1] %v507_v0  ;;  %v523_v2 = vadd.f32 %v522_v1, %v509_v63 }
  0xe3   :  { %524 = vst [vmem:[%s935_s4] sm:$0x1] %v523_v2 }
  0xe4   :  { %537 = vsyncpa [#allocation3], 1 }

// kernel: image_discriminator_forward.6
= control target key start
LH: loop header
LB: loop body
LE: loop exit
PB: predicated region body
PF: predicated region fallthrough
CT: control target
= control target key end

     0   :  { %10 = vsyncpa [#allocation3], 0  ;;  %s1987_s18 = smov [#allocation2]   ;;  %s1988_s20 = smov 128   ;;  %s2103_s0 = inlined_call_operand.vmem [shape: bf16[8,1152], index: 0, kind: input, shape index: {}]   ;;  %s2104_s1 = inlined_call_operand.hbm [shape: bf16[1152,256], index: 1, kind: input, shape index: {}]   ;;  %s2105_s2 = inlined_call_operand.vmem [shape: bf16[8,256], index: 2, kind: output, shape index: {0}]   ;;  %s2106_s3 = inlined_call_operand.vmem [shape: f32[1,256], index: 3, kind: output, shape index: {1}]   ;;  %s2107_s4 = inlined_call_operand.vmem [shape: f32[1,256], index: 4, kind: output, shape index: {2}]  }
   0x1   :  { %s17_s17 = sshll.u32 %s2104_s1, 4  ;;  %s19_s19 = sshll.u32 %s1987_s18, 4  ;;  %s18_s17 = int_to_ptr.hbm [resolvable:$true] %s17_s17  ;;  %s20_s19 = int_to_ptr.vmem [resolvable:$true] %s19_s19 }
   0x2   :  { %s1989_s21 = smov 8  }
   0x3   :  { %25 = dma.hbm_to_vmem [thread:$0]  %s18_s17, 18432, %s20_s19, [#allocation3], %s1988_s20, %s1988_s20, %s1989_s21  }
   0x4   :  { %1985 = dma.done.wait [#allocation3], 18432  }
   0x5   :  { %1986 = vsyncadd [#allocation3], 4294948864  ;;  %v1295_v0 = vld [vmem:[#allocation2 + $0x70] sm:$0xf]  ;;  %v1828_v1 = vld [vmem:[#allocation2 + $0x74] sm:$0xf0] }
   0x6   :  { %v1359_v2 = vld [vmem:[#allocation2 + $0xf0] sm:$0xf]  ;;  %v1296_v3 = vor.u32 %v1828_v1, %v1295_v0  ;;  %v1844_v4 = vld [vmem:[#allocation2 + $0xf4] sm:$0xf0]  ;;  %v1287_v11 = vld [vmem:[#allocation2 + $0x60] sm:$0xf] }
   0x7   :  { %v1423_v5 = vld [vmem:[#allocation2 + $0x170] sm:$0xf]  ;;  %v1860_v6 = vld [vmem:[#allocation2 + $0x174] sm:$0xf0]  ;;  %v1360_v7 = vor.u32 %v1844_v4, %v1359_v2  ;;  %v1826_v13 = vld [vmem:[#allocation2 + $0x64] sm:$0xf0] }
   0x8   :  { %v1424_v8 = vor.u32 %v1860_v6, %v1423_v5  ;;  %v1487_v9 = vld [vmem:[#allocation2 + $0x1f0] sm:$0xf]  ;;  %v1876_v10 = vld [vmem:[#allocation2 + $0x1f4] sm:$0xf0]  ;;  %941 = vmatpush.bf16.msra.mxu0 %v1296_v3  ;;  %v1351_v14 = vld [vmem:[#allocation2 + $0xe0] sm:$0xf]  ;;  %v1288_v16 = vor.u32 %v1826_v13, %v1287_v11 }
   0x9   :  { %v1488_v12 = vor.u32 %v1876_v10, %v1487_v9  ;;  %v1842_v15 = vld [vmem:[#allocation2 + $0xe4] sm:$0xf0]  ;;  %954 = vmatpush.bf16.msra.mxu1 %v1360_v7  ;;  %v1415_v18 = vld [vmem:[#allocation2 + $0x160] sm:$0xf]  ;;  %v1279_v23 = vld [vmem:[#allocation2 + $0x50] sm:$0xf] }
   0xa   :  { %967 = vmatpush.bf16.msra.mxu2 %v1424_v8  ;;  %v1352_v17 = vor.u32 %v1842_v15, %v1351_v14  ;;  %v1858_v19 = vld [vmem:[#allocation2 + $0x164] sm:$0xf0]  ;;  %v1479_v20 = vld [vmem:[#allocation2 + $0x1e0] sm:$0xf]  ;;  %v1824_v24 = vld [vmem:[#allocation2 + $0x54] sm:$0xf0] }
   0xb   :  { %980 = vmatpush.bf16.msra.mxu3 %v1488_v12  ;;  %v1416_v21 = vor.u32 %v1858_v19, %v1415_v18  ;;  %v1874_v22 = vld [vmem:[#allocation2 + $0x1e4] sm:$0xf0]  ;;  %v1343_v26 = vld [vmem:[#allocation2 + $0xd0] sm:$0xf]  ;;  %v1840_v27 = vld [vmem:[#allocation2 + $0xd4] sm:$0xf0]  ;;  %v1280_v29 = vor.u32 %v1824_v24, %v1279_v23 }
   0xc   :  { %v1480_v25 = vor.u32 %v1874_v22, %v1479_v20  ;;  %v1407_v28 = vld [vmem:[#allocation2 + $0x150] sm:$0xf]  ;;  %942 = vmatpush.bf16.msra.mxu0 %v1288_v16  ;;  %v1856_v30 = vld [vmem:[#allocation2 + $0x154] sm:$0xf0]  ;;  %v1344_v33 = vor.u32 %v1840_v27, %v1343_v26  ;;  %v1271_v35 = vld [vmem:[#allocation2 + $0x40] sm:$0xf] }
   0xd   :  { %v1471_v31 = vld [vmem:[#allocation2 + $0x1d0] sm:$0xf]  ;;  %v1872_v32 = vld [vmem:[#allocation2 + $0x1d4] sm:$0xf0]  ;;  %955 = vmatpush.bf16.msra.mxu1 %v1352_v17  ;;  %v1408_v34 = vor.u32 %v1856_v30, %v1407_v28  ;;  %v1822_v36 = vld [vmem:[#allocation2 + $0x44] sm:$0xf0] }
   0xe   :  { %968 = vmatpush.bf16.msra.mxu2 %v1416_v21  ;;  %v1335_v37 = vld [vmem:[#allocation2 + $0xc0] sm:$0xf]  ;;  %v1472_v38 = vor.u32 %v1872_v32, %v1471_v31  ;;  %v1838_v39 = vld [vmem:[#allocation2 + $0xc4] sm:$0xf0]  ;;  %v1272_v44 = vor.u32 %v1822_v36, %v1271_v35  ;;  %v1263_v47 = vld [vmem:[#allocation2 + $0x30] sm:$0xf] }
   0xf   :  { %981 = vmatpush.bf16.msra.mxu3 %v1480_v25  ;;  %v1399_v40 = vld [vmem:[#allocation2 + $0x140] sm:$0xf]  ;;  %v1854_v41 = vld [vmem:[#allocation2 + $0x144] sm:$0xf0]  ;;  %v1336_v45 = vor.u32 %v1838_v39, %v1335_v37  ;;  %v1820_v48 = vld [vmem:[#allocation2 + $0x34] sm:$0xf0] }
  0x10   :  { %v1463_v42 = vld [vmem:[#allocation2 + $0x1c0] sm:$0xf]  ;;  %v1870_v43 = vld [vmem:[#allocation2 + $0x1c4] sm:$0xf0]  ;;  %943 = vmatpush.bf16.msra.mxu0 %v1280_v29  ;;  %v1400_v46 = vor.u32 %v1854_v41, %v1399_v40  ;;  %v1327_v49 = vld [vmem:[#allocation2 + $0xb0] sm:$0xf]  ;;  %v1264_v56 = vor.u32 %v1820_v48, %v1263_v47 }
  0x11   :  { %956 = vmatpush.bf16.msra.mxu1 %v1344_v33  ;;  %v1464_v50 = vor.u32 %v1870_v43, %v1463_v42  ;;  %v1836_v51 = vld [vmem:[#allocation2 + $0xb4] sm:$0xf0]  ;;  %v1391_v52 = vld [vmem:[#allocation2 + $0x130] sm:$0xf]  ;;  %v1255_v59 = vld [vmem:[#allocation2 + $0x20] sm:$0xf] }
  0x12   :  { %969 = vmatpush.bf16.msra.mxu2 %v1408_v34  ;;  %v1852_v53 = vld [vmem:[#allocation2 + $0x134] sm:$0xf0]  ;;  %v1455_v54 = vld [vmem:[#allocation2 + $0x1b0] sm:$0xf]  ;;  %v1328_v57 = vor.u32 %v1836_v51, %v1327_v49  ;;  %v1818_v60 = vld [vmem:[#allocation2 + $0x24] sm:$0xf0] }
  0x13   :  { %982 = vmatpush.bf16.msra.mxu3 %v1472_v38  ;;  %v1868_v55 = vld [vmem:[#allocation2 + $0x1b4] sm:$0xf0]  ;;  %v1392_v58 = vor.u32 %v1852_v53, %v1391_v52  ;;  %v1319_v61 = vld [vmem:[#allocation2 + $0xa0] sm:$0xf]  ;;  %v1834_v63 = vld [vmem:[#allocation2 + $0xa4] sm:$0xf0]  ;;  %v1256_v4 = vor.u32 %v1818_v60, %v1255_v59 }
  0x14   :  { %944 = vmatpush.bf16.msra.mxu0 %v1272_v44  ;;  %v1456_v62 = vor.u32 %v1868_v55, %v1455_v54  ;;  %v1383_v0 = vld [vmem:[#allocation2 + $0x120] sm:$0xf]  ;;  %v1850_v1 = vld [vmem:[#allocation2 + $0x124] sm:$0xf0]  ;;  %v1320_v5 = vor.u32 %v1834_v63, %v1319_v61  ;;  %v1247_v7 = vld [vmem:[#allocation2 + $0x10] sm:$0xf] }
  0x15   :  { %957 = vmatpush.bf16.msra.mxu1 %v1336_v45  ;;  %v1447_v2 = vld [vmem:[#allocation2 + $0x1a0] sm:$0xf]  ;;  %v1866_v3 = vld [vmem:[#allocation2 + $0x1a4] sm:$0xf0]  ;;  %v1384_v6 = vor.u32 %v1850_v1, %v1383_v0  ;;  %v1816_v8 = vld [vmem:[#allocation2 + $0x14] sm:$0xf0] }
  0x16   :  { %970 = vmatpush.bf16.msra.mxu2 %v1400_v46  ;;  %v1311_v9 = vld [vmem:[#allocation2 + $0x90] sm:$0xf]  ;;  %v1448_v10 = vor.u32 %v1866_v3, %v1447_v2  ;;  %v1832_v11 = vld [vmem:[#allocation2 + $0x94] sm:$0xf0]  ;;  %v1248_v16 = vor.u32 %v1816_v8, %v1247_v7  ;;  %v1239_v17 = vld [vmem:[#allocation2] sm:$0xf] }
  0x17   :  { %983 = vmatpush.bf16.msra.mxu3 %v1464_v50  ;;  %v1375_v12 = vld [vmem:[#allocation2 + $0x110] sm:$0xf]  ;;  %v1848_v13 = vld [vmem:[#allocation2 + $0x114] sm:$0xf0]  ;;  %v1814_v18 = vld [vmem:[#allocation2 + $0x4] sm:$0xf0]  ;;  %v1312_v19 = vor.u32 %v1832_v11, %v1311_v9 }
  0x18   :  { %945 = vmatpush.bf16.msra.mxu0 %v1264_v56  ;;  %v1439_v14 = vld [vmem:[#allocation2 + $0x190] sm:$0xf]  ;;  %v1864_v15 = vld [vmem:[#allocation2 + $0x194] sm:$0xf0]  ;;  %v1376_v20 = vor.u32 %v1848_v13, %v1375_v12  ;;  %v1303_v21 = vld [vmem:[#allocation2 + $0x80] sm:$0xf]  ;;  %v1240_v31 = vor.u32 %v1814_v18, %v1239_v17 }
  0x19   :  { %958 = vmatpush.bf16.msra.mxu1 %v1328_v57  ;;  %v1830_v22 = vld [vmem:[#allocation2 + $0x84] sm:$0xf0]  ;;  %v1367_v23 = vld [vmem:[#allocation2 + $0x100] sm:$0xf]  ;;  %v1440_v24 = vor.u32 %v1864_v15, %v1439_v14  ;;  %v1551_v26 = vld [vmem:[#allocation2 + $0x270] sm:$0xf] }
  0x1a   :  { %971 = vmatpush.bf16.msra.mxu2 %v1392_v58  ;;  %v1846_v25 = vld [vmem:[#allocation2 + $0x104] sm:$0xf0]  ;;  %v1892_v27 = vld [vmem:[#allocation2 + $0x274] sm:$0xf0]  ;;  %v1615_v28 = vld [vmem:[#allocation2 + $0x2f0] sm:$0xf]  ;;  %v1304_v35 = vor.u32 %v1830_v22, %v1303_v21 }
  0x1b   :  { %984 = vmatpush.bf16.msra.mxu3 %v1456_v62  ;;  %v1908_v29 = vld [vmem:[#allocation2 + $0x2f4] sm:$0xf0]  ;;  %v1679_v30 = vld [vmem:[#allocation2 + $0x370] sm:$0xf]  ;;  %v1431_v33 = vld [vmem:[#allocation2 + $0x180] sm:$0xf]  ;;  %v1368_v36 = vor.u32 %v1846_v25, %v1367_v23  ;;  %v1552_v39 = vor.u32 %v1892_v27, %v1551_v26 }
  0x1c   :  { %946 = vmatpush.bf16.msra.mxu0 %v1256_v4  ;;  %v1924_v32 = vld [vmem:[#allocation2 + $0x374] sm:$0xf0]  ;;  %v1862_v34 = vld [vmem:[#allocation2 + $0x184] sm:$0xf0]  ;;  %v1743_v37 = vld [vmem:[#allocation2 + $0x3f0] sm:$0xf]  ;;  %v1616_v40 = vor.u32 %v1908_v29, %v1615_v28 }
  0x1d   :  { %959 = vmatpush.bf16.msra.mxu1 %v1320_v5  ;;  %v1940_v38 = vld [vmem:[#allocation2 + $0x3f4] sm:$0xf0]  ;;  %v1543_v41 = vld [vmem:[#allocation2 + $0x260] sm:$0xf]  ;;  %v1680_v42 = vor.u32 %v1924_v32, %v1679_v30  ;;  %v1432_v43 = vor.u32 %v1862_v34, %v1431_v33  ;;  %v1890_v44 = vld [vmem:[#allocation2 + $0x264] sm:$0xf0] }
  0x1e   :  { %972 = vmatpush.bf16.msra.mxu2 %v1384_v6  ;;  %v1607_v45 = vld [vmem:[#allocation2 + $0x2e0] sm:$0xf]  ;;  %v1906_v46 = vld [vmem:[#allocation2 + $0x2e4] sm:$0xf0]  ;;  %v1744_v47 = vor.u32 %v1940_v38, %v1743_v37  ;;  %v1544_v52 = vor.u32 %v1890_v44, %v1543_v41  ;;  %v1535_v54 = vld [vmem:[#allocation2 + $0x250] sm:$0xf] }
  0x1f   :  { %985 = vmatpush.bf16.msra.mxu3 %v1448_v10  ;;  %v1671_v48 = vld [vmem:[#allocation2 + $0x360] sm:$0xf]  ;;  %v1922_v49 = vld [vmem:[#allocation2 + $0x364] sm:$0xf0]  ;;  %v1608_v53 = vor.u32 %v1906_v46, %v1607_v45  ;;  %v1888_v55 = vld [vmem:[#allocation2 + $0x254] sm:$0xf0] }
  0x20   :  { %947 = vmatpush.bf16.msra.mxu0 %v1248_v16  ;;  %v1735_v50 = vld [vmem:[#allocation2 + $0x3e0] sm:$0xf]  ;;  %v1938_v51 = vld [vmem:[#allocation2 + $0x3e4] sm:$0xf0]  ;;  %v1672_v57 = vor.u32 %v1922_v49, %v1671_v48  ;;  %v1599_v58 = vld [vmem:[#allocation2 + $0x2d0] sm:$0xf]  ;;  %v1536_v4 = vor.u32 %v1888_v55, %v1535_v54 }
  0x21   :  { %960 = vmatpush.bf16.msra.mxu1 %v1312_v19  ;;  %v41_v56 = vld [vmem:[%s2103_s0 + $0x8] sm:$0xff]  ;;  %v1904_v59 = vld [vmem:[#allocation2 + $0x2d4] sm:$0xf0]  ;;  %v40_v61 = vld [vmem:[%s2103_s0] sm:$0xff]  ;;  %v1736_v63 = vor.u32 %v1938_v51, %v1735_v50  ;;  %vm1193_vm1 = vcmask 1040384  }
  0x22   :  { %973 = vmatpush.bf16.msra.mxu2 %v1376_v20  ;;  %v196_v60 = vunpack.c.l.b16 %v41_v56  ;;  %v197_v62 = vunpack.c.h.b16 %v41_v56  ;;  %v1663_v0 = vld [vmem:[#allocation2 + $0x350] sm:$0xf]  ;;  %v1920_v1 = vld [vmem:[#allocation2 + $0x354] sm:$0xf0]  ;;  %v194_v2 = vunpack.c.l.b16 %v40_v61  ;;  %v195_v3 = vunpack.c.h.b16 %v40_v61  ;;  %v1527_v10 = vld [vmem:[#allocation2 + $0x240] sm:$0xf] }
  0x23   :  { %986 = vmatpush.bf16.msra.mxu3 %v1440_v24  ;;  %v1727_v5 = vld [vmem:[#allocation2 + $0x3d0] sm:$0xf]  ;;  %v1936_v6 = vld [vmem:[#allocation2 + $0x3d4] sm:$0xf0]  ;;  %v1600_v9 = vor.u32 %v1904_v59, %v1599_v58  ;;  %v1664_v13 = vor.u32 %v1920_v1, %v1663_v0  ;;  %v1886_v14 = vld [vmem:[#allocation2 + $0x244] sm:$0xf0] }
  0x24   :  { %948 = vmatpush.bf16.msra.mxu0 %v1240_v31  ;;  %v2025_v7 = vpack.c.b16 %v196_v60, %v196_v60  ;;  %v2027_v8 = vpack.c.b16 %v197_v62, %v197_v62  ;;  %v2029_v11 = vpack.c.b16 %v194_v2, %v194_v2  ;;  %v2031_v12 = vpack.c.b16 %v195_v3, %v195_v3  ;;  %v1591_v15 = vld [vmem:[#allocation2 + $0x2c0] sm:$0xf]  ;;  %v1902_v16 = vld [vmem:[#allocation2 + $0x2c4] sm:$0xf0]  ;;  %v1519_v24 = vld [vmem:[#allocation2 + $0x230] sm:$0xf] }
  0x25   :  { %961 = vmatpush.bf16.msra.mxu1 %v1304_v35  ;;  %v1728_v17 = vor.u32 %v1936_v6, %v1727_v5  ;;  %v1655_v18 = vld [vmem:[#allocation2 + $0x340] sm:$0xf]  ;;  %v1918_v19 = vld [vmem:[#allocation2 + $0x344] sm:$0xf0]  ;;  %v1528_v22 = vor.u32 %v1886_v14, %v1527_v10  ;;  %v1592_v23 = vor.u32 %v1902_v16, %v1591_v15  ;;  %v1884_v26 = vld [vmem:[#allocation2 + $0x234] sm:$0xf0] }
  0x26   :  { %974 = vmatpush.bf16.msra.mxu2 %v1368_v36  ;;  %v1719_v20 = vld [vmem:[#allocation2 + $0x3c0] sm:$0xf]  ;;  %v1934_v21 = vld [vmem:[#allocation2 + $0x3c4] sm:$0xf0]  ;;  %v1656_v25 = vor.u32 %v1918_v19, %v1655_v18  ;;  %v1583_v27 = vld [vmem:[#allocation2 + $0x2b0] sm:$0xf]  ;;  %v1520_v34 = vor.u32 %v1884_v26, %v1519_v24 }
  0x27   :  { %987 = vmatpush.bf16.msra.mxu3 %v1432_v43  ;;  %949 = vmatmul.bf16.vlgmr.msra.gmra.mxu0 %v2029_v11  ;;  %v1900_v28 = vld [vmem:[#allocation2 + $0x2b4] sm:$0xf0]  ;;  %v1720_v29 = vor.u32 %v1934_v21, %v1719_v20  ;;  %v1647_v30 = vld [vmem:[#allocation2 + $0x330] sm:$0xf]  ;;  %v1511_v36 = vld [vmem:[#allocation2 + $0x220] sm:$0xf] }
  0x28   :  { %993 = vmatpush.bf16.msrb.mxu0 %v1552_v39  ;;  %962 = vmatmul.bf16.vlgmr.msra.gmra.mxu1 %v2031_v12  ;;  %v1916_v31 = vld [vmem:[#allocation2 + $0x334] sm:$0xf0]  ;;  %v1711_v32 = vld [vmem:[#allocation2 + $0x3b0] sm:$0xf]  ;;  %v1584_v35 = vor.u32 %v1900_v28, %v1583_v27  ;;  %v1882_v38 = vld [vmem:[#allocation2 + $0x224] sm:$0xf0] }
  0x29   :  { %1006 = vmatpush.bf16.msrb.mxu1 %v1616_v40  ;;  %975 = vmatmul.bf16.vlgmr.msra.gmra.mxu2 %v2025_v7  ;;  %v1932_v33 = vld [vmem:[#allocation2 + $0x3b4] sm:$0xf0]  ;;  %v1648_v37 = vor.u32 %v1916_v31, %v1647_v30  ;;  %v1575_v39 = vld [vmem:[#allocation2 + $0x2a0] sm:$0xf]  ;;  %v1898_v40 = vld [vmem:[#allocation2 + $0x2a4] sm:$0xf0]  ;;  %v1512_v46 = vor.u32 %v1882_v38, %v1511_v36 }
  0x2a   :  { %1019 = vmatpush.bf16.msrb.mxu2 %v1680_v42  ;;  %988 = vmatmul.bf16.vlgmr.msra.gmra.mxu3 %v2027_v8  ;;  %v1712_v41 = vor.u32 %v1932_v33, %v1711_v32  ;;  %v1639_v42 = vld [vmem:[#allocation2 + $0x320] sm:$0xf]  ;;  %v1914_v43 = vld [vmem:[#allocation2 + $0x324] sm:$0xf0]  ;;  %v1503_v48 = vld [vmem:[#allocation2 + $0x210] sm:$0xf] }
  0x2b   :  { %1032 = vmatpush.bf16.msrb.mxu3 %v1744_v47  ;;  %v1703_v44 = vld [vmem:[#allocation2 + $0x3a0] sm:$0xf]  ;;  %v1930_v45 = vld [vmem:[#allocation2 + $0x3a4] sm:$0xf0]  ;;  %v1576_v47 = vor.u32 %v1898_v40, %v1575_v39  ;;  %v1640_v49 = vor.u32 %v1914_v43, %v1639_v42  ;;  %v1880_v50 = vld [vmem:[#allocation2 + $0x214] sm:$0xf0] }
  0x2c   :  { %994 = vmatpush.bf16.msrb.mxu0 %v1544_v52  ;;  %v1567_v51 = vld [vmem:[#allocation2 + $0x290] sm:$0xf]  ;;  %v1896_v52 = vld [vmem:[#allocation2 + $0x294] sm:$0xf0]  ;;  %v1495_v58 = vld [vmem:[#allocation2 + $0x200] sm:$0xf]  ;;  %v1504_v60 = vor.u32 %v1880_v50, %v1503_v48 }
  0x2d   :  { %1007 = vmatpush.bf16.msrb.mxu1 %v1608_v53  ;;  %v1704_v53 = vor.u32 %v1930_v45, %v1703_v44  ;;  %v1631_v54 = vld [vmem:[#allocation2 + $0x310] sm:$0xf]  ;;  %v1912_v55 = vld [vmem:[#allocation2 + $0x314] sm:$0xf0]  ;;  %v1878_v59 = vld [vmem:[#allocation2 + $0x204] sm:$0xf0]  ;;  %v1568_v61 = vor.u32 %v1896_v52, %v1567_v51 }
  0x2e   :  { %1020 = vmatpush.bf16.msrb.mxu2 %v1672_v57  ;;  %v1695_v56 = vld [vmem:[#allocation2 + $0x390] sm:$0xf]  ;;  %v1928_v57 = vld [vmem:[#allocation2 + $0x394] sm:$0xf0]  ;;  %v1559_v62 = vld [vmem:[#allocation2 + $0x280] sm:$0xf]  ;;  %v1632_v1 = vor.u32 %v1912_v55, %v1631_v54 }
  0x2f   :  { %1033 = vmatpush.bf16.msrb.mxu3 %v1736_v63  ;;  %v1894_v63 = vld [vmem:[#allocation2 + $0x284] sm:$0xf0]  ;;  %v42_v0 = vld [vmem:[%s2103_s0 + $0x10] sm:$0xff]  ;;  %v1623_v2 = vld [vmem:[#allocation2 + $0x300] sm:$0xf]  ;;  %v1696_v5 = vor.u32 %v1928_v57, %v1695_v56 }
  0x30   :  { %995 = vmatpush.bf16.msrb.mxu0 %v1536_v4  ;;  %v1910_v3 = vld [vmem:[#allocation2 + $0x304] sm:$0xf0]  ;;  %v43_v4 = vld [vmem:[%s2103_s0 + $0x18] sm:$0xff]  ;;  %v1807_v6 = vld [vmem:[#allocation2 + $0x470] sm:$0xf]  ;;  %v198_v16 = vunpack.c.l.b16 %v42_v0  ;;  %v1560_v18 = vor.u32 %v1894_v63, %v1559_v62  ;;  %v199_v26 = vunpack.c.h.b16 %v42_v0 }
  0x31   :  { %1008 = vmatpush.bf16.msrb.mxu1 %v1600_v9  ;;  %v1956_v9 = vld [vmem:[#allocation2 + $0x474] sm:$0xf0]  ;;  %v1827_v10 = vld [vmem:[#allocation2 + $0x74] sm:$0xf]  ;;  %v1361_v15 = vld [vmem:[#allocation2 + $0xf8] sm:$0xf0]  ;;  %v200_v21 = vunpack.c.l.b16 %v43_v4 }
  0x32   :  { %1021 = vmatpush.bf16.msrb.mxu2 %v1664_v13  ;;  %v1297_v13 = vld [vmem:[#allocation2 + $0x78] sm:$0xf0]  ;;  %v1843_v14 = vld [vmem:[#allocation2 + $0xf4] sm:$0xf]  ;;  %v1687_v19 = vld [vmem:[#allocation2 + $0x380] sm:$0xf]  ;;  %v2043_v36 = vpack.c.b16 %v198_v16, %v198_v16  ;;  %v2047_v43 = vpack.c.b16 %v199_v26, %v199_v26 }
  0x33   :  { %1034 = vmatpush.bf16.msrb.mxu3 %v1728_v17  ;;  %v1496_v17 = vor.u32 %v1878_v59, %v1495_v58  ;;  %v1926_v20 = vld [vmem:[#allocation2 + $0x384] sm:$0xf0]  ;;  %v1859_v24 = vld [vmem:[#allocation2 + $0x174] sm:$0xf]  ;;  %v1300_v27 = vor.u32 %v1827_v10, %v1297_v13  ;;  %v1364_v28 = vor.u32 %v1843_v14, %v1361_v15  ;;  %v1825_v31 = vld [vmem:[#allocation2 + $0x64] sm:$0xf]  ;;  %v2045_v39 = vpack.c.b16 %v200_v21, %v200_v21 }
  0x34   :  { %996 = vmatpush.bf16.msrb.mxu0 %v1528_v22  ;;  %v1624_v22 = vor.u32 %v1910_v3, %v1623_v2  ;;  %v1954_v30 = vld [vmem:[#allocation2 + $0x464] sm:$0xf0]  ;;  %v1688_v32 = vor.u32 %v1926_v20, %v1687_v19  ;;  %v1289_v33 = vld [vmem:[#allocation2 + $0x68] sm:$0xf0]  ;;  %v1823_v48 = vld [vmem:[#allocation2 + $0x54] sm:$0xf] }
  0x35   :  { %1009 = vmatpush.bf16.msrb.mxu1 %v1592_v23  ;;  %v1808_v23 = vor.u32 %v1956_v9, %v1807_v6  ;;  %v1417_v42 = vld [vmem:[#allocation2 + $0x168] sm:$0xf0]  ;;  %v1292_v44 = vor.u32 %v1825_v31, %v1289_v33  ;;  %v1281_v50 = vld [vmem:[#allocation2 + $0x58] sm:$0xf0]  ;;  %v1839_v51 = vld [vmem:[#allocation2 + $0xd4] sm:$0xf] }
  0x36   :  { %1022 = vmatpush.bf16.msrb.mxu2 %v1656_v25  ;;  %v1425_v25 = vld [vmem:[#allocation2 + $0x178] sm:$0xf0]  ;;  %v1855_v55 = vld [vmem:[#allocation2 + $0x154] sm:$0xf]  ;;  %v1284_v57 = vor.u32 %v1823_v48, %v1281_v50  ;;  %v1783_v59 = vld [vmem:[#allocation2 + $0x440] sm:$0xf] }
  0x37   :  { %1035 = vmatpush.bf16.msrb.mxu3 %v1720_v29  ;;  %v1799_v29 = vld [vmem:[#allocation2 + $0x460] sm:$0xf]  ;;  %v1428_v38 = vor.u32 %v1859_v24, %v1425_v25  ;;  %v1345_v52 = vld [vmem:[#allocation2 + $0xd8] sm:$0xf0]  ;;  %v1273_v62 = vld [vmem:[#allocation2 + $0x48] sm:$0xf0] }
  0x38   :  { %997 = vmatpush.bf16.msrb.mxu0 %v1520_v34  ;;  %v1841_v34 = vld [vmem:[#allocation2 + $0xe4] sm:$0xf]  ;;  %v1800_v40 = vor.u32 %v1954_v30, %v1799_v29  ;;  %v1409_v56 = vld [vmem:[#allocation2 + $0x158] sm:$0xf0]  ;;  %v1348_v58 = vor.u32 %v1839_v51, %v1345_v52  ;;  %v1337_v0 = vld [vmem:[#allocation2 + $0xc8] sm:$0xf0] }
  0x39   :  { %1010 = vmatpush.bf16.msrb.mxu1 %v1584_v35  ;;  %v1353_v35 = vld [vmem:[#allocation2 + $0xe8] sm:$0xf0]  ;;  %v1837_v63 = vld [vmem:[#allocation2 + $0xc4] sm:$0xf]  ;;  %v1775_v9 = vld [vmem:[#allocation2 + $0x430] sm:$0xf] }
  0x3a   :  { %1023 = vmatpush.bf16.msrb.mxu2 %v1648_v37  ;;  %v201_v37 = vunpack.c.h.b16 %v43_v4  ;;  %v1356_v45 = vor.u32 %v1841_v34, %v1353_v35  ;;  %v1853_v3 = vld [vmem:[#allocation2 + $0x144] sm:$0xf]  ;;  %v1401_v4 = vld [vmem:[#allocation2 + $0x148] sm:$0xf0]  ;;  %v1340_v6 = vor.u32 %v1837_v63, %v1337_v0  ;;  %v1948_v10 = vld [vmem:[#allocation2 + $0x434] sm:$0xf0] }
  0x3b   :  { %1036 = vmatpush.bf16.msrb.mxu3 %v1712_v41  ;;  %v1857_v41 = vld [vmem:[#allocation2 + $0x164] sm:$0xf]  ;;  %v1819_v13 = vld [vmem:[#allocation2 + $0x34] sm:$0xf]  ;;  %v1265_v14 = vld [vmem:[#allocation2 + $0x38] sm:$0xf0] }
  0x3c   :  { %998 = vmatpush.bf16.msrb.mxu0 %v1512_v46  ;;  %v1791_v46 = vld [vmem:[#allocation2 + $0x450] sm:$0xf]  ;;  %v1835_v15 = vld [vmem:[#allocation2 + $0xb4] sm:$0xf]  ;;  %v1329_v16 = vld [vmem:[#allocation2 + $0xb8] sm:$0xf0]  ;;  %v1268_v21 = vor.u32 %v1819_v13, %v1265_v14 }
  0x3d   :  { %1011 = vmatpush.bf16.msrb.mxu1 %v1576_v47  ;;  %v1952_v47 = vld [vmem:[#allocation2 + $0x454] sm:$0xf0]  ;;  %v1851_v19 = vld [vmem:[#allocation2 + $0x134] sm:$0xf]  ;;  %v1393_v20 = vld [vmem:[#allocation2 + $0x138] sm:$0xf0] }
  0x3e   :  { %1024 = vmatpush.bf16.msrb.mxu2 %v1640_v49  ;;  %v2050_v49 = vpack.c.b16 %v201_v37, %v201_v37  ;;  %v1792_v54 = vor.u32 %v1952_v47, %v1791_v46  ;;  %v1946_v24 = vld [vmem:[#allocation2 + $0x424] sm:$0xf0]  ;;  %v1817_v25 = vld [vmem:[#allocation2 + $0x24] sm:$0xf]  ;;  %v1257_v26 = vld [vmem:[#allocation2 + $0x28] sm:$0xf0]  ;;  %v1396_v29 = vor.u32 %v1851_v19, %v1393_v20 }
  0x3f   :  { %1037 = vmatpush.bf16.msrb.mxu3 %v1704_v53  ;;  %v1420_v53 = vor.u32 %v1857_v41, %v1417_v42  ;;  %v1849_v31 = vld [vmem:[#allocation2 + $0x124] sm:$0xf]  ;;  %v1260_v33 = vor.u32 %v1817_v25, %v1257_v26  ;;  %v1759_v35 = vld [vmem:[#allocation2 + $0x410] sm:$0xf]  ;;  %v1944_v37 = vld [vmem:[#allocation2 + $0x414] sm:$0xf0] }
  0x40   :  { %999 = vmatpush.bf16.msrb.mxu0 %v1504_v60  ;;  %v1950_v60 = vld [vmem:[#allocation2 + $0x444] sm:$0xf0]  ;;  %v1831_v41 = vld [vmem:[#allocation2 + $0x94] sm:$0xf]  ;;  %v1313_v42 = vld [vmem:[#allocation2 + $0x98] sm:$0xf0]  ;;  %v1760_v46 = vor.u32 %v1944_v37, %v1759_v35 }
  0x41   :  { %1012 = vmatpush.bf16.msrb.mxu1 %v1568_v61  ;;  %v1821_v61 = vld [vmem:[#allocation2 + $0x44] sm:$0xf]  ;;  %v1784_v2 = vor.u32 %v1950_v60, %v1783_v59  ;;  %v1377_v47 = vld [vmem:[#allocation2 + $0x118] sm:$0xf0]  ;;  %v1751_v48 = vld [vmem:[#allocation2 + $0x400] sm:$0xf]  ;;  %v1316_v52 = vor.u32 %v1831_v41, %v1313_v42 }
  0x42   :  { %1025 = vmatpush.bf16.msrb.mxu2 %v1632_v1  ;;  %v1412_v1 = vor.u32 %v1855_v55, %v1409_v56  ;;  %v44_v50 = vld [vmem:[%s2103_s0 + $0x20] sm:$0xf]  ;;  %v1241_v55 = vld [vmem:[#allocation2 + $0x8] sm:$0xf0]  ;;  %v1829_v56 = vld [vmem:[#allocation2 + $0x84] sm:$0xf] }
  0x43   :  { %1038 = vmatpush.bf16.msrb.mxu3 %v1696_v5  ;;  %v1276_v5 = vor.u32 %v1821_v61, %v1273_v62  ;;  %v1489_v60 = vld [vmem:[#allocation2 + $0x1f8] sm:$0xf0]  ;;  %v1891_v61 = vld [vmem:[#allocation2 + $0x274] sm:$0xf]  ;;  %v202_v63 = vunpack.c.l.b16 %v44_v50  ;;  %v1889_v19 = vld [vmem:[#allocation2 + $0x264] sm:$0xf] }
  0x44   :  { %1000 = vmatpush.bf16.msrb.mxu0 %v1496_v17  ;;  %v1404_v17 = vor.u32 %v1853_v3, %v1401_v4  ;;  %v1553_v62 = vld [vmem:[#allocation2 + $0x278] sm:$0xf0]  ;;  %v1923_v13 = vld [vmem:[#allocation2 + $0x374] sm:$0xf]  ;;  %v1545_v20 = vld [vmem:[#allocation2 + $0x268] sm:$0xf0] }
  0x45   :  { %1013 = vmatpush.bf16.msrb.mxu1 %v1560_v18  ;;  %v1776_v18 = vor.u32 %v1948_v10, %v1775_v9  ;;  %v1556_v10 = vor.u32 %v1891_v61, %v1553_v62  ;;  %v1681_v14 = vld [vmem:[#allocation2 + $0x378] sm:$0xf0]  ;;  %v1548_v26 = vor.u32 %v1889_v19, %v1545_v20  ;;  %v1919_v41 = vld [vmem:[#allocation2 + $0x354] sm:$0xf]  ;;  %v1901_v50 = vld [vmem:[#allocation2 + $0x2c4] sm:$0xf] }
  0x46   :  { %1026 = vmatpush.bf16.msrb.mxu2 %v1624_v22  ;;  %v1332_v22 = vor.u32 %v1835_v15, %v1329_v16  ;;  %v1873_v15 = vld [vmem:[#allocation2 + $0x1e4] sm:$0xf]  ;;  %v1601_v35 = vld [vmem:[#allocation2 + $0x2d8] sm:$0xf0]  ;;  %v1863_v19 = vld [vmem:[#allocation2 + $0x194] sm:$0xf] }
  0x47   :  { %1039 = vmatpush.bf16.msrb.mxu3 %v1688_v32  ;;  %1001 = vmatmul.bf16.vlgmr.msrb.gmra.mxu0 %v2043_v36  ;;  %v1385_v32 = vld [vmem:[#allocation2 + $0x128] sm:$0xf0]  ;;  %v1665_v42 = vld [vmem:[#allocation2 + $0x358] sm:$0xf0] }
  0x48   :  { %1045 = vmatpush.bf16.msra.mxu0 %v1808_v23  ;;  %1014 = vmatmul.bf16.vlgmr.msrb.gmra.mxu1 %v2047_v43  ;;  %v1767_v23 = vld [vmem:[#allocation2 + $0x420] sm:$0xf]  ;;  %v1585_v61 = vld [vmem:[#allocation2 + $0x2b8] sm:$0xf0] }
  0x49   :  { %1058 = vmatpush.bf16.msra.mxu1 %v1300_v27  ;;  %1027 = vmatmul.bf16.vlgmr.msrb.gmra.mxu2 %v2045_v39  ;;  %v1833_v27 = vld [vmem:[#allocation2 + $0xa4] sm:$0xf]  ;;  %v1768_v30 = vor.u32 %v1946_v24, %v1767_v23  ;;  %v1609_v23 = vld [vmem:[#allocation2 + $0x2e8] sm:$0xf0]  ;;  %v1684_v24 = vor.u32 %v1923_v13, %v1681_v14 }
  0x4a   :  { %1071 = vmatpush.bf16.msra.mxu2 %v1364_v28  ;;  %1040 = vmatmul.bf16.vlgmr.msrb.gmra.mxu3 %v2050_v49  ;;  %v1321_v28 = vld [vmem:[#allocation2 + $0xa8] sm:$0xf0] }
  0x4b   :  { %1084 = vmatpush.bf16.msra.mxu3 %v1428_v38  ;;  %v1324_v34 = vor.u32 %v1833_v27, %v1321_v28  ;;  %v1815_v38 = vld [vmem:[#allocation2 + $0x14] sm:$0xf]  ;;  %v1921_v27 = vld [vmem:[#allocation2 + $0x364] sm:$0xf]  ;;  %v1673_v28 = vld [vmem:[#allocation2 + $0x368] sm:$0xf0] }
  0x4c   :  { %1046 = vmatpush.bf16.msra.mxu0 %v1800_v40  ;;  %v1249_v40 = vld [vmem:[#allocation2 + $0x18] sm:$0xf0]  ;;  %v1676_v37 = vor.u32 %v1921_v27, %v1673_v28  ;;  %v1911_v27 = vld [vmem:[#allocation2 + $0x314] sm:$0xf] }
  0x4d   :  { %1059 = vmatpush.bf16.msra.mxu1 %v1292_v44  ;;  %v1388_v44 = vor.u32 %v1849_v31, %v1385_v32  ;;  %v1252_v51 = vor.u32 %v1815_v38, %v1249_v40  ;;  %v1473_v31 = vld [vmem:[#allocation2 + $0x1d8] sm:$0xf0]  ;;  %v1887_v32 = vld [vmem:[#allocation2 + $0x254] sm:$0xf] }
  0x4e   :  { %1072 = vmatpush.bf16.msra.mxu2 %v1356_v45  ;;  %v1847_v45 = vld [vmem:[#allocation2 + $0x114] sm:$0xf] }
  0x4f   :  { %1085 = vmatpush.bf16.msra.mxu3 %v1420_v53  ;;  %v1942_v53 = vld [vmem:[#allocation2 + $0x404] sm:$0xf0]  ;;  %v1380_v59 = vor.u32 %v1847_v45, %v1377_v47  ;;  %v1885_v47 = vld [vmem:[#allocation2 + $0x244] sm:$0xf] }
  0x50   :  { %1047 = vmatpush.bf16.msra.mxu0 %v1792_v54  ;;  %v1813_v54 = vld [vmem:[#allocation2 + $0x4] sm:$0xf]  ;;  %v1752_v0 = vor.u32 %v1942_v53, %v1751_v48  ;;  %v1529_v48 = vld [vmem:[#allocation2 + $0x248] sm:$0xf0] }
  0x51   :  { %1060 = vmatpush.bf16.msra.mxu1 %v1284_v57  ;;  %v1305_v57 = vld [vmem:[#allocation2 + $0x88] sm:$0xf0]  ;;  %v1244_v3 = vor.u32 %v1813_v54, %v1241_v55  ;;  %v1917_v53 = vld [vmem:[#allocation2 + $0x344] sm:$0xf]  ;;  %v1867_v55 = vld [vmem:[#allocation2 + $0x1b4] sm:$0xf] }
  0x52   :  { %1073 = vmatpush.bf16.msra.mxu2 %v1348_v58  ;;  %v1875_v58 = vld [vmem:[#allocation2 + $0x1f4] sm:$0xf]  ;;  %v1308_v4 = vor.u32 %v1829_v56, %v1305_v57  ;;  %v1657_v54 = vld [vmem:[#allocation2 + $0x348] sm:$0xf0]  ;;  %v1457_v57 = vld [vmem:[#allocation2 + $0x1b8] sm:$0xf0] }
  0x53   :  { %1086 = vmatpush.bf16.msra.mxu3 %v1412_v1  ;;  %v1907_v1 = vld [vmem:[#allocation2 + $0x2f4] sm:$0xf]  ;;  %v1492_v9 = vor.u32 %v1875_v58, %v1489_v60  ;;  %v1460_v62 = vor.u32 %v1867_v55, %v1457_v57  ;;  %v1953_v55 = vld [vmem:[#allocation2 + $0x464] sm:$0xf] }
  0x54   :  { %1048 = vmatpush.bf16.msra.mxu0 %v1784_v2  ;;  %v1617_v2 = vld [vmem:[#allocation2 + $0x2f8] sm:$0xf0]  ;;  %v1883_v58 = vld [vmem:[#allocation2 + $0x234] sm:$0xf] }
  0x55   :  { %1061 = vmatpush.bf16.msra.mxu1 %v1276_v5  ;;  %v1845_v5 = vld [vmem:[#allocation2 + $0x104] sm:$0xf]  ;;  %v1620_v16 = vor.u32 %v1907_v1, %v1617_v2  ;;  %v1899_v60 = vld [vmem:[#allocation2 + $0x2b4] sm:$0xf]  ;;  %v1649_v1 = vld [vmem:[#allocation2 + $0x338] sm:$0xf0] }
  0x56   :  { %1074 = vmatpush.bf16.msra.mxu2 %v1340_v6  ;;  %v1369_v6 = vld [vmem:[#allocation2 + $0x108] sm:$0xf0]  ;;  %v1865_v2 = vld [vmem:[#allocation2 + $0x1a4] sm:$0xf] }
  0x57   :  { %1087 = vmatpush.bf16.msra.mxu3 %v1404_v17  ;;  %v2058_v17 = vpack.c.b16 %v202_v63, %v202_v63 }
  0x58   :  { %1049 = vmatpush.bf16.msra.mxu0 %v1776_v18  ;;  %v1481_v18 = vld [vmem:[#allocation2 + $0x1e8] sm:$0xf0] }
  0x59   :  { %1062 = vmatpush.bf16.msra.mxu1 %v1268_v21  ;;  %v1372_v21 = vor.u32 %v1845_v5, %v1369_v6  ;;  %v1484_v25 = vor.u32 %v1873_v15, %v1481_v18  ;;  %v1881_v5 = vld [vmem:[#allocation2 + $0x224] sm:$0xf]  ;;  %v1513_v6 = vld [vmem:[#allocation2 + $0x228] sm:$0xf0] }
  0x5a   :  { %1075 = vmatpush.bf16.msra.mxu2 %v1332_v22  ;;  %v1905_v22 = vld [vmem:[#allocation2 + $0x2e4] sm:$0xf]  ;;  %v1516_v15 = vor.u32 %v1881_v5, %v1513_v6  ;;  %v1641_v18 = vld [vmem:[#allocation2 + $0x328] sm:$0xf0]  ;;  %v1931_v5 = vld [vmem:[#allocation2 + $0x3b4] sm:$0xf] }
  0x5b   :  { %1088 = vmatpush.bf16.msra.mxu3 %v1396_v29  ;;  %v1871_v29 = vld [vmem:[#allocation2 + $0x1d4] sm:$0xf]  ;;  %v1713_v6 = vld [vmem:[#allocation2 + $0x3b8] sm:$0xf0] }
  0x5c   :  { %1050 = vmatpush.bf16.msra.mxu0 %v1768_v30  ;;  %v1612_v30 = vor.u32 %v1905_v22, %v1609_v23  ;;  %v1476_v38 = vor.u32 %v1871_v29, %v1473_v31  ;;  %v1879_v22 = vld [vmem:[#allocation2 + $0x214] sm:$0xf]  ;;  %v1505_v23 = vld [vmem:[#allocation2 + $0x218] sm:$0xf0]  ;;  %v1861_v31 = vld [vmem:[#allocation2 + $0x184] sm:$0xf] }
  0x5d   :  { %1063 = vmatpush.bf16.msra.mxu1 %v1260_v33  ;;  %v1537_v33 = vld [vmem:[#allocation2 + $0x258] sm:$0xf0]  ;;  %v1508_v29 = vor.u32 %v1879_v22, %v1505_v23 }
  0x5e   :  { %1076 = vmatpush.bf16.msra.mxu2 %v1324_v34  ;;  %v1903_v34 = vld [vmem:[#allocation2 + $0x2d4] sm:$0xf]  ;;  %v1540_v40 = vor.u32 %v1887_v32, %v1537_v33  ;;  %v1433_v32 = vld [vmem:[#allocation2 + $0x188] sm:$0xf0]  ;;  %v1761_v22 = vld [vmem:[#allocation2 + $0x418] sm:$0xf0] }
  0x5f   :  { %1089 = vmatpush.bf16.msra.mxu3 %v1388_v44  ;;  %v1869_v44 = vld [vmem:[#allocation2 + $0x1c4] sm:$0xf]  ;;  %v1604_v45 = vor.u32 %v1903_v34, %v1601_v35  ;;  %v1497_v35 = vld [vmem:[#allocation2 + $0x208] sm:$0xf0] }
  0x60   :  { %1051 = vmatpush.bf16.msra.mxu0 %v1760_v46  ;;  %v1465_v46 = vld [vmem:[#allocation2 + $0x1c8] sm:$0xf0]  ;;  %v1877_v34 = vld [vmem:[#allocation2 + $0x204] sm:$0xf] }
  0x61   :  { %1064 = vmatpush.bf16.msra.mxu1 %v1252_v51  ;;  %v1668_v51 = vor.u32 %v1919_v41, %v1665_v42  ;;  %v1745_v41 = vld [vmem:[#allocation2 + $0x3f8] sm:$0xf0] }
  0x62   :  { %1077 = vmatpush.bf16.msra.mxu2 %v1316_v52  ;;  %v1532_v52 = vor.u32 %v1885_v47, %v1529_v48  ;;  %v1500_v47 = vor.u32 %v1877_v34, %v1497_v35  ;;  %v1909_v48 = vld [vmem:[#allocation2 + $0x304] sm:$0xf] }
  0x63   :  { %1090 = vmatpush.bf16.msra.mxu3 %v1380_v59  ;;  %v1521_v59 = vld [vmem:[#allocation2 + $0x238] sm:$0xf0] }
  0x64   :  { %1052 = vmatpush.bf16.msra.mxu0 %v1752_v0  ;;  %v1524_v63 = vor.u32 %v1883_v58, %v1521_v59  ;;  %v1915_v0 = vld [vmem:[#allocation2 + $0x334] sm:$0xf] }
  0x65   :  { %1065 = vmatpush.bf16.msra.mxu1 %v1244_v3  ;;  %v1588_v3 = vor.u32 %v1899_v60, %v1585_v61  ;;  %v1652_v13 = vor.u32 %v1915_v0, %v1649_v1  ;;  %v1935_v59 = vld [vmem:[#allocation2 + $0x3d4] sm:$0xf]  ;;  %v1729_v60 = vld [vmem:[#allocation2 + $0x3d8] sm:$0xf0]  ;;  %v1933_v0 = vld [vmem:[#allocation2 + $0x3c4] sm:$0xf] }
  0x66   :  { %1078 = vmatpush.bf16.msra.mxu2 %v1308_v4  ;;  %v1449_v4 = vld [vmem:[#allocation2 + $0x1a8] sm:$0xf0]  ;;  %v1951_v61 = vld [vmem:[#allocation2 + $0x454] sm:$0xf] }
  0x67   :  { %1053 = vmatmul.bf16.vlgmr.msra.gmra.mxu0 %v2058_v17  ;;  %1091 = vmatpush.bf16.msra.mxu3 %v1372_v21  ;;  %v1452_v14 = vor.u32 %v1865_v2, %v1449_v4  ;;  %v1441_v21 = vld [vmem:[#allocation2 + $0x198] sm:$0xf0]  ;;  %v1721_v1 = vld [vmem:[#allocation2 + $0x3c8] sm:$0xf0]  ;;  %v1949_v2 = vld [vmem:[#allocation2 + $0x444] sm:$0xf] }
  0x68   :  { %1097 = vmatpush.bf16.msrb.mxu0 %v1492_v9  ;;  %1066 = vmatmul.bf16.vlgmr.msra.gmra.mxu1 %v2029_v11  ;;  %v1468_v11 = vor.u32 %v1869_v44, %v1465_v46  ;;  %v1897_v9 = vld [vmem:[#allocation2 + $0x2a4] sm:$0xf]  ;;  %v1444_v28 = vor.u32 %v1863_v19, %v1441_v21  ;;  %v1955_v44 = vld [vmem:[#allocation2 + $0x474] sm:$0xf]  ;;  %v1436_v46 = vor.u32 %v1861_v31, %v1433_v32 }
  0x69   :  { %1110 = vmatpush.bf16.msrb.mxu1 %v1556_v10  ;;  %1079 = vmatmul.bf16.vlgmr.msra.gmra.mxu2 %v2031_v12  ;;  %v1593_v12 = vld [vmem:[#allocation2 + $0x2c8] sm:$0xf0]  ;;  %v1724_v4 = vor.u32 %v1933_v0, %v1721_v1  ;;  %v1927_v19 = vld [vmem:[#allocation2 + $0x394] sm:$0xf]  ;;  %v1990_v1 = vmov 0.0  }
  0x6a   :  { %1123 = vmatpush.bf16.msrb.mxu2 %v1620_v16  ;;  %1092 = vmatmul.bf16.vlgmr.msra.gmra.mxu3 %v2025_v7  ;;  %v1596_v56 = vor.u32 %v1901_v50, %v1593_v12  ;;  %v1660_v7 = vor.u32 %v1917_v53, %v1657_v54  ;;  %v1577_v10 = vld [vmem:[#allocation2 + $0x2a8] sm:$0xf0]  ;;  %v1913_v16 = vld [vmem:[#allocation2 + $0x324] sm:$0xf]  ;;  %v1943_v21 = vld [vmem:[#allocation2 + $0x414] sm:$0xf] }
  0x6b   :  { %1136 = vmatpush.bf16.msrb.mxu3 %v1684_v24  ;;  %v1580_v20 = vor.u32 %v1897_v9, %v1577_v10  ;;  %v1895_v24 = vld [vmem:[#allocation2 + $0x294] sm:$0xf]  ;;  %v1625_v50 = vld [vmem:[#allocation2 + $0x308] sm:$0xf0] }
  0x6c   :  { %1098 = vmatpush.bf16.msrb.mxu0 %v1484_v25  ;;  %v1569_v25 = vld [vmem:[#allocation2 + $0x298] sm:$0xf0]  ;;  %v1737_v53 = vld [vmem:[#allocation2 + $0x3e8] sm:$0xf0]  ;;  %v1628_v54 = vor.u32 %v1909_v48, %v1625_v50  ;;  %v1947_v9 = vld [vmem:[#allocation2 + $0x434] sm:$0xf] }
  0x6d   :  { %1111 = vmatpush.bf16.msrb.mxu1 %v1548_v26  ;;  %v1644_v26 = vor.u32 %v1913_v16, %v1641_v18  ;;  %v1572_v33 = vor.u32 %v1895_v24, %v1569_v25  ;;  %v1764_v24 = vor.u32 %v1943_v21, %v1761_v22  ;;  %v1925_v25 = vld [vmem:[#allocation2 + $0x384] sm:$0xf] }
  0x6e   :  { %1124 = vmatpush.bf16.msrb.mxu2 %v1612_v30  ;;  %v1633_v30 = vld [vmem:[#allocation2 + $0x318] sm:$0xf0] }
  0x6f   :  { %1137 = vmatpush.bf16.msrb.mxu3 %v1676_v37  ;;  %v1893_v37 = vld [vmem:[#allocation2 + $0x284] sm:$0xf]  ;;  %v1636_v42 = vor.u32 %v1911_v27, %v1633_v30 }
  0x70   :  { %1099 = vmatpush.bf16.msrb.mxu0 %v1476_v38  ;;  %v1561_v38 = vld [vmem:[#allocation2 + $0x288] sm:$0xf0]  ;;  %v1941_v27 = vld [vmem:[#allocation2 + $0x404] sm:$0xf] }
  0x71   :  { %1112 = vmatpush.bf16.msrb.mxu1 %v1540_v40  ;;  %v1939_v40 = vld [vmem:[#allocation2 + $0x3f4] sm:$0xf]  ;;  %v1564_v12 = vor.u32 %v1893_v37, %v1561_v38 }
  0x72   :  { %1125 = vmatpush.bf16.msrb.mxu2 %v1604_v45  ;;  %v1809_v45 = vld [vmem:[#allocation2 + $0x478] sm:$0xf0] }
  0x73   :  { %1138 = vmatpush.bf16.msrb.mxu3 %v1668_v51  ;;  %v1748_v51 = vor.u32 %v1939_v40, %v1745_v41 }
  0x74   :  { %1100 = vmatpush.bf16.msrb.mxu0 %v1468_v11  ;;  %v1812_v11 = vor.u32 %v1955_v44, %v1809_v45 }
  0x75   :  { %1113 = vmatpush.bf16.msrb.mxu1 %v1532_v52  ;;  %v1937_v52 = vld [vmem:[#allocation2 + $0x3e4] sm:$0xf] }
  0x76   :  { %1126 = vmatpush.bf16.msrb.mxu2 %v1596_v56  ;;  %v1801_v56 = vld [vmem:[#allocation2 + $0x468] sm:$0xf0]  ;;  %v1740_v57 = vor.u32 %v1937_v52, %v1737_v53 }
  0x77   :  { %1139 = vmatpush.bf16.msrb.mxu3 %v1660_v7  ;;  %v1804_v58 = vor.u32 %v1953_v55, %v1801_v56  ;;  %v1793_v7 = vld [vmem:[#allocation2 + $0x458] sm:$0xf0] }
  0x78   :  { %1101 = vmatpush.bf16.msrb.mxu0 %v1460_v62  ;;  %v1732_v62 = vor.u32 %v1935_v59, %v1729_v60 }
  0x79   :  { %1114 = vmatpush.bf16.msrb.mxu1 %v1524_v63  ;;  %v1796_v63 = vor.u32 %v1951_v61, %v1793_v7  ;;  %v34_v7 = vlaneseq }
  0x7a   :  { %1127 = vmatpush.bf16.msrb.mxu2 %v1588_v3  ;;  %v1785_v3 = vld [vmem:[#allocation2 + $0x448] sm:$0xf0] }
  0x7b   :  { %1140 = vmatpush.bf16.msrb.mxu3 %v1652_v13  ;;  %v1929_v13 = vld [vmem:[#allocation2 + $0x3a4] sm:$0xf]  ;;  %vm2070_vm0 = vcmp.lt.s32.totalorder %v34_v7, 256 }
  0x7c   :  { %1102 = vmatpush.bf16.msrb.mxu0 %v1452_v14  ;;  %v1705_v14 = vld [vmem:[#allocation2 + $0x3a8] sm:$0xf0]  ;;  %38 = vst.msk [vmem:[%s2106_s3] sm:$0x3] %vm2070_vm0, %v1990_v1 }
  0x7d   :  { %1115 = vmatpush.bf16.msrb.mxu1 %v1516_v15  ;;  %v1769_v15 = vld [vmem:[#allocation2 + $0x428] sm:$0xf0]  ;;  %v1708_v16 = vor.u32 %v1929_v13, %v1705_v14  ;;  %39 = vst.msk [vmem:[%s2107_s4] sm:$0x3] %vm2070_vm0, %v1990_v1 }
  0x7e   :  { %1128 = vmatpush.bf16.msrb.mxu2 %v1580_v20  ;;  %v1697_v20 = vld [vmem:[#allocation2 + $0x398] sm:$0xf0] }
  0x7f   :  { %1141 = vmatpush.bf16.msrb.mxu3 %v1644_v26  ;;  %v1700_v23 = vor.u32 %v1927_v19, %v1697_v20  ;;  %v1689_v26 = vld [vmem:[#allocation2 + $0x388] sm:$0xf0] }
  0x80   :  { %1103 = vmatpush.bf16.msrb.mxu0 %v1444_v28  ;;  %v1753_v28 = vld [vmem:[#allocation2 + $0x408] sm:$0xf0] }
  0x81   :  { %1116 = vmatpush.bf16.msrb.mxu1 %v1508_v29  ;;  %v1692_v29 = vor.u32 %v1925_v25, %v1689_v26  ;;  %v1756_v30 = vor.u32 %v1941_v27, %v1753_v28 }
  0x82   :  { %1129 = vmatpush.bf16.msrb.mxu2 %v1572_v33 }
  0x83   :  { %1142 = vmatpush.bf16.msrb.mxu3 %v1636_v42 }
  0x84   :  { %1104 = vmatpush.bf16.msrb.mxu0 %v1436_v46 }
  0x85   :  { %1117 = vmatpush.bf16.msrb.mxu1 %v1500_v47 }
  0x86   :  { %1130 = vmatpush.bf16.msrb.mxu2 %v1564_v12 }
  0x87   :  { %1143 = vmatpush.bf16.msrb.mxu3 %v1628_v54  ;;  %1105 = vmatmul.bf16.vlgmr.msrb.gmra.mxu0 %v2027_v8  ;;  %v1788_v8 = vor.u32 %v1949_v2, %v1785_v3 }
  0x88   :  { %1149 = vmatpush.bf16.msra.mxu0 %v1748_v51  ;;  %1118 = vmatmul.bf16.vlgmr.msrb.gmra.mxu1 %v2043_v36  ;;  %v1716_v36 = vor.u32 %v1931_v5, %v1713_v6 }
  0x89   :  { %1162 = vmatpush.bf16.msra.mxu1 %v1812_v11  ;;  %1131 = vmatmul.bf16.vlgmr.msrb.gmra.mxu2 %v2047_v43  ;;  %v1777_v43 = vld [vmem:[#allocation2 + $0x438] sm:$0xf0] }
  0x8a   :  { %1144 = vmatmul.bf16.vlgmr.msrb.gmra.mxu3 %v2045_v39  ;;  %v1780_v10 = vor.u32 %v1947_v9, %v1777_v43  ;;  %v1945_v39 = vld [vmem:[#allocation2 + $0x424] sm:$0xf] }
  0x8b   :  { %v1772_v18 = vor.u32 %v1945_v39, %v1769_v15 }
  0x8c   :  { %1150 = vmatpush.bf16.msra.mxu0 %v1740_v57 }
  0x8d   :  { %1163 = vmatpush.bf16.msra.mxu1 %v1804_v58 }
  0x90   :  { %1151 = vmatpush.bf16.msra.mxu0 %v1732_v62 }
  0x91   :  { %1164 = vmatpush.bf16.msra.mxu1 %v1796_v63 }
  0x94   :  { %1152 = vmatpush.bf16.msra.mxu0 %v1724_v4 }
  0x95   :  { %1165 = vmatpush.bf16.msra.mxu1 %v1788_v8 }
  0x98   :  { %1153 = vmatpush.bf16.msra.mxu0 %v1716_v36 }
  0x99   :  { %1166 = vmatpush.bf16.msra.mxu1 %v1780_v10 }
  0x9c   :  { %1154 = vmatpush.bf16.msra.mxu0 %v1708_v16 }
  0x9d   :  { %1167 = vmatpush.bf16.msra.mxu1 %v1772_v18 }
  0xa0   :  { %1155 = vmatpush.bf16.msra.mxu0 %v1700_v23 }
  0xa1   :  { %1168 = vmatpush.bf16.msra.mxu1 %v1764_v24 }
  0xa4   :  { %1156 = vmatpush.bf16.msra.mxu0 %v1692_v29  ;;  %v950_v31 = vpop.f32.mrf.mxu0 }
  0xa5   :  { %1169 = vmatpush.bf16.msra.mxu1 %v1756_v30  ;;  %v963_v32 = vpop.f32.mrf.mxu1 }
  0xa6   :  { %v964_v33 = vadd.f32 %v963_v32, %v950_v31 }
  0xa7   :  { %1157 = vmatmul.bf16.vlgmr.msra.gmra.mxu0 %v2050_v49 }
  0xa8   :  { %1170 = vmatmul.bf16.vlgmr.msra.gmra.mxu1 %v2058_v17 }
  0xac   :  { %v976_v35 = vpop.f32.mrf.mxu2  ;;  %v952_v40 = vpop.f32.mrf.mxu0 }
  0xad   :  { %v989_v34 = vpop.f32.mrf.mxu3  ;;  %v977_v37 = vadd.f32 %v976_v35, %v964_v33  ;;  %v965_v41 = vpop.f32.mrf.mxu1 }
  0xaf   :  { %v990_v38 = vadd.f32 %v989_v34, %v977_v37 }
  0xb4   :  { %v978_v44 = vpop.f32.mrf.mxu2 }
  0xb5   :  { %v991_v42 = vpop.f32.mrf.mxu3 }
  0xc4   :  { %v1002_v45 = vpop.f32.mrf.mxu0 }
  0xc5   :  { %v1003_v46 = vadd.f32 %v1002_v45, %v990_v38  ;;  %v1015_v47 = vpop.f32.mrf.mxu1 }
  0xc7   :  { %v1016_v48 = vadd.f32 %v1015_v47, %v1003_v46 }
  0xcc   :  { %v1028_v50 = vpop.f32.mrf.mxu2  ;;  %v1004_v49 = vpop.f32.mrf.mxu0 }
  0xcd   :  { %v1029_v12 = vadd.f32 %v1028_v50, %v1016_v48  ;;  %v1041_v51 = vpop.f32.mrf.mxu3  ;;  %v1017_v17 = vpop.f32.mrf.mxu1 }
  0xcf   :  { %v1042_v11 = vadd.f32 %v1041_v51, %v1029_v12  ;;  %v1177_v12 = vld [vmem:[%s2106_s3] sm:$0x3] }
  0xd4   :  { %v1030_v52 = vpop.f32.mrf.mxu2 }
  0xd5   :  { %v1043_v53 = vpop.f32.mrf.mxu3  ;;  %v1202_v52 = vld [vmem:[%s2107_s4] sm:$0x3] }
  0xe4   :  { %v1054_v54 = vpop.f32.mrf.mxu0 }
  0xe5   :  { %v1067_v55 = vpop.f32.mrf.mxu1  ;;  %v1055_v10 = vadd.f32 %v1054_v54, %v1042_v11 }
  0xe7   :  { %v1203_v14 = vmul.f32 %v1055_v10, %v1055_v10  ;;  %v1178_v15 = vrot.slane %v1055_v10, 4 }
  0xe9   :  { %v1205_v16 = vrot.slane %v1203_v14, 4  ;;  %v1179_v20 = vadd.f32 %v1178_v15, %v1055_v10 }
  0xeb   :  { %v1206_v23 = vadd.f32 %v1205_v16, %v1203_v14  ;;  %v1180_v25 = vrot.slane %v1179_v20, 2 }
  0xec   :  { %v1080_v56 = vpop.f32.mrf.mxu2  ;;  %v1056_v57 = vpop.f32.mrf.mxu0 }
  0xed   :  { %v1093_v58 = vpop.f32.mrf.mxu3  ;;  %v1069_v59 = vpop.f32.mrf.mxu1  ;;  %v1081_v3 = vadd.f32 %v1080_v56, %v1067_v55  ;;  %v1207_v29 = vrot.slane %v1206_v23, 2  ;;  %v1181_v33 = vadd.f32 %v1180_v25, %v1179_v20 }
  0xef   :  { %v1094_v6 = vadd.f32 %v1093_v58, %v1081_v3  ;;  %v1208_v38 = vadd.f32 %v1207_v29, %v1206_v23  ;;  %v1182_v42 = vrot.slane %v1181_v33, 1 }
  0xf1   :  { %v1209_v46 = vrot.slane %v1208_v38, 1  ;;  %v1183_v50 = vadd.f32 %v1182_v42, %v1181_v33 }
  0xf3   :  { %v1210_v17 = vadd.f32 %v1209_v46, %v1208_v38 }
  0xf4   :  { %v1082_v60 = vpop.f32.mrf.mxu2 }
  0xf5   :  { %v1095_v61 = vpop.f32.mrf.mxu3 }
 0x104   :  { %v1106_v62 = vpop.f32.mrf.mxu0 }
 0x105   :  { %v1119_v0 = vpop.f32.mrf.mxu1  ;;  %v1107_v43 = vadd.f32 %v1106_v62, %v1094_v6 }
 0x107   :  { %v1120_v13 = vadd.f32 %v1119_v0, %v1107_v43 }
 0x10c   :  { %v1132_v2 = vpop.f32.mrf.mxu2  ;;  %v1108_v4 = vpop.f32.mrf.mxu0 }
 0x10d   :  { %v1145_v8 = vpop.f32.mrf.mxu3  ;;  %v1121_v5 = vpop.f32.mrf.mxu1  ;;  %v1133_v39 = vadd.f32 %v1132_v2, %v1120_v13 }
 0x10f   :  { %v1146_v18 = vadd.f32 %v1145_v8, %v1133_v39 }
 0x114   :  { %v1134_v9 = vpop.f32.mrf.mxu2 }
 0x115   :  { %v1147_v36 = vpop.f32.mrf.mxu3 }
 0x124   :  { %v1158_v19 = vpop.f32.mrf.mxu0 }
 0x125   :  { %v1159_v21 = vadd.f32 %v1158_v19, %v1146_v18  ;;  %v1171_v22 = vpop.f32.mrf.mxu1 }
 0x127   :  { %v1172_v24 = vadd.f32 %v1171_v22, %v1159_v21 }
 0x129   :  { %v1175_v26 = vpack.c.bf16 %v1172_v24, %v1055_v10  ;;  %v1184_v27 = vrot.slane %v1172_v24, 4  ;;  %v1204_v28 = vmul.f32 %v1172_v24, %v1172_v24 }
 0x12b   :  { %1176 = vst [vmem:[%s2105_s2] sm:$0xff] %v1175_v26  ;;  %v1185_v30 = vadd.f32 %v1184_v27, %v1172_v24  ;;  %v1211_v31 = vrot.slane %v1204_v28, 4 }
 0x12c   :  { %v1160_v32 = vpop.f32.mrf.mxu0 }
 0x12d   :  { %v1186_v34 = vrot.slane %v1185_v30, 2  ;;  %v1212_v35 = vadd.f32 %v1211_v31, %v1204_v28  ;;  %v1173_v37 = vpop.f32.mrf.mxu1 }
 0x12f   :  { %v1187_v40 = vadd.f32 %v1186_v34, %v1185_v30  ;;  %v1213_v41 = vrot.slane %v1212_v35, 2 }
 0x131   :  { %v1188_v44 = vrot.slane %v1187_v40, 1  ;;  %v1214_v45 = vadd.f32 %v1213_v41, %v1212_v35 }
 0x133   :  { %v1189_v47 = vadd.f32 %v1188_v44, %v1187_v40  ;;  %v1215_v48 = vrot.slane %v1214_v45, 1 }
 0x135   :  { %v1192_v49 = vrot.slane %v1189_v47, 7  ;;  %v1216_v51 = vadd.f32 %v1215_v48, %v1214_v45 }
 0x137   :  { %v1194_v11 = vsel %vm1193_vm1, %v1183_v50, %v1192_v49  ;;  %v1219_v53 = vrot.slane %v1216_v51, 7 }
 0x138   :  { %v1196_v54 = vadd.f32 %v1194_v11, %v1177_v12 }
 0x139   :  { %v1220_v55 = vsel %vm1193_vm1, %v1210_v17, %v1219_v53 }
 0x13a   :  { %1201 = vst.msk [vmem:[%s2106_s3] sm:$0x3] %vm2070_vm0, %v1196_v54  ;;  %v1222_v56 = vadd.f32 %v1220_v55, %v1202_v52 }
 0x13c   :  { %1223 = vst.msk [vmem:[%s2107_s4] sm:$0x3] %vm2070_vm0, %v1222_v56 }
 0x13d   :  { %1236 = vsyncpa [#allocation3], 1 }

// kernel: image_discriminator_forward.7
= control target key start
LH: loop header
LB: loop body
LE: loop exit
PB: predicated region body
PF: predicated region fallthrough
CT: control target
= control target key end

     0   :  { %s8054_s0 = inlined_call_operand.vmem [shape: bf16[2,2304], index: 0, kind: input, shape index: {}]   ;;  %s8055_s1 = inlined_call_operand.hbm [shape: bf16[2304,512], index: 1, kind: input, shape index: {}]   ;;  %s8056_s2 = inlined_call_operand.hbm [shape: f32[1,512], index: 2, kind: input, shape index: {}]   ;;  %s8057_s3 = inlined_call_operand.hbm [shape: f32[1,512], index: 3, kind: input, shape index: {}]   ;;  %s8058_s4 = inlined_call_operand.hbm [shape: f32[1,512], index: 4, kind: input, shape index: {}]   ;;  %s8059_s5 = inlined_call_operand.<no memory space> [shape: f32[1,1], index: 5, kind: input, shape index: {}]   ;;  %s8060_s6 = inlined_call_operand.vmem [shape: f32[2,1], index: 6, kind: output, shape index: {}]  }
   0x1   :  { %v11_v0 = vstv %s8059_s5 }
   0x2   :  { %12 = vst [vmem:[#allocation2] sm:$0x1] %v11_v0 }
   0x3   :  { %13 = vsyncpa [#allocation4], 0 }
   0x4   :  { %14 = vsyncpa [#allocation6], 0  ;;  %s36_s25 = sshll.u32 %s8056_s2, 4  ;;  %s37_s25 = int_to_ptr.hbm [resolvable:$true] %s36_s25 }
   0x5   :  { %15 = vsyncpa [#allocation9], 0  ;;  %s7763_s26 = smov [#allocation5]   ;;  %s22_s30 = sshll.u32 %s8055_s1, 4  ;;  %s23_s30 = int_to_ptr.hbm [resolvable:$true] %s22_s30 }
   0x6   :  { %s38_s27 = sshll.u32 %s7763_s26, 4  ;;  %s7764_s7 = smov [#allocation3]   ;;  %s39_s27 = int_to_ptr.vmem [resolvable:$true] %s38_s27 }
   0x7   :  { %41 = dma.hbm_to_vmem [thread:$0]  %s37_s25, 64, %s39_s27, [#allocation6]  }
   0x8   :  { %s24_s5 = sshll.u32 %s7764_s7, 4  ;;  %s7765_s8 = smov 256   ;;  %s25_s5 = int_to_ptr.vmem [resolvable:$true] %s24_s5 }
   0x9   :  { %s7766_s9 = smov 16   ;;  %s47_s2 = sshll.u32 %s8057_s3, 4  ;;  %s48_s2 = int_to_ptr.hbm [resolvable:$true] %s47_s2 }
   0xa   :  { %30 = dma.hbm_to_vmem [thread:$0]  %s23_s30, 73728, %s25_s5, [#allocation4], %s7765_s8, %s7765_s8, %s7766_s9  }
   0xb   :  { %s7767_s12 = smov [#allocation7]   ;;  %s58_s1 = sshll.u32 %s8058_s4, 4  ;;  %s59_s1 = int_to_ptr.hbm [resolvable:$true] %s58_s1 }
   0xc   :  { %s49_s13 = sshll.u32 %s7767_s12, 4  ;;  %s7768_s16 = smov [#allocation8]   ;;  %s50_s13 = int_to_ptr.vmem [resolvable:$true] %s49_s13 }
   0xd   :  { %52 = dma.hbm_to_vmem [thread:$0]  %s48_s2, 64, %s50_s13, [#allocation6]  }
   0xe   :  { %s60_s17 = sshll.u32 %s7768_s16, 4  ;;  %s61_s17 = int_to_ptr.vmem [resolvable:$true] %s60_s17 }
   0xf   :  { %63 = dma.hbm_to_vmem [thread:$0]  %s59_s1, 64, %s61_s17, [#allocation9]  }
  0x10   :  { %7757 = dma.done.wait [#allocation4], 73728  }
  0x11   :  { %7758 = vsyncadd [#allocation4], 4294893568 }
  0x12   :  { %7759 = dma.done.wait [#allocation6], 128  }
  0x13   :  { %7760 = vsyncadd [#allocation6], 4294967168 }
  0x14   :  { %7761 = dma.done.wait [#allocation9], 64  }
  0x15   :  { %7762 = vsyncadd [#allocation9], 4294967232  ;;  %v4867_v1 = vld [vmem:[#allocation3 + $0xe0] sm:$0xf]  ;;  %v7087_v2 = vld [vmem:[#allocation3 + $0xec] sm:$0xf0] }
  0x16   :  { %v4995_v3 = vld [vmem:[#allocation3 + $0x1e0] sm:$0xf]  ;;  %v4868_v4 = vor.u32 %v7087_v2, %v4867_v1  ;;  %v7119_v5 = vld [vmem:[#allocation3 + $0x1ec] sm:$0xf0]  ;;  %vm4519_vm0 = vcmask 1041408   ;;  %vm4651_vm7 = vcmask 1040384  }
  0x17   :  { %v5123_v6 = vld [vmem:[#allocation3 + $0x2e0] sm:$0xf]  ;;  %v7151_v7 = vld [vmem:[#allocation3 + $0x2ec] sm:$0xf0]  ;;  %v4996_v8 = vor.u32 %v7119_v5, %v4995_v3  ;;  %vm4653_vm15 = vcmask 1042434  }
  0x18   :  { %v5124_v9 = vor.u32 %v7151_v7, %v5123_v6  ;;  %v5251_v10 = vld [vmem:[#allocation3 + $0x3e0] sm:$0xf]  ;;  %v7183_v11 = vld [vmem:[#allocation3 + $0x3ec] sm:$0xf0]  ;;  %3583 = vmatpush.bf16.msra.mxu0 %v4868_v4 }
  0x19   :  { %v4851_v12 = vld [vmem:[#allocation3 + $0xc0] sm:$0xf]  ;;  %v5252_v13 = vor.u32 %v7183_v11, %v5251_v10  ;;  %v7083_v14 = vld [vmem:[#allocation3 + $0xcc] sm:$0xf0]  ;;  %3596 = vmatpush.bf16.msra.mxu1 %v4996_v8 }
  0x1a   :  { %v4979_v15 = vld [vmem:[#allocation3 + $0x1c0] sm:$0xf]  ;;  %v7115_v16 = vld [vmem:[#allocation3 + $0x1cc] sm:$0xf0]  ;;  %3609 = vmatpush.bf16.msra.mxu2 %v5124_v9  ;;  %v4852_v17 = vor.u32 %v7083_v14, %v4851_v12 }
  0x1b   :  { %v4980_v18 = vor.u32 %v7115_v16, %v4979_v15  ;;  %v5107_v19 = vld [vmem:[#allocation3 + $0x2c0] sm:$0xf]  ;;  %v7147_v20 = vld [vmem:[#allocation3 + $0x2cc] sm:$0xf0]  ;;  %3622 = vmatpush.bf16.msra.mxu3 %v5252_v13 }
  0x1c   :  { %v5235_v21 = vld [vmem:[#allocation3 + $0x3c0] sm:$0xf]  ;;  %v5108_v22 = vor.u32 %v7147_v20, %v5107_v19  ;;  %v7179_v23 = vld [vmem:[#allocation3 + $0x3cc] sm:$0xf0]  ;;  %3584 = vmatpush.bf16.msra.mxu0 %v4852_v17 }
  0x1d   :  { %v4835_v24 = vld [vmem:[#allocation3 + $0xa0] sm:$0xf]  ;;  %v7079_v25 = vld [vmem:[#allocation3 + $0xac] sm:$0xf0]  ;;  %v5236_v26 = vor.u32 %v7179_v23, %v5235_v21  ;;  %3597 = vmatpush.bf16.msra.mxu1 %v4980_v18 }
  0x1e   :  { %v4963_v27 = vld [vmem:[#allocation3 + $0x1a0] sm:$0xf]  ;;  %v7111_v28 = vld [vmem:[#allocation3 + $0x1ac] sm:$0xf0]  ;;  %v4836_v30 = vor.u32 %v7079_v25, %v4835_v24  ;;  %3610 = vmatpush.bf16.msra.mxu2 %v5108_v22 }
  0x1f   :  { %v5091_v29 = vld [vmem:[#allocation3 + $0x2a0] sm:$0xf]  ;;  %v7143_v31 = vld [vmem:[#allocation3 + $0x2ac] sm:$0xf0]  ;;  %v4964_v34 = vor.u32 %v7111_v28, %v4963_v27  ;;  %3623 = vmatpush.bf16.msra.mxu3 %v5236_v26 }
  0x20   :  { %v5219_v32 = vld [vmem:[#allocation3 + $0x3a0] sm:$0xf]  ;;  %v7175_v33 = vld [vmem:[#allocation3 + $0x3ac] sm:$0xf0]  ;;  %v5092_v35 = vor.u32 %v7143_v31, %v5091_v29  ;;  %3585 = vmatpush.bf16.msra.mxu0 %v4836_v30 }
  0x21   :  { %v4819_v36 = vld [vmem:[#allocation3 + $0x80] sm:$0xf]  ;;  %v7075_v37 = vld [vmem:[#allocation3 + $0x8c] sm:$0xf0]  ;;  %v5220_v39 = vor.u32 %v7175_v33, %v5219_v32  ;;  %3598 = vmatpush.bf16.msra.mxu1 %v4964_v34 }
  0x22   :  { %v4947_v38 = vld [vmem:[#allocation3 + $0x180] sm:$0xf]  ;;  %v7107_v40 = vld [vmem:[#allocation3 + $0x18c] sm:$0xf0]  ;;  %v4820_v45 = vor.u32 %v7075_v37, %v4819_v36  ;;  %3611 = vmatpush.bf16.msra.mxu2 %v5092_v35 }
  0x23   :  { %v5075_v41 = vld [vmem:[#allocation3 + $0x280] sm:$0xf]  ;;  %v7139_v42 = vld [vmem:[#allocation3 + $0x28c] sm:$0xf0]  ;;  %v4948_v46 = vor.u32 %v7107_v40, %v4947_v38  ;;  %3624 = vmatpush.bf16.msra.mxu3 %v5220_v39 }
  0x24   :  { %v5203_v43 = vld [vmem:[#allocation3 + $0x380] sm:$0xf]  ;;  %v7171_v44 = vld [vmem:[#allocation3 + $0x38c] sm:$0xf0]  ;;  %v5076_v47 = vor.u32 %v7139_v42, %v5075_v41  ;;  %3586 = vmatpush.bf16.msra.mxu0 %v4820_v45 }
  0x25   :  { %v4803_v48 = vld [vmem:[#allocation3 + $0x60] sm:$0xf]  ;;  %v7071_v49 = vld [vmem:[#allocation3 + $0x6c] sm:$0xf0]  ;;  %v5204_v51 = vor.u32 %v7171_v44, %v5203_v43  ;;  %3599 = vmatpush.bf16.msra.mxu1 %v4948_v46 }
  0x26   :  { %v4931_v50 = vld [vmem:[#allocation3 + $0x160] sm:$0xf]  ;;  %v7103_v52 = vld [vmem:[#allocation3 + $0x16c] sm:$0xf0]  ;;  %v4804_v57 = vor.u32 %v7071_v49, %v4803_v48  ;;  %3612 = vmatpush.bf16.msra.mxu2 %v5076_v47 }
  0x27   :  { %v5059_v53 = vld [vmem:[#allocation3 + $0x260] sm:$0xf]  ;;  %v7135_v54 = vld [vmem:[#allocation3 + $0x26c] sm:$0xf0]  ;;  %v4932_v58 = vor.u32 %v7103_v52, %v4931_v50  ;;  %3625 = vmatpush.bf16.msra.mxu3 %v5204_v51 }
  0x28   :  { %v5187_v55 = vld [vmem:[#allocation3 + $0x360] sm:$0xf]  ;;  %v7167_v56 = vld [vmem:[#allocation3 + $0x36c] sm:$0xf0]  ;;  %v5060_v59 = vor.u32 %v7135_v54, %v5059_v53  ;;  %3587 = vmatpush.bf16.msra.mxu0 %v4804_v57 }
  0x29   :  { %v4787_v60 = vld [vmem:[#allocation3 + $0x40] sm:$0xf]  ;;  %v7067_v61 = vld [vmem:[#allocation3 + $0x4c] sm:$0xf0]  ;;  %v5188_v63 = vor.u32 %v7167_v56, %v5187_v55  ;;  %3600 = vmatpush.bf16.msra.mxu1 %v4932_v58 }
  0x2a   :  { %v4915_v62 = vld [vmem:[#allocation3 + $0x140] sm:$0xf]  ;;  %v7099_v0 = vld [vmem:[#allocation3 + $0x14c] sm:$0xf0]  ;;  %v4788_v5 = vor.u32 %v7067_v61, %v4787_v60  ;;  %3613 = vmatpush.bf16.msra.mxu2 %v5060_v59  ;;  %v82_v60 = vld [vmem:[%s8054_s0] sm:$0xff] }
  0x2b   :  { %v5043_v1 = vld [vmem:[#allocation3 + $0x240] sm:$0xf]  ;;  %v7131_v2 = vld [vmem:[#allocation3 + $0x24c] sm:$0xf0]  ;;  %v4916_v6 = vor.u32 %v7099_v0, %v4915_v62  ;;  %3626 = vmatpush.bf16.msra.mxu3 %v5188_v63  ;;  %662 = vst [vmem:[#allocation1] ss:$9 sm:$0xff] %v82_v60 }
  0x2c   :  { %v5171_v3 = vld [vmem:[#allocation3 + $0x340] sm:$0xf]  ;;  %v7163_v4 = vld [vmem:[#allocation3 + $0x34c] sm:$0xf0]  ;;  %v5044_v7 = vor.u32 %v7131_v2, %v5043_v1  ;;  %3588 = vmatpush.bf16.msra.mxu0 %v4788_v5 }
  0x2d   :  { %v4771_v8 = vld [vmem:[#allocation3 + $0x20] sm:$0xf]  ;;  %v7063_v9 = vld [vmem:[#allocation3 + $0x2c] sm:$0xf0]  ;;  %v5172_v11 = vor.u32 %v7163_v4, %v5171_v3  ;;  %3601 = vmatpush.bf16.msra.mxu1 %v4916_v6 }
  0x2e   :  { %v4899_v10 = vld [vmem:[#allocation3 + $0x120] sm:$0xf]  ;;  %v7095_v12 = vld [vmem:[#allocation3 + $0x12c] sm:$0xf0]  ;;  %v4772_v17 = vor.u32 %v7063_v9, %v4771_v8  ;;  %3614 = vmatpush.bf16.msra.mxu2 %v5044_v7 }
  0x2f   :  { %v5027_v13 = vld [vmem:[#allocation3 + $0x220] sm:$0xf]  ;;  %v7127_v14 = vld [vmem:[#allocation3 + $0x22c] sm:$0xf0]  ;;  %v4900_v20 = vor.u32 %v7095_v12, %v4899_v10  ;;  %3627 = vmatpush.bf16.msra.mxu3 %v5172_v11 }
  0x30   :  { %v5155_v15 = vld [vmem:[#allocation3 + $0x320] sm:$0xf]  ;;  %v7159_v16 = vld [vmem:[#allocation3 + $0x32c] sm:$0xf0]  ;;  %v5028_v21 = vor.u32 %v7127_v14, %v5027_v13  ;;  %3589 = vmatpush.bf16.msra.mxu0 %v4772_v17 }
  0x31   :  { %v4755_v18 = vld [vmem:[#allocation3] sm:$0xf]  ;;  %v7059_v19 = vld [vmem:[#allocation3 + $0xc] sm:$0xf0]  ;;  %v5156_v25 = vor.u32 %v7159_v16, %v5155_v15  ;;  %3602 = vmatpush.bf16.msra.mxu1 %v4900_v20 }
  0x32   :  { %v4883_v22 = vld [vmem:[#allocation3 + $0x100] sm:$0xf]  ;;  %v7091_v23 = vld [vmem:[#allocation3 + $0x10c] sm:$0xf0]  ;;  %v4756_v32 = vor.u32 %v7059_v19, %v4755_v18  ;;  %3615 = vmatpush.bf16.msra.mxu2 %v5028_v21 }
  0x33   :  { %v5011_v24 = vld [vmem:[#allocation3 + $0x200] sm:$0xf]  ;;  %v7123_v26 = vld [vmem:[#allocation3 + $0x20c] sm:$0xf0]  ;;  %v4884_v36 = vor.u32 %v7091_v23, %v4883_v22  ;;  %3628 = vmatpush.bf16.msra.mxu3 %v5156_v25  ;;  %v7825_v22 = vld [vmem:[#allocation1] sm:$0xff] }
  0x34   :  { %v5139_v27 = vld [vmem:[#allocation3 + $0x300] sm:$0xf]  ;;  %v7155_v28 = vld [vmem:[#allocation3 + $0x30c] sm:$0xf0]  ;;  %v5012_v37 = vor.u32 %v7123_v26, %v5011_v24  ;;  %3590 = vmatpush.bf16.msra.mxu0 %v4756_v32 }
  0x35   :  { %v5379_v29 = vld [vmem:[#allocation3 + $0x4e0] sm:$0xf]  ;;  %v7215_v30 = vld [vmem:[#allocation3 + $0x4ec] sm:$0xf0]  ;;  %v5140_v40 = vor.u32 %v7155_v28, %v5139_v27  ;;  %3603 = vmatpush.bf16.msra.mxu1 %v4884_v36 }
  0x36   :  { %v5507_v31 = vld [vmem:[#allocation3 + $0x5e0] sm:$0xf]  ;;  %v7247_v33 = vld [vmem:[#allocation3 + $0x5ec] sm:$0xf0]  ;;  %v5380_v41 = vor.u32 %v7215_v30, %v5379_v29  ;;  %3616 = vmatpush.bf16.msra.mxu2 %v5012_v37 }
  0x37   :  { %v5635_v34 = vld [vmem:[#allocation3 + $0x6e0] sm:$0xf]  ;;  %v7279_v35 = vld [vmem:[#allocation3 + $0x6ec] sm:$0xf0]  ;;  %v5508_v42 = vor.u32 %v7247_v33, %v5507_v31  ;;  %3629 = vmatpush.bf16.msra.mxu3 %v5140_v40  ;;  %3591 = vmatmul.bf16.vlgmr.msra.gmra.mxu0 %v7825_v22 }
  0x38   :  { %v5763_v38 = vld [vmem:[#allocation3 + $0x7e0] sm:$0xf]  ;;  %v7311_v39 = vld [vmem:[#allocation3 + $0x7ec] sm:$0xf0]  ;;  %v5636_v43 = vor.u32 %v7279_v35, %v5635_v34  ;;  %3635 = vmatpush.bf16.msrb.mxu0 %v5380_v41 }
  0x39   :  { %v5363_v44 = vld [vmem:[#allocation3 + $0x4c0] sm:$0xf]  ;;  %v7211_v45 = vld [vmem:[#allocation3 + $0x4cc] sm:$0xf0]  ;;  %v5764_v47 = vor.u32 %v7311_v39, %v5763_v38  ;;  %3648 = vmatpush.bf16.msrb.mxu1 %v5508_v42 }
  0x3a   :  { %v5491_v46 = vld [vmem:[#allocation3 + $0x5c0] sm:$0xf]  ;;  %v7243_v48 = vld [vmem:[#allocation3 + $0x5cc] sm:$0xf0]  ;;  %v5364_v53 = vor.u32 %v7211_v45, %v5363_v44  ;;  %3661 = vmatpush.bf16.msrb.mxu2 %v5636_v43 }
  0x3b   :  { %v5619_v49 = vld [vmem:[#allocation3 + $0x6c0] sm:$0xf]  ;;  %v7275_v50 = vld [vmem:[#allocation3 + $0x6cc] sm:$0xf0]  ;;  %v5492_v56 = vor.u32 %v7243_v48, %v5491_v46  ;;  %3674 = vmatpush.bf16.msrb.mxu3 %v5764_v47 }
  0x3c   :  { %v5747_v51 = vld [vmem:[#allocation3 + $0x7c0] sm:$0xf]  ;;  %v7307_v52 = vld [vmem:[#allocation3 + $0x7cc] sm:$0xf0]  ;;  %v5620_v57 = vor.u32 %v7275_v50, %v5619_v49  ;;  %3636 = vmatpush.bf16.msrb.mxu0 %v5364_v53 }
  0x3d   :  { %v5347_v54 = vld [vmem:[#allocation3 + $0x4a0] sm:$0xf]  ;;  %v7207_v55 = vld [vmem:[#allocation3 + $0x4ac] sm:$0xf0]  ;;  %v5748_v61 = vor.u32 %v7307_v52, %v5747_v51  ;;  %3649 = vmatpush.bf16.msrb.mxu1 %v5492_v56 }
  0x3e   :  { %v5475_v58 = vld [vmem:[#allocation3 + $0x5a0] sm:$0xf]  ;;  %v7239_v59 = vld [vmem:[#allocation3 + $0x5ac] sm:$0xf0]  ;;  %v5348_v2 = vor.u32 %v7207_v55, %v5347_v54  ;;  %3662 = vmatpush.bf16.msrb.mxu2 %v5620_v57 }
  0x3f   :  { %v5603_v62 = vld [vmem:[#allocation3 + $0x6a0] sm:$0xf]  ;;  %v7271_v63 = vld [vmem:[#allocation3 + $0x6ac] sm:$0xf0]  ;;  %v5476_v3 = vor.u32 %v7239_v59, %v5475_v58  ;;  %3675 = vmatpush.bf16.msrb.mxu3 %v5748_v61 }
  0x40   :  { %v5731_v0 = vld [vmem:[#allocation3 + $0x7a0] sm:$0xf]  ;;  %v7303_v1 = vld [vmem:[#allocation3 + $0x7ac] sm:$0xf0]  ;;  %v5604_v4 = vor.u32 %v7271_v63, %v5603_v62  ;;  %3637 = vmatpush.bf16.msrb.mxu0 %v5348_v2 }
  0x41   :  { %v5331_v5 = vld [vmem:[#allocation3 + $0x480] sm:$0xf]  ;;  %v7203_v6 = vld [vmem:[#allocation3 + $0x48c] sm:$0xf0]  ;;  %v5732_v8 = vor.u32 %v7303_v1, %v5731_v0  ;;  %3650 = vmatpush.bf16.msrb.mxu1 %v5476_v3 }
  0x42   :  { %v5459_v7 = vld [vmem:[#allocation3 + $0x580] sm:$0xf]  ;;  %v7235_v9 = vld [vmem:[#allocation3 + $0x58c] sm:$0xf0]  ;;  %v5332_v15 = vor.u32 %v7203_v6, %v5331_v5  ;;  %3663 = vmatpush.bf16.msrb.mxu2 %v5604_v4 }
  0x43   :  { %v5587_v10 = vld [vmem:[#allocation3 + $0x680] sm:$0xf]  ;;  %v7267_v11 = vld [vmem:[#allocation3 + $0x68c] sm:$0xf0]  ;;  %v5460_v19 = vor.u32 %v7235_v9, %v5459_v7  ;;  %3676 = vmatpush.bf16.msrb.mxu3 %v5732_v8 }
  0x44   :  { %v5715_v12 = vld [vmem:[#allocation3 + $0x780] sm:$0xf]  ;;  %v7299_v13 = vld [vmem:[#allocation3 + $0x78c] sm:$0xf0]  ;;  %v5588_v20 = vor.u32 %v7267_v11, %v5587_v10  ;;  %3638 = vmatpush.bf16.msrb.mxu0 %v5332_v15 }
  0x45   :  { %v5315_v14 = vld [vmem:[#allocation3 + $0x460] sm:$0xf]  ;;  %v7199_v16 = vld [vmem:[#allocation3 + $0x46c] sm:$0xf0]  ;;  %v5716_v24 = vor.u32 %v7299_v13, %v5715_v12  ;;  %3651 = vmatpush.bf16.msrb.mxu1 %v5460_v19 }
  0x46   :  { %v5443_v17 = vld [vmem:[#allocation3 + $0x560] sm:$0xf]  ;;  %v7231_v18 = vld [vmem:[#allocation3 + $0x56c] sm:$0xf0]  ;;  %v5316_v30 = vor.u32 %v7199_v16, %v5315_v14  ;;  %3664 = vmatpush.bf16.msrb.mxu2 %v5588_v20 }
  0x47   :  { %v7823_v21 = vld [vmem:[#allocation1 + $0x12] sm:$0xff]  ;;  %v7827_v23 = vld [vmem:[#allocation1 + $0x1b] sm:$0xff]  ;;  %v5571_v25 = vld [vmem:[#allocation3 + $0x660] sm:$0xf]  ;;  %v5444_v31 = vor.u32 %v7231_v18, %v5443_v17  ;;  %3677 = vmatpush.bf16.msrb.mxu3 %v5716_v24 }
  0x48   :  { %v7263_v26 = vld [vmem:[#allocation3 + $0x66c] sm:$0xf0]  ;;  %3617 = vmatmul.bf16.vlgmr.msra.gmra.mxu2 %v7823_v21  ;;  %v7830_v27 = vld [vmem:[#allocation1 + $0x9] sm:$0xff]  ;;  %3630 = vmatmul.bf16.vlgmr.msra.gmra.mxu3 %v7827_v23 }
  0x49   :  { %v5699_v28 = vld [vmem:[#allocation3 + $0x760] sm:$0xf]  ;;  %v7295_v29 = vld [vmem:[#allocation3 + $0x76c] sm:$0xf0]  ;;  %3604 = vmatmul.bf16.vlgmr.msra.gmra.mxu1 %v7830_v27  ;;  %v5572_v32 = vor.u32 %v7263_v26, %v5571_v25  ;;  %3639 = vmatpush.bf16.msrb.mxu0 %v5316_v30 }
  0x4a   :  { %v5299_v33 = vld [vmem:[#allocation3 + $0x440] sm:$0xf]  ;;  %v7195_v34 = vld [vmem:[#allocation3 + $0x44c] sm:$0xf0]  ;;  %v5700_v36 = vor.u32 %v7295_v29, %v5699_v28  ;;  %3652 = vmatpush.bf16.msrb.mxu1 %v5444_v31 }
  0x4b   :  { %v5427_v35 = vld [vmem:[#allocation3 + $0x540] sm:$0xf]  ;;  %v7227_v37 = vld [vmem:[#allocation3 + $0x54c] sm:$0xf0]  ;;  %v5300_v42 = vor.u32 %v7195_v34, %v5299_v33  ;;  %3665 = vmatpush.bf16.msrb.mxu2 %v5572_v32  ;;  %v7839_v33 = vld [vmem:[#allocation1 + $0x3f] sm:$0xff] }
  0x4c   :  { %v5555_v38 = vld [vmem:[#allocation3 + $0x640] sm:$0xf]  ;;  %v7259_v39 = vld [vmem:[#allocation3 + $0x64c] sm:$0xf0]  ;;  %v5428_v43 = vor.u32 %v7227_v37, %v5427_v35  ;;  %3678 = vmatpush.bf16.msrb.mxu3 %v5700_v36 }
  0x4d   :  { %v5683_v40 = vld [vmem:[#allocation3 + $0x740] sm:$0xf]  ;;  %v7291_v41 = vld [vmem:[#allocation3 + $0x74c] sm:$0xf0]  ;;  %v5556_v44 = vor.u32 %v7259_v39, %v5555_v38  ;;  %3640 = vmatpush.bf16.msrb.mxu0 %v5300_v42  ;;  %v7841_v39 = vld [vmem:[#allocation1 + $0x2d] sm:$0xff] }
  0x4e   :  { %v5283_v45 = vld [vmem:[#allocation3 + $0x420] sm:$0xf]  ;;  %v7191_v46 = vld [vmem:[#allocation3 + $0x42c] sm:$0xf0]  ;;  %v5684_v48 = vor.u32 %v7291_v41, %v5683_v40  ;;  %3653 = vmatpush.bf16.msrb.mxu1 %v5428_v43 }
  0x4f   :  { %v5411_v47 = vld [vmem:[#allocation3 + $0x520] sm:$0xf]  ;;  %v7223_v49 = vld [vmem:[#allocation3 + $0x52c] sm:$0xf0]  ;;  %v5284_v54 = vor.u32 %v7191_v46, %v5283_v45  ;;  %3666 = vmatpush.bf16.msrb.mxu2 %v5556_v44 }
  0x50   :  { %v5539_v50 = vld [vmem:[#allocation3 + $0x620] sm:$0xf]  ;;  %v7255_v51 = vld [vmem:[#allocation3 + $0x62c] sm:$0xf0]  ;;  %v5412_v57 = vor.u32 %v7223_v49, %v5411_v47  ;;  %3679 = vmatpush.bf16.msrb.mxu3 %v5684_v48 }
  0x51   :  { %v5667_v52 = vld [vmem:[#allocation3 + $0x720] sm:$0xf]  ;;  %v7287_v53 = vld [vmem:[#allocation3 + $0x72c] sm:$0xf0]  ;;  %v5540_v58 = vor.u32 %v7255_v51, %v5539_v50  ;;  %3641 = vmatpush.bf16.msrb.mxu0 %v5284_v54 }
  0x52   :  { %v5267_v55 = vld [vmem:[#allocation3 + $0x400] sm:$0xf]  ;;  %v7187_v56 = vld [vmem:[#allocation3 + $0x40c] sm:$0xf0]  ;;  %v5668_v62 = vor.u32 %v7287_v53, %v5667_v52  ;;  %3654 = vmatpush.bf16.msrb.mxu1 %v5412_v57 }
  0x53   :  { %v5395_v59 = vld [vmem:[#allocation3 + $0x500] sm:$0xf]  ;;  %v7219_v60 = vld [vmem:[#allocation3 + $0x50c] sm:$0xf0]  ;;  %v5268_v5 = vor.u32 %v7187_v56, %v5267_v55  ;;  %3667 = vmatpush.bf16.msrb.mxu2 %v5540_v58 }
  0x54   :  { %v5523_v61 = vld [vmem:[#allocation3 + $0x600] sm:$0xf]  ;;  %v7251_v63 = vld [vmem:[#allocation3 + $0x60c] sm:$0xf0]  ;;  %v5396_v9 = vor.u32 %v7219_v60, %v5395_v59  ;;  %3680 = vmatpush.bf16.msrb.mxu3 %v5668_v62 }
  0x55   :  { %v5651_v0 = vld [vmem:[#allocation3 + $0x700] sm:$0xf]  ;;  %v7283_v1 = vld [vmem:[#allocation3 + $0x70c] sm:$0xf0]  ;;  %v5524_v10 = vor.u32 %v7251_v63, %v5523_v61  ;;  %3642 = vmatpush.bf16.msrb.mxu0 %v5268_v5 }
  0x56   :  { %v5891_v2 = vld [vmem:[#allocation3 + $0x8e0] sm:$0xf]  ;;  %v7343_v3 = vld [vmem:[#allocation3 + $0x8ec] sm:$0xf0]  ;;  %v5652_v13 = vor.u32 %v7283_v1, %v5651_v0  ;;  %3655 = vmatpush.bf16.msrb.mxu1 %v5396_v9 }
  0x57   :  { %v6019_v4 = vld [vmem:[#allocation3 + $0x9e0] sm:$0xf]  ;;  %v7375_v6 = vld [vmem:[#allocation3 + $0x9ec] sm:$0xf0]  ;;  %v5892_v14 = vor.u32 %v7343_v3, %v5891_v2  ;;  %3668 = vmatpush.bf16.msrb.mxu2 %v5524_v10 }
  0x58   :  { %v6147_v7 = vld [vmem:[#allocation3 + $0xae0] sm:$0xf]  ;;  %v7407_v8 = vld [vmem:[#allocation3 + $0xaec] sm:$0xf0]  ;;  %v6020_v15 = vor.u32 %v7375_v6, %v6019_v4  ;;  %3681 = vmatpush.bf16.msrb.mxu3 %v5652_v13 }
  0x59   :  { %v6275_v11 = vld [vmem:[#allocation3 + $0xbe0] sm:$0xf]  ;;  %v7439_v12 = vld [vmem:[#allocation3 + $0xbec] sm:$0xf0]  ;;  %v6148_v16 = vor.u32 %v7407_v8, %v6147_v7  ;;  %3687 = vmatpush.bf16.msra.mxu0 %v5892_v14  ;;  %3656 = vmatmul.bf16.vlgmr.msrb.gmra.mxu1 %v7841_v39 }
  0x5a   :  { %v5875_v17 = vld [vmem:[#allocation3 + $0x8c0] sm:$0xf]  ;;  %v7339_v18 = vld [vmem:[#allocation3 + $0x8cc] sm:$0xf0]  ;;  %v6276_v20 = vor.u32 %v7439_v12, %v6275_v11  ;;  %3700 = vmatpush.bf16.msra.mxu1 %v6020_v15 }
  0x5b   :  { %v6003_v19 = vld [vmem:[#allocation3 + $0x9c0] sm:$0xf]  ;;  %v7371_v24 = vld [vmem:[#allocation3 + $0x9cc] sm:$0xf0]  ;;  %v5876_v31 = vor.u32 %v7339_v18, %v5875_v17  ;;  %3713 = vmatpush.bf16.msra.mxu2 %v6148_v16  ;;  %3682 = vmatmul.bf16.vlgmr.msrb.gmra.mxu3 %v7839_v33 }
  0x5c   :  { %v6131_v25 = vld [vmem:[#allocation3 + $0xac0] sm:$0xf]  ;;  %v7403_v26 = vld [vmem:[#allocation3 + $0xacc] sm:$0xf0]  ;;  %v6004_v35 = vor.u32 %v7371_v24, %v6003_v19  ;;  %3726 = vmatpush.bf16.msra.mxu3 %v6276_v20 }
  0x5d   :  { %v6259_v28 = vld [vmem:[#allocation3 + $0xbc0] sm:$0xf]  ;;  %v7435_v29 = vld [vmem:[#allocation3 + $0xbcc] sm:$0xf0]  ;;  %v6132_v36 = vor.u32 %v7403_v26, %v6131_v25  ;;  %3688 = vmatpush.bf16.msra.mxu0 %v5876_v31 }
  0x5e   :  { %v7835_v30 = vld [vmem:[#allocation1 + $0x36] sm:$0xff]  ;;  %v7837_v32 = vld [vmem:[#allocation1 + $0x24] sm:$0xff]  ;;  %v6260_v40 = vor.u32 %v7435_v29, %v6259_v28  ;;  %3701 = vmatpush.bf16.msra.mxu1 %v6004_v35 }
  0x5f   :  { %v5859_v34 = vld [vmem:[#allocation3 + $0x8a0] sm:$0xf]  ;;  %v7335_v37 = vld [vmem:[#allocation3 + $0x8ac] sm:$0xf0]  ;;  %3669 = vmatmul.bf16.vlgmr.msrb.gmra.mxu2 %v7835_v30  ;;  %3643 = vmatmul.bf16.vlgmr.msrb.gmra.mxu0 %v7837_v32 }
  0x60   :  { %v5987_v38 = vld [vmem:[#allocation3 + $0x9a0] sm:$0xf]  ;;  %v7367_v41 = vld [vmem:[#allocation3 + $0x9ac] sm:$0xf0]  ;;  %v5860_v46 = vor.u32 %v7335_v37, %v5859_v34  ;;  %3714 = vmatpush.bf16.msra.mxu2 %v6132_v36  ;;  %3727 = vmatpush.bf16.msra.mxu3 %v6260_v40 }
  0x61   :  { %v6115_v42 = vld [vmem:[#allocation3 + $0xaa0] sm:$0xf]  ;;  %v7399_v43 = vld [vmem:[#allocation3 + $0xaac] sm:$0xf0]  ;;  %v5988_v47 = vor.u32 %v7367_v41, %v5987_v38 }
  0x62   :  { %v6243_v44 = vld [vmem:[#allocation3 + $0xba0] sm:$0xf]  ;;  %v7431_v45 = vld [vmem:[#allocation3 + $0xbac] sm:$0xf0]  ;;  %v6116_v48 = vor.u32 %v7399_v43, %v6115_v42  ;;  %3689 = vmatpush.bf16.msra.mxu0 %v5860_v46 }
  0x63   :  { %v5843_v49 = vld [vmem:[#allocation3 + $0x880] sm:$0xf]  ;;  %v7331_v50 = vld [vmem:[#allocation3 + $0x88c] sm:$0xf0]  ;;  %v6244_v52 = vor.u32 %v7431_v45, %v6243_v44  ;;  %3702 = vmatpush.bf16.msra.mxu1 %v5988_v47 }
  0x64   :  { %v5971_v51 = vld [vmem:[#allocation3 + $0x980] sm:$0xf]  ;;  %v7363_v53 = vld [vmem:[#allocation3 + $0x98c] sm:$0xf0]  ;;  %v5844_v59 = vor.u32 %v7331_v50, %v5843_v49  ;;  %3715 = vmatpush.bf16.msra.mxu2 %v6116_v48 }
  0x65   :  { %v6099_v54 = vld [vmem:[#allocation3 + $0xa80] sm:$0xf]  ;;  %v7395_v55 = vld [vmem:[#allocation3 + $0xa8c] sm:$0xf0]  ;;  %v5972_v60 = vor.u32 %v7363_v53, %v5971_v51  ;;  %3728 = vmatpush.bf16.msra.mxu3 %v6244_v52 }
  0x66   :  { %v6227_v56 = vld [vmem:[#allocation3 + $0xb80] sm:$0xf]  ;;  %v7427_v57 = vld [vmem:[#allocation3 + $0xb8c] sm:$0xf0]  ;;  %v6100_v61 = vor.u32 %v7395_v55, %v6099_v54  ;;  %3690 = vmatpush.bf16.msra.mxu0 %v5844_v59 }
  0x67   :  { %v83_v58 = vld [vmem:[%s8054_s0 + $0x8] sm:$0xff]  ;;  %v7327_v63 = vld [vmem:[#allocation3 + $0x86c] sm:$0xf0]  ;;  %v6228_v1 = vor.u32 %v7427_v57, %v6227_v56  ;;  %3703 = vmatpush.bf16.msra.mxu1 %v5972_v60 }
  0x68   :  { %672 = vst [vmem:[#allocation1] ss:$9 sm:$0xff] %v83_v58  ;;  %v5827_v62 = vld [vmem:[#allocation3 + $0x860] sm:$0xf]  ;;  %v7359_v2 = vld [vmem:[#allocation3 + $0x96c] sm:$0xf0]  ;;  %3716 = vmatpush.bf16.msra.mxu2 %v6100_v61 }
  0x69   :  { %v5955_v0 = vld [vmem:[#allocation3 + $0x960] sm:$0xf]  ;;  %v7391_v4 = vld [vmem:[#allocation3 + $0xa6c] sm:$0xf0]  ;;  %v5828_v7 = vor.u32 %v7327_v63, %v5827_v62  ;;  %3729 = vmatpush.bf16.msra.mxu3 %v6228_v1 }
  0x6a   :  { %v6083_v3 = vld [vmem:[#allocation3 + $0xa60] sm:$0xf]  ;;  %v7423_v6 = vld [vmem:[#allocation3 + $0xb6c] sm:$0xf0]  ;;  %v5956_v8 = vor.u32 %v7359_v2, %v5955_v0 }
  0x6b   :  { %v6211_v5 = vld [vmem:[#allocation3 + $0xb60] sm:$0xf]  ;;  %v6084_v9 = vor.u32 %v7391_v4, %v6083_v3  ;;  %v7323_v11 = vld [vmem:[#allocation3 + $0x84c] sm:$0xf0]  ;;  %3691 = vmatpush.bf16.msra.mxu0 %v5828_v7 }
  0x6c   :  { %v5811_v10 = vld [vmem:[#allocation3 + $0x840] sm:$0xf]  ;;  %v6212_v13 = vor.u32 %v7423_v6, %v6211_v5  ;;  %v7355_v14 = vld [vmem:[#allocation3 + $0x94c] sm:$0xf0]  ;;  %3704 = vmatpush.bf16.msra.mxu1 %v5956_v8 }
  0x6d   :  { %v5939_v12 = vld [vmem:[#allocation3 + $0x940] sm:$0xf]  ;;  %v7387_v16 = vld [vmem:[#allocation3 + $0xa4c] sm:$0xf0]  ;;  %v5812_v19 = vor.u32 %v7323_v11, %v5811_v10  ;;  %3717 = vmatpush.bf16.msra.mxu2 %v6084_v9 }
  0x6e   :  { %v6067_v15 = vld [vmem:[#allocation3 + $0xa40] sm:$0xf]  ;;  %v7419_v18 = vld [vmem:[#allocation3 + $0xb4c] sm:$0xf0]  ;;  %v5940_v20 = vor.u32 %v7355_v14, %v5939_v12  ;;  %3730 = vmatpush.bf16.msra.mxu3 %v6212_v13 }
  0x6f   :  { %v6195_v17 = vld [vmem:[#allocation3 + $0xb40] sm:$0xf]  ;;  %v6068_v24 = vor.u32 %v7387_v16, %v6067_v15  ;;  %v7319_v26 = vld [vmem:[#allocation3 + $0x82c] sm:$0xf0]  ;;  %3692 = vmatpush.bf16.msra.mxu0 %v5812_v19  ;;  %v7850_v9 = vld [vmem:[#allocation1] sm:$0xff] }
  0x70   :  { %v5795_v25 = vld [vmem:[#allocation3 + $0x820] sm:$0xf]  ;;  %v6196_v29 = vor.u32 %v7419_v18, %v6195_v17  ;;  %v7351_v31 = vld [vmem:[#allocation3 + $0x92c] sm:$0xf0]  ;;  %3705 = vmatpush.bf16.msra.mxu1 %v5940_v20 }
  0x71   :  { %v5923_v28 = vld [vmem:[#allocation3 + $0x920] sm:$0xf]  ;;  %v7383_v35 = vld [vmem:[#allocation3 + $0xa2c] sm:$0xf0]  ;;  %v5796_v38 = vor.u32 %v7319_v26, %v5795_v25  ;;  %3718 = vmatpush.bf16.msra.mxu2 %v6068_v24 }
  0x72   :  { %v6051_v34 = vld [vmem:[#allocation3 + $0xa20] sm:$0xf]  ;;  %v7415_v37 = vld [vmem:[#allocation3 + $0xb2c] sm:$0xf0]  ;;  %v5924_v42 = vor.u32 %v7351_v31, %v5923_v28  ;;  %3731 = vmatpush.bf16.msra.mxu3 %v6196_v29 }
  0x73   :  { %v6179_v36 = vld [vmem:[#allocation3 + $0xb20] sm:$0xf]  ;;  %v7315_v41 = vld [vmem:[#allocation3 + $0x80c] sm:$0xf0]  ;;  %v6052_v43 = vor.u32 %v7383_v35, %v6051_v34  ;;  %3693 = vmatpush.bf16.msra.mxu0 %v5796_v38 }
  0x74   :  { %v5779_v40 = vld [vmem:[#allocation3 + $0x800] sm:$0xf]  ;;  %v7347_v45 = vld [vmem:[#allocation3 + $0x90c] sm:$0xf0]  ;;  %v6180_v47 = vor.u32 %v7415_v37, %v6179_v36  ;;  %3706 = vmatpush.bf16.msra.mxu1 %v5924_v42 }
  0x75   :  { %v5907_v44 = vld [vmem:[#allocation3 + $0x900] sm:$0xf]  ;;  %v7379_v48 = vld [vmem:[#allocation3 + $0xa0c] sm:$0xf0]  ;;  %v5780_v54 = vor.u32 %v7315_v41, %v5779_v40  ;;  %3719 = vmatpush.bf16.msra.mxu2 %v6052_v43 }
  0x76   :  { %v6035_v46 = vld [vmem:[#allocation3 + $0xa00] sm:$0xf]  ;;  %v7411_v50 = vld [vmem:[#allocation3 + $0xb0c] sm:$0xf0]  ;;  %v5908_v58 = vor.u32 %v7347_v45, %v5907_v44  ;;  %3732 = vmatpush.bf16.msra.mxu3 %v6180_v47 }
  0x77   :  { %v6163_v49 = vld [vmem:[#allocation3 + $0xb00] sm:$0xf]  ;;  %v7471_v52 = vld [vmem:[#allocation3 + $0xcec] sm:$0xf0]  ;;  %v6036_v59 = vor.u32 %v7379_v48, %v6035_v46  ;;  %3694 = vmatpush.bf16.msra.mxu0 %v5780_v54 }
  0x78   :  { %v6403_v51 = vld [vmem:[#allocation3 + $0xce0] sm:$0xf]  ;;  %v7503_v55 = vld [vmem:[#allocation3 + $0xdec] sm:$0xf0]  ;;  %v6164_v62 = vor.u32 %v7411_v50, %v6163_v49  ;;  %3707 = vmatpush.bf16.msra.mxu1 %v5908_v58 }
  0x79   :  { %v6531_v53 = vld [vmem:[#allocation3 + $0xde0] sm:$0xf]  ;;  %v7535_v57 = vld [vmem:[#allocation3 + $0xeec] sm:$0xf0]  ;;  %v6404_v63 = vor.u32 %v7471_v52, %v6403_v51  ;;  %3720 = vmatpush.bf16.msra.mxu2 %v6036_v59 }
  0x7a   :  { %v6659_v56 = vld [vmem:[#allocation3 + $0xee0] sm:$0xf]  ;;  %v7567_v61 = vld [vmem:[#allocation3 + $0xfec] sm:$0xf0]  ;;  %v6532_v0 = vor.u32 %v7503_v55, %v6531_v53  ;;  %3733 = vmatpush.bf16.msra.mxu3 %v6164_v62  ;;  %3695 = vmatmul.bf16.vlgmr.msra.gmra.mxu0 %v7850_v9 }
  0x7b   :  { %v6787_v60 = vld [vmem:[#allocation3 + $0xfe0] sm:$0xf]  ;;  %v6660_v1 = vor.u32 %v7535_v57, %v6659_v56  ;;  %v7467_v3 = vld [vmem:[#allocation3 + $0xccc] sm:$0xf0]  ;;  %3739 = vmatpush.bf16.msrb.mxu0 %v6404_v63 }
  0x7c   :  { %v6387_v2 = vld [vmem:[#allocation3 + $0xcc0] sm:$0xf]  ;;  %v6788_v5 = vor.u32 %v7567_v61, %v6787_v60  ;;  %v7499_v6 = vld [vmem:[#allocation3 + $0xdcc] sm:$0xf0]  ;;  %3752 = vmatpush.bf16.msrb.mxu1 %v6532_v0 }
  0x7d   :  { %v6515_v4 = vld [vmem:[#allocation3 + $0xdc0] sm:$0xf]  ;;  %v7531_v8 = vld [vmem:[#allocation3 + $0xecc] sm:$0xf0]  ;;  %v6388_v14 = vor.u32 %v7467_v3, %v6387_v2  ;;  %3765 = vmatpush.bf16.msrb.mxu2 %v6660_v1 }
  0x7e   :  { %v6643_v7 = vld [vmem:[#allocation3 + $0xec0] sm:$0xf]  ;;  %v7563_v11 = vld [vmem:[#allocation3 + $0xfcc] sm:$0xf0]  ;;  %v6516_v17 = vor.u32 %v7499_v6, %v6515_v4  ;;  %3778 = vmatpush.bf16.msrb.mxu3 %v6788_v5 }
  0x7f   :  { %v6771_v10 = vld [vmem:[#allocation3 + $0xfc0] sm:$0xf]  ;;  %v7852_v12 = vld [vmem:[#allocation1 + $0x12] sm:$0xff]  ;;  %v7856_v16 = vld [vmem:[#allocation1 + $0x1b] sm:$0xff]  ;;  %v6644_v18 = vor.u32 %v7531_v8, %v6643_v7  ;;  %3740 = vmatpush.bf16.msrb.mxu0 %v6388_v14 }
  0x80   :  { %v7854_v13 = vld [vmem:[#allocation1 + $0x9] sm:$0xff]  ;;  %v7463_v19 = vld [vmem:[#allocation3 + $0xcac] sm:$0xf0]  ;;  %v6772_v24 = vor.u32 %v7563_v11, %v6771_v10  ;;  %3721 = vmatmul.bf16.vlgmr.msra.gmra.mxu2 %v7852_v12  ;;  %3734 = vmatmul.bf16.vlgmr.msra.gmra.mxu3 %v7856_v16 }
  0x81   :  { %v6371_v15 = vld [vmem:[#allocation3 + $0xca0] sm:$0xf]  ;;  %v7495_v25 = vld [vmem:[#allocation3 + $0xdac] sm:$0xf0]  ;;  %3708 = vmatmul.bf16.vlgmr.msra.gmra.mxu1 %v7854_v13  ;;  %3766 = vmatpush.bf16.msrb.mxu2 %v6644_v18 }
  0x82   :  { %v6499_v20 = vld [vmem:[#allocation3 + $0xda0] sm:$0xf]  ;;  %v7527_v28 = vld [vmem:[#allocation3 + $0xeac] sm:$0xf0]  ;;  %v6372_v34 = vor.u32 %v7463_v19, %v6371_v15  ;;  %3753 = vmatpush.bf16.msrb.mxu1 %v6516_v17  ;;  %3779 = vmatpush.bf16.msrb.mxu3 %v6772_v24 }
  0x83   :  { %v6627_v26 = vld [vmem:[#allocation3 + $0xea0] sm:$0xf]  ;;  %v7559_v31 = vld [vmem:[#allocation3 + $0xfac] sm:$0xf0]  ;;  %v6500_v35 = vor.u32 %v7495_v25, %v6499_v20 }
  0x84   :  { %v6755_v29 = vld [vmem:[#allocation3 + $0xfa0] sm:$0xf]  ;;  %v6628_v36 = vor.u32 %v7527_v28, %v6627_v26  ;;  %v7459_v38 = vld [vmem:[#allocation3 + $0xc8c] sm:$0xf0]  ;;  %3741 = vmatpush.bf16.msrb.mxu0 %v6372_v34 }
  0x85   :  { %v6355_v37 = vld [vmem:[#allocation3 + $0xc80] sm:$0xf]  ;;  %v6756_v41 = vor.u32 %v7559_v31, %v6755_v29  ;;  %v7491_v42 = vld [vmem:[#allocation3 + $0xd8c] sm:$0xf0] }
  0x86   :  { %v6483_v40 = vld [vmem:[#allocation3 + $0xd80] sm:$0xf]  ;;  %v7523_v44 = vld [vmem:[#allocation3 + $0xe8c] sm:$0xf0]  ;;  %v6356_v47 = vor.u32 %v7459_v38, %v6355_v37  ;;  %3754 = vmatpush.bf16.msrb.mxu1 %v6500_v35  ;;  %3767 = vmatpush.bf16.msrb.mxu2 %v6628_v36 }
  0x87   :  { %v6611_v43 = vld [vmem:[#allocation3 + $0xe80] sm:$0xf]  ;;  %v7555_v46 = vld [vmem:[#allocation3 + $0xf8c] sm:$0xf0]  ;;  %v6484_v48 = vor.u32 %v7491_v42, %v6483_v40  ;;  %3780 = vmatpush.bf16.msrb.mxu3 %v6756_v41 }
  0x88   :  { %v6739_v45 = vld [vmem:[#allocation3 + $0xf80] sm:$0xf]  ;;  %v6612_v49 = vor.u32 %v7523_v44, %v6611_v43  ;;  %v7455_v51 = vld [vmem:[#allocation3 + $0xc6c] sm:$0xf0]  ;;  %3742 = vmatpush.bf16.msrb.mxu0 %v6356_v47 }
  0x89   :  { %v6339_v50 = vld [vmem:[#allocation3 + $0xc60] sm:$0xf]  ;;  %v6740_v53 = vor.u32 %v7555_v46, %v6739_v45  ;;  %v7487_v54 = vld [vmem:[#allocation3 + $0xd6c] sm:$0xf0] }
  0x8a   :  { %v6467_v52 = vld [vmem:[#allocation3 + $0xd60] sm:$0xf]  ;;  %v7519_v56 = vld [vmem:[#allocation3 + $0xe6c] sm:$0xf0]  ;;  %v6340_v59 = vor.u32 %v7455_v51, %v6339_v50  ;;  %3755 = vmatpush.bf16.msrb.mxu1 %v6484_v48  ;;  %3768 = vmatpush.bf16.msrb.mxu2 %v6612_v49  ;;  %v7866_v49 = vld [vmem:[#allocation1 + $0x2d] sm:$0xff] }
  0x8b   :  { %v6595_v55 = vld [vmem:[#allocation3 + $0xe60] sm:$0xf]  ;;  %v7551_v58 = vld [vmem:[#allocation3 + $0xf6c] sm:$0xf0]  ;;  %v6468_v60 = vor.u32 %v7487_v54, %v6467_v52  ;;  %3781 = vmatpush.bf16.msrb.mxu3 %v6740_v53  ;;  %v7868_v50 = vld [vmem:[#allocation1 + $0x3f] sm:$0xff] }
  0x8c   :  { %v6723_v57 = vld [vmem:[#allocation3 + $0xf60] sm:$0xf]  ;;  %v6596_v61 = vor.u32 %v7519_v56, %v6595_v55  ;;  %v7451_v63 = vld [vmem:[#allocation3 + $0xc4c] sm:$0xf0]  ;;  %3743 = vmatpush.bf16.msrb.mxu0 %v6340_v59  ;;  %v84_v51 = vld [vmem:[%s8054_s0 + $0x10] sm:$0x3] }
  0x8d   :  { %v6323_v62 = vld [vmem:[#allocation3 + $0xc40] sm:$0xf]  ;;  %v6724_v1 = vor.u32 %v7551_v58, %v6723_v57  ;;  %v7483_v2 = vld [vmem:[#allocation3 + $0xd4c] sm:$0xf0]  ;;  %v7085_v53 = vld [vmem:[#allocation3 + $0xe4] sm:$0xf] }
  0x8e   :  { %v6451_v0 = vld [vmem:[#allocation3 + $0xd40] sm:$0xf]  ;;  %v7515_v4 = vld [vmem:[#allocation3 + $0xe4c] sm:$0xf0]  ;;  %v6324_v7 = vor.u32 %v7451_v63, %v6323_v62  ;;  %3756 = vmatpush.bf16.msrb.mxu1 %v6468_v60  ;;  %3769 = vmatpush.bf16.msrb.mxu2 %v6596_v61  ;;  %v4869_v54 = vld [vmem:[#allocation3 + $0xf0] sm:$0xf0] }
  0x8f   :  { %v6579_v3 = vld [vmem:[#allocation3 + $0xe40] sm:$0xf]  ;;  %v7547_v6 = vld [vmem:[#allocation3 + $0xf4c] sm:$0xf0]  ;;  %v6452_v10 = vor.u32 %v7483_v2, %v6451_v0  ;;  %3782 = vmatpush.bf16.msrb.mxu3 %v6724_v1  ;;  %v7117_v57 = vld [vmem:[#allocation3 + $0x1e4] sm:$0xf]  ;;  %v4872_v62 = vor.u32 %v7085_v53, %v4869_v54 }
  0x90   :  { %v6707_v5 = vld [vmem:[#allocation3 + $0xf40] sm:$0xf]  ;;  %v6580_v11 = vor.u32 %v7515_v4, %v6579_v3  ;;  %v7447_v14 = vld [vmem:[#allocation3 + $0xc2c] sm:$0xf0]  ;;  %3744 = vmatpush.bf16.msrb.mxu0 %v6324_v7  ;;  %v4997_v58 = vld [vmem:[#allocation3 + $0x1f0] sm:$0xf0] }
  0x91   :  { %v6307_v8 = vld [vmem:[#allocation3 + $0xc20] sm:$0xf]  ;;  %v7479_v17 = vld [vmem:[#allocation3 + $0xd2c] sm:$0xf0]  ;;  %v6708_v18 = vor.u32 %v7547_v6, %v6707_v5  ;;  %v5000_v2 = vor.u32 %v7117_v57, %v4997_v58  ;;  %v7081_v4 = vld [vmem:[#allocation3 + $0xc4] sm:$0xf] }
  0x92   :  { %v6435_v15 = vld [vmem:[#allocation3 + $0xd20] sm:$0xf]  ;;  %v7511_v20 = vld [vmem:[#allocation3 + $0xe2c] sm:$0xf0]  ;;  %v6308_v29 = vor.u32 %v7447_v14, %v6307_v8  ;;  %3757 = vmatpush.bf16.msrb.mxu1 %v6452_v10  ;;  %3770 = vmatpush.bf16.msrb.mxu2 %v6580_v11  ;;  %v4853_v5 = vld [vmem:[#allocation3 + $0xd0] sm:$0xf0] }
  0x93   :  { %v6563_v19 = vld [vmem:[#allocation3 + $0xe20] sm:$0xf]  ;;  %v7543_v25 = vld [vmem:[#allocation3 + $0xf2c] sm:$0xf0]  ;;  %v6436_v37 = vor.u32 %v7479_v17, %v6435_v15  ;;  %3783 = vmatpush.bf16.msrb.mxu3 %v6708_v18  ;;  %v7113_v6 = vld [vmem:[#allocation3 + $0x1c4] sm:$0xf]  ;;  %v4856_v11 = vor.u32 %v7081_v4, %v4853_v5 }
  0x94   :  { %v6691_v24 = vld [vmem:[#allocation3 + $0xf20] sm:$0xf]  ;;  %v7443_v28 = vld [vmem:[#allocation3 + $0xc0c] sm:$0xf0]  ;;  %v6564_v38 = vor.u32 %v7511_v20, %v6563_v19  ;;  %3745 = vmatpush.bf16.msrb.mxu0 %v6308_v29  ;;  %v4981_v7 = vld [vmem:[#allocation3 + $0x1d0] sm:$0xf0] }
  0x95   :  { %v6291_v26 = vld [vmem:[#allocation3 + $0xc00] sm:$0xf]  ;;  %v7475_v34 = vld [vmem:[#allocation3 + $0xd0c] sm:$0xf0]  ;;  %v6692_v44 = vor.u32 %v7543_v25, %v6691_v24  ;;  %v4984_v18 = vor.u32 %v7113_v6, %v4981_v7  ;;  %v7077_v20 = vld [vmem:[#allocation3 + $0xa4] sm:$0xf] }
  0x96   :  { %v6419_v31 = vld [vmem:[#allocation3 + $0xd00] sm:$0xf]  ;;  %v7507_v36 = vld [vmem:[#allocation3 + $0xe0c] sm:$0xf0]  ;;  %v6292_v52 = vor.u32 %v7443_v28, %v6291_v26  ;;  %3758 = vmatpush.bf16.msrb.mxu1 %v6436_v37  ;;  %3771 = vmatpush.bf16.msrb.mxu2 %v6564_v38  ;;  %v4837_v24 = vld [vmem:[#allocation3 + $0xb0] sm:$0xf0] }
  0x97   :  { %v6547_v35 = vld [vmem:[#allocation3 + $0xe00] sm:$0xf]  ;;  %v7539_v41 = vld [vmem:[#allocation3 + $0xf0c] sm:$0xf0]  ;;  %v6420_v55 = vor.u32 %v7475_v34, %v6419_v31  ;;  %3784 = vmatpush.bf16.msrb.mxu3 %v6692_v44  ;;  %v7109_v25 = vld [vmem:[#allocation3 + $0x1a4] sm:$0xf]  ;;  %v4840_v31 = vor.u32 %v7077_v20, %v4837_v24 }
  0x98   :  { %v6675_v40 = vld [vmem:[#allocation3 + $0xf00] sm:$0xf]  ;;  %v7599_v43 = vld [vmem:[#allocation3 + $0x10ec] sm:$0xf0]  ;;  %v6548_v56 = vor.u32 %v7507_v36, %v6547_v35  ;;  %3746 = vmatpush.bf16.msrb.mxu0 %v6292_v52  ;;  %v4965_v26 = vld [vmem:[#allocation3 + $0x1b0] sm:$0xf0] }
  0x99   :  { %v6915_v42 = vld [vmem:[#allocation3 + $0x10e0] sm:$0xf]  ;;  %v7631_v46 = vld [vmem:[#allocation3 + $0x11ec] sm:$0xf0]  ;;  %v6676_v59 = vor.u32 %v7539_v41, %v6675_v40  ;;  %v4968_v37 = vor.u32 %v7109_v25, %v4965_v26  ;;  %v7073_v40 = vld [vmem:[#allocation3 + $0x84] sm:$0xf] }
  0x9a   :  { %v7043_v45 = vld [vmem:[#allocation3 + $0x11e0] sm:$0xf]  ;;  %v7864_v48 = vld [vmem:[#allocation1 + $0x36] sm:$0xff]  ;;  %v6916_v60 = vor.u32 %v7599_v43, %v6915_v42  ;;  %3759 = vmatpush.bf16.msrb.mxu1 %v6420_v55  ;;  %3772 = vmatpush.bf16.msrb.mxu2 %v6548_v56  ;;  %v7105_v42 = vld [vmem:[#allocation3 + $0x184] sm:$0xf] }
  0x9b   :  { %v7862_v47 = vld [vmem:[#allocation1 + $0x24] sm:$0xff]  ;;  %v7044_v61 = vor.u32 %v7631_v46, %v7043_v45  ;;  %v7595_v0 = vld [vmem:[#allocation3 + $0x10cc] sm:$0xf0]  ;;  %3785 = vmatpush.bf16.msrb.mxu3 %v6676_v59  ;;  %v4821_v41 = vld [vmem:[#allocation3 + $0x90] sm:$0xf0] }
  0x9c   :  { %682 = vst [vmem:[#allocation1] ss:$9 sm:$0xff] %v84_v51  ;;  %v6899_v63 = vld [vmem:[#allocation3 + $0x10c0] sm:$0xf]  ;;  %v7627_v3 = vld [vmem:[#allocation3 + $0x11cc] sm:$0xf0]  ;;  %3791 = vmatpush.bf16.msra.mxu0 %v6916_v60  ;;  %v4824_v46 = vor.u32 %v7073_v40, %v4821_v41 }
  0x9d   :  { %v7027_v1 = vld [vmem:[#allocation3 + $0x11c0] sm:$0xf]  ;;  %v6900_v8 = vor.u32 %v7595_v0, %v6899_v63  ;;  %v7591_v15 = vld [vmem:[#allocation3 + $0x10ac] sm:$0xf0]  ;;  %3747 = vmatmul.bf16.vlgmr.msrb.gmra.mxu0 %v7862_v47  ;;  %3773 = vmatmul.bf16.vlgmr.msrb.gmra.mxu2 %v7864_v48  ;;  %v4949_v43 = vld [vmem:[#allocation3 + $0x190] sm:$0xf0] }
  0x9e   :  { %3804 = vmatpush.bf16.msra.mxu1 %v7044_v61  ;;  %3817 = vmatpush.bf16.msra.mxu2 %v4872_v62  ;;  %v7028_v10 = vor.u32 %v7627_v3, %v7027_v1  ;;  %v6883_v14 = vld [vmem:[#allocation3 + $0x10a0] sm:$0xf]  ;;  %v7623_v19 = vld [vmem:[#allocation3 + $0x11ac] sm:$0xf0]  ;;  %v4952_v54 = vor.u32 %v7105_v42, %v4949_v43  ;;  %v7069_v56 = vld [vmem:[#allocation3 + $0x64] sm:$0xf] }
  0x9f   :  { %v7011_v17 = vld [vmem:[#allocation3 + $0x11a0] sm:$0xf]  ;;  %3830 = vmatpush.bf16.msra.mxu3 %v5000_v2  ;;  %3760 = vmatmul.bf16.vlgmr.msrb.gmra.mxu1 %v7866_v49  ;;  %v6884_v28 = vor.u32 %v7591_v15, %v6883_v14  ;;  %v7587_v35 = vld [vmem:[#allocation3 + $0x108c] sm:$0xf0]  ;;  %v4805_v57 = vld [vmem:[#allocation3 + $0x70] sm:$0xf0] }
  0xa0   :  { %3786 = vmatmul.bf16.vlgmr.msrb.gmra.mxu3 %v7868_v50  ;;  %3792 = vmatpush.bf16.msra.mxu0 %v6900_v8  ;;  %v7012_v29 = vor.u32 %v7623_v19, %v7011_v17  ;;  %v6867_v34 = vld [vmem:[#allocation3 + $0x1080] sm:$0xf]  ;;  %v7619_v38 = vld [vmem:[#allocation3 + $0x118c] sm:$0xf0]  ;;  %v7101_v58 = vld [vmem:[#allocation3 + $0x164] sm:$0xf]  ;;  %v4808_v62 = vor.u32 %v7069_v56, %v4805_v57 }
  0xa1   :  { %v6995_v36 = vld [vmem:[#allocation3 + $0x1180] sm:$0xf]  ;;  %v6868_v44 = vor.u32 %v7587_v35, %v6867_v34  ;;  %v7583_v52 = vld [vmem:[#allocation3 + $0x106c] sm:$0xf0]  ;;  %v4933_v59 = vld [vmem:[#allocation3 + $0x170] sm:$0xf0] }
  0xa2   :  { %3805 = vmatpush.bf16.msra.mxu1 %v7028_v10  ;;  %3818 = vmatpush.bf16.msra.mxu2 %v4856_v11  ;;  %v6996_v45 = vor.u32 %v7619_v38, %v6995_v36  ;;  %v6851_v51 = vld [vmem:[#allocation3 + $0x1060] sm:$0xf]  ;;  %v7615_v55 = vld [vmem:[#allocation3 + $0x116c] sm:$0xf0]  ;;  %v4936_v2 = vor.u32 %v7101_v58, %v4933_v59  ;;  %v7065_v4 = vld [vmem:[#allocation3 + $0x44] sm:$0xf] }
  0xa3   :  { %3831 = vmatpush.bf16.msra.mxu3 %v4984_v18  ;;  %v6979_v53 = vld [vmem:[#allocation3 + $0x1160] sm:$0xf]  ;;  %v6852_v60 = vor.u32 %v7583_v52, %v6851_v51  ;;  %v7579_v0 = vld [vmem:[#allocation3 + $0x104c] sm:$0xf0]  ;;  %v4789_v5 = vld [vmem:[#allocation3 + $0x50] sm:$0xf0] }
  0xa4   :  { %3793 = vmatpush.bf16.msra.mxu0 %v6884_v28  ;;  %v6980_v61 = vor.u32 %v7615_v55, %v6979_v53  ;;  %v6835_v63 = vld [vmem:[#allocation3 + $0x1040] sm:$0xf]  ;;  %v7611_v3 = vld [vmem:[#allocation3 + $0x114c] sm:$0xf0]  ;;  %v7097_v6 = vld [vmem:[#allocation3 + $0x144] sm:$0xf]  ;;  %v4792_v11 = vor.u32 %v7065_v4, %v4789_v5 }
  0xa5   :  { %v6963_v1 = vld [vmem:[#allocation3 + $0x1140] sm:$0xf]  ;;  %v4917_v7 = vld [vmem:[#allocation3 + $0x150] sm:$0xf0]  ;;  %v6836_v8 = vor.u32 %v7579_v0, %v6835_v63  ;;  %v7575_v15 = vld [vmem:[#allocation3 + $0x102c] sm:$0xf0] }
  0xa6   :  { %3806 = vmatpush.bf16.msra.mxu1 %v7012_v29  ;;  %3819 = vmatpush.bf16.msra.mxu2 %v4840_v31  ;;  %v6964_v10 = vor.u32 %v7611_v3, %v6963_v1  ;;  %v6819_v14 = vld [vmem:[#allocation3 + $0x1020] sm:$0xf]  ;;  %v4920_v18 = vor.u32 %v7097_v6, %v4917_v7  ;;  %v7607_v19 = vld [vmem:[#allocation3 + $0x112c] sm:$0xf0]  ;;  %v7061_v20 = vld [vmem:[#allocation3 + $0x24] sm:$0xf] }
  0xa7   :  { %3832 = vmatpush.bf16.msra.mxu3 %v4968_v37  ;;  %v6947_v17 = vld [vmem:[#allocation3 + $0x1120] sm:$0xf]  ;;  %v4773_v24 = vld [vmem:[#allocation3 + $0x30] sm:$0xf0]  ;;  %v7093_v25 = vld [vmem:[#allocation3 + $0x124] sm:$0xf]  ;;  %v6820_v28 = vor.u32 %v7575_v15, %v6819_v14 }
  0xa8   :  { %3794 = vmatpush.bf16.msra.mxu0 %v6868_v44  ;;  %v4901_v26 = vld [vmem:[#allocation3 + $0x130] sm:$0xf0]  ;;  %v6803_v29 = vld [vmem:[#allocation3 + $0x1000] sm:$0xf]  ;;  %v7571_v31 = vld [vmem:[#allocation3 + $0x100c] sm:$0xf0]  ;;  %v6948_v34 = vor.u32 %v7607_v19, %v6947_v17  ;;  %v4776_v35 = vor.u32 %v7061_v20, %v4773_v24 }
  0xa9   :  { %v6931_v36 = vld [vmem:[#allocation3 + $0x1100] sm:$0xf]  ;;  %v7603_v37 = vld [vmem:[#allocation3 + $0x110c] sm:$0xf0]  ;;  %v7057_v38 = vld [vmem:[#allocation3 + $0x4] sm:$0xf]  ;;  %v4904_v40 = vor.u32 %v7093_v25, %v4901_v26  ;;  %v6804_v51 = vor.u32 %v7571_v31, %v6803_v29 }
  0xaa   :  { %3807 = vmatpush.bf16.msra.mxu1 %v6996_v45  ;;  %3820 = vmatpush.bf16.msra.mxu2 %v4824_v46  ;;  %v4757_v41 = vld [vmem:[#allocation3 + $0x10] sm:$0xf0]  ;;  %v7089_v42 = vld [vmem:[#allocation3 + $0x104] sm:$0xf]  ;;  %v6932_v55 = vor.u32 %v7603_v37, %v6931_v36 }
  0xab   :  { %3833 = vmatpush.bf16.msra.mxu3 %v4952_v54  ;;  %v4885_v43 = vld [vmem:[#allocation3 + $0x110] sm:$0xf0]  ;;  %v7149_v44 = vld [vmem:[#allocation3 + $0x2e4] sm:$0xf]  ;;  %v4760_v56 = vor.u32 %v7057_v38, %v4757_v41 }
  0xac   :  { %3795 = vmatpush.bf16.msra.mxu0 %v6852_v60  ;;  %v5125_v45 = vld [vmem:[#allocation3 + $0x2f0] sm:$0xf0]  ;;  %v7181_v46 = vld [vmem:[#allocation3 + $0x3e4] sm:$0xf]  ;;  %v4888_v59 = vor.u32 %v7089_v42, %v4885_v43 }
  0xad   :  { %v5253_v52 = vld [vmem:[#allocation3 + $0x3f0] sm:$0xf0]  ;;  %v7213_v53 = vld [vmem:[#allocation3 + $0x4e4] sm:$0xf]  ;;  %v5128_v60 = vor.u32 %v7149_v44, %v5125_v45 }
  0xae   :  { %3808 = vmatpush.bf16.msra.mxu1 %v6980_v61  ;;  %3821 = vmatpush.bf16.msra.mxu2 %v4808_v62  ;;  %v5381_v54 = vld [vmem:[#allocation3 + $0x4f0] sm:$0xf0]  ;;  %v7245_v57 = vld [vmem:[#allocation3 + $0x5e4] sm:$0xf]  ;;  %v5256_v61 = vor.u32 %v7181_v46, %v5253_v52 }
  0xaf   :  { %3834 = vmatpush.bf16.msra.mxu3 %v4936_v2  ;;  %v5509_v58 = vld [vmem:[#allocation3 + $0x5f0] sm:$0xf0]  ;;  %v5384_v62 = vor.u32 %v7213_v53, %v5381_v54  ;;  %v7145_v63 = vld [vmem:[#allocation3 + $0x2c4] sm:$0xf] }
  0xb0   :  { %3796 = vmatpush.bf16.msra.mxu0 %v6836_v8  ;;  %v5109_v0 = vld [vmem:[#allocation3 + $0x2d0] sm:$0xf0]  ;;  %v7177_v1 = vld [vmem:[#allocation3 + $0x3c4] sm:$0xf]  ;;  %v5512_v2 = vor.u32 %v7245_v57, %v5509_v58 }
  0xb1   :  { %v5237_v3 = vld [vmem:[#allocation3 + $0x3d0] sm:$0xf0]  ;;  %v7209_v4 = vld [vmem:[#allocation3 + $0x4c4] sm:$0xf] }
  0xb2   :  { %3809 = vmatpush.bf16.msra.mxu1 %v6964_v10  ;;  %3822 = vmatpush.bf16.msra.mxu2 %v4792_v11  ;;  %v5365_v5 = vld [vmem:[#allocation3 + $0x4d0] sm:$0xf0]  ;;  %v7241_v7 = vld [vmem:[#allocation3 + $0x5c4] sm:$0xf]  ;;  %v5112_v11 = vor.u32 %v7145_v63, %v5109_v0  ;;  %v5240_v14 = vor.u32 %v7177_v1, %v5237_v3 }
  0xb3   :  { %3835 = vmatpush.bf16.msra.mxu3 %v4920_v18  ;;  %v683_v6 = vld [vmem:[#allocation1] sm:$0xff]  ;;  %v684_v10 = vld [vmem:[#allocation1 + $0x9] sm:$0xff]  ;;  %v5368_v15 = vor.u32 %v7209_v4, %v5365_v5 }
  0xb4   :  { %3797 = vmatpush.bf16.msra.mxu0 %v6820_v28  ;;  %v5493_v8 = vld [vmem:[#allocation3 + $0x5d0] sm:$0xf0]  ;;  %v7141_v17 = vld [vmem:[#allocation3 + $0x2a4] sm:$0xf] }
  0xb5   :  { %v5093_v18 = vld [vmem:[#allocation3 + $0x2b0] sm:$0xf0]  ;;  %v7173_v19 = vld [vmem:[#allocation3 + $0x3a4] sm:$0xf]  ;;  %v5496_v20 = vor.u32 %v7241_v7, %v5493_v8 }
  0xb6   :  { %3810 = vmatpush.bf16.msra.mxu1 %v6948_v34  ;;  %3823 = vmatpush.bf16.msra.mxu2 %v4776_v35  ;;  %v5221_v24 = vld [vmem:[#allocation3 + $0x3b0] sm:$0xf0]  ;;  %v7205_v25 = vld [vmem:[#allocation3 + $0x4a4] sm:$0xf]  ;;  %v5096_v31 = vor.u32 %v7141_v17, %v5093_v18 }
  0xb7   :  { %3836 = vmatpush.bf16.msra.mxu3 %v4904_v40  ;;  %v5349_v26 = vld [vmem:[#allocation3 + $0x4b0] sm:$0xf0]  ;;  %v7237_v28 = vld [vmem:[#allocation3 + $0x5a4] sm:$0xf]  ;;  %v5224_v34 = vor.u32 %v7173_v19, %v5221_v24 }
  0xb8   :  { %3798 = vmatpush.bf16.msra.mxu0 %v6804_v51  ;;  %v5477_v29 = vld [vmem:[#allocation3 + $0x5b0] sm:$0xf0]  ;;  %v5352_v35 = vor.u32 %v7205_v25, %v5349_v26  ;;  %v7137_v36 = vld [vmem:[#allocation3 + $0x284] sm:$0xf] }
  0xb9   :  { %v5077_v37 = vld [vmem:[#allocation3 + $0x290] sm:$0xf0]  ;;  %v7169_v38 = vld [vmem:[#allocation3 + $0x384] sm:$0xf]  ;;  %v5480_v40 = vor.u32 %v7237_v28, %v5477_v29 }
  0xba   :  { %3811 = vmatpush.bf16.msra.mxu1 %v6932_v55  ;;  %3824 = vmatpush.bf16.msra.mxu2 %v4760_v56  ;;  %v5205_v41 = vld [vmem:[#allocation3 + $0x390] sm:$0xf0]  ;;  %v7201_v42 = vld [vmem:[#allocation3 + $0x484] sm:$0xf]  ;;  %v5080_v46 = vor.u32 %v7137_v36, %v5077_v37 }
  0xbb   :  { %3837 = vmatpush.bf16.msra.mxu3 %v4888_v59  ;;  %3799 = vmatmul.bf16.vlgmr.msra.gmra.mxu0 %v683_v6  ;;  %v5333_v43 = vld [vmem:[#allocation3 + $0x490] sm:$0xf0]  ;;  %v7233_v44 = vld [vmem:[#allocation3 + $0x584] sm:$0xf]  ;;  %v5208_v51 = vor.u32 %v7169_v38, %v5205_v41 }
  0xbc   :  { %3843 = vmatpush.bf16.msrb.mxu0 %v5128_v60  ;;  %v5461_v45 = vld [vmem:[#allocation3 + $0x590] sm:$0xf0]  ;;  %v5336_v52 = vor.u32 %v7201_v42, %v5333_v43  ;;  %v7133_v53 = vld [vmem:[#allocation3 + $0x264] sm:$0xf] }
  0xbd   :  { %3812 = vmatmul.bf16.vlgmr.msra.gmra.mxu1 %v684_v10  ;;  %3825 = vmatmul.bf16.vlgmr.msra.gmra.mxu2 %v7825_v22  ;;  %v5061_v54 = vld [vmem:[#allocation3 + $0x270] sm:$0xf0]  ;;  %v7165_v55 = vld [vmem:[#allocation3 + $0x364] sm:$0xf]  ;;  %v5464_v56 = vor.u32 %v7233_v44, %v5461_v45 }
  0xbe   :  { %3856 = vmatpush.bf16.msrb.mxu1 %v5256_v61  ;;  %3869 = vmatpush.bf16.msrb.mxu2 %v5384_v62  ;;  %v5189_v57 = vld [vmem:[#allocation3 + $0x370] sm:$0xf0]  ;;  %v7197_v58 = vld [vmem:[#allocation3 + $0x464] sm:$0xf]  ;;  %v5064_v62 = vor.u32 %v7133_v53, %v5061_v54 }
  0xbf   :  { %3882 = vmatpush.bf16.msrb.mxu3 %v5512_v2  ;;  %v5317_v59 = vld [vmem:[#allocation3 + $0x470] sm:$0xf0]  ;;  %v7229_v60 = vld [vmem:[#allocation3 + $0x564] sm:$0xf]  ;;  %v5192_v63 = vor.u32 %v7165_v55, %v5189_v57 }
  0xc0   :  { %3844 = vmatpush.bf16.msrb.mxu0 %v5112_v11  ;;  %3838 = vmatmul.bf16.vlgmr.msra.gmra.mxu3 %v7830_v27  ;;  %v5445_v61 = vld [vmem:[#allocation3 + $0x570] sm:$0xf0]  ;;  %v5320_v0 = vor.u32 %v7197_v58, %v5317_v59  ;;  %v7129_v1 = vld [vmem:[#allocation3 + $0x244] sm:$0xf] }
  0xc1   :  { %v5045_v2 = vld [vmem:[#allocation3 + $0x250] sm:$0xf0]  ;;  %v7161_v3 = vld [vmem:[#allocation3 + $0x344] sm:$0xf]  ;;  %v5448_v4 = vor.u32 %v7229_v60, %v5445_v61 }
  0xc2   :  { %3857 = vmatpush.bf16.msrb.mxu1 %v5240_v14  ;;  %3870 = vmatpush.bf16.msrb.mxu2 %v5368_v15  ;;  %v5173_v5 = vld [vmem:[#allocation3 + $0x350] sm:$0xf0]  ;;  %v7193_v6 = vld [vmem:[#allocation3 + $0x444] sm:$0xf]  ;;  %v5048_v11 = vor.u32 %v7129_v1, %v5045_v2  ;;  %v3592_v14 = vpop.f32.mrf.mxu0 }
  0xc3   :  { %3883 = vmatpush.bf16.msrb.mxu3 %v5496_v20  ;;  %v5301_v7 = vld [vmem:[#allocation3 + $0x450] sm:$0xf0]  ;;  %v7225_v8 = vld [vmem:[#allocation3 + $0x544] sm:$0xf]  ;;  %v5176_v15 = vor.u32 %v7161_v3, %v5173_v5 }
  0xc4   :  { %3845 = vmatpush.bf16.msrb.mxu0 %v5096_v31  ;;  %v5429_v10 = vld [vmem:[#allocation3 + $0x550] sm:$0xf0]  ;;  %v5304_v17 = vor.u32 %v7193_v6, %v5301_v7  ;;  %v7125_v18 = vld [vmem:[#allocation3 + $0x224] sm:$0xf] }
  0xc5   :  { %v5029_v19 = vld [vmem:[#allocation3 + $0x230] sm:$0xf0]  ;;  %v7157_v20 = vld [vmem:[#allocation3 + $0x324] sm:$0xf]  ;;  %v5432_v25 = vor.u32 %v7225_v8, %v5429_v10 }
  0xc6   :  { %3858 = vmatpush.bf16.msrb.mxu1 %v5224_v34  ;;  %3871 = vmatpush.bf16.msrb.mxu2 %v5352_v35  ;;  %v3605_v24 = vpop.f32.mrf.mxu1  ;;  %v5157_v26 = vld [vmem:[#allocation3 + $0x330] sm:$0xf0]  ;;  %v7189_v28 = vld [vmem:[#allocation3 + $0x424] sm:$0xf]  ;;  %v5032_v36 = vor.u32 %v7125_v18, %v5029_v19 }
  0xc7   :  { %3884 = vmatpush.bf16.msrb.mxu3 %v5480_v40  ;;  %v5285_v29 = vld [vmem:[#allocation3 + $0x430] sm:$0xf0]  ;;  %v3606_v31 = vadd.f32 %v3605_v24, %v3592_v14  ;;  %v7221_v34 = vld [vmem:[#allocation3 + $0x524] sm:$0xf]  ;;  %v5160_v40 = vor.u32 %v7157_v20, %v5157_v26 }
  0xc8   :  { %3846 = vmatpush.bf16.msrb.mxu0 %v5080_v46  ;;  %v5413_v35 = vld [vmem:[#allocation3 + $0x530] sm:$0xf0]  ;;  %v7121_v37 = vld [vmem:[#allocation3 + $0x204] sm:$0xf]  ;;  %v5288_v41 = vor.u32 %v7189_v28, %v5285_v29 }
  0xc9   :  { %v5013_v38 = vld [vmem:[#allocation3 + $0x210] sm:$0xf0]  ;;  %v7153_v42 = vld [vmem:[#allocation3 + $0x304] sm:$0xf]  ;;  %v5416_v46 = vor.u32 %v7221_v34, %v5413_v35 }
  0xca   :  { %3859 = vmatpush.bf16.msrb.mxu1 %v5208_v51  ;;  %3872 = vmatpush.bf16.msrb.mxu2 %v5336_v52  ;;  %v5141_v43 = vld [vmem:[#allocation3 + $0x310] sm:$0xf0]  ;;  %v7185_v44 = vld [vmem:[#allocation3 + $0x404] sm:$0xf]  ;;  %v5016_v59 = vor.u32 %v7121_v37, %v5013_v38 }
  0xcb   :  { %3885 = vmatpush.bf16.msrb.mxu3 %v5464_v56  ;;  %v3618_v45 = vpop.f32.mrf.mxu2  ;;  %v5269_v51 = vld [vmem:[#allocation3 + $0x410] sm:$0xf0]  ;;  %v7217_v52 = vld [vmem:[#allocation3 + $0x504] sm:$0xf]  ;;  %v3631_v55 = vpop.f32.mrf.mxu3  ;;  %v5144_v1 = vor.u32 %v7153_v42, %v5141_v43 }
  0xcc   :  { %3847 = vmatpush.bf16.msrb.mxu0 %v5064_v62  ;;  %v5397_v53 = vld [vmem:[#allocation3 + $0x510] sm:$0xf0]  ;;  %v3619_v54 = vadd.f32 %v3618_v45, %v3606_v31  ;;  %v7277_v56 = vld [vmem:[#allocation3 + $0x6e4] sm:$0xf]  ;;  %v5272_v2 = vor.u32 %v7185_v44, %v5269_v51 }
  0xcd   :  { %v5637_v57 = vld [vmem:[#allocation3 + $0x6f0] sm:$0xf0]  ;;  %v7309_v58 = vld [vmem:[#allocation3 + $0x7e4] sm:$0xf]  ;;  %v5400_v6 = vor.u32 %v7217_v52, %v5397_v53 }
  0xce   :  { %3860 = vmatpush.bf16.msrb.mxu1 %v5192_v63  ;;  %3873 = vmatpush.bf16.msrb.mxu2 %v5320_v0  ;;  %v5765_v60 = vld [vmem:[#allocation3 + $0x7f0] sm:$0xf0]  ;;  %v7341_v61 = vld [vmem:[#allocation3 + $0x8e4] sm:$0xf]  ;;  %v7879_v63 = vadd.f32 %v3631_v55, %v3619_v54  ;;  %v3594_v0 = vpop.f32.mrf.mxu0  ;;  %v3607_v5 = vpop.f32.mrf.mxu1  ;;  %v5640_v7 = vor.u32 %v7277_v56, %v5637_v57 }
  0xcf   :  { %3886 = vmatpush.bf16.msrb.mxu3 %v5448_v4  ;;  %v5893_v62 = vld [vmem:[#allocation3 + $0x8f0] sm:$0xf0]  ;;  %v7373_v3 = vld [vmem:[#allocation3 + $0x9e4] sm:$0xf]  ;;  %v5768_v8 = vor.u32 %v7309_v58, %v5765_v60 }
  0xd0   :  { %3848 = vmatpush.bf16.msrb.mxu0 %v5048_v11  ;;  %v6021_v4 = vld [vmem:[#allocation3 + $0x9f0] sm:$0xf0]  ;;  %v5896_v10 = vor.u32 %v7341_v61, %v5893_v62  ;;  %v7273_v11 = vld [vmem:[#allocation3 + $0x6c4] sm:$0xf] }
  0xd1   :  { %v5621_v14 = vld [vmem:[#allocation3 + $0x6d0] sm:$0xf0]  ;;  %v7337_v19 = vld [vmem:[#allocation3 + $0x8c4] sm:$0xf] }
  0xd2   :  { %3861 = vmatpush.bf16.msrb.mxu1 %v5176_v15  ;;  %3874 = vmatpush.bf16.msrb.mxu2 %v5304_v17  ;;  %v7305_v15 = vld [vmem:[#allocation3 + $0x7c4] sm:$0xf]  ;;  %v6024_v17 = vor.u32 %v7373_v3, %v6021_v4  ;;  %v5749_v18 = vld [vmem:[#allocation3 + $0x7d0] sm:$0xf0]  ;;  %v5624_v28 = vor.u32 %v7273_v11, %v5621_v14 }
  0xd3   :  { %3887 = vmatpush.bf16.msrb.mxu3 %v5432_v25  ;;  %v5877_v20 = vld [vmem:[#allocation3 + $0x8d0] sm:$0xf0]  ;;  %v7369_v24 = vld [vmem:[#allocation3 + $0x9c4] sm:$0xf]  ;;  %v3620_v26 = vpop.f32.mrf.mxu2  ;;  %v3633_v29 = vpop.f32.mrf.mxu3  ;;  %v5752_v31 = vor.u32 %v7305_v15, %v5749_v18 }
  0xd4   :  { %3849 = vmatpush.bf16.msrb.mxu0 %v5032_v36  ;;  %v6005_v25 = vld [vmem:[#allocation3 + $0x9d0] sm:$0xf0]  ;;  %v5880_v34 = vor.u32 %v7337_v19, %v5877_v20  ;;  %v7269_v35 = vld [vmem:[#allocation3 + $0x6a4] sm:$0xf] }
  0xd5   :  { %v5605_v36 = vld [vmem:[#allocation3 + $0x6b0] sm:$0xf0]  ;;  %v7301_v37 = vld [vmem:[#allocation3 + $0x7a4] sm:$0xf]  ;;  %v6008_v38 = vor.u32 %v7369_v24, %v6005_v25 }
  0xd6   :  { %3862 = vmatpush.bf16.msrb.mxu1 %v5160_v40  ;;  %3875 = vmatpush.bf16.msrb.mxu2 %v5288_v41  ;;  %v5733_v40 = vld [vmem:[#allocation3 + $0x7b0] sm:$0xf0]  ;;  %v7333_v41 = vld [vmem:[#allocation3 + $0x8a4] sm:$0xf]  ;;  %v5608_v45 = vor.u32 %v7269_v35, %v5605_v36 }
  0xd7   :  { %3888 = vmatpush.bf16.msrb.mxu3 %v5416_v46  ;;  %v5861_v42 = vld [vmem:[#allocation3 + $0x8b0] sm:$0xf0]  ;;  %v7365_v43 = vld [vmem:[#allocation3 + $0x9a4] sm:$0xf]  ;;  %v5736_v46 = vor.u32 %v7301_v37, %v5733_v40 }
  0xd8   :  { %3850 = vmatpush.bf16.msrb.mxu0 %v5016_v59  ;;  %v5989_v44 = vld [vmem:[#allocation3 + $0x9b0] sm:$0xf0]  ;;  %v5864_v51 = vor.u32 %v7333_v41, %v5861_v42  ;;  %v7265_v52 = vld [vmem:[#allocation3 + $0x684] sm:$0xf] }
  0xd9   :  { %v5589_v53 = vld [vmem:[#allocation3 + $0x690] sm:$0xf0]  ;;  %v7297_v54 = vld [vmem:[#allocation3 + $0x784] sm:$0xf]  ;;  %v5992_v55 = vor.u32 %v7365_v43, %v5989_v44 }
  0xda   :  { %3863 = vmatpush.bf16.msrb.mxu1 %v5144_v1  ;;  %3876 = vmatpush.bf16.msrb.mxu2 %v5272_v2  ;;  %v5717_v56 = vld [vmem:[#allocation3 + $0x790] sm:$0xf0]  ;;  %v7329_v57 = vld [vmem:[#allocation3 + $0x884] sm:$0xf]  ;;  %v5592_v61 = vor.u32 %v7265_v52, %v5589_v53 }
  0xdb   :  { %3889 = vmatpush.bf16.msrb.mxu3 %v5400_v6  ;;  %3851 = vmatmul.bf16.vlgmr.msrb.gmra.mxu0 %v7823_v21  ;;  %v5845_v58 = vld [vmem:[#allocation3 + $0x890] sm:$0xf0]  ;;  %v7361_v59 = vld [vmem:[#allocation3 + $0x984] sm:$0xf]  ;;  %v5720_v0 = vor.u32 %v7297_v54, %v5717_v56  ;;  %v3657_v6 = vpop.f32.mrf.mxu1 }
  0xdc   :  { %3895 = vmatpush.bf16.msra.mxu0 %v5640_v7  ;;  %v5973_v60 = vld [vmem:[#allocation3 + $0x990] sm:$0xf0]  ;;  %v3644_v62 = vpop.f32.mrf.mxu0  ;;  %v5848_v1 = vor.u32 %v7329_v57, %v5845_v58  ;;  %v7261_v2 = vld [vmem:[#allocation3 + $0x664] sm:$0xf] }
  0xdd   :  { %3877 = vmatmul.bf16.vlgmr.msrb.gmra.mxu2 %v7837_v32  ;;  %3864 = vmatmul.bf16.vlgmr.msrb.gmra.mxu1 %v7827_v23  ;;  %v5573_v3 = vld [vmem:[#allocation3 + $0x670] sm:$0xf0]  ;;  %v7293_v4 = vld [vmem:[#allocation3 + $0x764] sm:$0xf]  ;;  %v3645_v5 = vadd.f32 %v3644_v62, %v7879_v63  ;;  %v5976_v7 = vor.u32 %v7361_v59, %v5973_v60 }
  0xde   :  { %3908 = vmatpush.bf16.msra.mxu1 %v5768_v8  ;;  %3921 = vmatpush.bf16.msra.mxu2 %v5896_v10  ;;  %v5701_v8 = vld [vmem:[#allocation3 + $0x770] sm:$0xf0]  ;;  %v7325_v10 = vld [vmem:[#allocation3 + $0x864] sm:$0xf]  ;;  %v5576_v18 = vor.u32 %v7261_v2, %v5573_v3  ;;  %v3683_v36 = vpop.f32.mrf.mxu3 }
  0xdf   :  { %3934 = vmatpush.bf16.msra.mxu3 %v6024_v17  ;;  %v5829_v11 = vld [vmem:[#allocation3 + $0x870] sm:$0xf0]  ;;  %v7357_v14 = vld [vmem:[#allocation3 + $0x964] sm:$0xf]  ;;  %v3658_v17 = vadd.f32 %v3657_v6, %v3645_v5  ;;  %v5704_v19 = vor.u32 %v7293_v4, %v5701_v8 }
  0xe0   :  { %3890 = vmatmul.bf16.vlgmr.msrb.gmra.mxu3 %v7841_v39  ;;  %3896 = vmatpush.bf16.msra.mxu0 %v5624_v28  ;;  %v5957_v15 = vld [vmem:[#allocation3 + $0x970] sm:$0xf0]  ;;  %v5832_v20 = vor.u32 %v7325_v10, %v5829_v11  ;;  %v7257_v24 = vld [vmem:[#allocation3 + $0x644] sm:$0xf] }
  0xe1   :  { %v5557_v25 = vld [vmem:[#allocation3 + $0x650] sm:$0xf0]  ;;  %v7289_v26 = vld [vmem:[#allocation3 + $0x744] sm:$0xf]  ;;  %v5960_v63 = vor.u32 %v7357_v14, %v5957_v15 }
  0xe2   :  { %3909 = vmatpush.bf16.msra.mxu1 %v5752_v31  ;;  %3922 = vmatpush.bf16.msra.mxu2 %v5880_v34  ;;  %v3670_v28 = vpop.f32.mrf.mxu2  ;;  %v5685_v29 = vld [vmem:[#allocation3 + $0x750] sm:$0xf0]  ;;  %v7321_v31 = vld [vmem:[#allocation3 + $0x844] sm:$0xf]  ;;  %v5560_v40 = vor.u32 %v7257_v24, %v5557_v25 }
  0xe3   :  { %3935 = vmatpush.bf16.msra.mxu3 %v6008_v38  ;;  %v5813_v34 = vld [vmem:[#allocation3 + $0x850] sm:$0xf0]  ;;  %v3671_v35 = vadd.f32 %v3670_v28, %v3658_v17  ;;  %v7353_v37 = vld [vmem:[#allocation3 + $0x944] sm:$0xf]  ;;  %v5688_v43 = vor.u32 %v7289_v26, %v5685_v29  ;;  %v3659_v52 = vpop.f32.mrf.mxu1 }
  0xe4   :  { %3897 = vmatpush.bf16.msra.mxu0 %v5608_v45  ;;  %v5941_v38 = vld [vmem:[#allocation3 + $0x950] sm:$0xf0]  ;;  %v3646_v42 = vpop.f32.mrf.mxu0  ;;  %v5816_v44 = vor.u32 %v7321_v31, %v5813_v34  ;;  %v7253_v45 = vld [vmem:[#allocation3 + $0x624] sm:$0xf] }
  0xe5   :  { %v7886_v41 = vadd.f32 %v3683_v36, %v3671_v35  ;;  %v5944_v53 = vor.u32 %v7353_v37, %v5941_v38  ;;  %v5669_v54 = vld [vmem:[#allocation3 + $0x730] sm:$0xf0]  ;;  %v7349_v57 = vld [vmem:[#allocation3 + $0x924] sm:$0xf] }
  0xe6   :  { %3910 = vmatpush.bf16.msra.mxu1 %v5736_v46  ;;  %3923 = vmatpush.bf16.msra.mxu2 %v5864_v51  ;;  %v5541_v46 = vld [vmem:[#allocation3 + $0x630] sm:$0xf0]  ;;  %v7285_v51 = vld [vmem:[#allocation3 + $0x724] sm:$0xf]  ;;  %v3685_v10 = vpop.f32.mrf.mxu3 }
  0xe7   :  { %3936 = vmatpush.bf16.msra.mxu3 %v5992_v55  ;;  %v7317_v55 = vld [vmem:[#allocation3 + $0x824] sm:$0xf]  ;;  %v5797_v56 = vld [vmem:[#allocation3 + $0x830] sm:$0xf0]  ;;  %v5544_v59 = vor.u32 %v7253_v45, %v5541_v46  ;;  %v5672_v62 = vor.u32 %v7285_v51, %v5669_v54 }
  0xe8   :  { %3898 = vmatpush.bf16.msra.mxu0 %v5592_v61  ;;  %v5925_v58 = vld [vmem:[#allocation3 + $0x930] sm:$0xf0]  ;;  %v7249_v60 = vld [vmem:[#allocation3 + $0x604] sm:$0xf] }
  0xe9   :  { %v5525_v61 = vld [vmem:[#allocation3 + $0x610] sm:$0xf0]  ;;  %v7313_v3 = vld [vmem:[#allocation3 + $0x804] sm:$0xf]  ;;  %v5928_v5 = vor.u32 %v7349_v57, %v5925_v58 }
  0xea   :  { %3911 = vmatpush.bf16.msra.mxu1 %v5720_v0  ;;  %3924 = vmatpush.bf16.msra.mxu2 %v5848_v1  ;;  %v5800_v0 = vor.u32 %v7317_v55, %v5797_v56  ;;  %v7281_v1 = vld [vmem:[#allocation3 + $0x704] sm:$0xf]  ;;  %v5653_v2 = vld [vmem:[#allocation3 + $0x710] sm:$0xf0]  ;;  %v3672_v4 = vpop.f32.mrf.mxu2  ;;  %v5528_v17 = vor.u32 %v7249_v60, %v5525_v61 }
  0xeb   :  { %3937 = vmatpush.bf16.msra.mxu3 %v5976_v7  ;;  %v5781_v6 = vld [vmem:[#allocation3 + $0x810] sm:$0xf0]  ;;  %v7345_v7 = vld [vmem:[#allocation3 + $0x904] sm:$0xf]  ;;  %v5656_v24 = vor.u32 %v7281_v1, %v5653_v2 }
  0xec   :  { %3899 = vmatpush.bf16.msra.mxu0 %v5576_v18  ;;  %v5909_v8 = vld [vmem:[#allocation3 + $0x910] sm:$0xf0]  ;;  %v7405_v11 = vld [vmem:[#allocation3 + $0xae4] sm:$0xf]  ;;  %v5784_v25 = vor.u32 %v7313_v3, %v5781_v6 }
  0xed   :  { %v6149_v14 = vld [vmem:[#allocation3 + $0xaf0] sm:$0xf0]  ;;  %v7437_v15 = vld [vmem:[#allocation3 + $0xbe4] sm:$0xf] }
  0xee   :  { %3912 = vmatpush.bf16.msra.mxu1 %v5704_v19  ;;  %3925 = vmatpush.bf16.msra.mxu2 %v5832_v20  ;;  %v6277_v18 = vld [vmem:[#allocation3 + $0xbf0] sm:$0xf0]  ;;  %v7469_v19 = vld [vmem:[#allocation3 + $0xce4] sm:$0xf]  ;;  %v6152_v29 = vor.u32 %v7405_v11, %v6149_v14 }
  0xef   :  { %3938 = vmatpush.bf16.msra.mxu3 %v5960_v63  ;;  %v6405_v20 = vld [vmem:[#allocation3 + $0xcf0] sm:$0xf0]  ;;  %v7501_v26 = vld [vmem:[#allocation3 + $0xde4] sm:$0xf]  ;;  %v5912_v63 = vor.u32 %v7345_v7, %v5909_v8  ;;  %v6280_v31 = vor.u32 %v7437_v15, %v6277_v18 }
  0xf0   :  { %3900 = vmatpush.bf16.msra.mxu0 %v5560_v40  ;;  %v6533_v28 = vld [vmem:[#allocation3 + $0xdf0] sm:$0xf0]  ;;  %v6408_v34 = vor.u32 %v7469_v19, %v6405_v20  ;;  %v7401_v35 = vld [vmem:[#allocation3 + $0xac4] sm:$0xf] }
  0xf1   :  { %v6133_v36 = vld [vmem:[#allocation3 + $0xad0] sm:$0xf0]  ;;  %v7433_v37 = vld [vmem:[#allocation3 + $0xbc4] sm:$0xf]  ;;  %v6536_v38 = vor.u32 %v7501_v26, %v6533_v28 }
  0xf2   :  { %3913 = vmatpush.bf16.msra.mxu1 %v5688_v43  ;;  %3926 = vmatpush.bf16.msra.mxu2 %v5816_v44  ;;  %v6261_v40 = vld [vmem:[#allocation3 + $0xbd0] sm:$0xf0]  ;;  %v7465_v42 = vld [vmem:[#allocation3 + $0xcc4] sm:$0xf]  ;;  %v6136_v46 = vor.u32 %v7401_v35, %v6133_v36 }
  0xf3   :  { %3939 = vmatpush.bf16.msra.mxu3 %v5944_v53  ;;  %v6389_v43 = vld [vmem:[#allocation3 + $0xcd0] sm:$0xf0]  ;;  %v7497_v44 = vld [vmem:[#allocation3 + $0xdc4] sm:$0xf]  ;;  %v6264_v51 = vor.u32 %v7433_v37, %v6261_v40 }
  0xf4   :  { %3901 = vmatpush.bf16.msra.mxu0 %v5544_v59  ;;  %v6517_v45 = vld [vmem:[#allocation3 + $0xdd0] sm:$0xf0]  ;;  %v6392_v52 = vor.u32 %v7465_v42, %v6389_v43  ;;  %v7397_v53 = vld [vmem:[#allocation3 + $0xaa4] sm:$0xf] }
  0xf5   :  { %v6117_v54 = vld [vmem:[#allocation3 + $0xab0] sm:$0xf0]  ;;  %v7429_v55 = vld [vmem:[#allocation3 + $0xba4] sm:$0xf]  ;;  %v6520_v56 = vor.u32 %v7497_v44, %v6517_v45 }
  0xf6   :  { %3914 = vmatpush.bf16.msra.mxu1 %v5672_v62  ;;  %3927 = vmatpush.bf16.msra.mxu2 %v5800_v0  ;;  %v6245_v57 = vld [vmem:[#allocation3 + $0xbb0] sm:$0xf0]  ;;  %v7461_v58 = vld [vmem:[#allocation3 + $0xca4] sm:$0xf]  ;;  %v6120_v62 = vor.u32 %v7397_v53, %v6117_v54 }
  0xf7   :  { %3940 = vmatpush.bf16.msra.mxu3 %v5928_v5  ;;  %v6373_v59 = vld [vmem:[#allocation3 + $0xcb0] sm:$0xf0]  ;;  %v7493_v60 = vld [vmem:[#allocation3 + $0xda4] sm:$0xf]  ;;  %v6248_v0 = vor.u32 %v7429_v55, %v6245_v57  ;;  %v3696_v10 = vpop.f32.mrf.mxu0 }
  0xf8   :  { %3902 = vmatpush.bf16.msra.mxu0 %v5528_v17  ;;  %v6501_v61 = vld [vmem:[#allocation3 + $0xdb0] sm:$0xf0]  ;;  %v6376_v1 = vor.u32 %v7461_v58, %v6373_v59  ;;  %v7393_v2 = vld [vmem:[#allocation3 + $0xa84] sm:$0xf]  ;;  %v3697_v15 = vadd.f32 %v3696_v10, %v7886_v41 }
  0xf9   :  { %v6101_v3 = vld [vmem:[#allocation3 + $0xa90] sm:$0xf0]  ;;  %v7425_v4 = vld [vmem:[#allocation3 + $0xb84] sm:$0xf]  ;;  %v6504_v5 = vor.u32 %v7493_v60, %v6501_v61 }
  0xfa   :  { %3915 = vmatpush.bf16.msra.mxu1 %v5656_v24  ;;  %3928 = vmatpush.bf16.msra.mxu2 %v5784_v25  ;;  %v6229_v6 = vld [vmem:[#allocation3 + $0xb90] sm:$0xf0]  ;;  %v7457_v7 = vld [vmem:[#allocation3 + $0xc84] sm:$0xf]  ;;  %v6104_v17 = vor.u32 %v7393_v2, %v6101_v3 }
  0xfb   :  { %3941 = vmatpush.bf16.msra.mxu3 %v5912_v63  ;;  %3903 = vmatmul.bf16.vlgmr.msra.gmra.mxu0 %v7835_v30  ;;  %v6357_v8 = vld [vmem:[#allocation3 + $0xc90] sm:$0xf0]  ;;  %v7489_v11 = vld [vmem:[#allocation3 + $0xd84] sm:$0xf]  ;;  %v6232_v19 = vor.u32 %v7425_v4, %v6229_v6 }
  0xfc   :  { %3947 = vmatpush.bf16.msrb.mxu0 %v6152_v29  ;;  %v6485_v14 = vld [vmem:[#allocation3 + $0xd90] sm:$0xf0]  ;;  %v6360_v20 = vor.u32 %v7457_v7, %v6357_v8  ;;  %v7389_v24 = vld [vmem:[#allocation3 + $0xa64] sm:$0xf] }
  0xfd   :  { %3929 = vmatmul.bf16.vlgmr.msra.gmra.mxu2 %v7850_v9  ;;  %3916 = vmatmul.bf16.vlgmr.msra.gmra.mxu1 %v7839_v33  ;;  %v6085_v25 = vld [vmem:[#allocation3 + $0xa70] sm:$0xf0]  ;;  %v7421_v26 = vld [vmem:[#allocation3 + $0xb64] sm:$0xf]  ;;  %v6488_v28 = vor.u32 %v7489_v11, %v6485_v14 }
  0xfe   :  { %3960 = vmatpush.bf16.msrb.mxu1 %v6280_v31  ;;  %3973 = vmatpush.bf16.msrb.mxu2 %v6408_v34  ;;  %v3709_v18 = vpop.f32.mrf.mxu1  ;;  %v6213_v29 = vld [vmem:[#allocation3 + $0xb70] sm:$0xf0]  ;;  %v7453_v31 = vld [vmem:[#allocation3 + $0xc64] sm:$0xf]  ;;  %v6088_v37 = vor.u32 %v7389_v24, %v6085_v25 }
  0xff   :  { %3986 = vmatpush.bf16.msrb.mxu3 %v6536_v38  ;;  %v3710_v63 = vadd.f32 %v3709_v18, %v3697_v15  ;;  %v6341_v34 = vld [vmem:[#allocation3 + $0xc70] sm:$0xf0]  ;;  %v7485_v35 = vld [vmem:[#allocation3 + $0xd64] sm:$0xf]  ;;  %v6216_v41 = vor.u32 %v7421_v26, %v6213_v29  ;;  %v3698_v57 = vpop.f32.mrf.mxu0 }
 0x100   :  { %3942 = vmatmul.bf16.vlgmr.msra.gmra.mxu3 %v7854_v13  ;;  %3948 = vmatpush.bf16.msrb.mxu0 %v6136_v46  ;;  %v6469_v36 = vld [vmem:[#allocation3 + $0xd70] sm:$0xf0]  ;;  %v6344_v38 = vor.u32 %v7453_v31, %v6341_v34  ;;  %v7385_v40 = vld [vmem:[#allocation3 + $0xa44] sm:$0xf] }
 0x101   :  { %v6069_v42 = vld [vmem:[#allocation3 + $0xa50] sm:$0xf0]  ;;  %v7417_v43 = vld [vmem:[#allocation3 + $0xb44] sm:$0xf]  ;;  %v6472_v44 = vor.u32 %v7485_v35, %v6469_v36 }
 0x102   :  { %3961 = vmatpush.bf16.msrb.mxu1 %v6264_v51  ;;  %3974 = vmatpush.bf16.msrb.mxu2 %v6392_v52  ;;  %v6197_v46 = vld [vmem:[#allocation3 + $0xb50] sm:$0xf0]  ;;  %v7449_v51 = vld [vmem:[#allocation3 + $0xc44] sm:$0xf]  ;;  %v6072_v58 = vor.u32 %v7385_v40, %v6069_v42 }
 0x103   :  { %3987 = vmatpush.bf16.msrb.mxu3 %v6520_v56  ;;  %v3722_v45 = vpop.f32.mrf.mxu2  ;;  %v6325_v52 = vld [vmem:[#allocation3 + $0xc50] sm:$0xf0]  ;;  %v3735_v54 = vpop.f32.mrf.mxu3  ;;  %v7481_v55 = vld [vmem:[#allocation3 + $0xd44] sm:$0xf]  ;;  %v6200_v61 = vor.u32 %v7417_v43, %v6197_v46 }
 0x104   :  { %3949 = vmatpush.bf16.msrb.mxu0 %v6120_v62  ;;  %v3723_v53 = vadd.f32 %v3722_v45, %v3710_v63  ;;  %v6453_v56 = vld [vmem:[#allocation3 + $0xd50] sm:$0xf0]  ;;  %v6328_v62 = vor.u32 %v7449_v51, %v6325_v52  ;;  %v7413_v2 = vld [vmem:[#allocation3 + $0xb24] sm:$0xf] }
 0x105   :  { %v6456_v3 = vor.u32 %v7481_v55, %v6453_v56  ;;  %v6181_v4 = vld [vmem:[#allocation3 + $0xb30] sm:$0xf0]  ;;  %v7477_v7 = vld [vmem:[#allocation3 + $0xd24] sm:$0xf] }
 0x106   :  { %3962 = vmatpush.bf16.msrb.mxu1 %v6248_v0  ;;  %3975 = vmatpush.bf16.msrb.mxu2 %v6376_v1  ;;  %v3711_v59 = vpop.f32.mrf.mxu1  ;;  %v7893_v60 = vadd.f32 %v3735_v54, %v3723_v53  ;;  %v7381_v0 = vld [vmem:[#allocation3 + $0xa24] sm:$0xf]  ;;  %v6053_v1 = vld [vmem:[#allocation3 + $0xa30] sm:$0xf0]  ;;  %v6184_v15 = vor.u32 %v7413_v2, %v6181_v4 }
 0x107   :  { %3988 = vmatpush.bf16.msrb.mxu3 %v6504_v5  ;;  %v7445_v5 = vld [vmem:[#allocation3 + $0xc24] sm:$0xf]  ;;  %v6309_v6 = vld [vmem:[#allocation3 + $0xc30] sm:$0xf0]  ;;  %v6056_v10 = vor.u32 %v7381_v0, %v6053_v1 }
 0x108   :  { %3950 = vmatpush.bf16.msrb.mxu0 %v6104_v17  ;;  %v6437_v8 = vld [vmem:[#allocation3 + $0xd30] sm:$0xf0]  ;;  %v7377_v11 = vld [vmem:[#allocation3 + $0xa04] sm:$0xf]  ;;  %v6312_v17 = vor.u32 %v7445_v5, %v6309_v6 }
 0x109   :  { %v6037_v14 = vld [vmem:[#allocation3 + $0xa10] sm:$0xf0]  ;;  %v7409_v18 = vld [vmem:[#allocation3 + $0xb04] sm:$0xf]  ;;  %v6440_v24 = vor.u32 %v7477_v7, %v6437_v8 }
 0x10a   :  { %3963 = vmatpush.bf16.msrb.mxu1 %v6232_v19  ;;  %3976 = vmatpush.bf16.msrb.mxu2 %v6360_v20  ;;  %v6165_v19 = vld [vmem:[#allocation3 + $0xb10] sm:$0xf0]  ;;  %v7441_v20 = vld [vmem:[#allocation3 + $0xc04] sm:$0xf]  ;;  %v6040_v36 = vor.u32 %v7377_v11, %v6037_v14 }
 0x10b   :  { %3989 = vmatpush.bf16.msrb.mxu3 %v6488_v28  ;;  %v6293_v25 = vld [vmem:[#allocation3 + $0xc10] sm:$0xf0]  ;;  %v7473_v26 = vld [vmem:[#allocation3 + $0xd04] sm:$0xf]  ;;  %v3724_v63 = vpop.f32.mrf.mxu2  ;;  %v3737_v35 = vpop.f32.mrf.mxu3  ;;  %v6168_v40 = vor.u32 %v7409_v18, %v6165_v19 }
 0x10c   :  { %3951 = vmatpush.bf16.msrb.mxu0 %v6088_v37  ;;  %v6421_v28 = vld [vmem:[#allocation3 + $0xd10] sm:$0xf0]  ;;  %v7533_v29 = vld [vmem:[#allocation3 + $0xee4] sm:$0xf]  ;;  %v6296_v42 = vor.u32 %v7441_v20, %v6293_v25 }
 0x10d   :  { %v6661_v31 = vld [vmem:[#allocation3 + $0xef0] sm:$0xf0]  ;;  %v7565_v34 = vld [vmem:[#allocation3 + $0xfe4] sm:$0xf]  ;;  %v6424_v45 = vor.u32 %v7473_v26, %v6421_v28 }
 0x10e   :  { %3964 = vmatpush.bf16.msrb.mxu1 %v6216_v41  ;;  %3977 = vmatpush.bf16.msrb.mxu2 %v6344_v38  ;;  %v6789_v37 = vld [vmem:[#allocation3 + $0xff0] sm:$0xf0]  ;;  %v7597_v41 = vld [vmem:[#allocation3 + $0x10e4] sm:$0xf]  ;;  %v6664_v46 = vor.u32 %v7533_v29, %v6661_v31 }
 0x10f   :  { %3990 = vmatpush.bf16.msrb.mxu3 %v6472_v44  ;;  %v6917_v38 = vld [vmem:[#allocation3 + $0x10f0] sm:$0xf0]  ;;  %v7629_v43 = vld [vmem:[#allocation3 + $0x11e4] sm:$0xf]  ;;  %v6792_v51 = vor.u32 %v7565_v34, %v6789_v37 }
 0x110   :  { %3952 = vmatpush.bf16.msrb.mxu0 %v6072_v58  ;;  %v7045_v44 = vld [vmem:[#allocation3 + $0x11f0] sm:$0xf0]  ;;  %v6920_v52 = vor.u32 %v7597_v41, %v6917_v38  ;;  %v7529_v53 = vld [vmem:[#allocation3 + $0xec4] sm:$0xf] }
 0x111   :  { %v6645_v54 = vld [vmem:[#allocation3 + $0xed0] sm:$0xf0]  ;;  %v7561_v55 = vld [vmem:[#allocation3 + $0xfc4] sm:$0xf]  ;;  %v7048_v56 = vor.u32 %v7629_v43, %v7045_v44 }
 0x112   :  { %3965 = vmatpush.bf16.msrb.mxu1 %v6200_v61  ;;  %3978 = vmatpush.bf16.msrb.mxu2 %v6328_v62  ;;  %v6773_v57 = vld [vmem:[#allocation3 + $0xfd0] sm:$0xf0]  ;;  %v7593_v58 = vld [vmem:[#allocation3 + $0x10c4] sm:$0xf]  ;;  %v6648_v0 = vor.u32 %v7529_v53, %v6645_v54 }
 0x113   :  { %3991 = vmatpush.bf16.msrb.mxu3 %v6456_v3  ;;  %v6901_v59 = vld [vmem:[#allocation3 + $0x10d0] sm:$0xf0]  ;;  %v7625_v61 = vld [vmem:[#allocation3 + $0x11c4] sm:$0xf]  ;;  %v6776_v1 = vor.u32 %v7561_v55, %v6773_v57 }
 0x114   :  { %3953 = vmatpush.bf16.msrb.mxu0 %v6056_v10  ;;  %v7029_v62 = vld [vmem:[#allocation3 + $0x11d0] sm:$0xf0]  ;;  %v6904_v2 = vor.u32 %v7593_v58, %v6901_v59  ;;  %v7525_v3 = vld [vmem:[#allocation3 + $0xea4] sm:$0xf] }
 0x115   :  { %v6629_v4 = vld [vmem:[#allocation3 + $0xeb0] sm:$0xf0]  ;;  %v7557_v5 = vld [vmem:[#allocation3 + $0xfa4] sm:$0xf]  ;;  %v7032_v6 = vor.u32 %v7625_v61, %v7029_v62 }
 0x116   :  { %3966 = vmatpush.bf16.msrb.mxu1 %v6184_v15  ;;  %3979 = vmatpush.bf16.msrb.mxu2 %v6312_v17  ;;  %v6757_v7 = vld [vmem:[#allocation3 + $0xfb0] sm:$0xf0]  ;;  %v7589_v8 = vld [vmem:[#allocation3 + $0x10a4] sm:$0xf]  ;;  %v6632_v15 = vor.u32 %v7525_v3, %v6629_v4 }
 0x117   :  { %3992 = vmatpush.bf16.msrb.mxu3 %v6440_v24  ;;  %v6885_v10 = vld [vmem:[#allocation3 + $0x10b0] sm:$0xf0]  ;;  %v7621_v11 = vld [vmem:[#allocation3 + $0x11a4] sm:$0xf]  ;;  %v6760_v17 = vor.u32 %v7557_v5, %v6757_v7 }
 0x118   :  { %3954 = vmatpush.bf16.msrb.mxu0 %v6040_v36  ;;  %v7013_v14 = vld [vmem:[#allocation3 + $0x11b0] sm:$0xf0]  ;;  %v6888_v18 = vor.u32 %v7589_v8, %v6885_v10  ;;  %v7521_v19 = vld [vmem:[#allocation3 + $0xe84] sm:$0xf] }
 0x119   :  { %v6613_v20 = vld [vmem:[#allocation3 + $0xe90] sm:$0xf0]  ;;  %v7553_v24 = vld [vmem:[#allocation3 + $0xf84] sm:$0xf]  ;;  %v7016_v25 = vor.u32 %v7621_v11, %v7013_v14 }
 0x11a   :  { %3967 = vmatpush.bf16.msrb.mxu1 %v6168_v40  ;;  %3980 = vmatpush.bf16.msrb.mxu2 %v6296_v42  ;;  %v6741_v26 = vld [vmem:[#allocation3 + $0xf90] sm:$0xf0]  ;;  %v7585_v28 = vld [vmem:[#allocation3 + $0x1084] sm:$0xf]  ;;  %v3748_v29 = vpop.f32.mrf.mxu0  ;;  %v6616_v36 = vor.u32 %v7521_v19, %v6613_v20 }
 0x11b   :  { %3993 = vmatpush.bf16.msrb.mxu3 %v6424_v45  ;;  %3955 = vmatmul.bf16.vlgmr.msrb.gmra.mxu0 %v7852_v12  ;;  %v6869_v63 = vld [vmem:[#allocation3 + $0x1090] sm:$0xf0]  ;;  %v7617_v31 = vld [vmem:[#allocation3 + $0x1184] sm:$0xf]  ;;  %v3749_v35 = vadd.f32 %v3748_v29, %v7893_v60  ;;  %v6744_v41 = vor.u32 %v7553_v24, %v6741_v26 }
 0x11c   :  { %3999 = vmatpush.bf16.msra.mxu0 %v6664_v46  ;;  %v6997_v34 = vld [vmem:[#allocation3 + $0x1190] sm:$0xf0]  ;;  %v3761_v37 = vpop.f32.mrf.mxu1  ;;  %v6872_v38 = vor.u32 %v7585_v28, %v6869_v63  ;;  %v7517_v40 = vld [vmem:[#allocation3 + $0xe64] sm:$0xf] }
 0x11d   :  { %3981 = vmatmul.bf16.vlgmr.msrb.gmra.mxu2 %v7862_v47  ;;  %3968 = vmatmul.bf16.vlgmr.msrb.gmra.mxu1 %v7856_v16  ;;  %v6597_v42 = vld [vmem:[#allocation3 + $0xe70] sm:$0xf0]  ;;  %v7549_v43 = vld [vmem:[#allocation3 + $0xf64] sm:$0xf]  ;;  %v7000_v44 = vor.u32 %v7617_v31, %v6997_v34  ;;  %v3762_v45 = vadd.f32 %v3761_v37, %v3749_v35 }
 0x11e   :  { %4012 = vmatpush.bf16.msra.mxu1 %v6792_v51  ;;  %4025 = vmatpush.bf16.msra.mxu2 %v6920_v52  ;;  %v6725_v46 = vld [vmem:[#allocation3 + $0xf70] sm:$0xf0]  ;;  %v7581_v51 = vld [vmem:[#allocation3 + $0x1064] sm:$0xf]  ;;  %v6600_v55 = vor.u32 %v7517_v40, %v6597_v42 }
 0x11f   :  { %4038 = vmatpush.bf16.msra.mxu3 %v7048_v56  ;;  %v6853_v52 = vld [vmem:[#allocation3 + $0x1070] sm:$0xf0]  ;;  %v7613_v53 = vld [vmem:[#allocation3 + $0x1164] sm:$0xf]  ;;  %v6728_v60 = vor.u32 %v7549_v43, %v6725_v46  ;;  %v4875_v46 = vld [vmem:[#allocation3 + $0xe8] sm:$0xf] }
 0x120   :  { %3994 = vmatmul.bf16.vlgmr.msrb.gmra.mxu3 %v7866_v49  ;;  %4000 = vmatpush.bf16.msra.mxu0 %v6648_v0  ;;  %v6981_v54 = vld [vmem:[#allocation3 + $0x1170] sm:$0xf0]  ;;  %v6856_v56 = vor.u32 %v7581_v51, %v6853_v52  ;;  %v7513_v57 = vld [vmem:[#allocation3 + $0xe44] sm:$0xf]  ;;  %v3774_v62 = vpop.f32.mrf.mxu2  ;;  %v7088_v51 = vld [vmem:[#allocation3 + $0xf4] sm:$0xf0] }
 0x121   :  { %v6581_v58 = vld [vmem:[#allocation3 + $0xe50] sm:$0xf0]  ;;  %v7545_v59 = vld [vmem:[#allocation3 + $0xf44] sm:$0xf]  ;;  %v6984_v61 = vor.u32 %v7613_v53, %v6981_v54  ;;  %v3775_v3 = vadd.f32 %v3774_v62, %v3762_v45  ;;  %v5003_v52 = vld [vmem:[#allocation3 + $0x1e8] sm:$0xf] }
 0x122   :  { %4013 = vmatpush.bf16.msra.mxu1 %v6776_v1  ;;  %4026 = vmatpush.bf16.msra.mxu2 %v6904_v2  ;;  %v6709_v0 = vld [vmem:[#allocation3 + $0xf50] sm:$0xf0]  ;;  %v7577_v1 = vld [vmem:[#allocation3 + $0x1044] sm:$0xf]  ;;  %v3750_v7 = vpop.f32.mrf.mxu0  ;;  %v6584_v8 = vor.u32 %v7513_v57, %v6581_v58 }
 0x123   :  { %4039 = vmatpush.bf16.msra.mxu3 %v7032_v6  ;;  %v6837_v2 = vld [vmem:[#allocation3 + $0x1050] sm:$0xf0]  ;;  %v3787_v4 = vpop.f32.mrf.mxu3  ;;  %v7609_v5 = vld [vmem:[#allocation3 + $0x1144] sm:$0xf]  ;;  %v6712_v14 = vor.u32 %v7545_v59, %v6709_v0  ;;  %v5259_v59 = vld [vmem:[#allocation3 + $0x3e8] sm:$0xf]  ;;  %v4876_v0 = vor.u32 %v7088_v51, %v4875_v46 }
 0x124   :  { %4001 = vmatpush.bf16.msra.mxu0 %v6632_v15  ;;  %v6965_v6 = vld [vmem:[#allocation3 + $0x1150] sm:$0xf0]  ;;  %v3763_v10 = vpop.f32.mrf.mxu1  ;;  %v7900_v11 = vadd.f32 %v3787_v4, %v3775_v3  ;;  %v6840_v15 = vor.u32 %v7577_v1, %v6837_v2  ;;  %v7541_v19 = vld [vmem:[#allocation3 + $0xf24] sm:$0xf]  ;;  %v4859_v3 = vld [vmem:[#allocation3 + $0xc8] sm:$0xf] }
 0x125   :  { %v6968_v20 = vor.u32 %v7609_v5, %v6965_v6  ;;  %v6693_v24 = vld [vmem:[#allocation3 + $0xf30] sm:$0xf0]  ;;  %v7605_v28 = vld [vmem:[#allocation3 + $0x1124] sm:$0xf]  ;;  %v7084_v4 = vld [vmem:[#allocation3 + $0xd4] sm:$0xf0] }
 0x126   :  { %4014 = vmatpush.bf16.msra.mxu1 %v6760_v17  ;;  %4027 = vmatpush.bf16.msra.mxu2 %v6888_v18  ;;  %v7509_v17 = vld [vmem:[#allocation3 + $0xe24] sm:$0xf]  ;;  %v6565_v18 = vld [vmem:[#allocation3 + $0xe30] sm:$0xf0]  ;;  %v6696_v35 = vor.u32 %v7541_v19, %v6693_v24  ;;  %v4987_v5 = vld [vmem:[#allocation3 + $0x1c8] sm:$0xf] }
 0x127   :  { %4040 = vmatpush.bf16.msra.mxu3 %v7016_v25  ;;  %v7573_v25 = vld [vmem:[#allocation3 + $0x1024] sm:$0xf]  ;;  %v6821_v26 = vld [vmem:[#allocation3 + $0x1030] sm:$0xf0]  ;;  %v6568_v29 = vor.u32 %v7509_v17, %v6565_v18  ;;  %v7116_v7 = vld [vmem:[#allocation3 + $0x1d4] sm:$0xf0]  ;;  %v4860_v17 = vor.u32 %v7084_v4, %v4859_v3 }
 0x128   :  { %4002 = vmatpush.bf16.msra.mxu0 %v6616_v36  ;;  %v6949_v63 = vld [vmem:[#allocation3 + $0x1130] sm:$0xf0]  ;;  %v7505_v31 = vld [vmem:[#allocation3 + $0xe04] sm:$0xf]  ;;  %v6824_v36 = vor.u32 %v7573_v25, %v6821_v26  ;;  %v3776_v45 = vpop.f32.mrf.mxu2  ;;  %v7148_v10 = vld [vmem:[#allocation3 + $0x2d4] sm:$0xf0]  ;;  %v4988_v18 = vor.u32 %v7116_v7, %v4987_v5 }
 0x129   :  { %v6549_v34 = vld [vmem:[#allocation3 + $0xe10] sm:$0xf0]  ;;  %v7537_v37 = vld [vmem:[#allocation3 + $0xf04] sm:$0xf]  ;;  %v6952_v40 = vor.u32 %v7605_v28, %v6949_v63  ;;  %v7080_v24 = vld [vmem:[#allocation3 + $0xb4] sm:$0xf0] }
 0x12a   :  { %4015 = vmatpush.bf16.msra.mxu1 %v6744_v41  ;;  %4028 = vmatpush.bf16.msra.mxu2 %v6872_v38  ;;  %v6677_v41 = vld [vmem:[#allocation3 + $0xf10] sm:$0xf0]  ;;  %v7569_v38 = vld [vmem:[#allocation3 + $0x1004] sm:$0xf]  ;;  %v6552_v54 = vor.u32 %v7505_v31, %v6549_v34  ;;  %v4971_v25 = vld [vmem:[#allocation3 + $0x1a8] sm:$0xf] }
 0x12b   :  { %4041 = vmatpush.bf16.msra.mxu3 %v7000_v44  ;;  %v6805_v42 = vld [vmem:[#allocation3 + $0x1010] sm:$0xf0]  ;;  %v7601_v43 = vld [vmem:[#allocation3 + $0x1104] sm:$0xf]  ;;  %v3789_v53 = vpop.f32.mrf.mxu3  ;;  %v6680_v57 = vor.u32 %v7537_v37, %v6677_v41  ;;  %v7112_v28 = vld [vmem:[#allocation3 + $0x1b4] sm:$0xf0] }
 0x12c   :  { %4003 = vmatpush.bf16.msra.mxu0 %v6600_v55  ;;  %v6933_v44 = vld [vmem:[#allocation3 + $0x1110] sm:$0xf0]  ;;  %v7120_v55 = vld [vmem:[#allocation3 + $0x1f4] sm:$0xf0]  ;;  %v6808_v58 = vor.u32 %v7569_v38, %v6805_v42  ;;  %v5099_v63 = vld [vmem:[#allocation3 + $0x2a8] sm:$0xf]  ;;  %v4972_v41 = vor.u32 %v7112_v28, %v4971_v25 }
 0x12d   :  { %v6936_v62 = vor.u32 %v7601_v43, %v6933_v44  ;;  %v5004_v1 = vor.u32 %v7120_v55, %v5003_v52  ;;  %v7655_v31 = vld [vmem:[#allocation1] sm:$0xff]  ;;  %v5227_v34 = vld [vmem:[#allocation3 + $0x3a8] sm:$0xf] }
 0x12e   :  { %4016 = vmatpush.bf16.msra.mxu1 %v6728_v60  ;;  %4029 = vmatpush.bf16.msra.mxu2 %v6856_v56  ;;  %v5131_v60 = vld [vmem:[#allocation3 + $0x2e8] sm:$0xf]  ;;  %v7152_v56 = vld [vmem:[#allocation3 + $0x2f4] sm:$0xf0] }
 0x12f   :  { %4042 = vmatpush.bf16.msra.mxu3 %v6984_v61  ;;  %v7184_v61 = vld [vmem:[#allocation3 + $0x3f4] sm:$0xf0]  ;;  %v5132_v2 = vor.u32 %v7152_v56, %v5131_v60  ;;  %v4955_v43 = vld [vmem:[#allocation3 + $0x188] sm:$0xf] }
 0x130   :  { %4004 = vmatpush.bf16.msra.mxu0 %v6584_v8  ;;  %v5260_v6 = vor.u32 %v7184_v61, %v5259_v59  ;;  %v5115_v8 = vld [vmem:[#allocation3 + $0x2c8] sm:$0xf]  ;;  %v7076_v42 = vld [vmem:[#allocation3 + $0x94] sm:$0xf0] }
 0x131   :  { %v5116_v19 = vor.u32 %v7148_v10, %v5115_v8  ;;  %v7108_v45 = vld [vmem:[#allocation3 + $0x194] sm:$0xf0]  ;;  %v5083_v46 = vld [vmem:[#allocation3 + $0x288] sm:$0xf] }
 0x132   :  { %4017 = vmatpush.bf16.msra.mxu1 %v6712_v14  ;;  %4030 = vmatpush.bf16.msra.mxu2 %v6840_v15  ;;  %v5243_v14 = vld [vmem:[#allocation3 + $0x3c8] sm:$0xf]  ;;  %v7180_v15 = vld [vmem:[#allocation3 + $0x3d4] sm:$0xf0] }
 0x133   :  { %4043 = vmatpush.bf16.msra.mxu3 %v6968_v20  ;;  %v4843_v20 = vld [vmem:[#allocation3 + $0xa8] sm:$0xf]  ;;  %v5244_v26 = vor.u32 %v7180_v15, %v5243_v14  ;;  %v7140_v51 = vld [vmem:[#allocation3 + $0x294] sm:$0xf0] }
 0x134   :  { %4005 = vmatpush.bf16.msra.mxu0 %v6568_v29  ;;  %v7144_v29 = vld [vmem:[#allocation3 + $0x2b4] sm:$0xf0]  ;;  %v4844_v37 = vor.u32 %v7080_v24, %v4843_v20  ;;  %v5211_v53 = vld [vmem:[#allocation3 + $0x388] sm:$0xf] }
 0x135   :  { %v5100_v38 = vor.u32 %v7144_v29, %v5099_v63  ;;  %v4811_v59 = vld [vmem:[#allocation3 + $0x68] sm:$0xf]  ;;  %v7072_v61 = vld [vmem:[#allocation3 + $0x74] sm:$0xf0] }
 0x136   :  { %4018 = vmatpush.bf16.msra.mxu1 %v6696_v35  ;;  %4031 = vmatpush.bf16.msra.mxu2 %v6824_v36  ;;  %v7176_v35 = vld [vmem:[#allocation3 + $0x3b4] sm:$0xf0]  ;;  %v7656_v36 = vld [vmem:[#allocation1 + $0x9] sm:$0xff]  ;;  %v5067_v3 = vld [vmem:[#allocation3 + $0x268] sm:$0xf] }
 0x137   :  { %4044 = vmatpush.bf16.msra.mxu3 %v6952_v40  ;;  %v4827_v40 = vld [vmem:[#allocation3 + $0x88] sm:$0xf]  ;;  %v5228_v44 = vor.u32 %v7176_v35, %v5227_v34  ;;  %v7136_v4 = vld [vmem:[#allocation3 + $0x274] sm:$0xf0] }
 0x138   :  { %4006 = vmatpush.bf16.msra.mxu0 %v6552_v54  ;;  %v3800_v52 = vpop.f32.mrf.mxu0  ;;  %v7172_v54 = vld [vmem:[#allocation3 + $0x394] sm:$0xf0]  ;;  %v4828_v60 = vor.u32 %v7076_v42, %v4827_v40  ;;  %v5195_v5 = vld [vmem:[#allocation3 + $0x368] sm:$0xf]  ;;  %v5068_v8 = vor.u32 %v7136_v4, %v5067_v3 }
 0x139   :  { %v3801_v55 = vadd.f32 %v3800_v52, %v7900_v11  ;;  %v4812_v11 = vor.u32 %v7072_v61, %v4811_v59  ;;  %v4795_v10 = vld [vmem:[#allocation3 + $0x48] sm:$0xf]  ;;  %v7068_v14 = vld [vmem:[#allocation3 + $0x54] sm:$0xf0] }
 0x13a   :  { %4019 = vmatpush.bf16.msra.mxu1 %v6680_v57  ;;  %4032 = vmatpush.bf16.msra.mxu2 %v6808_v58  ;;  %v3813_v56 = vpop.f32.mrf.mxu1  ;;  %v4956_v57 = vor.u32 %v7108_v45, %v4955_v43  ;;  %v5084_v58 = vor.u32 %v7140_v51, %v5083_v46  ;;  %v4923_v15 = vld [vmem:[#allocation3 + $0x148] sm:$0xf]  ;;  %v7132_v20 = vld [vmem:[#allocation3 + $0x254] sm:$0xf0]  ;;  %v4796_v29 = vor.u32 %v7068_v14, %v4795_v10 }
 0x13b   :  { %4045 = vmatpush.bf16.msra.mxu3 %v6936_v62  ;;  %4007 = vmatmul.bf16.vlgmr.msra.gmra.mxu0 %v7864_v48  ;;  %v4939_v62 = vld [vmem:[#allocation3 + $0x168] sm:$0xf]  ;;  %v7096_v42 = vld [vmem:[#allocation3 + $0x134] sm:$0xf0] }
 0x13c   :  { %4051 = vmatpush.bf16.msrb.mxu0 %v4876_v0  ;;  %v5212_v0 = vor.u32 %v7172_v54, %v5211_v53  ;;  %v5179_v25 = vld [vmem:[#allocation3 + $0x348] sm:$0xf]  ;;  %v7160_v46 = vld [vmem:[#allocation3 + $0x334] sm:$0xf0] }
 0x13d   :  { %4033 = vmatmul.bf16.vlgmr.msra.gmra.mxu2 %v7655_v31  ;;  %4020 = vmatmul.bf16.vlgmr.msra.gmra.mxu1 %v7868_v50  ;;  %v5035_v43 = vld [vmem:[#allocation3 + $0x228] sm:$0xf]  ;;  %v7060_v53 = vld [vmem:[#allocation3 + $0x14] sm:$0xf0] }
 0x13e   :  { %4064 = vmatpush.bf16.msrb.mxu1 %v5004_v1  ;;  %4077 = vmatpush.bf16.msrb.mxu2 %v5132_v2  ;;  %v7905_v1 = vadd.f32 %v3813_v56, %v3801_v55  ;;  %v7104_v2 = vld [vmem:[#allocation3 + $0x174] sm:$0xf0]  ;;  %v5163_v45 = vld [vmem:[#allocation3 + $0x328] sm:$0xf] }
 0x13f   :  { %4090 = vmatpush.bf16.msrb.mxu3 %v5260_v6  ;;  %v7168_v6 = vld [vmem:[#allocation3 + $0x374] sm:$0xf0]  ;;  %v4940_v7 = vor.u32 %v7104_v2, %v4939_v62  ;;  %v4763_v52 = vld [vmem:[#allocation3 + $0x8] sm:$0xf] }
 0x140   :  { %4046 = vmatmul.bf16.vlgmr.msra.gmra.mxu3 %v7656_v36  ;;  %4052 = vmatpush.bf16.msrb.mxu0 %v4860_v17  ;;  %v5196_v17 = vor.u32 %v7168_v6, %v5195_v5  ;;  %v3826_v24 = vpop.f32.mrf.mxu2  ;;  %v3802_v63 = vpop.f32.mrf.mxu0  ;;  %v7092_v56 = vld [vmem:[#allocation3 + $0x114] sm:$0xf0]  ;;  %v5147_v61 = vld [vmem:[#allocation3 + $0x308] sm:$0xf]  ;;  %v4764_v6 = vor.u32 %v7060_v53, %v4763_v52 }
 0x141   :  { %v7124_v59 = vld [vmem:[#allocation3 + $0x214] sm:$0xf0]  ;;  %v5387_v2 = vld [vmem:[#allocation3 + $0x4e8] sm:$0xf] }
 0x142   :  { %4065 = vmatpush.bf16.msrb.mxu1 %v4988_v18  ;;  %4078 = vmatpush.bf16.msrb.mxu2 %v5116_v19  ;;  %v7100_v18 = vld [vmem:[#allocation3 + $0x154] sm:$0xf0]  ;;  %v5051_v19 = vld [vmem:[#allocation3 + $0x248] sm:$0xf]  ;;  %v3815_v34 = vpop.f32.mrf.mxu1 }
 0x143   :  { %4091 = vmatpush.bf16.msrb.mxu3 %v5244_v26  ;;  %v7164_v26 = vld [vmem:[#allocation3 + $0x354] sm:$0xf0]  ;;  %v3839_v28 = vpop.f32.mrf.mxu3  ;;  %v4924_v35 = vor.u32 %v7100_v18, %v4923_v15  ;;  %v5052_v36 = vor.u32 %v7132_v20, %v5051_v19  ;;  %v5515_v4 = vld [vmem:[#allocation3 + $0x5e8] sm:$0xf] }
 0x144   :  { %4053 = vmatpush.bf16.msrb.mxu0 %v4844_v37  ;;  %v7907_v31 = vadd.f32 %v3839_v28, %v3826_v24  ;;  %v4779_v37 = vld [vmem:[#allocation3 + $0x28] sm:$0xf]  ;;  %v5180_v40 = vor.u32 %v7164_v26, %v5179_v25  ;;  %v7156_v62 = vld [vmem:[#allocation3 + $0x314] sm:$0xf0] }
 0x145   :  { %v7216_v3 = vld [vmem:[#allocation3 + $0x4f4] sm:$0xf0]  ;;  %v5771_v15 = vld [vmem:[#allocation3 + $0x7e8] sm:$0xf]  ;;  %v5148_v18 = vor.u32 %v7156_v62, %v5147_v61 }
 0x146   :  { %4066 = vmatpush.bf16.msrb.mxu1 %v4972_v41  ;;  %4079 = vmatpush.bf16.msrb.mxu2 %v5100_v38  ;;  %v7064_v41 = vld [vmem:[#allocation3 + $0x34] sm:$0xf0]  ;;  %v4907_v38 = vld [vmem:[#allocation3 + $0x128] sm:$0xf]  ;;  %v5388_v19 = vor.u32 %v7216_v3, %v5387_v2 }
 0x147   :  { %4092 = vmatpush.bf16.msrb.mxu3 %v5228_v44  ;;  %v7128_v44 = vld [vmem:[#allocation3 + $0x234] sm:$0xf0]  ;;  %v4780_v51 = vor.u32 %v7064_v41, %v4779_v37  ;;  %v4908_v54 = vor.u32 %v7096_v42, %v4907_v38  ;;  %v5371_v25 = vld [vmem:[#allocation3 + $0x4c8] sm:$0xf] }
 0x148   :  { %4054 = vmatpush.bf16.msrb.mxu0 %v4828_v60  ;;  %v5036_v55 = vor.u32 %v7128_v44, %v5035_v43  ;;  %v4891_v60 = vld [vmem:[#allocation3 + $0x108] sm:$0xf]  ;;  %v7212_v26 = vld [vmem:[#allocation3 + $0x4d4] sm:$0xf0] }
 0x149   :  { %v4892_v10 = vor.u32 %v7092_v56, %v4891_v60  ;;  %v5499_v28 = vld [vmem:[#allocation3 + $0x5c8] sm:$0xf]  ;;  %v7308_v37 = vld [vmem:[#allocation3 + $0x7d4] sm:$0xf0]  ;;  %v5372_v41 = vor.u32 %v7212_v26, %v5371_v25 }
 0x14a   :  { %4067 = vmatpush.bf16.msrb.mxu1 %v4956_v57  ;;  %4080 = vmatpush.bf16.msrb.mxu2 %v5084_v58  ;;  %v5019_v57 = vld [vmem:[#allocation3 + $0x208] sm:$0xf]  ;;  %v5164_v58 = vor.u32 %v7160_v46, %v5163_v45  ;;  %v7208_v43 = vld [vmem:[#allocation3 + $0x4b4] sm:$0xf0] }
 0x14b   :  { %4093 = vmatpush.bf16.msrb.mxu3 %v5212_v0  ;;  %v3828_v0 = vpop.f32.mrf.mxu2  ;;  %v3841_v5 = vpop.f32.mrf.mxu3  ;;  %v5020_v14 = vor.u32 %v7124_v59, %v5019_v57  ;;  %v5627_v34 = vld [vmem:[#allocation3 + $0x6c8] sm:$0xf]  ;;  %v7240_v46 = vld [vmem:[#allocation3 + $0x5b4] sm:$0xf0] }
 0x14c   :  { %4055 = vmatpush.bf16.msrb.mxu0 %v4812_v11  ;;  %v7248_v11 = vld [vmem:[#allocation3 + $0x5f4] sm:$0xf0]  ;;  %v5355_v42 = vld [vmem:[#allocation3 + $0x4a8] sm:$0xf] }
 0x14d   :  { %v5516_v20 = vor.u32 %v7248_v11, %v5515_v4  ;;  %v5483_v44 = vld [vmem:[#allocation3 + $0x5a8] sm:$0xf]  ;;  %v7272_v52 = vld [vmem:[#allocation3 + $0x6b4] sm:$0xf0] }
 0x14e   :  { %4068 = vmatpush.bf16.msrb.mxu1 %v4940_v7  ;;  %4081 = vmatpush.bf16.msrb.mxu2 %v5068_v8  ;;  %v5643_v7 = vld [vmem:[#allocation3 + $0x6e8] sm:$0xf]  ;;  %v7280_v8 = vld [vmem:[#allocation3 + $0x6f4] sm:$0xf0]  ;;  %v5484_v60 = vor.u32 %v7240_v46, %v5483_v44 }
 0x14f   :  { %4094 = vmatpush.bf16.msrb.mxu3 %v5196_v17  ;;  %v7312_v17 = vld [vmem:[#allocation3 + $0x7f4] sm:$0xf0]  ;;  %v5644_v24 = vor.u32 %v7280_v8, %v5643_v7  ;;  %v5739_v53 = vld [vmem:[#allocation3 + $0x7a8] sm:$0xf] }
 0x150   :  { %4056 = vmatpush.bf16.msrb.mxu0 %v4796_v29  ;;  %v5772_v63 = vor.u32 %v7312_v17, %v5771_v15  ;;  %v7244_v29 = vld [vmem:[#allocation3 + $0x5d4] sm:$0xf0]  ;;  %v5339_v57 = vld [vmem:[#allocation3 + $0x488] sm:$0xf] }
 0x151   :  { %v5500_v38 = vor.u32 %v7244_v29, %v5499_v28  ;;  %v5467_v59 = vld [vmem:[#allocation3 + $0x588] sm:$0xf]  ;;  %v7236_v62 = vld [vmem:[#allocation3 + $0x594] sm:$0xf0] }
 0x152   :  { %4069 = vmatpush.bf16.msrb.mxu1 %v4924_v35  ;;  %4082 = vmatpush.bf16.msrb.mxu2 %v5052_v36  ;;  %v7276_v35 = vld [vmem:[#allocation3 + $0x6d4] sm:$0xf0]  ;;  %v5755_v36 = vld [vmem:[#allocation3 + $0x7c8] sm:$0xf]  ;;  %v5468_v11 = vor.u32 %v7236_v62, %v5467_v59 }
 0x153   :  { %4095 = vmatpush.bf16.msrb.mxu3 %v5180_v40  ;;  %v5628_v40 = vor.u32 %v7276_v35, %v5627_v34  ;;  %v5756_v45 = vor.u32 %v7308_v37, %v5755_v36  ;;  %v5595_v0 = vld [vmem:[#allocation3 + $0x688] sm:$0xf]  ;;  %v7268_v2 = vld [vmem:[#allocation3 + $0x694] sm:$0xf0] }
 0x154   :  { %4057 = vmatpush.bf16.msrb.mxu0 %v4780_v51  ;;  %v5611_v51 = vld [vmem:[#allocation3 + $0x6a8] sm:$0xf]  ;;  %v7300_v4 = vld [vmem:[#allocation3 + $0x794] sm:$0xf0]  ;;  %v5596_v7 = vor.u32 %v7268_v2, %v5595_v0 }
 0x155   :  { %v5612_v56 = vor.u32 %v7272_v52, %v5611_v51  ;;  %v5723_v3 = vld [vmem:[#allocation3 + $0x788] sm:$0xf]  ;;  %v7296_v26 = vld [vmem:[#allocation3 + $0x774] sm:$0xf0] }
 0x156   :  { %4070 = vmatpush.bf16.msrb.mxu1 %v4908_v54  ;;  %4083 = vmatpush.bf16.msrb.mxu2 %v5036_v55  ;;  %v7304_v54 = vld [vmem:[#allocation3 + $0x7b4] sm:$0xf0]  ;;  %v5356_v55 = vor.u32 %v7208_v43, %v5355_v42  ;;  %v5323_v8 = vld [vmem:[#allocation3 + $0x468] sm:$0xf] }
 0x157   :  { %4096 = vmatpush.bf16.msrb.mxu3 %v5164_v58  ;;  %v7204_v58 = vld [vmem:[#allocation3 + $0x494] sm:$0xf0]  ;;  %v5740_v61 = vor.u32 %v7304_v54, %v5739_v53  ;;  %v5707_v25 = vld [vmem:[#allocation3 + $0x768] sm:$0xf] }
 0x158   :  { %4058 = vmatpush.bf16.msrb.mxu0 %v4764_v6  ;;  %v5340_v5 = vor.u32 %v7204_v58, %v5339_v57  ;;  %v3852_v6 = vpop.f32.mrf.mxu0  ;;  %v5307_v35 = vld [vmem:[#allocation3 + $0x448] sm:$0xf]  ;;  %v7196_v36 = vld [vmem:[#allocation3 + $0x454] sm:$0xf0] }
 0x159   :  { %v3853_v15 = vadd.f32 %v3852_v6, %v7907_v31  ;;  %v5435_v37 = vld [vmem:[#allocation3 + $0x548] sm:$0xf]  ;;  %v5708_v31 = vor.u32 %v7296_v26, %v5707_v25  ;;  %v7260_v42 = vld [vmem:[#allocation3 + $0x654] sm:$0xf0]  ;;  %v5308_v51 = vor.u32 %v7196_v36, %v5307_v35 }
 0x15a   :  { %4071 = vmatpush.bf16.msrb.mxu1 %v4892_v10  ;;  %4084 = vmatpush.bf16.msrb.mxu2 %v5020_v14  ;;  %v7200_v10 = vld [vmem:[#allocation3 + $0x474] sm:$0xf0]  ;;  %v5451_v14 = vld [vmem:[#allocation3 + $0x568] sm:$0xf]  ;;  %v3865_v17 = vpop.f32.mrf.mxu1 }
 0x15b   :  { %4097 = vmatpush.bf16.msrb.mxu3 %v5148_v18  ;;  %4059 = vmatmul.bf16.vlgmr.msrb.gmra.mxu0 %v7825_v22  ;;  %v5724_v18 = vor.u32 %v7300_v4, %v5723_v3  ;;  %v3866_v28 = vadd.f32 %v3865_v17, %v3853_v15  ;;  %v7292_v46 = vld [vmem:[#allocation3 + $0x754] sm:$0xf0]  ;;  %v5419_v57 = vld [vmem:[#allocation3 + $0x528] sm:$0xf] }
 0x15c   :  { %4103 = vmatpush.bf16.msra.mxu0 %v5388_v19  ;;  %v7232_v19 = vld [vmem:[#allocation3 + $0x574] sm:$0xf0]  ;;  %v5547_v62 = vld [vmem:[#allocation3 + $0x628] sm:$0xf] }
 0x15d   :  { %4085 = vmatmul.bf16.vlgmr.msrb.gmra.mxu2 %v7823_v21  ;;  %4072 = vmatmul.bf16.vlgmr.msrb.gmra.mxu1 %v7830_v27  ;;  %v5452_v29 = vor.u32 %v7232_v19, %v5451_v14  ;;  %v7256_v0 = vld [vmem:[#allocation3 + $0x634] sm:$0xf0]  ;;  %v5675_v2 = vld [vmem:[#allocation3 + $0x728] sm:$0xf] }
 0x15e   :  { %4116 = vmatpush.bf16.msra.mxu1 %v5516_v20  ;;  %4129 = vmatpush.bf16.msra.mxu2 %v5644_v24  ;;  %v5579_v20 = vld [vmem:[#allocation3 + $0x668] sm:$0xf]  ;;  %v7264_v24 = vld [vmem:[#allocation3 + $0x674] sm:$0xf0] }
 0x15f   :  { %4142 = vmatpush.bf16.msra.mxu3 %v5772_v63  ;;  %v5324_v63 = vor.u32 %v7200_v10, %v5323_v8  ;;  %v5580_v34 = vor.u32 %v7264_v24, %v5579_v20  ;;  %v7288_v3 = vld [vmem:[#allocation3 + $0x734] sm:$0xf0]  ;;  %v5403_v8 = vld [vmem:[#allocation3 + $0x508] sm:$0xf] }
 0x160   :  { %4098 = vmatmul.bf16.vlgmr.msrb.gmra.mxu3 %v7827_v23  ;;  %4104 = vmatpush.bf16.msra.mxu0 %v5372_v41  ;;  %v3878_v41 = vpop.f32.mrf.mxu2  ;;  %v3854_v53 = vpop.f32.mrf.mxu0  ;;  %v7188_v6 = vld [vmem:[#allocation3 + $0x414] sm:$0xf0]  ;;  %v5531_v14 = vld [vmem:[#allocation3 + $0x608] sm:$0xf]  ;;  %v5676_v17 = vor.u32 %v7288_v3, %v5675_v2 }
 0x161   :  { %v3879_v43 = vadd.f32 %v3878_v41, %v3866_v28  ;;  %v7220_v10 = vld [vmem:[#allocation3 + $0x514] sm:$0xf0]  ;;  %v5659_v19 = vld [vmem:[#allocation3 + $0x708] sm:$0xf] }
 0x162   :  { %4117 = vmatpush.bf16.msra.mxu1 %v5500_v38  ;;  %4130 = vmatpush.bf16.msra.mxu2 %v5628_v40  ;;  %v7228_v38 = vld [vmem:[#allocation3 + $0x554] sm:$0xf0]  ;;  %v5563_v40 = vld [vmem:[#allocation3 + $0x648] sm:$0xf]  ;;  %v3867_v58 = vpop.f32.mrf.mxu1  ;;  %v5404_v36 = vor.u32 %v7220_v10, %v5403_v8 }
 0x163   :  { %4143 = vmatpush.bf16.msra.mxu3 %v5756_v45  ;;  %v3891_v44 = vpop.f32.mrf.mxu3  ;;  %v5691_v45 = vld [vmem:[#allocation3 + $0x748] sm:$0xf]  ;;  %v5436_v54 = vor.u32 %v7228_v38, %v5435_v37  ;;  %v7284_v20 = vld [vmem:[#allocation3 + $0x714] sm:$0xf0] }
 0x164   :  { %4105 = vmatpush.bf16.msra.mxu0 %v5356_v55  ;;  %v7914_v52 = vadd.f32 %v3891_v44, %v3879_v43  ;;  %v5564_v55 = vor.u32 %v7260_v42, %v5563_v40  ;;  %v5692_v59 = vor.u32 %v7292_v46, %v5691_v45  ;;  %v5899_v25 = vld [vmem:[#allocation3 + $0x8e8] sm:$0xf]  ;;  %v7344_v26 = vld [vmem:[#allocation3 + $0x8f4] sm:$0xf0]  ;;  %v5660_v38 = vor.u32 %v7284_v20, %v5659_v19 }
 0x165   :  { %v6027_v28 = vld [vmem:[#allocation3 + $0x9e8] sm:$0xf]  ;;  %v7408_v35 = vld [vmem:[#allocation3 + $0xaf4] sm:$0xf0]  ;;  %v5900_v40 = vor.u32 %v7344_v26, %v5899_v25 }
 0x166   :  { %4118 = vmatpush.bf16.msra.mxu1 %v5484_v60  ;;  %4131 = vmatpush.bf16.msra.mxu2 %v5612_v56  ;;  %v5291_v60 = vld [vmem:[#allocation3 + $0x428] sm:$0xf]  ;;  %v7192_v56 = vld [vmem:[#allocation3 + $0x434] sm:$0xf0] }
 0x167   :  { %4144 = vmatpush.bf16.msra.mxu3 %v5740_v61  ;;  %v7224_v61 = vld [vmem:[#allocation3 + $0x534] sm:$0xf0]  ;;  %v5292_v4 = vor.u32 %v7192_v56, %v5291_v60  ;;  %v6283_v41 = vld [vmem:[#allocation3 + $0xbe8] sm:$0xf] }
 0x168   :  { %4106 = vmatpush.bf16.msra.mxu0 %v5340_v5  ;;  %v5275_v5 = vld [vmem:[#allocation3 + $0x408] sm:$0xf]  ;;  %v3880_v15 = vpop.f32.mrf.mxu2  ;;  %v7340_v45 = vld [vmem:[#allocation3 + $0x8d4] sm:$0xf0] }
 0x169   :  { %v5883_v44 = vld [vmem:[#allocation3 + $0x8c8] sm:$0xf]  ;;  %v7372_v53 = vld [vmem:[#allocation3 + $0x9d4] sm:$0xf0] }
 0x16a   :  { %4119 = vmatpush.bf16.msra.mxu1 %v5468_v11  ;;  %4132 = vmatpush.bf16.msra.mxu2 %v5596_v7  ;;  %v5420_v11 = vor.u32 %v7224_v61, %v5419_v57  ;;  %v5548_v7 = vor.u32 %v7256_v0, %v5547_v62  ;;  %v6011_v46 = vld [vmem:[#allocation3 + $0x9c8] sm:$0xf]  ;;  %v7436_v56 = vld [vmem:[#allocation3 + $0xbd4] sm:$0xf0]  ;;  %v5884_v57 = vor.u32 %v7340_v45, %v5883_v44 }
 0x16b   :  { %4145 = vmatpush.bf16.msra.mxu3 %v5724_v18  ;;  %v7252_v18 = vld [vmem:[#allocation3 + $0x614] sm:$0xf0]  ;;  %v3893_v24 = vpop.f32.mrf.mxu3  ;;  %v6267_v60 = vld [vmem:[#allocation3 + $0xbc8] sm:$0xf]  ;;  %v6012_v58 = vor.u32 %v7372_v53, %v6011_v46 }
 0x16c   :  { %4107 = vmatpush.bf16.msra.mxu0 %v5324_v63  ;;  %v5276_v63 = vor.u32 %v7188_v6, %v5275_v5  ;;  %v5532_v37 = vor.u32 %v7252_v18, %v5531_v14  ;;  %v5867_v61 = vld [vmem:[#allocation3 + $0x8a8] sm:$0xf]  ;;  %v7336_v62 = vld [vmem:[#allocation3 + $0x8b4] sm:$0xf0]  ;;  %v6268_v2 = vor.u32 %v7436_v56, %v6267_v60 }
 0x16d   :  { %v5995_v0 = vld [vmem:[#allocation3 + $0x9a8] sm:$0xf]  ;;  %v7368_v3 = vld [vmem:[#allocation3 + $0x9b4] sm:$0xf0] }
 0x16e   :  { %4120 = vmatpush.bf16.msra.mxu1 %v5452_v29  ;;  %4133 = vmatpush.bf16.msra.mxu2 %v5580_v34  ;;  %v7376_v29 = vld [vmem:[#allocation3 + $0x9f4] sm:$0xf0]  ;;  %v6155_v34 = vld [vmem:[#allocation3 + $0xae8] sm:$0xf]  ;;  %v5996_v8 = vor.u32 %v7368_v3, %v5995_v0 }
 0x16f   :  { %4146 = vmatpush.bf16.msra.mxu3 %v5708_v31  ;;  %v7440_v31 = vld [vmem:[#allocation3 + $0xbf4] sm:$0xf0]  ;;  %v6028_v42 = vor.u32 %v7376_v29, %v6027_v28  ;;  %v6156_v43 = vor.u32 %v7408_v35, %v6155_v34  ;;  %v6251_v6 = vld [vmem:[#allocation3 + $0xba8] sm:$0xf] }
 0x170   :  { %4108 = vmatpush.bf16.msra.mxu0 %v5308_v51  ;;  %v6284_v51 = vor.u32 %v7440_v31, %v6283_v41  ;;  %v7400_v5 = vld [vmem:[#allocation3 + $0xab4] sm:$0xf0]  ;;  %v5851_v14 = vld [vmem:[#allocation3 + $0x888] sm:$0xf] }
 0x171   :  { %v7332_v15 = vld [vmem:[#allocation3 + $0x894] sm:$0xf0]  ;;  %v6107_v20 = vld [vmem:[#allocation3 + $0xa88] sm:$0xf] }
 0x172   :  { %4121 = vmatpush.bf16.msra.mxu1 %v5436_v54  ;;  %4134 = vmatpush.bf16.msra.mxu2 %v5564_v55  ;;  %v6139_v54 = vld [vmem:[#allocation3 + $0xac8] sm:$0xf]  ;;  %v7404_v55 = vld [vmem:[#allocation3 + $0xad4] sm:$0xf0]  ;;  %v5852_v29 = vor.u32 %v7332_v15, %v5851_v14 }
 0x173   :  { %4147 = vmatpush.bf16.msra.mxu3 %v5692_v59  ;;  %v6140_v59 = vor.u32 %v7404_v55, %v6139_v54  ;;  %v7364_v19 = vld [vmem:[#allocation3 + $0x994] sm:$0xf0]  ;;  %v6235_v26 = vld [vmem:[#allocation3 + $0xb88] sm:$0xf] }
 0x174   :  { %4109 = vmatpush.bf16.msra.mxu0 %v5292_v4  ;;  %v6123_v4 = vld [vmem:[#allocation3 + $0xaa8] sm:$0xf]  ;;  %v7396_v24 = vld [vmem:[#allocation3 + $0xa94] sm:$0xf0] }
 0x175   :  { %v6124_v10 = vor.u32 %v7400_v5, %v6123_v4  ;;  %v7428_v28 = vld [vmem:[#allocation3 + $0xb94] sm:$0xf0]  ;;  %v5963_v31 = vld [vmem:[#allocation3 + $0x968] sm:$0xf] }
 0x176   :  { %4122 = vmatpush.bf16.msra.mxu1 %v5420_v11  ;;  %4135 = vmatpush.bf16.msra.mxu2 %v5548_v7  ;;  %v7432_v11 = vld [vmem:[#allocation3 + $0xbb4] sm:$0xf0]  ;;  %v5868_v7 = vor.u32 %v7336_v62, %v5867_v61  ;;  %v6219_v45 = vld [vmem:[#allocation3 + $0xb68] sm:$0xf] }
 0x177   :  { %4148 = vmatpush.bf16.msra.mxu3 %v5676_v17  ;;  %v5979_v17 = vld [vmem:[#allocation3 + $0x988] sm:$0xf]  ;;  %v6252_v18 = vor.u32 %v7432_v11, %v6251_v6  ;;  %v7328_v41 = vld [vmem:[#allocation3 + $0x874] sm:$0xf0] }
 0x178   :  { %4110 = vmatpush.bf16.msra.mxu0 %v5276_v63  ;;  %v3904_v25 = vpop.f32.mrf.mxu0  ;;  %v5980_v35 = vor.u32 %v7364_v19, %v5979_v17  ;;  %v7392_v44 = vld [vmem:[#allocation3 + $0xa74] sm:$0xf0]  ;;  %v5819_v54 = vld [vmem:[#allocation3 + $0x848] sm:$0xf] }
 0x179   :  { %v3905_v63 = vadd.f32 %v3904_v25, %v7914_v52  ;;  %v7424_v46 = vld [vmem:[#allocation3 + $0xb74] sm:$0xf0]  ;;  %v5947_v60 = vld [vmem:[#allocation3 + $0x948] sm:$0xf] }
 0x17a   :  { %4123 = vmatpush.bf16.msra.mxu1 %v5404_v36  ;;  %4136 = vmatpush.bf16.msra.mxu2 %v5532_v37  ;;  %v3917_v34 = vpop.f32.mrf.mxu1  ;;  %v6108_v36 = vor.u32 %v7396_v24, %v6107_v20  ;;  %v5835_v37 = vld [vmem:[#allocation3 + $0x868] sm:$0xf]  ;;  %v7324_v55 = vld [vmem:[#allocation3 + $0x854] sm:$0xf0]  ;;  %v6220_v56 = vor.u32 %v7424_v46, %v6219_v45 }
 0x17b   :  { %4149 = vmatpush.bf16.msra.mxu3 %v5660_v38  ;;  %4111 = vmatmul.bf16.vlgmr.msra.gmra.mxu0 %v7837_v32  ;;  %v6236_v38 = vor.u32 %v7428_v28, %v6235_v26  ;;  %v7388_v61 = vld [vmem:[#allocation3 + $0xa54] sm:$0xf0]  ;;  %v5820_v5 = vor.u32 %v7324_v55, %v5819_v54  ;;  %v5931_v15 = vld [vmem:[#allocation3 + $0x928] sm:$0xf]  ;;  %v4520_v26 = vsel %vm4519_vm0, %v7905_v1, 0.0 }
 0x17c   :  { %4155 = vmatpush.bf16.msrb.mxu0 %v5900_v40  ;;  %v3918_v40 = vadd.f32 %v3917_v34, %v3905_v63  ;;  %v7420_v3 = vld [vmem:[#allocation3 + $0xb54] sm:$0xf0]  ;;  %v6059_v19 = vld [vmem:[#allocation3 + $0xa28] sm:$0xf] }
 0x17d   :  { %4137 = vmatmul.bf16.vlgmr.msra.gmra.mxu2 %v7835_v30  ;;  %4124 = vmatmul.bf16.vlgmr.msra.gmra.mxu1 %v7841_v39  ;;  %v7320_v14 = vld [vmem:[#allocation3 + $0x834] sm:$0xf0]  ;;  %v6187_v24 = vld [vmem:[#allocation3 + $0xb28] sm:$0xf] }
 0x17e   :  { %4168 = vmatpush.bf16.msrb.mxu1 %v6028_v42  ;;  %4181 = vmatpush.bf16.msrb.mxu2 %v6156_v43  ;;  %v7360_v42 = vld [vmem:[#allocation3 + $0x974] sm:$0xf0]  ;;  %v6091_v43 = vld [vmem:[#allocation3 + $0xa68] sm:$0xf] }
 0x17f   :  { %4194 = vmatpush.bf16.msrb.mxu3 %v6284_v51  ;;  %v5836_v51 = vor.u32 %v7328_v41, %v5835_v37  ;;  %v5964_v52 = vor.u32 %v7360_v42, %v5963_v31  ;;  %v6092_v53 = vor.u32 %v7392_v44, %v6091_v43  ;;  %v7384_v20 = vld [vmem:[#allocation3 + $0xa34] sm:$0xf0]  ;;  %v5787_v63 = vld [vmem:[#allocation3 + $0x808] sm:$0xf] }
 0x180   :  { %4150 = vmatmul.bf16.vlgmr.msra.gmra.mxu3 %v7839_v33  ;;  %4156 = vmatpush.bf16.msrb.mxu0 %v5884_v57  ;;  %v3930_v57 = vpop.f32.mrf.mxu2  ;;  %v3906_v4 = vpop.f32.mrf.mxu0  ;;  %v7416_v25 = vld [vmem:[#allocation3 + $0xb34] sm:$0xf0]  ;;  %v6043_v41 = vld [vmem:[#allocation3 + $0xa08] sm:$0xf] }
 0x181   :  { %v3931_v62 = vadd.f32 %v3930_v57, %v3918_v40  ;;  %v7348_v37 = vld [vmem:[#allocation3 + $0x914] sm:$0xf0]  ;;  %v6188_v31 = vor.u32 %v7416_v25, %v6187_v24  ;;  %v6171_v40 = vld [vmem:[#allocation3 + $0xb08] sm:$0xf] }
 0x182   :  { %4169 = vmatpush.bf16.msrb.mxu1 %v6012_v58  ;;  %4182 = vmatpush.bf16.msrb.mxu2 %v6140_v59  ;;  %v7356_v58 = vld [vmem:[#allocation3 + $0x954] sm:$0xf0]  ;;  %v6075_v59 = vld [vmem:[#allocation3 + $0xa48] sm:$0xf]  ;;  %v3919_v6 = vpop.f32.mrf.mxu1 }
 0x183   :  { %4195 = vmatpush.bf16.msrb.mxu3 %v6268_v2  ;;  %v3943_v0 = vpop.f32.mrf.mxu3  ;;  %v6203_v2 = vld [vmem:[#allocation3 + $0xb48] sm:$0xf]  ;;  %v7412_v42 = vld [vmem:[#allocation3 + $0xb14] sm:$0xf0] }
 0x184   :  { %4157 = vmatpush.bf16.msrb.mxu0 %v5868_v7  ;;  %v7921_v11 = vadd.f32 %v3943_v0, %v3931_v62  ;;  %v5948_v7 = vor.u32 %v7356_v58, %v5947_v60  ;;  %v6204_v17 = vor.u32 %v7420_v3, %v6203_v2  ;;  %v6411_v44 = vld [vmem:[#allocation3 + $0xce8] sm:$0xf]  ;;  %v7472_v45 = vld [vmem:[#allocation3 + $0xcf4] sm:$0xf0]  ;;  %v6172_v62 = vor.u32 %v7412_v42, %v6171_v40 }
 0x185   :  { %v6539_v46 = vld [vmem:[#allocation3 + $0xde8] sm:$0xf]  ;;  %v7504_v54 = vld [vmem:[#allocation3 + $0xdf4] sm:$0xf0]  ;;  %v6412_v0 = vor.u32 %v7472_v45, %v6411_v44 }
 0x186   :  { %4170 = vmatpush.bf16.msrb.mxu1 %v5996_v8  ;;  %4183 = vmatpush.bf16.msrb.mxu2 %v6124_v10  ;;  %v6076_v8 = vor.u32 %v7388_v61, %v6075_v59  ;;  %v5803_v10 = vld [vmem:[#allocation3 + $0x828] sm:$0xf]  ;;  %v7536_v60 = vld [vmem:[#allocation3 + $0xef4] sm:$0xf0]  ;;  %v4521_v61 = vrot.slane %v4520_v26, 4  ;;  %v6540_v2 = vor.u32 %v7504_v54, %v6539_v46 }
 0x187   :  { %4196 = vmatpush.bf16.msrb.mxu3 %v6252_v18  ;;  %v7352_v18 = vld [vmem:[#allocation3 + $0x934] sm:$0xf0]  ;;  %v5804_v28 = vor.u32 %v7320_v14, %v5803_v10  ;;  %v6667_v55 = vld [vmem:[#allocation3 + $0xee8] sm:$0xf] }
 0x188   :  { %4158 = vmatpush.bf16.msrb.mxu0 %v5852_v29  ;;  %v7316_v29 = vld [vmem:[#allocation3 + $0x814] sm:$0xf0]  ;;  %v5932_v34 = vor.u32 %v7352_v18, %v5931_v15  ;;  %v3932_v43 = vpop.f32.mrf.mxu2  ;;  %v6795_v58 = vld [vmem:[#allocation3 + $0xfe8] sm:$0xf]  ;;  %v6668_v3 = vor.u32 %v7536_v60, %v6667_v55 }
 0x189   :  { %v7568_v59 = vld [vmem:[#allocation3 + $0xff4] sm:$0xf0]  ;;  %v6395_v4 = vld [vmem:[#allocation3 + $0xcc8] sm:$0xf] }
 0x18a   :  { %4171 = vmatpush.bf16.msrb.mxu1 %v5980_v35  ;;  %4184 = vmatpush.bf16.msrb.mxu2 %v6108_v36  ;;  %v6060_v35 = vor.u32 %v7384_v20, %v6059_v19  ;;  %v5915_v36 = vld [vmem:[#allocation3 + $0x908] sm:$0xf]  ;;  %v7532_v14 = vld [vmem:[#allocation3 + $0xed4] sm:$0xf0]  ;;  %v4522_v19 = vadd.f32 %v4521_v61, %v4520_v26 }
 0x18b   :  { %4197 = vmatpush.bf16.msrb.mxu3 %v6236_v38  ;;  %v7380_v38 = vld [vmem:[#allocation3 + $0xa14] sm:$0xf0]  ;;  %v6523_v6 = vld [vmem:[#allocation3 + $0xdc8] sm:$0xf] }
 0x18c   :  { %4159 = vmatpush.bf16.msrb.mxu0 %v5836_v51  ;;  %v3945_v51 = vpop.f32.mrf.mxu3  ;;  %v6044_v57 = vor.u32 %v7380_v38, %v6043_v41  ;;  %v6651_v10 = vld [vmem:[#allocation3 + $0xec8] sm:$0xf]  ;;  %v4523_v38 = vrot.slane %v4522_v19, 2  ;;  %v7460_v45 = vld [vmem:[#allocation3 + $0xc94] sm:$0xf0] }
 0x18d   :  { %v6779_v15 = vld [vmem:[#allocation3 + $0xfc8] sm:$0xf]  ;;  %v6652_v25 = vor.u32 %v7532_v14, %v6651_v10  ;;  %v7524_v54 = vld [vmem:[#allocation3 + $0xe94] sm:$0xf0] }
 0x18e   :  { %4172 = vmatpush.bf16.msrb.mxu1 %v5964_v52  ;;  %4185 = vmatpush.bf16.msrb.mxu2 %v6092_v53  ;;  %v7769_v52 = vmov 2.0   ;;  %v5788_v53 = vor.u32 %v7316_v29, %v5787_v63  ;;  %v7464_v63 = vld [vmem:[#allocation3 + $0xcb4] sm:$0xf0]  ;;  %v6507_v29 = vld [vmem:[#allocation3 + $0xda8] sm:$0xf] }
 0x18f   :  { %4198 = vmatpush.bf16.msrb.mxu3 %v6220_v56  ;;  %7641 = vrcp.f32 %v7769_v52  ;;  %v5916_v56 = vor.u32 %v7348_v37, %v5915_v36  ;;  %v6635_v36 = vld [vmem:[#allocation3 + $0xea8] sm:$0xf]  ;;  %v7528_v37 = vld [vmem:[#allocation3 + $0xeb4] sm:$0xf0] }
 0x190   :  { %4160 = vmatpush.bf16.msrb.mxu0 %v5820_v5  ;;  %v7468_v5 = vld [vmem:[#allocation3 + $0xcd4] sm:$0xf0]  ;;  %v6763_v26 = vld [vmem:[#allocation3 + $0xfa8] sm:$0xf]  ;;  %v6636_v43 = vor.u32 %v7528_v37, %v6635_v36 }
 0x191   :  { %v6396_v20 = vor.u32 %v7468_v5, %v6395_v4  ;;  %v6363_v44 = vld [vmem:[#allocation3 + $0xc88] sm:$0xf]  ;;  %v7492_v52 = vld [vmem:[#allocation3 + $0xd94] sm:$0xf0] }
 0x192   :  { %4173 = vmatpush.bf16.msrb.mxu1 %v5948_v7  ;;  %4186 = vmatpush.bf16.msrb.mxu2 %v6076_v8  ;;  %v6796_v7 = vor.u32 %v7568_v59, %v6795_v58  ;;  %v7500_v8 = vld [vmem:[#allocation3 + $0xdd4] sm:$0xf0]  ;;  %v6491_v46 = vld [vmem:[#allocation3 + $0xd88] sm:$0xf]  ;;  %v4524_v58 = vadd.f32 %v4523_v38, %v4522_v19  ;;  %v6364_v61 = vor.u32 %v7460_v45, %v6363_v44 }
 0x193   :  { %4199 = vmatpush.bf16.msrb.mxu3 %v6204_v17  ;;  %v7564_v17 = vld [vmem:[#allocation3 + $0xfd4] sm:$0xf0]  ;;  %v6524_v24 = vor.u32 %v7500_v8, %v6523_v6  ;;  %v6475_v5 = vld [vmem:[#allocation3 + $0xd68] sm:$0xf] }
 0x194   :  { %4161 = vmatpush.bf16.msrb.mxu0 %v5804_v28  ;;  %v6379_v28 = vld [vmem:[#allocation3 + $0xca8] sm:$0xf]  ;;  %v7456_v4 = vld [vmem:[#allocation3 + $0xc74] sm:$0xf0] }
 0x195   :  { %v7925_v18 = vpop.eup %7641  ;;  %v6380_v40 = vor.u32 %v7464_v63, %v6379_v28  ;;  %v7488_v8 = vld [vmem:[#allocation3 + $0xd74] sm:$0xf0]  ;;  %v6603_v10 = vld [vmem:[#allocation3 + $0xe68] sm:$0xf] }
 0x196   :  { %4174 = vmatpush.bf16.msrb.mxu1 %v5932_v34  ;;  %4187 = vmatpush.bf16.msrb.mxu2 %v6060_v35  ;;  %v6780_v34 = vor.u32 %v7564_v17, %v6779_v15  ;;  %v7496_v35 = vld [vmem:[#allocation3 + $0xdb4] sm:$0xf0]  ;;  %v4549_v41 = vmul.f32 2.0, %v7925_v18  ;;  %v6731_v17 = vld [vmem:[#allocation3 + $0xf68] sm:$0xf]  ;;  %vm4553_vm1 = vweird.f32 %v7925_v18 }
 0x197   :  { %4200 = vmatpush.bf16.msrb.mxu3 %v6188_v31  ;;  %v7560_v31 = vld [vmem:[#allocation3 + $0xfb4] sm:$0xf0]  ;;  %v6508_v42 = vor.u32 %v7496_v35, %v6507_v29  ;;  %v6331_v28 = vld [vmem:[#allocation3 + $0xc48] sm:$0xf] }
 0x198   :  { %4162 = vmatpush.bf16.msrb.mxu0 %v5788_v53  ;;  %v6764_v51 = vor.u32 %v7560_v31, %v6763_v26  ;;  %v6619_v53 = vld [vmem:[#allocation3 + $0xe88] sm:$0xf]  ;;  %v4550_v55 = vsub.f32 1.0, %v4549_v41  ;;  %v3956_v60 = vpop.f32.mrf.mxu0  ;;  %v7520_v14 = vld [vmem:[#allocation3 + $0xe74] sm:$0xf0] }
 0x199   :  { %v3957_v59 = vadd.f32 %v3956_v60, %v7921_v11  ;;  %v7552_v19 = vld [vmem:[#allocation3 + $0xf74] sm:$0xf0]  ;;  %v4525_v11 = vrot.slane %v4524_v58, 1  ;;  %v6459_v29 = vld [vmem:[#allocation3 + $0xd48] sm:$0xf] }
 0x19a   :  { %4175 = vmatpush.bf16.msrb.mxu1 %v5916_v56  ;;  %4188 = vmatpush.bf16.msrb.mxu2 %v6044_v57  ;;  %v6747_v56 = vld [vmem:[#allocation3 + $0xf88] sm:$0xf]  ;;  %v7556_v57 = vld [vmem:[#allocation3 + $0xf94] sm:$0xf0]  ;;  %v4551_v15 = vmul.f32 %v7925_v18, %v4550_v55 }
 0x19b   :  { %4201 = vmatpush.bf16.msrb.mxu3 %v6172_v62  ;;  %4163 = vmatmul.bf16.vlgmr.msrb.gmra.mxu0 %v7850_v9  ;;  %v3969_v62 = vpop.f32.mrf.mxu1  ;;  %v6748_v6 = vor.u32 %v7556_v57, %v6747_v56  ;;  %v7452_v63 = vld [vmem:[#allocation3 + $0xc54] sm:$0xf0]  ;;  %v6587_v37 = vld [vmem:[#allocation3 + $0xe48] sm:$0xf]  ;;  %v4526_v60 = vadd.f32 %v4525_v11, %v4524_v58 }
 0x19c   :  { %4207 = vmatpush.bf16.msra.mxu0 %v6412_v0  ;;  %v6492_v0 = vor.u32 %v7492_v52, %v6491_v46  ;;  %v7484_v36 = vld [vmem:[#allocation3 + $0xd54] sm:$0xf0]  ;;  %v4552_v26 = vadd.f32 %v7925_v18, %v4551_v15  ;;  %v6332_v44 = vor.u32 %v7452_v63, %v6331_v28  ;;  %v6443_v55 = vld [vmem:[#allocation3 + $0xd28] sm:$0xf] }
 0x19d   :  { %4189 = vmatmul.bf16.vlgmr.msrb.gmra.mxu2 %v7852_v12  ;;  %4176 = vmatmul.bf16.vlgmr.msrb.gmra.mxu1 %v7854_v13  ;;  %v7516_v41 = vld [vmem:[#allocation3 + $0xe54] sm:$0xf0] }
 0x19e   :  { %4220 = vmatpush.bf16.msra.mxu1 %v6540_v2  ;;  %4233 = vmatpush.bf16.msra.mxu2 %v6668_v3  ;;  %v6620_v2 = vor.u32 %v7524_v54, %v6619_v53  ;;  %v6347_v3 = vld [vmem:[#allocation3 + $0xc68] sm:$0xf]  ;;  %v6588_v52 = vor.u32 %v7516_v41, %v6587_v37  ;;  %v7448_v54 = vld [vmem:[#allocation3 + $0xc34] sm:$0xf0]  ;;  %v7118_v41 = vld [vmem:[#allocation3 + $0x1ec] sm:$0xf] }
 0x19f   :  { %4246 = vmatpush.bf16.msra.mxu3 %v6796_v7  ;;  %v3970_v7 = vadd.f32 %v3969_v62, %v3957_v59  ;;  %v6315_v53 = vld [vmem:[#allocation3 + $0xc28] sm:$0xf]  ;;  %v7480_v57 = vld [vmem:[#allocation3 + $0xd34] sm:$0xf0]  ;;  %v7941_v62 = vsel %vm4553_vm1, %v7925_v18, %v4552_v26  ;;  %v5005_v26 = vld [vmem:[#allocation3 + $0x1f8] sm:$0xf0] }
 0x1a0   :  { %4202 = vmatmul.bf16.vlgmr.msrb.gmra.mxu3 %v7856_v16  ;;  %4208 = vmatpush.bf16.msra.mxu0 %v6396_v20  ;;  %v6348_v20 = vor.u32 %v7456_v4, %v6347_v3  ;;  %v3982_v35 = vpop.f32.mrf.mxu2  ;;  %v6571_v59 = vld [vmem:[#allocation3 + $0xe28] sm:$0xf]  ;;  %v6316_v3 = vor.u32 %v7448_v54, %v6315_v53  ;;  %v7628_v53 = vld [vmem:[#allocation3 + $0x11d4] sm:$0xf0]  ;;  %v7082_v54 = vld [vmem:[#allocation3 + $0xcc] sm:$0xf] }
 0x1a1   :  { %v3983_v31 = vadd.f32 %v3982_v35, %v3970_v7  ;;  %v6299_v4 = vld [vmem:[#allocation3 + $0xc08] sm:$0xf]  ;;  %v4877_v35 = vld [vmem:[#allocation3 + $0xf8] sm:$0xf0] }
 0x1a2   :  { %4221 = vmatpush.bf16.msra.mxu1 %v6524_v24  ;;  %4234 = vmatpush.bf16.msra.mxu2 %v6652_v25  ;;  %v6476_v24 = vor.u32 %v7488_v8, %v6475_v5  ;;  %v6604_v25 = vor.u32 %v7520_v14, %v6603_v10  ;;  %v7444_v5 = vld [vmem:[#allocation3 + $0xc14] sm:$0xf0]  ;;  %v6427_v7 = vld [vmem:[#allocation3 + $0xd08] sm:$0xf]  ;;  %v4555_v14 = vmul.f32 %v7941_v62, %v4526_v60  ;;  %v7114_v60 = vld [vmem:[#allocation3 + $0x1cc] sm:$0xf] }
 0x1a3   :  { %4247 = vmatpush.bf16.msra.mxu3 %v6780_v34  ;;  %v6732_v34 = vor.u32 %v7552_v19, %v6731_v17  ;;  %v3995_v38 = vpop.f32.mrf.mxu3  ;;  %v3971_v45 = vpop.f32.mrf.mxu1  ;;  %v7476_v8 = vld [vmem:[#allocation3 + $0xd14] sm:$0xf0]  ;;  %v6555_v10 = vld [vmem:[#allocation3 + $0xe08] sm:$0xf]  ;;  %v6300_v63 = vor.u32 %v7444_v5, %v6299_v4 }
 0x1a4   :  { %4209 = vmatpush.bf16.msra.mxu0 %v6380_v40  ;;  %v6715_v40 = vld [vmem:[#allocation3 + $0xf48] sm:$0xf]  ;;  %v7936_v46 = vadd.f32 %v3995_v38, %v3983_v31  ;;  %v7508_v17 = vld [vmem:[#allocation3 + $0xe14] sm:$0xf0]  ;;  %v7945_v31 = vsub.f32 %v7905_v1, %v4555_v14 }
 0x1a5   :  { %v6683_v18 = vld [vmem:[#allocation3 + $0xf08] sm:$0xf]  ;;  %v7540_v19 = vld [vmem:[#allocation3 + $0xf14] sm:$0xf0]  ;;  %v6556_v37 = vor.u32 %v7508_v17, %v6555_v10 }
 0x1a6   :  { %4222 = vmatpush.bf16.msra.mxu1 %v6508_v42  ;;  %4235 = vmatpush.bf16.msra.mxu2 %v6636_v43  ;;  %v7548_v42 = vld [vmem:[#allocation3 + $0xf54] sm:$0xf0]  ;;  %v3958_v43 = vpop.f32.mrf.mxu0  ;;  %v6684_v38 = vor.u32 %v7540_v19, %v6683_v18  ;;  %v4563_v1 = vmul.f32 %v7945_v31, %v7945_v31  ;;  %v6875_v18 = vld [vmem:[#allocation3 + $0x1088] sm:$0xf] }
 0x1a7   :  { %4248 = vmatpush.bf16.msra.mxu3 %v6764_v51  ;;  %v6460_v51 = vor.u32 %v7484_v36, %v6459_v29  ;;  %v6716_v56 = vor.u32 %v7548_v42, %v6715_v40  ;;  %v7632_v29 = vld [vmem:[#allocation3 + $0x11f4] sm:$0xf0]  ;;  %v6428_v36 = vor.u32 %v7476_v8, %v6427_v7  ;;  %v7110_v7 = vld [vmem:[#allocation3 + $0x1ac] sm:$0xf]  ;;  %v4973_v8 = vld [vmem:[#allocation3 + $0x1b8] sm:$0xf0] }
 0x1a8   :  { %4210 = vmatpush.bf16.msra.mxu0 %v6364_v61  ;;  %v7512_v61 = vld [vmem:[#allocation3 + $0xe34] sm:$0xf0]  ;;  %v3984_v11 = vpop.f32.mrf.mxu2  ;;  %v4567_v10 = vsel %vm4519_vm0, %v4563_v1, 0.0 }
 0x1a9   :  { %v6572_v58 = vor.u32 %v7512_v61, %v6571_v59  ;;  %v7596_v45 = vld [vmem:[#allocation3 + $0x10d4] sm:$0xf0]  ;;  %v7003_v11 = vld [vmem:[#allocation3 + $0x1188] sm:$0xf] }
 0x1aa   :  { %4223 = vmatpush.bf16.msra.mxu1 %v6492_v0  ;;  %4236 = vmatpush.bf16.msra.mxu2 %v6620_v2  ;;  %v6699_v0 = vld [vmem:[#allocation3 + $0xf28] sm:$0xf]  ;;  %v7544_v2 = vld [vmem:[#allocation3 + $0xf34] sm:$0xf0] }
 0x1ab   :  { %4249 = vmatpush.bf16.msra.mxu3 %v6748_v6  ;;  %v6444_v6 = vor.u32 %v7480_v57, %v6443_v55  ;;  %v6700_v15 = vor.u32 %v7544_v2, %v6699_v0  ;;  %v3997_v28 = vpop.f32.mrf.mxu3  ;;  %v4861_v55 = vld [vmem:[#allocation3 + $0xd8] sm:$0xf0]  ;;  %v6891_v0 = vld [vmem:[#allocation3 + $0x10a8] sm:$0xf]  ;;  %v7592_v2 = vld [vmem:[#allocation3 + $0x10b4] sm:$0xf0] }
 0x1ac   :  { %4211 = vmatpush.bf16.msra.mxu0 %v6348_v20  ;;  %v6923_v20 = vld [vmem:[#allocation3 + $0x10e8] sm:$0xf]  ;;  %v4864_v61 = vor.u32 %v7082_v54, %v4861_v55  ;;  %v7624_v5 = vld [vmem:[#allocation3 + $0x11b4] sm:$0xf0]  ;;  %v6892_v14 = vor.u32 %v7592_v2, %v6891_v0  ;;  %v4829_v28 = vld [vmem:[#allocation3 + $0x98] sm:$0xf0] }
 0x1ad   :  { %v7588_v19 = vld [vmem:[#allocation3 + $0x1094] sm:$0xf0]  ;;  %v7102_v54 = vld [vmem:[#allocation3 + $0x16c] sm:$0xf]  ;;  %v4941_v55 = vld [vmem:[#allocation3 + $0x178] sm:$0xf0] }
 0x1ae   :  { %4224 = vmatpush.bf16.msra.mxu1 %v6476_v24  ;;  %4237 = vmatpush.bf16.msra.mxu2 %v6604_v25  ;;  %v7600_v24 = vld [vmem:[#allocation3 + $0x10f4] sm:$0xf0]  ;;  %v7051_v25 = vld [vmem:[#allocation3 + $0x11e8] sm:$0xf]  ;;  %v4944_v0 = vor.u32 %v7102_v54, %v4941_v55 }
 0x1af   :  { %4250 = vmatpush.bf16.msra.mxu3 %v6732_v34  ;;  %v7086_v34 = vld [vmem:[#allocation3 + $0xec] sm:$0xf]  ;;  %v6924_v40 = vor.u32 %v7600_v24, %v6923_v20  ;;  %v7052_v42 = vor.u32 %v7632_v29, %v7051_v25  ;;  %v4976_v20 = vor.u32 %v7110_v7, %v4973_v8  ;;  %v7620_v24 = vld [vmem:[#allocation3 + $0x1194] sm:$0xf0]  ;;  %v4925_v8 = vld [vmem:[#allocation3 + $0x158] sm:$0xf0] }
 0x1b0   :  { %4212 = vmatpush.bf16.msra.mxu0 %v6332_v44  ;;  %v4880_v43 = vor.u32 %v7086_v34, %v4877_v35  ;;  %v6907_v44 = vld [vmem:[#allocation3 + $0x10c8] sm:$0xf]  ;;  %v7074_v25 = vld [vmem:[#allocation3 + $0x8c] sm:$0xf]  ;;  %v4957_v34 = vld [vmem:[#allocation3 + $0x198] sm:$0xf0] }
 0x1b1   :  { %v6908_v57 = vor.u32 %v7596_v45, %v6907_v44  ;;  %v7106_v29 = vld [vmem:[#allocation3 + $0x18c] sm:$0xf]  ;;  %v4568_v35 = vrot.slane %v4567_v10, 4 }
 0x1b2   :  { %4225 = vmatpush.bf16.msra.mxu1 %v6460_v51  ;;  %4238 = vmatpush.bf16.msra.mxu2 %v6588_v52  ;;  %v7035_v51 = vld [vmem:[#allocation3 + $0x11c8] sm:$0xf]  ;;  %v5008_v52 = vor.u32 %v7118_v41, %v5005_v26  ;;  %v7004_v26 = vor.u32 %v7620_v24, %v7003_v11  ;;  %v4960_v44 = vor.u32 %v7106_v29, %v4957_v34  ;;  %v7098_v7 = vld [vmem:[#allocation3 + $0x14c] sm:$0xf]  ;;  %v7576_v24 = vld [vmem:[#allocation3 + $0x1034] sm:$0xf0] }
 0x1b3   :  { %4251 = vmatpush.bf16.msra.mxu3 %v6716_v56  ;;  %v4989_v56 = vld [vmem:[#allocation3 + $0x1d8] sm:$0xf0]  ;;  %v7036_v59 = vor.u32 %v7628_v53, %v7035_v51  ;;  %v7616_v51 = vld [vmem:[#allocation3 + $0x1174] sm:$0xf0]  ;;  %v7062_v29 = vld [vmem:[#allocation3 + $0x2c] sm:$0xf] }
 0x1b4   :  { %4213 = vmatpush.bf16.msra.mxu0 %v6316_v3  ;;  %v7019_v3 = vld [vmem:[#allocation3 + $0x11a8] sm:$0xf]  ;;  %v4992_v4 = vor.u32 %v7114_v60, %v4989_v56  ;;  %v4813_v53 = vld [vmem:[#allocation3 + $0x78] sm:$0xf0]  ;;  %v4569_v60 = vadd.f32 %v4568_v35, %v4567_v10  ;;  %v7094_v35 = vld [vmem:[#allocation3 + $0x12c] sm:$0xf] }
 0x1b5   :  { %v4781_v34 = vld [vmem:[#allocation3 + $0x38] sm:$0xf0] }
 0x1b6   :  { %4226 = vmatpush.bf16.msra.mxu1 %v6444_v6  ;;  %4239 = vmatpush.bf16.msra.mxu2 %v6572_v58  ;;  %v7078_v6 = vld [vmem:[#allocation3 + $0xac] sm:$0xf]  ;;  %v4845_v58 = vld [vmem:[#allocation3 + $0xb8] sm:$0xf0] }
 0x1b7   :  { %4252 = vmatpush.bf16.msra.mxu3 %v6700_v15  ;;  %v7020_v15 = vor.u32 %v7624_v5, %v7019_v3  ;;  %v4848_v17 = vor.u32 %v7078_v6, %v4845_v58  ;;  %v7612_v3 = vld [vmem:[#allocation3 + $0x1154] sm:$0xf0]  ;;  %v4797_v5 = vld [vmem:[#allocation3 + $0x58] sm:$0xf0] }
 0x1b8   :  { %4214 = vmatpush.bf16.msra.mxu0 %v6300_v63  ;;  %v4008_v63 = vpop.f32.mrf.mxu0 }
 0x1ba   :  { %4227 = vmatpush.bf16.msra.mxu1 %v6428_v36  ;;  %4240 = vmatpush.bf16.msra.mxu2 %v6556_v37  ;;  %v4009_v36 = vadd.f32 %v4008_v63, %v7936_v46  ;;  %v6876_v37 = vor.u32 %v7588_v19, %v6875_v18  ;;  %v4021_v41 = vpop.f32.mrf.mxu1  ;;  %v4928_v63 = vor.u32 %v7098_v7, %v4925_v8  ;;  %v7246_v7 = vld [vmem:[#allocation3 + $0x5ec] sm:$0xf]  ;;  %v5517_v8 = vld [vmem:[#allocation3 + $0x5f8] sm:$0xf0] }
 0x1bb   :  { %4253 = vmatpush.bf16.msra.mxu3 %v6684_v38  ;;  %4215 = vmatmul.bf16.vlgmr.msra.gmra.mxu0 %v7862_v47  ;;  %v4832_v38 = vor.u32 %v7074_v25, %v4829_v28  ;;  %v6955_v25 = vld [vmem:[#allocation3 + $0x1128] sm:$0xf]  ;;  %v7608_v28 = vld [vmem:[#allocation3 + $0x1134] sm:$0xf0] }
 0x1bc   :  { %4259 = vmatpush.bf16.msrb.mxu0 %v6924_v40  ;;  %v6859_v40 = vld [vmem:[#allocation3 + $0x1068] sm:$0xf]  ;;  %v4022_v45 = vadd.f32 %v4021_v41, %v4009_v36 }
 0x1bd   :  { %4241 = vmatmul.bf16.vlgmr.msra.gmra.mxu2 %v7864_v48  ;;  %4228 = vmatmul.bf16.vlgmr.msra.gmra.mxu1 %v7866_v49  ;;  %v6811_v41 = vld [vmem:[#allocation3 + $0x1008] sm:$0xf] }
 0x1be   :  { %4272 = vmatpush.bf16.msrb.mxu1 %v7052_v42  ;;  %4285 = vmatpush.bf16.msrb.mxu2 %v4880_v43  ;;  %v7584_v42 = vld [vmem:[#allocation3 + $0x1074] sm:$0xf0]  ;;  %v6987_v43 = vld [vmem:[#allocation3 + $0x1168] sm:$0xf] }
 0x1bf   :  { %4298 = vmatpush.bf16.msrb.mxu3 %v5008_v52  ;;  %v7070_v52 = vld [vmem:[#allocation3 + $0x6c] sm:$0xf]  ;;  %v6860_v46 = vor.u32 %v7584_v42, %v6859_v40  ;;  %v6988_v56 = vor.u32 %v7616_v51, %v6987_v43  ;;  %v7572_v40 = vld [vmem:[#allocation3 + $0x1014] sm:$0xf0]  ;;  %v6939_v42 = vld [vmem:[#allocation3 + $0x1108] sm:$0xf]  ;;  %v6956_v43 = vor.u32 %v7608_v28, %v6955_v25 }
 0x1c0   :  { %4254 = vmatmul.bf16.vlgmr.msra.gmra.mxu3 %v7868_v50  ;;  %4260 = vmatpush.bf16.msrb.mxu0 %v6908_v57  ;;  %v4816_v1 = vor.u32 %v7070_v52, %v4813_v53  ;;  %v6843_v57 = vld [vmem:[#allocation3 + $0x1048] sm:$0xf]  ;;  %v4034_v2 = vpop.f32.mrf.mxu2  ;;  %v4010_v10 = vpop.f32.mrf.mxu0  ;;  %v7058_v51 = vld [vmem:[#allocation3 + $0xc] sm:$0xf]  ;;  %v4765_v52 = vld [vmem:[#allocation3 + $0x18] sm:$0xf0] }
 0x1c1   :  { %v4035_v6 = vadd.f32 %v4034_v2, %v4022_v45  ;;  %v7604_v45 = vld [vmem:[#allocation3 + $0x1114] sm:$0xf0]  ;;  %v7178_v25 = vld [vmem:[#allocation3 + $0x3cc] sm:$0xf]  ;;  %v5245_v28 = vld [vmem:[#allocation3 + $0x3d8] sm:$0xf0] }
 0x1c2   :  { %4273 = vmatpush.bf16.msrb.mxu1 %v7036_v59  ;;  %4286 = vmatpush.bf16.msrb.mxu2 %v4864_v61  ;;  %v7580_v59 = vld [vmem:[#allocation3 + $0x1054] sm:$0xf0]  ;;  %v6971_v61 = vld [vmem:[#allocation3 + $0x1148] sm:$0xf]  ;;  %v4023_v18 = vpop.f32.mrf.mxu1 }
 0x1c3   :  { %4299 = vmatpush.bf16.msrb.mxu3 %v4992_v4  ;;  %v7066_v4 = vld [vmem:[#allocation3 + $0x4c] sm:$0xf]  ;;  %v4047_v58 = vpop.f32.mrf.mxu3  ;;  %v6972_v11 = vor.u32 %v7612_v3, %v6971_v61 }
 0x1c4   :  { %4261 = vmatpush.bf16.msrb.mxu0 %v6892_v14  ;;  %v4570_v14 = vrot.slane %v4569_v60, 2  ;;  %v7955_v19 = vadd.f32 %v4047_v58, %v4035_v6  ;;  %v7182_v61 = vld [vmem:[#allocation3 + $0x3ec] sm:$0xf]  ;;  %v5389_v6 = vld [vmem:[#allocation3 + $0x4f8] sm:$0xf0]  ;;  %v6940_v58 = vor.u32 %v7604_v45, %v6939_v42 }
 0x1c5   :  { %v7146_v18 = vld [vmem:[#allocation3 + $0x2cc] sm:$0xf] }
 0x1c6   :  { %4274 = vmatpush.bf16.msrb.mxu1 %v7020_v15  ;;  %4287 = vmatpush.bf16.msrb.mxu2 %v4848_v17  ;;  %v6844_v15 = vor.u32 %v7580_v59, %v6843_v57  ;;  %v6827_v17 = vld [vmem:[#allocation3 + $0x1028] sm:$0xf]  ;;  %v4527_v36 = vsel %vm4519_vm0, %v7955_v19, 0.0  ;;  %v4571_v53 = vadd.f32 %v4570_v14, %v4569_v60  ;;  %v5133_v59 = vld [vmem:[#allocation3 + $0x2f8] sm:$0xf0]  ;;  %v4768_v60 = vor.u32 %v7058_v51, %v4765_v52 }
 0x1c7   :  { %4300 = vmatpush.bf16.msrb.mxu3 %v4976_v20  ;;  %v4800_v20 = vor.u32 %v7066_v4, %v4797_v5  ;;  %v6812_v4 = vor.u32 %v7572_v40, %v6811_v41  ;;  %v7214_v5 = vld [vmem:[#allocation3 + $0x4ec] sm:$0xf]  ;;  %v5248_v40 = vor.u32 %v7178_v25, %v5245_v28  ;;  %v7657_v52 = vld [vmem:[#allocation1] sm:$0xff] }
 0x1c8   :  { %4262 = vmatpush.bf16.msrb.mxu0 %v6876_v37  ;;  %v4909_v37 = vld [vmem:[#allocation3 + $0x138] sm:$0xf0]  ;;  %v4036_v57 = vpop.f32.mrf.mxu2  ;;  %v4572_v10 = vrot.slane %v4571_v53, 1  ;;  %v7174_v45 = vld [vmem:[#allocation3 + $0x3ac] sm:$0xf] }
 0x1c9   :  { %v4912_v55 = vor.u32 %v7094_v35, %v4909_v37  ;;  %v5373_v35 = vld [vmem:[#allocation3 + $0x4d8] sm:$0xf0]  ;;  %v7166_v28 = vld [vmem:[#allocation3 + $0x36c] sm:$0xf] }
 0x1ca   :  { %4275 = vmatpush.bf16.msrb.mxu1 %v7004_v26  ;;  %4288 = vmatpush.bf16.msrb.mxu2 %v4832_v38  ;;  %v4528_v26 = vrot.slane %v4527_v36, 4  ;;  %v6828_v38 = vor.u32 %v7576_v24, %v6827_v17  ;;  %v5117_v24 = vld [vmem:[#allocation3 + $0x2d8] sm:$0xf0]  ;;  %v4573_v41 = vadd.f32 %v4572_v10, %v4571_v53 }
 0x1cb   :  { %4301 = vmatpush.bf16.msrb.mxu3 %v4960_v44  ;;  %v4784_v44 = vor.u32 %v7062_v29, %v4781_v34  ;;  %v4049_v2 = vpop.f32.mrf.mxu3  ;;  %v5520_v29 = vor.u32 %v7246_v7, %v5517_v8  ;;  %v7210_v34 = vld [vmem:[#allocation3 + $0x4cc] sm:$0xf]  ;;  %v5501_v37 = vld [vmem:[#allocation3 + $0x5d8] sm:$0xf0] }
 0x1cc   :  { %4263 = vmatpush.bf16.msrb.mxu0 %v6860_v46  ;;  %v4529_v54 = vadd.f32 %v4528_v26, %v4527_v36  ;;  %v7090_v46 = vld [vmem:[#allocation3 + $0x10c] sm:$0xf]  ;;  %v5376_v42 = vor.u32 %v7210_v34, %v5373_v35  ;;  %v5357_v53 = vld [vmem:[#allocation3 + $0x4b8] sm:$0xf0] }
 0x1cd   :  { %v7242_v36 = vld [vmem:[#allocation3 + $0x5cc] sm:$0xf]  ;;  %v5485_v57 = vld [vmem:[#allocation3 + $0x5b8] sm:$0xf0] }
 0x1ce   :  { %4276 = vmatpush.bf16.msrb.mxu1 %v6988_v56  ;;  %4289 = vmatpush.bf16.msrb.mxu2 %v4816_v1  ;;  %v4893_v56 = vld [vmem:[#allocation3 + $0x118] sm:$0xf0]  ;;  %v7150_v1 = vld [vmem:[#allocation3 + $0x2ec] sm:$0xf]  ;;  %v4530_v3 = vrot.slane %v4529_v54, 2 }
 0x1cf   :  { %4302 = vmatpush.bf16.msrb.mxu3 %v4944_v0  ;;  %v5261_v0 = vld [vmem:[#allocation3 + $0x3f8] sm:$0xf0]  ;;  %v5136_v17 = vor.u32 %v7150_v1, %v5133_v59  ;;  %v7238_v1 = vld [vmem:[#allocation3 + $0x5ac] sm:$0xf]  ;;  %v4595_v59 = vmul.f32 %v4573_v41, %v7941_v62 }
 0x1d0   :  { %4264 = vmatpush.bf16.msrb.mxu0 %v6844_v15  ;;  %v4531_v14 = vadd.f32 %v4530_v3, %v4529_v54  ;;  %v4896_v15 = vor.u32 %v7090_v46, %v4893_v56  ;;  %v5504_v54 = vor.u32 %v7242_v36, %v5501_v37  ;;  %v7206_v46 = vld [vmem:[#allocation3 + $0x4ac] sm:$0xf]  ;;  %v7658_v56 = vld [vmem:[#allocation1 + $0x9] sm:$0xff]  ;;  %v5469_v10 = vld [vmem:[#allocation3 + $0x598] sm:$0xf0] }
 0x1d1   :  { %v5360_v3 = vor.u32 %v7206_v46, %v5357_v53  ;;  %v7202_v7 = vld [vmem:[#allocation3 + $0x48c] sm:$0xf]  ;;  %v5069_v25 = vld [vmem:[#allocation3 + $0x278] sm:$0xf0] }
 0x1d2   :  { %4277 = vmatpush.bf16.msrb.mxu1 %v6972_v11  ;;  %4290 = vmatpush.bf16.msrb.mxu2 %v4800_v20  ;;  %v5264_v11 = vor.u32 %v7182_v61, %v5261_v0  ;;  %v5392_v20 = vor.u32 %v7214_v5, %v5389_v6  ;;  %v5085_v5 = vld [vmem:[#allocation3 + $0x298] sm:$0xf0]  ;;  %v7170_v6 = vld [vmem:[#allocation3 + $0x38c] sm:$0xf] }
 0x1d3   :  { %4303 = vmatpush.bf16.msrb.mxu3 %v4928_v63  ;;  %v4532_v63 = vrot.slane %v4531_v14, 1  ;;  %v7234_v8 = vld [vmem:[#allocation3 + $0x58c] sm:$0xf]  ;;  %v5197_v34 = vld [vmem:[#allocation3 + $0x378] sm:$0xf0] }
 0x1d4   :  { %4265 = vmatpush.bf16.msrb.mxu0 %v6828_v38  ;;  %v5120_v38 = vor.u32 %v7146_v18, %v5117_v24  ;;  %v7198_v35 = vld [vmem:[#allocation3 + $0x46c] sm:$0xf]  ;;  %v5325_v36 = vld [vmem:[#allocation3 + $0x478] sm:$0xf0] }
 0x1d5   :  { %v4533_v26 = vadd.f32 %v4532_v63, %v4531_v14  ;;  %v7968_v14 = vadd.f32 1e-05, %v4595_v59  ;;  %v7230_v41 = vld [vmem:[#allocation3 + $0x56c] sm:$0xf]  ;;  %v5181_v46 = vld [vmem:[#allocation3 + $0x358] sm:$0xf0] }
 0x1d6   :  { %4278 = vmatpush.bf16.msrb.mxu1 %v6956_v43  ;;  %4291 = vmatpush.bf16.msrb.mxu2 %v4784_v44  ;;  %v7142_v43 = vld [vmem:[#allocation3 + $0x2ac] sm:$0xf]  ;;  %v5101_v44 = vld [vmem:[#allocation3 + $0x2b8] sm:$0xf0] }
 0x1d7   :  { %4304 = vmatpush.bf16.msrb.mxu3 %v4912_v55  ;;  %v4556_v51 = vmul.f32 %v7941_v62, %v4533_v26  ;;  %v5229_v55 = vld [vmem:[#allocation3 + $0x3b8] sm:$0xf0]  ;;  %v5104_v0 = vor.u32 %v7142_v43, %v5101_v44  ;;  %7643 = vrsqrt.f32 %v7968_v14  ;;  %v5200_v44 = vor.u32 %v7166_v28, %v5197_v34  ;;  %v7194_v53 = vld [vmem:[#allocation3 + $0x44c] sm:$0xf] }
 0x1d8   :  { %4266 = vmatpush.bf16.msrb.mxu0 %v6812_v4  ;;  %v5232_v2 = vor.u32 %v7174_v45, %v5229_v55  ;;  %v7138_v4 = vld [vmem:[#allocation3 + $0x28c] sm:$0xf]  ;;  %v4060_v18 = vpop.f32.mrf.mxu0  ;;  %v5453_v26 = vld [vmem:[#allocation3 + $0x578] sm:$0xf0]  ;;  %v5328_v45 = vor.u32 %v7198_v35, %v5325_v36  ;;  %vm4609_vm6 = vweird.f32 %v7968_v14 }
 0x1d9   :  { %v7963_v61 = vsub.f32 %v7955_v19, %v4556_v51  ;;  %v5341_v19 = vld [vmem:[#allocation3 + $0x498] sm:$0xf0]  ;;  %v5456_v55 = vor.u32 %v7230_v41, %v5453_v26  ;;  %v7122_v28 = vld [vmem:[#allocation3 + $0x20c] sm:$0xf] }
 0x1da   :  { %4279 = vmatpush.bf16.msrb.mxu1 %v6940_v58  ;;  %4292 = vmatpush.bf16.msrb.mxu2 %v4768_v60  ;;  %v5213_v60 = vld [vmem:[#allocation3 + $0x398] sm:$0xf0]  ;;  %v5344_v24 = vor.u32 %v7202_v7, %v5341_v19  ;;  %v4073_v63 = vpop.f32.mrf.mxu1  ;;  %v7158_v19 = vld [vmem:[#allocation3 + $0x32c] sm:$0xf] }
 0x1db   :  { %4305 = vmatpush.bf16.msrb.mxu3 %v4896_v15  ;;  %4267 = vmatmul.bf16.vlgmr.msrb.gmra.mxu0 %v7657_v52  ;;  %v4564_v58 = vmul.f32 %v7963_v61, %v7963_v61  ;;  %v5088_v15 = vor.u32 %v7138_v4, %v5085_v5  ;;  %v5053_v51 = vld [vmem:[#allocation3 + $0x258] sm:$0xf0]  ;;  %v7162_v52 = vld [vmem:[#allocation3 + $0x34c] sm:$0xf] }
 0x1dc   :  { %4311 = vmatpush.bf16.msra.mxu0 %v5136_v17  ;;  %v7134_v17 = vld [vmem:[#allocation3 + $0x26c] sm:$0xf]  ;;  %v5037_v7 = vld [vmem:[#allocation3 + $0x238] sm:$0xf0] }
 0x1dd   :  { %4280 = vmatmul.bf16.vlgmr.msrb.gmra.mxu1 %v7658_v56  ;;  %4293 = vmatmul.bf16.vlgmr.msrb.gmra.mxu2 %v7825_v22  ;;  %v5488_v22 = vor.u32 %v7238_v1, %v5485_v57  ;;  %v5309_v56 = vld [vmem:[#allocation3 + $0x458] sm:$0xf0]  ;;  %v7126_v4 = vld [vmem:[#allocation3 + $0x22c] sm:$0xf] }
 0x1de   :  { %4324 = vmatpush.bf16.msra.mxu1 %v5264_v11  ;;  %4337 = vmatpush.bf16.msra.mxu2 %v5392_v20  ;;  %v5216_v20 = vor.u32 %v7170_v6, %v5213_v60  ;;  %v5312_v60 = vor.u32 %v7194_v53, %v5309_v56  ;;  %v7186_v41 = vld [vmem:[#allocation3 + $0x40c] sm:$0xf]  ;;  %v5277_v26 = vld [vmem:[#allocation3 + $0x418] sm:$0xf0] }
 0x1df   :  { %4350 = vmatpush.bf16.msra.mxu3 %v5520_v29  ;;  %v5472_v29 = vor.u32 %v7234_v8, %v5469_v10  ;;  %v5773_v53 = vld [vmem:[#allocation3 + $0x7f8] sm:$0xf0]  ;;  %v7342_v56 = vld [vmem:[#allocation3 + $0x8ec] sm:$0xf] }
 0x1e0   :  { %4312 = vmatpush.bf16.msra.mxu0 %v5120_v38  ;;  %4306 = vmatmul.bf16.vlgmr.msrb.gmra.mxu3 %v7830_v27  ;;  %v4574_v27 = vsel %vm4519_vm0, %v4564_v58, 0.0  ;;  %v4074_v38 = vadd.f32 %v4073_v63, %v4060_v18  ;;  %v4062_v6 = vpop.f32.mrf.mxu0  ;;  %v7974_v18 = vpop.eup %7643  ;;  %v5021_v63 = vld [vmem:[#allocation3 + $0x218] sm:$0xf0] }
 0x1e1   :  { %v4575_v11 = vrot.slane %v4574_v27, 4  ;;  %vm4610_vm3 = vweird.f32 %v7974_v18 }
 0x1e2   :  { %4325 = vmatpush.bf16.msra.mxu1 %v5248_v40  ;;  %4338 = vmatpush.bf16.msra.mxu2 %v5376_v42  ;;  %v5072_v40 = vor.u32 %v7134_v17, %v5069_v25  ;;  %v7130_v42 = vld [vmem:[#allocation3 + $0x24c] sm:$0xf]  ;;  %v4075_v8 = vpop.f32.mrf.mxu1  ;;  %v5293_v17 = vld [vmem:[#allocation3 + $0x438] sm:$0xf0]  ;;  %v5040_v25 = vor.u32 %v7126_v4, %v5037_v7  ;;  %vm8004_vm8 = vmor %vm4609_vm6, %vm4610_vm3 }
 0x1e3   :  { %4351 = vmatpush.bf16.msra.mxu3 %v5504_v54  ;;  %v4576_v37 = vadd.f32 %v4575_v11, %v4574_v27  ;;  %v4086_v54 = vpop.f32.mrf.mxu2  ;;  %v4099_v57 = vpop.f32.mrf.mxu3  ;;  %v5165_v27 = vld [vmem:[#allocation3 + $0x338] sm:$0xf0] }
 0x1e4   :  { %4313 = vmatpush.bf16.msra.mxu0 %v5104_v0  ;;  %v4087_v1 = vadd.f32 %v4086_v54, %v4074_v38  ;;  %v7226_v0 = vld [vmem:[#allocation3 + $0x54c] sm:$0xf]  ;;  %v5168_v35 = vor.u32 %v7158_v19, %v5165_v27  ;;  %v5645_v54 = vld [vmem:[#allocation3 + $0x6f8] sm:$0xf0] }
 0x1e5   :  { %v4577_v43 = vrot.slane %v4576_v37, 2  ;;  %v5629_v7 = vld [vmem:[#allocation3 + $0x6d8] sm:$0xf0]  ;;  %v7306_v19 = vld [vmem:[#allocation3 + $0x7cc] sm:$0xf] }
 0x1e6   :  { %4326 = vmatpush.bf16.msra.mxu1 %v5232_v2  ;;  %4339 = vmatpush.bf16.msra.mxu2 %v5360_v3  ;;  %v5437_v2 = vld [vmem:[#allocation3 + $0x558] sm:$0xf0]  ;;  %v5056_v3 = vor.u32 %v7130_v42, %v5053_v51  ;;  %v7972_v5 = vadd.f32 %v4099_v57, %v4087_v1  ;;  %v7338_v27 = vld [vmem:[#allocation3 + $0x8cc] sm:$0xf] }
 0x1e7   :  { %4352 = vmatpush.bf16.msra.mxu3 %v5488_v22  ;;  %v4578_v59 = vadd.f32 %v4577_v43, %v4576_v37  ;;  %v5184_v22 = vor.u32 %v7162_v52, %v5181_v46  ;;  %v5440_v10 = vor.u32 %v7226_v0, %v5437_v2  ;;  %v5149_v37 = vld [vmem:[#allocation3 + $0x318] sm:$0xf0]  ;;  %v7218_v43 = vld [vmem:[#allocation3 + $0x50c] sm:$0xf]  ;;  %v5024_v46 = vor.u32 %v7122_v28, %v5021_v63 }
 0x1e8   :  { %4314 = vmatpush.bf16.msra.mxu0 %v5088_v15  ;;  %v7190_v15 = vld [vmem:[#allocation3 + $0x42c] sm:$0xf]  ;;  %v5901_v1 = vld [vmem:[#allocation3 + $0x8f8] sm:$0xf0] }
 0x1e9   :  { %v4579_v58 = vrot.slane %v4578_v59, 1  ;;  %v5296_v36 = vor.u32 %v7190_v15, %v5293_v17  ;;  %v7374_v0 = vld [vmem:[#allocation3 + $0x9ec] sm:$0xf]  ;;  %v6029_v2 = vld [vmem:[#allocation3 + $0x9f8] sm:$0xf0] }
 0x1ea   :  { %4327 = vmatpush.bf16.msra.mxu1 %v5216_v20  ;;  %4340 = vmatpush.bf16.msra.mxu2 %v5344_v24  ;;  %v7222_v20 = vld [vmem:[#allocation3 + $0x52c] sm:$0xf]  ;;  %v5421_v24 = vld [vmem:[#allocation3 + $0x538] sm:$0xf0]  ;;  %v6032_v8 = vor.u32 %v7374_v0, %v6029_v2 }
 0x1eb   :  { %4353 = vmatpush.bf16.msra.mxu3 %v5472_v29  ;;  %v4580_v11 = vadd.f32 %v4579_v58, %v4578_v59  ;;  %v7154_v29 = vld [vmem:[#allocation3 + $0x30c] sm:$0xf]  ;;  %v4088_v38 = vpop.f32.mrf.mxu2  ;;  %v5424_v42 = vor.u32 %v7222_v20, %v5421_v24  ;;  %v4101_v51 = vpop.f32.mrf.mxu3  ;;  %v5280_v59 = vor.u32 %v7186_v41, %v5277_v26  ;;  %v5885_v15 = vld [vmem:[#allocation3 + $0x8d8] sm:$0xf0] }
 0x1ec   :  { %4315 = vmatpush.bf16.msra.mxu0 %v5072_v40  ;;  %v4604_v40 = vmul.f32 %v7974_v18, %v7968_v14  ;;  %v5152_v57 = vor.u32 %v7154_v29, %v5149_v37  ;;  %v7370_v17 = vld [vmem:[#allocation3 + $0x9cc] sm:$0xf]  ;;  %v5888_v63 = vor.u32 %v7338_v27, %v5885_v15  ;;  %v5741_v41 = vld [vmem:[#allocation3 + $0x7b8] sm:$0xf0] }
 0x1ed   :  { %v4596_v34 = vmul.f32 %v4580_v11, %v7941_v62  ;;  %v6013_v11 = vld [vmem:[#allocation3 + $0x9d8] sm:$0xf0]  ;;  %v7270_v29 = vld [vmem:[#allocation3 + $0x6ac] sm:$0xf] }
 0x1ee   :  { %4328 = vmatpush.bf16.msra.mxu1 %v5200_v44  ;;  %4341 = vmatpush.bf16.msra.mxu2 %v5328_v45  ;;  %v5405_v44 = vld [vmem:[#allocation3 + $0x518] sm:$0xf0]  ;;  %v7278_v45 = vld [vmem:[#allocation3 + $0x6ec] sm:$0xf]  ;;  %v6016_v37 = vor.u32 %v7370_v17, %v6013_v11 }
 0x1ef   :  { %4354 = vmatpush.bf16.msra.mxu3 %v5456_v55  ;;  %v7979_v52 = vadd.f32 1e-05, %v4596_v34  ;;  %v7310_v55 = vld [vmem:[#allocation3 + $0x7ec] sm:$0xf]  ;;  %v5408_v4 = vor.u32 %v7218_v43, %v5405_v44  ;;  %v5648_v6 = vor.u32 %v7278_v45, %v5645_v54  ;;  %v5613_v34 = vld [vmem:[#allocation3 + $0x6b8] sm:$0xf0] }
 0x1f0   :  { %4316 = vmatpush.bf16.msra.mxu0 %v5056_v3  ;;  %v4605_v3 = vmul.f32 %v7974_v18, %v4604_v40  ;;  %v5776_v58 = vor.u32 %v7310_v55, %v5773_v53  ;;  %v7334_v26 = vld [vmem:[#allocation3 + $0x8ac] sm:$0xf]  ;;  %v5869_v38 = vld [vmem:[#allocation3 + $0x8b8] sm:$0xf0]  ;;  %v5616_v44 = vor.u32 %v7270_v29, %v5613_v34 }
 0x1f1   :  { %7645 = vrsqrt.f32 %v7979_v52  ;;  %v7366_v40 = vld [vmem:[#allocation3 + $0x9ac] sm:$0xf]  ;;  %v5597_v54 = vld [vmem:[#allocation3 + $0x698] sm:$0xf0]  ;;  %vm4619_vm4 = vweird.f32 %v7979_v52 }
 0x1f2   :  { %4329 = vmatpush.bf16.msra.mxu1 %v5184_v22  ;;  %4342 = vmatpush.bf16.msra.mxu2 %v5312_v60  ;;  %v5904_v22 = vor.u32 %v7342_v56, %v5901_v1  ;;  %v7274_v60 = vld [vmem:[#allocation3 + $0x6cc] sm:$0xf]  ;;  %v4606_v20 = vmul.f32 0.5, %v4605_v3  ;;  %v5853_v1 = vld [vmem:[#allocation3 + $0x898] sm:$0xf0] }
 0x1f3   :  { %4355 = vmatpush.bf16.msra.mxu3 %v5440_v10  ;;  %v5757_v10 = vld [vmem:[#allocation3 + $0x7d8] sm:$0xf0]  ;;  %v5632_v24 = vor.u32 %v7274_v60, %v5629_v7  ;;  %v7266_v45 = vld [vmem:[#allocation3 + $0x68c] sm:$0xf] }
 0x1f4   :  { %4317 = vmatpush.bf16.msra.mxu0 %v5040_v25  ;;  %v5760_v28 = vor.u32 %v7306_v19, %v5757_v10  ;;  %v7298_v55 = vld [vmem:[#allocation3 + $0x78c] sm:$0xf]  ;;  %v4607_v53 = vsub.f32 1.5, %v4606_v20  ;;  %v5709_v27 = vld [vmem:[#allocation3 + $0x778] sm:$0xf0] }
 0x1f5   :  { %v7330_v56 = vld [vmem:[#allocation3 + $0x88c] sm:$0xf]  ;;  %v5837_v17 = vld [vmem:[#allocation3 + $0x878] sm:$0xf0] }
 0x1f6   :  { %4330 = vmatpush.bf16.msra.mxu1 %v5168_v35  ;;  %4343 = vmatpush.bf16.msra.mxu2 %v5296_v36  ;;  %v7302_v35 = vld [vmem:[#allocation3 + $0x7ac] sm:$0xf]  ;;  %v4608_v19 = vmul.f32 %v7974_v18, %v4607_v53  ;;  %v5965_v20 = vld [vmem:[#allocation3 + $0x978] sm:$0xf0] }
 0x1f7   :  { %4356 = vmatpush.bf16.msra.mxu3 %v5424_v42  ;;  %v7983_v25 = vpop.eup %7645  ;;  %v5997_v42 = vld [vmem:[#allocation3 + $0x9b8] sm:$0xf0]  ;;  %v5744_v51 = vor.u32 %v7302_v35, %v5741_v41  ;;  %v7326_v15 = vld [vmem:[#allocation3 + $0x86c] sm:$0xf] }
 0x1f8   :  { %4318 = vmatpush.bf16.msra.mxu0 %v5024_v46  ;;  %v4614_v36 = vmul.f32 %v7983_v25, %v7979_v52  ;;  %v5725_v46 = vld [vmem:[#allocation3 + $0x798] sm:$0xf0]  ;;  %vm4620_vm2 = vweird.f32 %v7983_v25  ;;  %v4112_v2 = vpop.f32.mrf.mxu0  ;;  %v7358_v11 = vld [vmem:[#allocation3 + $0x96c] sm:$0xf]  ;;  %v5840_v35 = vor.u32 %v7326_v15, %v5837_v17 }
 0x1f9   :  { %v5728_v3 = vor.u32 %v7298_v55, %v5725_v46  ;;  %v4113_v60 = vadd.f32 %v4112_v2, %v7972_v5  ;;  %vm4621_vm5 = vmor %vm4619_vm4, %vm4620_vm2  ;;  %v5693_v41 = vld [vmem:[#allocation3 + $0x758] sm:$0xf0]  ;;  %v7346_v15 = vld [vmem:[#allocation3 + $0x90c] sm:$0xf] }
 0x1fa   :  { %4331 = vmatpush.bf16.msra.mxu1 %v5152_v57  ;;  %4344 = vmatpush.bf16.msra.mxu2 %v5280_v59  ;;  %v4615_v43 = vmul.f32 %v7983_v25, %v4614_v36  ;;  %v7362_v57 = vld [vmem:[#allocation3 + $0x98c] sm:$0xf]  ;;  %v5981_v59 = vld [vmem:[#allocation3 + $0x998] sm:$0xf0]  ;;  %v4125_v7 = vpop.f32.mrf.mxu1 }
 0x1fb   :  { %4357 = vmatpush.bf16.msra.mxu3 %v5408_v4  ;;  %4319 = vmatmul.bf16.vlgmr.msra.gmra.mxu0 %v7823_v21  ;;  %v5856_v4 = vor.u32 %v7330_v56, %v5853_v1  ;;  %v5984_v10 = vor.u32 %v7362_v57, %v5981_v59  ;;  %v5565_v36 = vld [vmem:[#allocation3 + $0x658] sm:$0xf0]  ;;  %v7286_v56 = vld [vmem:[#allocation3 + $0x72c] sm:$0xf] }
 0x1fc   :  { %4363 = vmatpush.bf16.msrb.mxu0 %v5648_v6  ;;  %v4616_v21 = vmul.f32 0.5, %v4615_v43  ;;  %v7262_v6 = vld [vmem:[#allocation3 + $0x66c] sm:$0xf]  ;;  %v4612_v43 = vsel %vm8004_vm8, %v7974_v18, %v4608_v19  ;;  %v5677_v57 = vld [vmem:[#allocation3 + $0x738] sm:$0xf0] }
 0x1fd   :  { %4345 = vmatmul.bf16.vlgmr.msra.gmra.mxu2 %v7837_v32  ;;  %4332 = vmatmul.bf16.vlgmr.msra.gmra.mxu1 %v7827_v23  ;;  %v5872_v32 = vor.u32 %v7334_v26, %v5869_v38  ;;  %v5600_v23 = vor.u32 %v7266_v45, %v5597_v54  ;;  %v7322_v26 = vld [vmem:[#allocation3 + $0x84c] sm:$0xf]  ;;  %v5821_v38 = vld [vmem:[#allocation3 + $0x858] sm:$0xf0] }
 0x1fe   :  { %4376 = vmatpush.bf16.msrb.mxu1 %v5776_v58  ;;  %4389 = vmatpush.bf16.msrb.mxu2 %v5904_v22  ;;  %v4617_v0 = vsub.f32 1.5, %v4616_v21  ;;  %v5581_v58 = vld [vmem:[#allocation3 + $0x678] sm:$0xf0]  ;;  %v7294_v22 = vld [vmem:[#allocation3 + $0x76c] sm:$0xf]  ;;  %v5824_v53 = vor.u32 %v7322_v26, %v5821_v38 }
 0x1ff   :  { %4402 = vmatpush.bf16.msrb.mxu3 %v6032_v8  ;;  %v5712_v34 = vor.u32 %v7294_v22, %v5709_v27  ;;  %v5949_v45 = vld [vmem:[#allocation3 + $0x958] sm:$0xf0]  ;;  %v7254_v21 = vld [vmem:[#allocation3 + $0x62c] sm:$0xf] }
 0x200   :  { %4358 = vmatmul.bf16.vlgmr.msra.gmra.mxu3 %v7841_v39  ;;  %4364 = vmatpush.bf16.msrb.mxu0 %v5632_v24  ;;  %v6000_v39 = vor.u32 %v7366_v40, %v5997_v42  ;;  %v4618_v8 = vmul.f32 %v7983_v25, %v4617_v0  ;;  %v4126_v24 = vadd.f32 %v4125_v7, %v4113_v60  ;;  %v4138_v14 = vpop.f32.mrf.mxu2  ;;  %v4114_v55 = vpop.f32.mrf.mxu0  ;;  %v7318_v59 = vld [vmem:[#allocation3 + $0x82c] sm:$0xf]  ;;  %v5805_v0 = vld [vmem:[#allocation3 + $0x838] sm:$0xf0] }
 0x201   :  { %v5933_v2 = vld [vmem:[#allocation3 + $0x938] sm:$0xf0]  ;;  %v5808_v22 = vor.u32 %v7318_v59, %v5805_v0  ;;  %v7282_v60 = vld [vmem:[#allocation3 + $0x70c] sm:$0xf] }
 0x202   :  { %4377 = vmatpush.bf16.msrb.mxu1 %v5760_v28  ;;  %4390 = vmatpush.bf16.msrb.mxu2 %v5888_v63  ;;  %v4622_v5 = vsel %vm4621_vm5, %v7983_v25, %v4618_v8  ;;  %v5584_v28 = vor.u32 %v7262_v6, %v5581_v58  ;;  %v7258_v63 = vld [vmem:[#allocation3 + $0x64c] sm:$0xf]  ;;  %v5968_v25 = vor.u32 %v7358_v11, %v5965_v20  ;;  %v4127_v1 = vpop.f32.mrf.mxu1  ;;  %v5533_v6 = vld [vmem:[#allocation3 + $0x618] sm:$0xf0] }
 0x203   :  { %4403 = vmatpush.bf16.msrb.mxu3 %v6016_v37  ;;  %v4648_v29 = vrot.slane %v4622_v5, 7  ;;  %v7290_v37 = vld [vmem:[#allocation3 + $0x74c] sm:$0xf]  ;;  %v4139_v40 = vadd.f32 %v4138_v14, %v4126_v24  ;;  %v4151_v42 = vpop.f32.mrf.mxu3  ;;  %v5680_v58 = vor.u32 %v7286_v56, %v5677_v57  ;;  %v5661_v7 = vld [vmem:[#allocation3 + $0x718] sm:$0xf0] }
 0x204   :  { %4365 = vmatpush.bf16.msrb.mxu0 %v5616_v44  ;;  %v7354_v44 = vld [vmem:[#allocation3 + $0x94c] sm:$0xf]  ;;  %v5696_v46 = vor.u32 %v7290_v37, %v5693_v41  ;;  %v5789_v27 = vld [vmem:[#allocation3 + $0x818] sm:$0xf0] }
 0x205   :  { %v8014_v54 = vadd.f32 %v4151_v42, %v4139_v40  ;;  %v5952_v18 = vor.u32 %v7354_v44, %v5949_v45  ;;  %v7314_v19 = vld [vmem:[#allocation3 + $0x80c] sm:$0xf]  ;;  %v5917_v17 = vld [vmem:[#allocation3 + $0x918] sm:$0xf0] }
 0x206   :  { %4378 = vmatpush.bf16.msrb.mxu1 %v5744_v51  ;;  %4391 = vmatpush.bf16.msrb.mxu2 %v5872_v32  ;;  %v8012_v51 = vsel %vm4651_vm7, %v4612_v43, %v4648_v29  ;;  %v5568_v32 = vor.u32 %v7258_v63, %v5565_v36  ;;  %v7406_v20 = vld [vmem:[#allocation3 + $0xaec] sm:$0xf]  ;;  %v6157_v24 = vld [vmem:[#allocation3 + $0xaf8] sm:$0xf0]  ;;  %v5920_v14 = vor.u32 %v7346_v15, %v5917_v17  ;;  %vm4744_vm7 = vcmask 1024  }
 0x207   :  { %4404 = vmatpush.bf16.msrb.mxu3 %v6000_v39  ;;  %v5549_v39 = vld [vmem:[#allocation3 + $0x638] sm:$0xf0]  ;;  %v7438_v5 = vld [vmem:[#allocation3 + $0xbec] sm:$0xf] }
 0x208   :  { %4366 = vmatpush.bf16.msrb.mxu0 %v5600_v23  ;;  %v7350_v23 = vld [vmem:[#allocation3 + $0x92c] sm:$0xf]  ;;  %v4140_v8 = vpop.f32.mrf.mxu2  ;;  %v6285_v63 = vld [vmem:[#allocation3 + $0xbf8] sm:$0xf0] }
 0x209   :  { %v7470_v52 = vld [vmem:[#allocation3 + $0xcec] sm:$0xf]  ;;  %v6413_v29 = vld [vmem:[#allocation3 + $0xcf8] sm:$0xf0]  ;;  %v6288_v41 = vor.u32 %v7438_v5, %v6285_v63 }
 0x20a   :  { %4379 = vmatpush.bf16.msrb.mxu1 %v5728_v3  ;;  %4392 = vmatpush.bf16.msrb.mxu2 %v5856_v4  ;;  %v5552_v3 = vor.u32 %v7254_v21, %v5549_v39  ;;  %v7250_v4 = vld [vmem:[#allocation3 + $0x60c] sm:$0xf]  ;;  %v6541_v37 = vld [vmem:[#allocation3 + $0xdf8] sm:$0xf0]  ;;  %v6416_v26 = vor.u32 %v7470_v52, %v6413_v29 }
 0x20b   :  { %4405 = vmatpush.bf16.msrb.mxu3 %v5984_v10  ;;  %v5936_v10 = vor.u32 %v7350_v23, %v5933_v2  ;;  %v4153_v11 = vpop.f32.mrf.mxu3  ;;  %v7502_v36 = vld [vmem:[#allocation3 + $0xdec] sm:$0xf]  ;;  %v6141_v40 = vld [vmem:[#allocation3 + $0xad8] sm:$0xf0] }
 0x20c   :  { %4367 = vmatpush.bf16.msrb.mxu0 %v5584_v28  ;;  %v5536_v28 = vor.u32 %v7250_v4, %v5533_v6  ;;  %v7402_v38 = vld [vmem:[#allocation3 + $0xacc] sm:$0xf]  ;;  %v6544_v43 = vor.u32 %v7502_v36, %v6541_v37  ;;  %v6269_v44 = vld [vmem:[#allocation3 + $0xbd8] sm:$0xf0] }
 0x20d   :  { %v7434_v42 = vld [vmem:[#allocation3 + $0xbcc] sm:$0xf]  ;;  %v6125_v1 = vld [vmem:[#allocation3 + $0xab8] sm:$0xf0] }
 0x20e   :  { %4380 = vmatpush.bf16.msrb.mxu1 %v5712_v34  ;;  %4393 = vmatpush.bf16.msrb.mxu2 %v5840_v35  ;;  %v5664_v34 = vor.u32 %v7282_v60, %v5661_v7  ;;  %v5792_v35 = vor.u32 %v7314_v19, %v5789_v27  ;;  %v7466_v45 = vld [vmem:[#allocation3 + $0xccc] sm:$0xf]  ;;  %v6272_v21 = vor.u32 %v7434_v42, %v6269_v44  ;;  %v6253_v59 = vld [vmem:[#allocation3 + $0xbb8] sm:$0xf0] }
 0x20f   :  { %4406 = vmatpush.bf16.msrb.mxu3 %v5968_v25  ;;  %v6160_v25 = vor.u32 %v7406_v20, %v6157_v24  ;;  %v7498_v55 = vld [vmem:[#allocation3 + $0xdcc] sm:$0xf]  ;;  %v6381_v23 = vld [vmem:[#allocation3 + $0xcb8] sm:$0xf0] }
 0x210   :  { %4368 = vmatpush.bf16.msrb.mxu0 %v5568_v32  ;;  %v6397_v32 = vld [vmem:[#allocation3 + $0xcd8] sm:$0xf0]  ;;  %v7398_v56 = vld [vmem:[#allocation3 + $0xaac] sm:$0xf] }
 0x211   :  { %v6400_v39 = vor.u32 %v7466_v45, %v6397_v32  ;;  %v7462_v0 = vld [vmem:[#allocation3 + $0xcac] sm:$0xf]  ;;  %v6128_v4 = vor.u32 %v7398_v56, %v6125_v1  ;;  %v6237_v19 = vld [vmem:[#allocation3 + $0xb98] sm:$0xf0] }
 0x212   :  { %4381 = vmatpush.bf16.msrb.mxu1 %v5696_v46  ;;  %4394 = vmatpush.bf16.msrb.mxu2 %v5824_v53  ;;  %v6525_v46 = vld [vmem:[#allocation3 + $0xdd8] sm:$0xf0]  ;;  %v6144_v53 = vor.u32 %v7402_v38, %v6141_v40  ;;  %v7494_v2 = vld [vmem:[#allocation3 + $0xdac] sm:$0xf] }
 0x213   :  { %4407 = vmatpush.bf16.msrb.mxu3 %v5952_v18  ;;  %v7430_v18 = vld [vmem:[#allocation3 + $0xbac] sm:$0xf]  ;;  %v6528_v57 = vor.u32 %v7498_v55, %v6525_v46  ;;  %v6493_v27 = vld [vmem:[#allocation3 + $0xd98] sm:$0xf0] }
 0x214   :  { %4369 = vmatpush.bf16.msrb.mxu0 %v5552_v3  ;;  %v6509_v3 = vld [vmem:[#allocation3 + $0xdb8] sm:$0xf0]  ;;  %v6256_v6 = vor.u32 %v7430_v18, %v6253_v59  ;;  %v7426_v60 = vld [vmem:[#allocation3 + $0xb8c] sm:$0xf] }
 0x215   :  { %v6512_v7 = vor.u32 %v7494_v2, %v6509_v3  ;;  %v7458_v8 = vld [vmem:[#allocation3 + $0xc8c] sm:$0xf]  ;;  %v6240_v11 = vor.u32 %v7426_v60, %v6237_v19  ;;  %v6093_v5 = vld [vmem:[#allocation3 + $0xa78] sm:$0xf0] }
 0x216   :  { %4382 = vmatpush.bf16.msrb.mxu1 %v5680_v58  ;;  %4395 = vmatpush.bf16.msrb.mxu2 %v5808_v22  ;;  %v6384_v58 = vor.u32 %v7462_v0, %v6381_v23  ;;  %v7394_v22 = vld [vmem:[#allocation3 + $0xa8c] sm:$0xf]  ;;  %v6221_v29 = vld [vmem:[#allocation3 + $0xb78] sm:$0xf0] }
 0x217   :  { %4408 = vmatpush.bf16.msrb.mxu3 %v5936_v10  ;;  %v7390_v24 = vld [vmem:[#allocation3 + $0xa6c] sm:$0xf]  ;;  %v6477_v37 = vld [vmem:[#allocation3 + $0xd78] sm:$0xf0] }
 0x218   :  { %4370 = vmatpush.bf16.msrb.mxu0 %v5536_v28  ;;  %v4164_v10 = vpop.f32.mrf.mxu0  ;;  %v7422_v28 = vld [vmem:[#allocation3 + $0xb6c] sm:$0xf]  ;;  %v6333_v45 = vld [vmem:[#allocation3 + $0xc58] sm:$0xf0] }
 0x219   :  { %v7486_v36 = vld [vmem:[#allocation3 + $0xd6c] sm:$0xf]  ;;  %v6061_v0 = vld [vmem:[#allocation3 + $0xa38] sm:$0xf0] }
 0x21a   :  { %4383 = vmatpush.bf16.msrb.mxu1 %v5664_v34  ;;  %4396 = vmatpush.bf16.msrb.mxu2 %v5792_v35  ;;  %v4177_v17 = vpop.f32.mrf.mxu1  ;;  %v7454_v34 = vld [vmem:[#allocation3 + $0xc6c] sm:$0xf]  ;;  %v6349_v35 = vld [vmem:[#allocation3 + $0xc78] sm:$0xf0]  ;;  %v6480_v40 = vor.u32 %v7486_v36, %v6477_v37 }
 0x21b   :  { %4409 = vmatpush.bf16.msrb.mxu3 %v5920_v14  ;;  %4371 = vmatmul.bf16.vlgmr.msrb.gmra.mxu0 %v7835_v30  ;;  %v6109_v30 = vld [vmem:[#allocation3 + $0xa98] sm:$0xf0]  ;;  %v6096_v14 = vor.u32 %v7390_v24, %v6093_v5  ;;  %v7418_v38 = vld [vmem:[#allocation3 + $0xb4c] sm:$0xf] }
 0x21c   :  { %4415 = vmatpush.bf16.msra.mxu0 %v6160_v25  ;;  %v6112_v15 = vor.u32 %v7394_v22, %v6109_v30  ;;  %v6352_v25 = vor.u32 %v7454_v34, %v6349_v35  ;;  %v7450_v44 = vld [vmem:[#allocation3 + $0xc4c] sm:$0xf]  ;;  %v6189_v3 = vld [vmem:[#allocation3 + $0xb38] sm:$0xf0] }
 0x21d   :  { %4397 = vmatmul.bf16.vlgmr.msrb.gmra.mxu2 %v7850_v9  ;;  %4384 = vmatmul.bf16.vlgmr.msrb.gmra.mxu1 %v7839_v33  ;;  %v6365_v9 = vld [vmem:[#allocation3 + $0xc98] sm:$0xf0]  ;;  %v7490_v33 = vld [vmem:[#allocation3 + $0xd8c] sm:$0xf] }
 0x21e   :  { %4428 = vmatpush.bf16.msra.mxu1 %v6288_v41  ;;  %4441 = vmatpush.bf16.msra.mxu2 %v6416_v26  ;;  %v6368_v20 = vor.u32 %v7458_v8, %v6365_v9  ;;  %v6496_v63 = vor.u32 %v7490_v33, %v6493_v27  ;;  %v7386_v41 = vld [vmem:[#allocation3 + $0xa4c] sm:$0xf]  ;;  %v6077_v26 = vld [vmem:[#allocation3 + $0xa58] sm:$0xf0] }
 0x21f   :  { %4454 = vmatpush.bf16.msra.mxu3 %v6544_v43  ;;  %v6205_v43 = vld [vmem:[#allocation3 + $0xb58] sm:$0xf0]  ;;  %v7482_v46 = vld [vmem:[#allocation3 + $0xd4c] sm:$0xf] }
 0x220   :  { %4410 = vmatmul.bf16.vlgmr.msrb.gmra.mxu3 %v7854_v13  ;;  %4416 = vmatpush.bf16.msra.mxu0 %v6144_v53  ;;  %v4165_v13 = vadd.f32 %v4164_v10, %v8014_v54  ;;  %v6224_v54 = vor.u32 %v7422_v28, %v6221_v29  ;;  %v4190_v42 = vpop.f32.mrf.mxu2  ;;  %v6461_v53 = vld [vmem:[#allocation3 + $0xd58] sm:$0xf0]  ;;  %v6208_v18 = vor.u32 %v7418_v38, %v6205_v43  ;;  %v7382_v59 = vld [vmem:[#allocation3 + $0xa2c] sm:$0xf] }
 0x221   :  { %v7414_v23 = vld [vmem:[#allocation3 + $0xb2c] sm:$0xf]  ;;  %v6464_v2 = vor.u32 %v7482_v46, %v6461_v53  ;;  %v6445_v22 = vld [vmem:[#allocation3 + $0xd38] sm:$0xf0]  ;;  %v6064_v30 = vor.u32 %v7382_v59, %v6061_v0 }
 0x222   :  { %4429 = vmatpush.bf16.msra.mxu1 %v6272_v21  ;;  %4442 = vmatpush.bf16.msra.mxu2 %v6400_v39  ;;  %v4178_v52 = vadd.f32 %v4177_v17, %v4165_v13  ;;  %v4166_v21 = vpop.f32.mrf.mxu0  ;;  %v6080_v39 = vor.u32 %v7386_v41, %v6077_v26  ;;  %v4179_v56 = vpop.f32.mrf.mxu1  ;;  %v7378_v60 = vld [vmem:[#allocation3 + $0xa0c] sm:$0xf]  ;;  %v6192_v19 = vor.u32 %v7414_v23, %v6189_v3  ;;  %v6173_v10 = vld [vmem:[#allocation3 + $0xb18] sm:$0xf0] }
 0x223   :  { %4455 = vmatpush.bf16.msra.mxu3 %v6528_v57  ;;  %v4203_v55 = vpop.f32.mrf.mxu3  ;;  %v6336_v57 = vor.u32 %v7450_v44, %v6333_v45  ;;  %v7410_v9 = vld [vmem:[#allocation3 + $0xb0c] sm:$0xf]  ;;  %v6301_v13 = vld [vmem:[#allocation3 + $0xc18] sm:$0xf0] }
 0x224   :  { %4417 = vmatpush.bf16.msra.mxu0 %v6128_v4  ;;  %v4191_v32 = vadd.f32 %v4190_v42, %v4178_v52  ;;  %v7446_v4 = vld [vmem:[#allocation3 + $0xc2c] sm:$0xf]  ;;  %v6429_v17 = vld [vmem:[#allocation3 + $0xd18] sm:$0xf0]  ;;  %v6176_v35 = vor.u32 %v7410_v9, %v6173_v10 }
 0x225   :  { %v7442_v33 = vld [vmem:[#allocation3 + $0xc0c] sm:$0xf]  ;;  %v6669_v24 = vld [vmem:[#allocation3 + $0xef8] sm:$0xf0] }
 0x226   :  { %4430 = vmatpush.bf16.msra.mxu1 %v6256_v6  ;;  %4443 = vmatpush.bf16.msra.mxu2 %v6384_v58  ;;  %v8021_v1 = vadd.f32 %v4203_v55, %v4191_v32  ;;  %v6317_v6 = vld [vmem:[#allocation3 + $0xc38] sm:$0xf0]  ;;  %v7478_v58 = vld [vmem:[#allocation3 + $0xd2c] sm:$0xf]  ;;  %v6304_v36 = vor.u32 %v7442_v33, %v6301_v13 }
 0x227   :  { %4456 = vmatpush.bf16.msra.mxu3 %v6512_v7  ;;  %v6045_v7 = vld [vmem:[#allocation3 + $0xa18] sm:$0xf0]  ;;  %v6320_v8 = vor.u32 %v7446_v4, %v6317_v6  ;;  %v6448_v27 = vor.u32 %v7478_v58, %v6445_v22  ;;  %v7566_v5 = vld [vmem:[#allocation3 + $0xfec] sm:$0xf] }
 0x228   :  { %4418 = vmatpush.bf16.msra.mxu0 %v6112_v15  ;;  %v7474_v15 = vld [vmem:[#allocation3 + $0xd0c] sm:$0xf]  ;;  %v6797_v52 = vld [vmem:[#allocation3 + $0xff8] sm:$0xf0] }
 0x229   :  { %v7598_v29 = vld [vmem:[#allocation3 + $0x10ec] sm:$0xf]  ;;  %v6925_v34 = vld [vmem:[#allocation3 + $0x10f8] sm:$0xf0]  ;;  %v6800_v41 = vor.u32 %v7566_v5, %v6797_v52 }
 0x22a   :  { %4431 = vmatpush.bf16.msra.mxu1 %v6240_v11  ;;  %4444 = vmatpush.bf16.msra.mxu2 %v6368_v20  ;;  %v4192_v11 = vpop.f32.mrf.mxu2  ;;  %v7534_v20 = vld [vmem:[#allocation3 + $0xeec] sm:$0xf]  ;;  %v6928_v26 = vor.u32 %v7598_v29, %v6925_v34  ;;  %v6781_v44 = vld [vmem:[#allocation3 + $0xfd8] sm:$0xf0] }
 0x22b   :  { %4457 = vmatpush.bf16.msra.mxu3 %v6496_v63  ;;  %v4205_v28 = vpop.f32.mrf.mxu3  ;;  %v6048_v63 = vor.u32 %v7378_v60, %v6045_v7  ;;  %v7630_v37 = vld [vmem:[#allocation3 + $0x11ec] sm:$0xf]  ;;  %v6909_v32 = vld [vmem:[#allocation3 + $0x10d8] sm:$0xf0] }
 0x22c   :  { %4419 = vmatpush.bf16.msra.mxu0 %v6096_v14  ;;  %v7053_v14 = vld [vmem:[#allocation3 + $0x11f8] sm:$0xf0]  ;;  %v7530_v38 = vld [vmem:[#allocation3 + $0xecc] sm:$0xf] }
 0x22d   :  { %v7562_v42 = vld [vmem:[#allocation3 + $0xfcc] sm:$0xf]  ;;  %v7056_v43 = vor.u32 %v7630_v37, %v7053_v14  ;;  %v7037_v46 = vld [vmem:[#allocation3 + $0x11d8] sm:$0xf0] }
 0x22e   :  { %4432 = vmatpush.bf16.msra.mxu1 %v6224_v54  ;;  %4445 = vmatpush.bf16.msra.mxu2 %v6352_v25  ;;  %v6432_v54 = vor.u32 %v7474_v15, %v6429_v17  ;;  %v6672_v25 = vor.u32 %v7534_v20, %v6669_v24  ;;  %v7594_v45 = vld [vmem:[#allocation3 + $0x10cc] sm:$0xf]  ;;  %v6784_v21 = vor.u32 %v7562_v42, %v6781_v44  ;;  %v6765_v0 = vld [vmem:[#allocation3 + $0xfb8] sm:$0xf0] }
 0x22f   :  { %4458 = vmatpush.bf16.msra.mxu3 %v6480_v40  ;;  %v6653_v40 = vld [vmem:[#allocation3 + $0xed8] sm:$0xf0]  ;;  %v7626_v55 = vld [vmem:[#allocation3 + $0x11cc] sm:$0xf] }
 0x230   :  { %4420 = vmatpush.bf16.msra.mxu0 %v6080_v39  ;;  %v6656_v53 = vor.u32 %v7530_v38, %v6653_v40  ;;  %v6912_v39 = vor.u32 %v7594_v45, %v6909_v32  ;;  %v7526_v56 = vld [vmem:[#allocation3 + $0xeac] sm:$0xf]  ;;  %v7040_v59 = vor.u32 %v7626_v55, %v7037_v46  ;;  %v7021_v4 = vld [vmem:[#allocation3 + $0x11b8] sm:$0xf0] }
 0x231   :  { %v7590_v23 = vld [vmem:[#allocation3 + $0x10ac] sm:$0xf]  ;;  %v7005_v10 = vld [vmem:[#allocation3 + $0x1198] sm:$0xf0] }
 0x232   :  { %4433 = vmatpush.bf16.msra.mxu1 %v6208_v18  ;;  %4446 = vmatpush.bf16.msra.mxu2 %v6336_v57  ;;  %v6637_v18 = vld [vmem:[#allocation3 + $0xeb8] sm:$0xf0]  ;;  %v7558_v57 = vld [vmem:[#allocation3 + $0xfac] sm:$0xf] }
 0x233   :  { %4459 = vmatpush.bf16.msra.mxu3 %v6464_v2  ;;  %v6893_v2 = vld [vmem:[#allocation3 + $0x10b8] sm:$0xf0]  ;;  %v7622_v3 = vld [vmem:[#allocation3 + $0x11ac] sm:$0xf]  ;;  %v6640_v6 = vor.u32 %v7526_v56, %v6637_v18  ;;  %v6768_v58 = vor.u32 %v7558_v57, %v6765_v0 }
 0x234   :  { %4421 = vmatpush.bf16.msra.mxu0 %v6064_v30  ;;  %v6896_v22 = vor.u32 %v7590_v23, %v6893_v2  ;;  %v7522_v30 = vld [vmem:[#allocation3 + $0xe8c] sm:$0xf]  ;;  %v7024_v7 = vor.u32 %v7622_v3, %v7021_v4  ;;  %v6605_v11 = vld [vmem:[#allocation3 + $0xe78] sm:$0xf0] }
 0x235   :  { %v7554_v60 = vld [vmem:[#allocation3 + $0xf8c] sm:$0xf]  ;;  %v6733_v28 = vld [vmem:[#allocation3 + $0xf78] sm:$0xf0] }
 0x236   :  { %4434 = vmatpush.bf16.msra.mxu1 %v6192_v19  ;;  %4447 = vmatpush.bf16.msra.mxu2 %v6320_v8  ;;  %v6749_v19 = vld [vmem:[#allocation3 + $0xf98] sm:$0xf0]  ;;  %v7586_v8 = vld [vmem:[#allocation3 + $0x108c] sm:$0xf] }
 0x237   :  { %4460 = vmatpush.bf16.msra.mxu3 %v6448_v27  ;;  %v6752_v13 = vor.u32 %v7554_v60, %v6749_v19  ;;  %v7518_v17 = vld [vmem:[#allocation3 + $0xe6c] sm:$0xf]  ;;  %v6861_v52 = vld [vmem:[#allocation3 + $0x1078] sm:$0xf0] }
 0x238   :  { %4422 = vmatpush.bf16.msra.mxu0 %v6048_v63  ;;  %v4216_v9 = vpop.f32.mrf.mxu0  ;;  %v7550_v20 = vld [vmem:[#allocation3 + $0xf6c] sm:$0xf]  ;;  %v6989_v34 = vld [vmem:[#allocation3 + $0x1178] sm:$0xf0] }
 0x239   :  { %v7582_v63 = vld [vmem:[#allocation3 + $0x106c] sm:$0xf]  ;;  %v6589_v14 = vld [vmem:[#allocation3 + $0xe58] sm:$0xf0] }
 0x23a   :  { %4435 = vmatpush.bf16.msra.mxu1 %v6176_v35  ;;  %4448 = vmatpush.bf16.msra.mxu2 %v6304_v36  ;;  %v4229_v27 = vpop.f32.mrf.mxu1  ;;  %v7614_v29 = vld [vmem:[#allocation3 + $0x116c] sm:$0xf]  ;;  %v6608_v35 = vor.u32 %v7518_v17, %v6605_v11  ;;  %v6864_v36 = vor.u32 %v7582_v63, %v6861_v52  ;;  %v6845_v40 = vld [vmem:[#allocation3 + $0x1058] sm:$0xf0]  ;;  %v7660_v11 = vld [vmem:[#allocation1 + $0x9] sm:$0xff] }
 0x23b   :  { %4461 = vmatpush.bf16.msra.mxu3 %v6432_v54  ;;  %4423 = vmatmul.bf16.vlgmr.msra.gmra.mxu0 %v7852_v12  ;;  %v6621_v12 = vld [vmem:[#allocation3 + $0xe98] sm:$0xf0]  ;;  %v7514_v37 = vld [vmem:[#allocation3 + $0xe4c] sm:$0xf] }
 0x23c   :  { %4467 = vmatpush.bf16.msrb.mxu0 %v6672_v25  ;;  %v6624_v33 = vor.u32 %v7522_v30, %v6621_v12  ;;  %v7546_v54 = vld [vmem:[#allocation3 + $0xf4c] sm:$0xf]  ;;  %v6992_v25 = vor.u32 %v7614_v29, %v6989_v34  ;;  %v6973_v45 = vld [vmem:[#allocation3 + $0x1158] sm:$0xf0]  ;;  %v6592_v55 = vor.u32 %v7514_v37, %v6589_v14 }
 0x23d   :  { %4449 = vmatmul.bf16.vlgmr.msra.gmra.mxu2 %v7862_v47  ;;  %4436 = vmatmul.bf16.vlgmr.msra.gmra.mxu1 %v7856_v16  ;;  %v6877_v47 = vld [vmem:[#allocation3 + $0x1098] sm:$0xf0]  ;;  %v7618_v16 = vld [vmem:[#allocation3 + $0x118c] sm:$0xf] }
 0x23e   :  { %4480 = vmatpush.bf16.msrb.mxu1 %v6800_v41  ;;  %4493 = vmatpush.bf16.msrb.mxu2 %v6928_v26  ;;  %v6880_v15 = vor.u32 %v7586_v8, %v6877_v47  ;;  %v7008_v24 = vor.u32 %v7618_v16, %v7005_v10  ;;  %v6717_v26 = vld [vmem:[#allocation3 + $0xf58] sm:$0xf0]  ;;  %v7578_v38 = vld [vmem:[#allocation3 + $0x104c] sm:$0xf] }
 0x23f   :  { %4506 = vmatpush.bf16.msrb.mxu3 %v7056_v43  ;;  %v7610_v44 = vld [vmem:[#allocation3 + $0x114c] sm:$0xf]  ;;  %v6573_v18 = vld [vmem:[#allocation3 + $0xe38] sm:$0xf0] }
 0x240   :  { %4462 = vmatmul.bf16.vlgmr.msra.gmra.mxu3 %v7866_v49  ;;  %4468 = vmatpush.bf16.msrb.mxu0 %v6656_v53  ;;  %v4217_v49 = vadd.f32 %v4216_v9, %v8021_v1  ;;  %v6736_v1 = vor.u32 %v7550_v20, %v6733_v28  ;;  %v4242_v41 = vpop.f32.mrf.mxu2  ;;  %v4218_v32 = vpop.f32.mrf.mxu0  ;;  %v7510_v56 = vld [vmem:[#allocation3 + $0xe2c] sm:$0xf]  ;;  %v6701_v0 = vld [vmem:[#allocation3 + $0xf38] sm:$0xf0] }
 0x241   :  { %v7542_v57 = vld [vmem:[#allocation3 + $0xf2c] sm:$0xf]  ;;  %v6829_v2 = vld [vmem:[#allocation3 + $0x1038] sm:$0xf0] }
 0x242   :  { %4481 = vmatpush.bf16.msrb.mxu1 %v6784_v21  ;;  %4494 = vmatpush.bf16.msrb.mxu2 %v6912_v39  ;;  %v4230_v5 = vadd.f32 %v4229_v27, %v4217_v49  ;;  %v4231_v46 = vpop.f32.mrf.mxu1  ;;  %v6720_v21 = vor.u32 %v7546_v54, %v6717_v26  ;;  %v6848_v39 = vor.u32 %v7578_v38, %v6845_v40  ;;  %v7574_v23 = vld [vmem:[#allocation3 + $0x102c] sm:$0xf]  ;;  %v6957_v4 = vld [vmem:[#allocation3 + $0x1138] sm:$0xf0] }
 0x243   :  { %4507 = vmatpush.bf16.msrb.mxu3 %v7040_v59  ;;  %v4255_v43 = vpop.f32.mrf.mxu3  ;;  %v6976_v59 = vor.u32 %v7610_v44, %v6973_v45  ;;  %v7606_v3 = vld [vmem:[#allocation3 + $0x112c] sm:$0xf]  ;;  %v6557_v12 = vld [vmem:[#allocation3 + $0xe18] sm:$0xf0] }
 0x244   :  { %4469 = vmatpush.bf16.msrb.mxu0 %v6640_v6  ;;  %v4243_v42 = vadd.f32 %v4242_v41, %v4230_v5  ;;  %v6576_v6 = vor.u32 %v7510_v56, %v6573_v18  ;;  %v7506_v30 = vld [vmem:[#allocation3 + $0xe0c] sm:$0xf]  ;;  %v6685_v19 = vld [vmem:[#allocation3 + $0xf18] sm:$0xf0] }
 0x245   :  { %v7538_v60 = vld [vmem:[#allocation3 + $0xf0c] sm:$0xf]  ;;  %v6813_v47 = vld [vmem:[#allocation3 + $0x1018] sm:$0xf0] }
 0x246   :  { %4482 = vmatpush.bf16.msrb.mxu1 %v6768_v58  ;;  %4495 = vmatpush.bf16.msrb.mxu2 %v6896_v22  ;;  %v4256_v53 = vadd.f32 %v4255_v43, %v4243_v42  ;;  %v6704_v58 = vor.u32 %v7542_v57, %v6701_v0  ;;  %v6832_v22 = vor.u32 %v7574_v23, %v6829_v2  ;;  %v7570_v8 = vld [vmem:[#allocation3 + $0x100c] sm:$0xf]  ;;  %v6941_v10 = vld [vmem:[#allocation3 + $0x1118] sm:$0xf0] }
 0x247   :  { %4508 = vmatpush.bf16.msrb.mxu3 %v7024_v7  ;;  %v6960_v7 = vor.u32 %v7606_v3, %v6957_v4  ;;  %v7602_v16 = vld [vmem:[#allocation3 + $0x110c] sm:$0xf]  ;;  %v6688_v27 = vor.u32 %v7538_v60, %v6685_v19  ;;  %v7659_v17 = vld [vmem:[#allocation1] sm:$0xff] }
 0x248   :  { %4470 = vmatpush.bf16.msrb.mxu0 %v6624_v33  ;;  %v4244_v9 = vpop.f32.mrf.mxu2  ;;  %v6560_v33 = vor.u32 %v7506_v30, %v6557_v12 }
 0x24a   :  { %4483 = vmatpush.bf16.msrb.mxu1 %v6752_v13  ;;  %4496 = vmatpush.bf16.msrb.mxu2 %v6880_v15  ;;  %v6816_v13 = vor.u32 %v7570_v8, %v6813_v47  ;;  %v6944_v15 = vor.u32 %v7602_v16, %v6941_v10 }
 0x24b   :  { %4509 = vmatpush.bf16.msrb.mxu3 %v7008_v24  ;;  %v4257_v49 = vpop.f32.mrf.mxu3 }
 0x24c   :  { %4471 = vmatpush.bf16.msrb.mxu0 %v6608_v35 }
 0x24e   :  { %4484 = vmatpush.bf16.msrb.mxu1 %v6736_v1  ;;  %4497 = vmatpush.bf16.msrb.mxu2 %v6864_v36 }
 0x24f   :  { %4510 = vmatpush.bf16.msrb.mxu3 %v6992_v25 }
 0x250   :  { %4472 = vmatpush.bf16.msrb.mxu0 %v6592_v55 }
 0x252   :  { %4485 = vmatpush.bf16.msrb.mxu1 %v6720_v21  ;;  %4498 = vmatpush.bf16.msrb.mxu2 %v6848_v39 }
 0x253   :  { %4511 = vmatpush.bf16.msrb.mxu3 %v6976_v59 }
 0x254   :  { %4473 = vmatpush.bf16.msrb.mxu0 %v6576_v6 }
 0x256   :  { %4486 = vmatpush.bf16.msrb.mxu1 %v6704_v58  ;;  %4499 = vmatpush.bf16.msrb.mxu2 %v6832_v22 }
 0x257   :  { %4512 = vmatpush.bf16.msrb.mxu3 %v6960_v7 }
 0x258   :  { %4474 = vmatpush.bf16.msrb.mxu0 %v6560_v33  ;;  %v4268_v20 = vpop.f32.mrf.mxu0 }
 0x259   :  { %v4269_v24 = vadd.f32 %v4268_v20, %v4256_v53 }
 0x25a   :  { %4487 = vmatpush.bf16.msrb.mxu1 %v6688_v27  ;;  %4500 = vmatpush.bf16.msrb.mxu2 %v6816_v13  ;;  %v4281_v5 = vpop.f32.mrf.mxu1 }
 0x25b   :  { %4513 = vmatpush.bf16.msrb.mxu3 %v6944_v15  ;;  %4475 = vmatmul.bf16.vlgmr.msrb.gmra.mxu0 %v7864_v48  ;;  %v4282_v28 = vadd.f32 %v4281_v5, %v4269_v24 }
 0x25d   :  { %4488 = vmatmul.bf16.vlgmr.msrb.gmra.mxu1 %v7868_v50  ;;  %4501 = vmatmul.bf16.vlgmr.msrb.gmra.mxu2 %v7659_v17  ;;  %v4534_v56 = vsel %vm4519_vm0, %v4282_v28, 0.0 }
 0x25e   :  { %4514 = vmatmul.bf16.vlgmr.msrb.gmra.mxu3 %v7660_v11  ;;  %v4535_v18 = vrot.slane %v4534_v56, 4 }
 0x260   :  { %v4294_v63 = vpop.f32.mrf.mxu2  ;;  %v4270_v29 = vpop.f32.mrf.mxu0  ;;  %v4536_v57 = vadd.f32 %v4535_v18, %v4534_v56 }
 0x262   :  { %v4283_v35 = vpop.f32.mrf.mxu1  ;;  %v4537_v59 = vrot.slane %v4536_v57, 2 }
 0x263   :  { %v4307_v52 = vpop.f32.mrf.mxu3 }
 0x264   :  { %v4308_v34 = vadd.f32 %v4307_v52, %v4294_v63  ;;  %v4538_v2 = vadd.f32 %v4537_v59, %v4536_v57 }
 0x266   :  { %v4539_v6 = vrot.slane %v4538_v2, 1 }
 0x268   :  { %v4296_v1 = vpop.f32.mrf.mxu2  ;;  %v4540_v60 = vadd.f32 %v4539_v6, %v4538_v2 }
 0x26a   :  { %v4557_v8 = vmul.f32 %v7941_v62, %v4540_v60 }
 0x26b   :  { %v4309_v36 = vpop.f32.mrf.mxu3 }
 0x26c   :  { %v8032_v10 = vsub.f32 %v4282_v28, %v4557_v8 }
 0x26e   :  { %v4565_v33 = vmul.f32 %v8032_v10, %v8032_v10 }
 0x270   :  { %v4581_v13 = vsel %vm4519_vm0, %v4565_v33, 0.0 }
 0x271   :  { %v4582_v20 = vrot.slane %v4581_v13, 4 }
 0x273   :  { %v4583_v5 = vadd.f32 %v4582_v20, %v4581_v13 }
 0x275   :  { %v4584_v1 = vrot.slane %v4583_v5, 2 }
 0x278   :  { %v4320_v37 = vpop.f32.mrf.mxu0 }
 0x279   :  { %v4321_v14 = vadd.f32 %v4320_v37, %v4308_v34 }
 0x27a   :  { %v4333_v48 = vpop.f32.mrf.mxu1 }
 0x27b   :  { %v4334_v54 = vadd.f32 %v4333_v48, %v4321_v14  ;;  %v4585_v48 = vadd.f32 %v4584_v1, %v4583_v5 }
 0x280   :  { %v4346_v50 = vpop.f32.mrf.mxu2  ;;  %v4322_v38 = vpop.f32.mrf.mxu0 }
 0x281   :  { %v4347_v25 = vadd.f32 %v4346_v50, %v4334_v54 }
 0x282   :  { %v4335_v40 = vpop.f32.mrf.mxu1 }
 0x283   :  { %v4359_v41 = vpop.f32.mrf.mxu3 }
 0x284   :  { %v4360_v26 = vadd.f32 %v4359_v41, %v4347_v25 }
 0x288   :  { %v4348_v42 = vpop.f32.mrf.mxu2 }
 0x28b   :  { %v4361_v43 = vpop.f32.mrf.mxu3 }
 0x298   :  { %v4372_v44 = vpop.f32.mrf.mxu0 }
 0x299   :  { %v4373_v3 = vadd.f32 %v4372_v44, %v4360_v26  ;;  %v4586_v26 = vrot.slane %v4585_v48, 1 }
 0x29a   :  { %v4385_v45 = vpop.f32.mrf.mxu1 }
 0x29b   :  { %v4386_v12 = vadd.f32 %v4385_v45, %v4373_v3  ;;  %v4587_v42 = vadd.f32 %v4586_v26, %v4585_v48 }
 0x29d   :  { %v4597_v45 = vmul.f32 %v4587_v42, %v7941_v62 }
 0x2a0   :  { %v4398_v32 = vpop.f32.mrf.mxu2  ;;  %v4374_v46 = vpop.f32.mrf.mxu0 }
 0x2a1   :  { %v4399_v7 = vadd.f32 %v4398_v32, %v4386_v12  ;;  %v4601_v46 = vadd.f32 1e-05, %v4597_v45 }
 0x2a2   :  { %v4387_v53 = vpop.f32.mrf.mxu1 }
 0x2a3   :  { %v4411_v55 = vpop.f32.mrf.mxu3  ;;  %7647 = vrsqrt.f32 %v4601_v46  ;;  %vm4629_vm10 = vweird.f32 %v4601_v46 }
 0x2a4   :  { %v4412_v9 = vadd.f32 %v4411_v55, %v4399_v7 }
 0x2a8   :  { %v4400_v21 = vpop.f32.mrf.mxu2 }
 0x2a9   :  { %v7648_v57 = vpop.eup %7647 }
 0x2aa   :  { %vm4630_vm9 = vweird.f32 %v7648_v57 }
 0x2ab   :  { %v4413_v39 = vpop.f32.mrf.mxu3  ;;  %vm4631_vm12 = vmor %vm4629_vm10, %vm4630_vm9 }
 0x2b8   :  { %v4424_v0 = vpop.f32.mrf.mxu0 }
 0x2b9   :  { %v4425_v16 = vadd.f32 %v4424_v0, %v4412_v9 }
 0x2ba   :  { %v4437_v23 = vpop.f32.mrf.mxu1 }
 0x2bb   :  { %v4438_v49 = vadd.f32 %v4437_v23, %v4425_v16  ;;  %v4624_v23 = vmul.f32 %v7648_v57, %v4601_v46 }
 0x2c0   :  { %v4450_v4 = vpop.f32.mrf.mxu2  ;;  %v4426_v22 = vpop.f32.mrf.mxu0 }
 0x2c1   :  { %v4451_v27 = vadd.f32 %v4450_v4, %v4438_v49  ;;  %v4625_v4 = vmul.f32 %v7648_v57, %v4624_v23  ;;  %v4643_v49 = vld [vmem:[#allocation5] sm:$0xf] }
 0x2c2   :  { %v4439_v30 = vpop.f32.mrf.mxu1 }
 0x2c3   :  { %v4463_v58 = vpop.f32.mrf.mxu3  ;;  %v4626_v6 = vmul.f32 0.5, %v4625_v4 }
 0x2c4   :  { %v4464_v15 = vadd.f32 %v4463_v58, %v4451_v27  ;;  %v4671_v27 = vld [vmem:[#allocation7] sm:$0xf] }
 0x2c5   :  { %v4627_v22 = vsub.f32 1.5, %v4626_v6  ;;  %v4674_v20 = vperm.slane %v4671_v27, 1 }
 0x2c7   :  { %v4628_v60 = vmul.f32 %v7648_v57, %v4627_v22 }
 0x2c8   :  { %v4452_v19 = vpop.f32.mrf.mxu2 }
 0x2c9   :  { %v4632_v8 = vsel %vm4631_vm12, %v7648_v57, %v4628_v60 }
 0x2ca   :  { %v4649_v9 = vrot.slane %v4632_v8, 6 }
 0x2cb   :  { %v4465_v47 = vpop.f32.mrf.mxu3 }
 0x2d8   :  { %v4476_v17 = vpop.f32.mrf.mxu0 }
 0x2d9   :  { %v4477_v24 = vadd.f32 %v4476_v17, %v4464_v15  ;;  %v4676_v17 = vperm.slane %v4671_v27, 3 }
 0x2da   :  { %v4489_v11 = vpop.f32.mrf.mxu1 }
 0x2db   :  { %v4490_v63 = vadd.f32 %v4489_v11, %v4477_v24  ;;  %v4673_v11 = vperm.slane %v4671_v27, 0  ;;  %v4675_v24 = vperm.slane %v4671_v27, 2 }
 0x2e0   :  { %v4502_v52 = vpop.f32.mrf.mxu2  ;;  %v4478_v35 = vpop.f32.mrf.mxu0 }
 0x2e1   :  { %v4503_v29 = vadd.f32 %v4502_v52, %v4490_v63  ;;  %v4515_v34 = vpop.f32.mrf.mxu3 }
 0x2e2   :  { %v4491_v28 = vpop.f32.mrf.mxu1 }
 0x2e3   :  { %v4516_v36 = vadd.f32 %v4515_v34, %v4503_v29 }
 0x2e5   :  { %v4541_v37 = vsel %vm4519_vm0, %v4516_v36, 0.0 }
 0x2e6   :  { %v4542_v14 = vrot.slane %v4541_v37, 4 }
 0x2e8   :  { %v4543_v54 = vadd.f32 %v4542_v14, %v4541_v37  ;;  %v4504_v50 = vpop.f32.mrf.mxu2 }
 0x2e9   :  { %v4517_v25 = vpop.f32.mrf.mxu3 }
 0x2ea   :  { %v4544_v41 = vrot.slane %v4543_v54, 2 }
 0x2ec   :  { %v4545_v38 = vadd.f32 %v4544_v41, %v4543_v54 }
 0x2ee   :  { %v4546_v40 = vrot.slane %v4545_v38, 1 }
 0x2f0   :  { %v4547_v43 = vadd.f32 %v4546_v40, %v4545_v38 }
 0x2f2   :  { %v4558_v44 = vmul.f32 %v7941_v62, %v4547_v43 }
 0x2f4   :  { %v4562_v32 = vsub.f32 %v4516_v36, %v4558_v44  ;;  %v4697_v36 = vld [vmem:[#allocation8] sm:$0xf] }
 0x2f5   :  { %v4699_v54 = vperm.slane %v4697_v36, 0  ;;  %v4700_v50 = vperm.slane %v4697_v36, 1  ;;  %v4701_v25 = vperm.slane %v4697_v36, 2  ;;  %v4702_v40 = vperm.slane %v4697_v36, 3 }
 0x2f6   :  { %v4566_v55 = vmul.f32 %v4562_v32, %v4562_v32 }
 0x2f8   :  { %v4588_v53 = vsel %vm4519_vm0, %v4566_v55, 0.0 }
 0x2f9   :  { %v4589_v21 = vrot.slane %v4588_v53, 4 }
 0x2fb   :  { %v4590_v39 = vadd.f32 %v4589_v21, %v4588_v53 }
 0x2fd   :  { %v4591_v56 = vrot.slane %v4590_v39, 2 }
 0x2ff   :  { %v4592_v18 = vadd.f32 %v4591_v56, %v4590_v39 }
 0x301   :  { %v4593_v59 = vrot.slane %v4592_v18, 1 }
 0x303   :  { %v4594_v0 = vadd.f32 %v4593_v59, %v4592_v18  ;;  %v7640_v59 = vld [vmem:[#allocation2] ss:$0 sm:$0xff] }
 0x305   :  { %v4598_v2 = vmul.f32 %v4594_v0, %v7941_v62 }
 0x307   :  { %v4602_v3 = vadd.f32 1e-05, %v4598_v2 }
 0x309   :  { %7649 = vrsqrt.f32 %v4602_v3  ;;  %vm4639_vm13 = vweird.f32 %v4602_v3 }
 0x30f   :  { %v7650_v58 = vpop.eup %7649 }
 0x310   :  { %v4634_v30 = vmul.f32 %v7650_v58, %v4602_v3  ;;  %vm4640_vm11 = vweird.f32 %v7650_v58 }
 0x311   :  { %vm4641_vm14 = vmor %vm4639_vm13, %vm4640_vm11 }
 0x312   :  { %v4635_v12 = vmul.f32 %v7650_v58, %v4634_v30 }
 0x314   :  { %v4636_v7 = vmul.f32 0.5, %v4635_v12 }
 0x316   :  { %v4637_v19 = vsub.f32 1.5, %v4636_v7 }
 0x318   :  { %v4638_v47 = vmul.f32 %v7650_v58, %v4637_v19 }
 0x31a   :  { %v4642_v62 = vsel %vm4641_vm14, %v7650_v58, %v4638_v47 }
 0x31b   :  { %v4650_v16 = vrot.slane %v4642_v62, 5 }
 0x31d   :  { %v4654_v33 = vsel %vm4653_vm15, %v4649_v9, %v4650_v16 }
 0x31e   :  { %v4655_v13 = vsel %vm4519_vm0, %v8012_v51, %v4654_v33 }
 0x31f   :  { %v4657_v15 = vmul.f32 %v4655_v13, %v4643_v49 }
 0x321   :  { %v4662_v5 = vperm.slane %v4657_v15, 3  ;;  %v4659_v63 = vperm.slane %v4657_v15, 0  ;;  %v4660_v52 = vperm.slane %v4657_v15, 1  ;;  %v4661_v29 = vperm.slane %v4657_v15, 2 }
 0x323   :  { %v4670_v34 = vmul.f32 %v4662_v5, %v4562_v32  ;;  %v4667_v35 = vmul.f32 %v4659_v63, %v7945_v31  ;;  %v4668_v28 = vmul.f32 %v4660_v52, %v7963_v61  ;;  %v4669_v1 = vmul.f32 %v4661_v29, %v8032_v10 }
 0x325   :  { %v4684_v37 = vadd.f32 %v4676_v17, %v4670_v34  ;;  %v4681_v14 = vadd.f32 %v4673_v11, %v4667_v35  ;;  %v4682_v51 = vadd.f32 %v4674_v20, %v4668_v28  ;;  %v4683_v48 = vadd.f32 %v4675_v24, %v4669_v1 }
 0x327   :  { %vm4685_vm1 = vcmp.ge.f32.partialorder %v4681_v14, 0.0  ;;  %vm4686_vm2 = vcmp.ge.f32.partialorder %v4682_v51, 0.0  ;;  %vm4687_vm3 = vcmp.ge.f32.partialorder %v4683_v48, 0.0  ;;  %vm4688_vm4 = vcmp.ge.f32.partialorder %v4684_v37, 0.0 }
 0x328   :  { %v4689_v41 = vmul.f32 0.2, %v4681_v14  ;;  %v4690_v26 = vmul.f32 0.2, %v4682_v51  ;;  %v4691_v38 = vmul.f32 0.2, %v4683_v48 }
 0x329   :  { %v4692_v31 = vmul.f32 0.2, %v4684_v37 }
 0x32a   :  { %v4693_v61 = vsel %vm4685_vm1, %v4681_v14, %v4689_v41  ;;  %v4694_v42 = vsel %vm4686_vm2, %v4682_v51, %v4690_v26  ;;  %v4695_v10 = vsel %vm4687_vm3, %v4683_v48, %v4691_v38 }
 0x32b   :  { %v4696_v43 = vsel %vm4688_vm4, %v4684_v37, %v4692_v31  ;;  %v4707_v44 = vmul.f32 %v4699_v54, %v4693_v61  ;;  %v4708_v45 = vmul.f32 %v4700_v50, %v4694_v42  ;;  %v4709_v32 = vmul.f32 %v4701_v25, %v4695_v10 }
 0x32c   :  { %v4710_v55 = vmul.f32 %v4702_v40, %v4696_v43 }
 0x32d   :  { %v4711_v46 = vsel %vm4519_vm0, %v4707_v44, 0.0  ;;  %v4712_v53 = vsel %vm4519_vm0, %v4708_v45, 0.0  ;;  %v4714_v39 = vsel %vm4519_vm0, %v4709_v32, 0.0 }
 0x32e   :  { %v4713_v21 = vadd.f32 %v4712_v53, %v4711_v46  ;;  %v4716_v18 = vsel %vm4519_vm0, %v4710_v55, 0.0 }
 0x330   :  { %v4715_v56 = vadd.f32 %v4714_v39, %v4713_v21 }
 0x332   :  { %v4717_v57 = vadd.f32 %v4716_v18, %v4715_v56 }
 0x334   :  { %4718 = vadd.xlane.f32.xlu0 %v4717_v57 }
 0x3a7   :  { %v4719_v0 = vpop.xlane.xlu0 %4718 }
 0x3a8   :  { %v4724_v23 = vadd.f32 %v7640_v59, %v4719_v0 }
 0x3aa   :  { %v4725_v2 = vsub.f32 0.0, %v4724_v23 }
 0x3ac   :  { %v4726_v3 = vmul.f32 1.442695, %v4725_v2 }
 0x3ae   :  { %7651 = vpow2.f32 %v4726_v3 }
 0x3b4   :  { %v7652_v4 = vpop.eup %7651 }
 0x3b5   :  { %v4728_v6 = vadd.f32 1.0, %v7652_v4 }
 0x3b7   :  { %7653 = vrcp.f32 %v4728_v6  ;;  %v4740_v12 = vand.u32 2147483648, %v4728_v6  ;;  %v4738_v7 = vand.u32 2147483647, %v4728_v6  ;;  %vm4734_vm0 = vweird.f32 %v4728_v6 }
 0x3b9   :  { %v4741_v8 = vor.u32 1.1754944e-38, %v4740_v12  ;;  %vm4739_vm8 = vcmp.eq.f32.partialorder %v4738_v7, 8.507059e+37 }
 0x3bd   :  { %v7654_v58 = vpop.eup %7653 }
 0x3be   :  { %v4730_v22 = vmul.f32 %v7654_v58, %v4728_v6  ;;  %vm4735_vm5 = vweird.f32 %v7654_v58 }
 0x3bf   :  { %vm4736_vm6 = vmor %vm4734_vm0, %vm4735_vm5 }
 0x3c0   :  { %v4731_v30 = vsub.f32 1.0, %v4730_v22 }
 0x3c2   :  { %v4732_v60 = vmul.f32 %v7654_v58, %v4731_v30 }
 0x3c4   :  { %v4733_v19 = vadd.f32 %v7654_v58, %v4732_v60 }
 0x3c6   :  { %v4737_v47 = vsel %vm4736_vm6, %v7654_v58, %v4733_v19 }
 0x3c7   :  { %v4742_v62 = vsel %vm4739_vm8, %v4741_v8, %v4737_v47 }
 0x3c8   :  { %4745 = vst.msk [vmem:[%s8060_s6] sm:$0x3] %vm4744_vm7, %v4742_v62 }
 0x3c9   :  { %4750 = vsyncpa [#allocation4], 1 }
 0x3ca   :  { %4751 = vsyncpa [#allocation6], 1 }
 0x3cb   :  { %4752 = vsyncpa [#allocation9], 1 }

</bundles_post_ra>
